<compile_context>
chip_gen: v7x
topology: tpu7x:2x2x1
jax: 0.10.0
libtpu: 0.0.40
codegen_flags: <defaults>
</compile_context>

<pallas_src>
import jax
import jax.numpy as jnp
from jax.experimental import pallas as pl
from jax.experimental.pallas import tpu as pltpu

# Network dims (from ValueNetwork.__init__)
H1, H2, H3, H_OUT = 2048, 512, 128, 1


def _round_up(n, m):
    return ((n + m - 1) // m) * m


def _cdiv(a, b):
    return -(-a // b)


def _max_batch_tile():
    """Generation-aware M-tile cap: 512 on v6e/v7x, 256 on v5e."""
    try:
        kind = jax.devices()[0].device_kind.lower()
        if "v5 lite" in kind or "v5e" in kind or "v5litepod" in kind:
            return 256
    except Exception:
        pass
    return 512


def _choose_tiling(B, batch_tile):
    """Returns (batch_tile, padded_batch)."""
    if batch_tile is not None:
        assert batch_tile % 8 == 0
        return batch_tile, _round_up(B, batch_tile)
    if B <= 512:
        # Weight-DMA-bound regime: one grid step -> weights fetched once and, on
        # v7x, only one TensorCore pulls the ~10 MiB of weights.
        bt = max(128, _round_up(B, 128))
        return bt, bt
    # Compute-bound regime: large M tiles, even step count so both v7x
    # TensorCores get equal work under "parallel" semantics.
    cap = _max_batch_tile()
    n_steps = max(2, 2 * _cdiv(B, 2 * cap))
    bt = _round_up(_cdiv(B, n_steps), 128)
    return bt, n_steps * bt


def _mlp_kernel(x_ref, w1_ref, b1_ref, w2_ref, b2_ref,
                w3_ref, b3_ref, w4_ref, b4_ref, o_ref):
    # layer1: x cast to bf16 in-kernel (cheap VPU cast hidden under the MXU);
    # accumulation stays f32 via preferred_element_type.
    h = jnp.dot(x_ref[...].astype(jnp.bfloat16), w1_ref[...],
                preferred_element_type=jnp.float32)
    h = jnp.maximum(h + b1_ref[...], 0.0)
    # layer2 (activation recast to bf16 to feed the MXU)
    h = jnp.dot(h.astype(jnp.bfloat16), w2_ref[...],
                preferred_element_type=jnp.float32)
    h = jnp.maximum(h + b2_ref[...], 0.0)
    # layer3
    h = jnp.dot(h.astype(jnp.bfloat16), w3_ref[...],
                preferred_element_type=jnp.float32)
    h = jnp.maximum(h + b3_ref[...], 0.0)            # (batch_tile, 128) f32
    # head (128 -> 1) on VPU/XLU, stored lane-dense: transpose so batch sits on
    # lanes, multiply by the f32 weight column and reduce across sublanes.
    h_t = h.T                                         # (128, batch_tile), XLU
    out_row = jnp.sum(h_t * w4_ref[...], axis=0, keepdims=True) + b4_ref[...]
    o_ref[...] = out_row.reshape(o_ref.shape).astype(o_ref.dtype)


def _build_call(n_space, batch_tile, n_steps, single_buffer_weights):
    def const_spec(shape):
        # Constant index map: same block every grid step (never re-fetched).
        if single_buffer_weights:
            return pl.BlockSpec(shape, lambda i: (0,) * len(shape),
                                pipeline_mode=pl.Buffered(1))
        return pl.BlockSpec(shape, lambda i: (0,) * len(shape))

    # Single-step grids are marked "arbitrary" so a v7x megacore does not
    # duplicate the weight DMA into both TensorCores; multi-step grids split
    # batch tiles across cores.
    sem = "arbitrary" if n_steps == 1 else "parallel"

    return pl.pallas_call(
        _mlp_kernel,
        out_shape=jax.ShapeDtypeStruct((n_steps, 1, batch_tile), jnp.float32),
        grid_spec=pltpu.PrefetchScalarGridSpec(
            num_scalar_prefetch=0,
            grid=(n_steps,),
            in_specs=[
                pl.BlockSpec((batch_tile, n_space), lambda i: (i, 0)),  # x tile
                const_spec((n_space, H1)), const_spec((1, H1)),
                const_spec((H1, H2)),      const_spec((1, H2)),
                const_spec((H2, H3)),      const_spec((1, H3)),
                const_spec((H3, H_OUT)),   const_spec((1, H_OUT)),
            ],
            out_specs=pl.BlockSpec((1, 1, batch_tile), lambda i: (i, 0, 0)),
        ),
        compiler_params=pltpu.CompilerParams(
            dimension_semantics=(sem,),
            vmem_limit_bytes=48 << 20,   # headroom on v7x's 64 MiB per-TC VMEM
        ),
    )


def value_network_forward(x, prepared_params, *, batch_tile=None):
    """x: (B, n_space) float32; prepared_params from prepare_params().
    Returns (B, 1) float32."""
    w1, b1, w2, b2, w3, b3, w4, b4 = prepared_params
    B, n_space = x.shape
    assert w1.shape[0] == n_space

    batch_tile, B_pad = _choose_tiling(B, batch_tile)
    n_steps = B_pad // batch_tile

    x_p = x if B_pad == B else jnp.pad(x, ((0, B_pad - B), (0, 0)))
    args = (x_p, w1, b1, w2, b2, w3, b3, w4, b4)

    try:
        out = _build_call(n_space, batch_tile, n_steps, True)(*args)
    except Exception:
        # pl.Buffered pipeline_mode unavailable/rejected: default double-buffering.
        out = _build_call(n_space, batch_tile, n_steps, False)(*args)

    out = out.reshape(B_pad, 1)          # (n_steps, 1, bt) -> (B_pad, 1)
    return out[:B] if B_pad != B else out


def init_params(key, n_space):
    """Deterministic f32 init mirroring nn.Linear; W stored (in, out) so the
    forward is x @ W + b == PyTorch's x @ W.T + b."""
    ks = jax.random.split(key, 8)

    def linear(kw, kb, fan_in, fan_out):
        bound = 1.0 / jnp.sqrt(fan_in)
        w = jax.random.uniform(kw, (fan_in, fan_out), jnp.float32, -bound, bound)
        b = jax.random.uniform(kb, (1, fan_out), jnp.float32, -bound, bound)
        return w, b

    w1, b1 = linear(ks[0], ks[1], n_space, H1)
    w2, b2 = linear(ks[2], ks[3], H1, H2)
    w3, b3 = linear(ks[4], ks[5], H2, H3)
    w4, b4 = linear(ks[6], ks[7], H3, H_OUT)
    return (w1, b1, w2, b2, w3, b3, w4, b4)


def prepare_params(params_f32):
    """One-time conversion to the kernel's dtypes/layout.  Call once at init /
    after a weight update, NOT per forward call (avoids per-call cast traffic)."""
    w1, b1, w2, b2, w3, b3, w4, b4 = params_f32
    return (w1.astype(jnp.bfloat16), b1.astype(jnp.float32),
            w2.astype(jnp.bfloat16), b2.astype(jnp.float32),
            w3.astype(jnp.bfloat16), b3.astype(jnp.float32),
            w4.astype(jnp.float32).reshape(H3, H_OUT),   # head stays f32 (VPU)
            b4.astype(jnp.float32).reshape(1, H_OUT))


def _reference_f32(x, params):
    """Pure-f32 reference (module semantics)."""
    w1, b1, w2, b2, w3, b3, w4, b4 = params
    h = jnp.maximum(x @ w1 + b1, 0.0)
    h = jnp.maximum(h @ w2 + b2, 0.0)
    h = jnp.maximum(h @ w3 + b3, 0.0)
    return h @ w4 + b4


def _reference_bf16(x, params):
    """Reference emulating the kernel's bf16 MXU inputs (f32 accumulation)."""
    w1, b1, w2, b2, w3, b3, w4, b4 = params
    bf = lambda a: a.astype(jnp.bfloat16).astype(jnp.float32)
    h = jnp.maximum(bf(x) @ bf(w1) + b1, 0.0)
    h = jnp.maximum(bf(h) @ bf(w2) + b2, 0.0)
    h = jnp.maximum(bf(h) @ bf(w3) + b3, 0.0)
    return h @ w4 + b4


if __name__ == "__main__":
    key = jax.random.PRNGKey(0)
    k_x, k_p, k_x2 = jax.random.split(key, 3)

    batch, n_space = 8, 128
    x = jax.random.normal(k_x, (batch, n_space), dtype=jnp.float32)
    params_f32 = init_params(k_p, n_space)
    params = prepare_params(params_f32)     # one-time bf16 weight conversion

    out = jax.block_until_ready(value_network_forward(x, params))
    assert out.shape == (batch, 1)

    # Tight check vs a bf16-matched reference (same numerics as the kernel).
    ref_bf = _reference_bf16(x, params_f32)
    assert jnp.allclose(out, ref_bf, atol=2e-3, rtol=2e-3), "mismatch vs bf16-matched reference"
    # Loose check vs the pure-f32 module semantics (bf16 MXU rounding only).
    ref_f32 = _reference_f32(x, params_f32)
    assert jnp.allclose(out, ref_f32, atol=5e-2, rtol=5e-2), "mismatch vs f32 reference"

    # Exercise ragged batch + multi-step grid (padding + "parallel" path).
    x2 = jax.random.normal(k_x2, (200, n_space), dtype=jnp.float32)
    out2 = jax.block_until_ready(value_network_forward(x2, params, batch_tile=128))
    assert out2.shape == (200, 1)
    assert jnp.allclose(out2, _reference_bf16(x2, params_f32), atol=2e-3, rtol=2e-3)

    print("KERNEL_OK")
</pallas_src>

<mosaic_0001>
module attributes {stable_mosaic.version = 11 : i64} {
  func.func @_mlp_kernel(%arg0: i32, %arg1: memref<128x128xf32, #tpu.memory_space<vmem>>, %arg2: memref<128x2048xbf16, #tpu.memory_space<vmem>>, %arg3: memref<1x2048xf32, #tpu.memory_space<vmem>>, %arg4: memref<2048x512xbf16, #tpu.memory_space<vmem>>, %arg5: memref<1x512xf32, #tpu.memory_space<vmem>>, %arg6: memref<512x128xbf16, #tpu.memory_space<vmem>>, %arg7: memref<1x128xf32, #tpu.memory_space<vmem>>, %arg8: memref<128x1xf32, #tpu.memory_space<vmem>>, %arg9: memref<1x1xf32, #tpu.memory_space<vmem>>, %arg10: memref<1x1x128xf32, #tpu.memory_space<vmem>>) attributes {dimension_semantics = [#tpu.dimension_semantics<arbitrary>], iteration_bounds = array<i64: 1>, scalar_prefetch = 0 : i64, scratch_operands = 0 : i64, tpu.core_type = #tpu.core_type<tc>, window_params = [{transform_indices = @transform_0, window_bounds = array<i64: 128, 128>}, {pipeline_mode = #tpu.pipeline_mode<synchronous>, transform_indices = @transform_1, window_bounds = array<i64: 128, 2048>}, {pipeline_mode = #tpu.pipeline_mode<synchronous>, transform_indices = @transform_2, window_bounds = array<i64: 1, 2048>}, {pipeline_mode = #tpu.pipeline_mode<synchronous>, transform_indices = @transform_3, window_bounds = array<i64: 2048, 512>}, {pipeline_mode = #tpu.pipeline_mode<synchronous>, transform_indices = @transform_4, window_bounds = array<i64: 1, 512>}, {pipeline_mode = #tpu.pipeline_mode<synchronous>, transform_indices = @transform_5, window_bounds = array<i64: 512, 128>}, {pipeline_mode = #tpu.pipeline_mode<synchronous>, transform_indices = @transform_6, window_bounds = array<i64: 1, 128>}, {pipeline_mode = #tpu.pipeline_mode<synchronous>, transform_indices = @transform_7, window_bounds = array<i64: 128, 1>}, {pipeline_mode = #tpu.pipeline_mode<synchronous>, transform_indices = @transform_8, window_bounds = array<i64: 1, 1>}, {transform_indices = @transform_9, window_bounds = array<i64: 1, 1, 128>}]} {
    %c0 = arith.constant 0 : index
    %c0_0 = arith.constant 0 : index
    %0 = vector.load %arg1[%c0, %c0_0] : memref<128x128xf32, #tpu.memory_space<vmem>>, vector<128x128xf32>
    %1 = arith.truncf %0 : vector<128x128xf32> to vector<128x128xbf16>
    %c0_1 = arith.constant 0 : index
    %c0_2 = arith.constant 0 : index
    %2 = vector.load %arg2[%c0_1, %c0_2] : memref<128x2048xbf16, #tpu.memory_space<vmem>>, vector<128x2048xbf16>
    %cst = arith.constant dense<0.000000e+00> : vector<128x2048xf32>
    %3 = tpu.matmul %1, %2, %cst {dimension_numbers = #tpu.dot_dimension_numbers<[1], [0], [0], [1], [0, 0, 1, 1], [], []>} : vector<128x128xbf16>, vector<128x2048xbf16>, vector<128x2048xf32> -> vector<128x2048xf32>
    %c0_3 = arith.constant 0 : index
    %c0_4 = arith.constant 0 : index
    %4 = vector.load %arg3[%c0_3, %c0_4] : memref<1x2048xf32, #tpu.memory_space<vmem>>, vector<1x2048xf32>
    %5 = vector.broadcast %4 : vector<1x2048xf32> to vector<128x2048xf32>
    %6 = arith.addf %3, %5 : vector<128x2048xf32>
    %cst_5 = arith.constant 0.000000e+00 : f32
    %7 = vector.broadcast %cst_5 : f32 to vector<128x2048xf32>
    %8 = arith.maximumf %6, %7 : vector<128x2048xf32>
    %9 = arith.truncf %8 : vector<128x2048xf32> to vector<128x2048xbf16>
    %c0_6 = arith.constant 0 : index
    %c0_7 = arith.constant 0 : index
    %10 = vector.load %arg4[%c0_6, %c0_7] : memref<2048x512xbf16, #tpu.memory_space<vmem>>, vector<2048x512xbf16>
    %cst_8 = arith.constant dense<0.000000e+00> : vector<128x512xf32>
    %11 = tpu.matmul %9, %10, %cst_8 {dimension_numbers = #tpu.dot_dimension_numbers<[1], [0], [0], [1], [0, 0, 1, 1], [], []>} : vector<128x2048xbf16>, vector<2048x512xbf16>, vector<128x512xf32> -> vector<128x512xf32>
    %c0_9 = arith.constant 0 : index
    %c0_10 = arith.constant 0 : index
    %12 = vector.load %arg5[%c0_9, %c0_10] : memref<1x512xf32, #tpu.memory_space<vmem>>, vector<1x512xf32>
    %13 = vector.broadcast %12 : vector<1x512xf32> to vector<128x512xf32>
    %14 = arith.addf %11, %13 : vector<128x512xf32>
    %cst_11 = arith.constant 0.000000e+00 : f32
    %15 = vector.broadcast %cst_11 : f32 to vector<128x512xf32>
    %16 = arith.maximumf %14, %15 : vector<128x512xf32>
    %17 = arith.truncf %16 : vector<128x512xf32> to vector<128x512xbf16>
    %c0_12 = arith.constant 0 : index
    %c0_13 = arith.constant 0 : index
    %18 = vector.load %arg6[%c0_12, %c0_13] : memref<512x128xbf16, #tpu.memory_space<vmem>>, vector<512x128xbf16>
    %cst_14 = arith.constant dense<0.000000e+00> : vector<128x128xf32>
    %19 = tpu.matmul %17, %18, %cst_14 {dimension_numbers = #tpu.dot_dimension_numbers<[1], [0], [0], [1], [0, 0, 1, 1], [], []>} : vector<128x512xbf16>, vector<512x128xbf16>, vector<128x128xf32> -> vector<128x128xf32>
    %c0_15 = arith.constant 0 : index
    %c0_16 = arith.constant 0 : index
    %20 = vector.load %arg7[%c0_15, %c0_16] : memref<1x128xf32, #tpu.memory_space<vmem>>, vector<1x128xf32>
    %21 = vector.broadcast %20 : vector<1x128xf32> to vector<128x128xf32>
    %22 = arith.addf %19, %21 : vector<128x128xf32>
    %cst_17 = arith.constant 0.000000e+00 : f32
    %23 = vector.broadcast %cst_17 : f32 to vector<128x128xf32>
    %24 = arith.maximumf %22, %23 : vector<128x128xf32>
    %25 = tpu.transpose %24, [1, 0] : vector<128x128xf32> -> vector<128x128xf32>
    %c0_18 = arith.constant 0 : index
    %c0_19 = arith.constant 0 : index
    %26 = vector.load %arg8[%c0_18, %c0_19] : memref<128x1xf32, #tpu.memory_space<vmem>>, vector<128x1xf32>
    %27 = vector.broadcast %26 : vector<128x1xf32> to vector<128x128xf32>
    %28 = arith.mulf %25, %27 : vector<128x128xf32>
    %cst_20 = arith.constant dense<0.000000e+00> : vector<128xf32>
    %29 = vector.multi_reduction <add>, %28, %cst_20 [0] : vector<128x128xf32> to vector<128xf32>
    %30 = vector.shape_cast %29 : vector<128xf32> to vector<1x128xf32>
    %c0_21 = arith.constant 0 : index
    %c0_22 = arith.constant 0 : index
    %31 = vector.load %arg9[%c0_21, %c0_22] : memref<1x1xf32, #tpu.memory_space<vmem>>, vector<1x1xf32>
    %32 = vector.broadcast %31 : vector<1x1xf32> to vector<1x128xf32>
    %33 = arith.addf %30, %32 : vector<1x128xf32>
    %34 = vector.shape_cast %33 : vector<1x128xf32> to vector<1x1x128xf32>
    %c0_23 = arith.constant 0 : index
    %c0_24 = arith.constant 0 : index
    %c0_25 = arith.constant 0 : index
    %35 = vector.load %arg10[%c0_23, %c0_24, %c0_25] : memref<1x1x128xf32, #tpu.memory_space<vmem>>, vector<1x1x128xf32>
    tpu.vector_store %arg10[%c0_23, %c0_24, %c0_25], %34 {strides = array<i32>} : memref<1x1x128xf32, #tpu.memory_space<vmem>>, vector<1x1x128xf32>,
    return
  }
  func.func @transform_0(%arg0: i32) -> (i32, i32) {
    %c0_i32 = arith.constant 0 : i32
    %c0_i32_0 = arith.constant 0 : i32
    return %arg0, %c0_i32 : i32, i32
  }
  func.func @transform_1(%arg0: i32) -> (i32, i32) {
    %c0_i32 = arith.constant 0 : i32
    %c0_i32_0 = arith.constant 0 : i32
    %c0_i32_1 = arith.constant 0 : i32
    return %c0_i32, %c0_i32_0 : i32, i32
  }
  func.func @transform_2(%arg0: i32) -> (i32, i32) {
    %c0_i32 = arith.constant 0 : i32
    %c0_i32_0 = arith.constant 0 : i32
    %c0_i32_1 = arith.constant 0 : i32
    return %c0_i32, %c0_i32_0 : i32, i32
  }
  func.func @transform_3(%arg0: i32) -> (i32, i32) {
    %c0_i32 = arith.constant 0 : i32
    %c0_i32_0 = arith.constant 0 : i32
    %c0_i32_1 = arith.constant 0 : i32
    return %c0_i32, %c0_i32_0 : i32, i32
  }
  func.func @transform_4(%arg0: i32) -> (i32, i32) {
    %c0_i32 = arith.constant 0 : i32
    %c0_i32_0 = arith.constant 0 : i32
    %c0_i32_1 = arith.constant 0 : i32
    return %c0_i32, %c0_i32_0 : i32, i32
  }
  func.func @transform_5(%arg0: i32) -> (i32, i32) {
    %c0_i32 = arith.constant 0 : i32
    %c0_i32_0 = arith.constant 0 : i32
    %c0_i32_1 = arith.constant 0 : i32
    return %c0_i32, %c0_i32_0 : i32, i32
  }
  func.func @transform_6(%arg0: i32) -> (i32, i32) {
    %c0_i32 = arith.constant 0 : i32
    %c0_i32_0 = arith.constant 0 : i32
    %c0_i32_1 = arith.constant 0 : i32
    return %c0_i32, %c0_i32_0 : i32, i32
  }
  func.func @transform_7(%arg0: i32) -> (i32, i32) {
    %c0_i32 = arith.constant 0 : i32
    %c0_i32_0 = arith.constant 0 : i32
    %c0_i32_1 = arith.constant 0 : i32
    return %c0_i32, %c0_i32_0 : i32, i32
  }
  func.func @transform_8(%arg0: i32) -> (i32, i32) {
    %c0_i32 = arith.constant 0 : i32
    %c0_i32_0 = arith.constant 0 : i32
    %c0_i32_1 = arith.constant 0 : i32
    return %c0_i32, %c0_i32_0 : i32, i32
  }
  func.func @transform_9(%arg0: i32) -> (i32, i32, i32) {
    %c0_i32 = arith.constant 0 : i32
    %c0_i32_0 = arith.constant 0 : i32
    %c0_i32_1 = arith.constant 0 : i32
    return %arg0, %c0_i32, %c0_i32_0 : i32, i32, i32
  }
}

module attributes {stable_mosaic.version = 11 : i64} {
  func.func @_mlp_kernel(%arg0: i32, %arg1: memref<128x128xf32, #tpu.memory_space<vmem>>, %arg2: memref<128x2048xbf16, #tpu.memory_space<vmem>>, %arg3: memref<1x2048xf32, #tpu.memory_space<vmem>>, %arg4: memref<2048x512xbf16, #tpu.memory_space<vmem>>, %arg5: memref<1x512xf32, #tpu.memory_space<vmem>>, %arg6: memref<512x128xbf16, #tpu.memory_space<vmem>>, %arg7: memref<1x128xf32, #tpu.memory_space<vmem>>, %arg8: memref<128x1xf32, #tpu.memory_space<vmem>>, %arg9: memref<1x1xf32, #tpu.memory_space<vmem>>, %arg10: memref<1x1x128xf32, #tpu.memory_space<vmem>>) attributes {dimension_semantics = [#tpu.dimension_semantics<arbitrary>], iteration_bounds = array<i64: 1>, scalar_prefetch = 0 : i64, scratch_operands = 0 : i64, tpu.core_type = #tpu.core_type<tc>, window_params = [{transform_indices = @transform_0, window_bounds = array<i64: 128, 128>}, {pipeline_mode = #tpu.pipeline_mode<synchronous>, transform_indices = @transform_1, window_bounds = array<i64: 128, 2048>}, {pipeline_mode = #tpu.pipeline_mode<synchronous>, transform_indices = @transform_2, window_bounds = array<i64: 1, 2048>}, {pipeline_mode = #tpu.pipeline_mode<synchronous>, transform_indices = @transform_3, window_bounds = array<i64: 2048, 512>}, {pipeline_mode = #tpu.pipeline_mode<synchronous>, transform_indices = @transform_4, window_bounds = array<i64: 1, 512>}, {pipeline_mode = #tpu.pipeline_mode<synchronous>, transform_indices = @transform_5, window_bounds = array<i64: 512, 128>}, {pipeline_mode = #tpu.pipeline_mode<synchronous>, transform_indices = @transform_6, window_bounds = array<i64: 1, 128>}, {pipeline_mode = #tpu.pipeline_mode<synchronous>, transform_indices = @transform_7, window_bounds = array<i64: 128, 1>}, {pipeline_mode = #tpu.pipeline_mode<synchronous>, transform_indices = @transform_8, window_bounds = array<i64: 1, 1>}, {transform_indices = @transform_9, window_bounds = array<i64: 1, 1, 128>}]} {
    %c0 = arith.constant 0 : index
    %c0_0 = arith.constant 0 : index
    %0 = vector.load %arg1[%c0, %c0_0] : memref<128x128xf32, #tpu.memory_space<vmem>>, vector<128x128xf32>
    %1 = arith.truncf %0 : vector<128x128xf32> to vector<128x128xbf16>
    %c0_1 = arith.constant 0 : index
    %c0_2 = arith.constant 0 : index
    %2 = vector.load %arg2[%c0_1, %c0_2] : memref<128x2048xbf16, #tpu.memory_space<vmem>>, vector<128x2048xbf16>
    %cst = arith.constant dense<0.000000e+00> : vector<128x2048xf32>
    %3 = tpu.matmul %1, %2, %cst {dimension_numbers = #tpu.dot_dimension_numbers<[1], [0], [0], [1], [0, 0, 1, 1], [], []>} : vector<128x128xbf16>, vector<128x2048xbf16>, vector<128x2048xf32> -> vector<128x2048xf32>
    %c0_3 = arith.constant 0 : index
    %c0_4 = arith.constant 0 : index
    %4 = vector.load %arg3[%c0_3, %c0_4] : memref<1x2048xf32, #tpu.memory_space<vmem>>, vector<1x2048xf32>
    %5 = vector.broadcast %4 : vector<1x2048xf32> to vector<128x2048xf32>
    %6 = arith.addf %3, %5 : vector<128x2048xf32>
    %cst_5 = arith.constant 0.000000e+00 : f32
    %7 = vector.broadcast %cst_5 : f32 to vector<128x2048xf32>
    %8 = arith.maximumf %6, %7 : vector<128x2048xf32>
    %9 = arith.truncf %8 : vector<128x2048xf32> to vector<128x2048xbf16>
    %c0_6 = arith.constant 0 : index
    %c0_7 = arith.constant 0 : index
    %10 = vector.load %arg4[%c0_6, %c0_7] : memref<2048x512xbf16, #tpu.memory_space<vmem>>, vector<2048x512xbf16>
    %cst_8 = arith.constant dense<0.000000e+00> : vector<128x512xf32>
    %11 = tpu.matmul %9, %10, %cst_8 {dimension_numbers = #tpu.dot_dimension_numbers<[1], [0], [0], [1], [0, 0, 1, 1], [], []>} : vector<128x2048xbf16>, vector<2048x512xbf16>, vector<128x512xf32> -> vector<128x512xf32>
    %c0_9 = arith.constant 0 : index
    %c0_10 = arith.constant 0 : index
    %12 = vector.load %arg5[%c0_9, %c0_10] : memref<1x512xf32, #tpu.memory_space<vmem>>, vector<1x512xf32>
    %13 = vector.broadcast %12 : vector<1x512xf32> to vector<128x512xf32>
    %14 = arith.addf %11, %13 : vector<128x512xf32>
    %cst_11 = arith.constant 0.000000e+00 : f32
    %15 = vector.broadcast %cst_11 : f32 to vector<128x512xf32>
    %16 = arith.maximumf %14, %15 : vector<128x512xf32>
    %17 = arith.truncf %16 : vector<128x512xf32> to vector<128x512xbf16>
    %c0_12 = arith.constant 0 : index
    %c0_13 = arith.constant 0 : index
    %18 = vector.load %arg6[%c0_12, %c0_13] : memref<512x128xbf16, #tpu.memory_space<vmem>>, vector<512x128xbf16>
    %cst_14 = arith.constant dense<0.000000e+00> : vector<128x128xf32>
    %19 = tpu.matmul %17, %18, %cst_14 {dimension_numbers = #tpu.dot_dimension_numbers<[1], [0], [0], [1], [0, 0, 1, 1], [], []>} : vector<128x512xbf16>, vector<512x128xbf16>, vector<128x128xf32> -> vector<128x128xf32>
    %c0_15 = arith.constant 0 : index
    %c0_16 = arith.constant 0 : index
    %20 = vector.load %arg7[%c0_15, %c0_16] : memref<1x128xf32, #tpu.memory_space<vmem>>, vector<1x128xf32>
    %21 = vector.broadcast %20 : vector<1x128xf32> to vector<128x128xf32>
    %22 = arith.addf %19, %21 : vector<128x128xf32>
    %cst_17 = arith.constant 0.000000e+00 : f32
    %23 = vector.broadcast %cst_17 : f32 to vector<128x128xf32>
    %24 = arith.maximumf %22, %23 : vector<128x128xf32>
    %25 = tpu.transpose %24, [1, 0] : vector<128x128xf32> -> vector<128x128xf32>
    %c0_18 = arith.constant 0 : index
    %c0_19 = arith.constant 0 : index
    %26 = vector.load %arg8[%c0_18, %c0_19] : memref<128x1xf32, #tpu.memory_space<vmem>>, vector<128x1xf32>
    %27 = vector.broadcast %26 : vector<128x1xf32> to vector<128x128xf32>
    %28 = arith.mulf %25, %27 : vector<128x128xf32>
    %cst_20 = arith.constant dense<0.000000e+00> : vector<128xf32>
    %29 = vector.multi_reduction <add>, %28, %cst_20 [0] : vector<128x128xf32> to vector<128xf32>
    %30 = vector.shape_cast %29 : vector<128xf32> to vector<1x128xf32>
    %c0_21 = arith.constant 0 : index
    %c0_22 = arith.constant 0 : index
    %31 = vector.load %arg9[%c0_21, %c0_22] : memref<1x1xf32, #tpu.memory_space<vmem>>, vector<1x1xf32>
    %32 = vector.broadcast %31 : vector<1x1xf32> to vector<1x128xf32>
    %33 = arith.addf %30, %32 : vector<1x128xf32>
    %34 = vector.shape_cast %33 : vector<1x128xf32> to vector<1x1x128xf32>
    %c0_23 = arith.constant 0 : index
    %c0_24 = arith.constant 0 : index
    %c0_25 = arith.constant 0 : index
    %35 = vector.load %arg10[%c0_23, %c0_24, %c0_25] : memref<1x1x128xf32, #tpu.memory_space<vmem>>, vector<1x1x128xf32>
    tpu.vector_store %arg10[%c0_23, %c0_24, %c0_25], %34 {strides = array<i32>} : memref<1x1x128xf32, #tpu.memory_space<vmem>>, vector<1x1x128xf32>,
    return
  }
  func.func @transform_0(%arg0: i32) -> (i32, i32) {
    %c0_i32 = arith.constant 0 : i32
    %c0_i32_0 = arith.constant 0 : i32
    return %arg0, %c0_i32 : i32, i32
  }
  func.func @transform_1(%arg0: i32) -> (i32, i32) {
    %c0_i32 = arith.constant 0 : i32
    %c0_i32_0 = arith.constant 0 : i32
    %c0_i32_1 = arith.constant 0 : i32
    return %c0_i32, %c0_i32_0 : i32, i32
  }
  func.func @transform_2(%arg0: i32) -> (i32, i32) {
    %c0_i32 = arith.constant 0 : i32
    %c0_i32_0 = arith.constant 0 : i32
    %c0_i32_1 = arith.constant 0 : i32
    return %c0_i32, %c0_i32_0 : i32, i32
  }
  func.func @transform_3(%arg0: i32) -> (i32, i32) {
    %c0_i32 = arith.constant 0 : i32
    %c0_i32_0 = arith.constant 0 : i32
    %c0_i32_1 = arith.constant 0 : i32
    return %c0_i32, %c0_i32_0 : i32, i32
  }
  func.func @transform_4(%arg0: i32) -> (i32, i32) {
    %c0_i32 = arith.constant 0 : i32
    %c0_i32_0 = arith.constant 0 : i32
    %c0_i32_1 = arith.constant 0 : i32
    return %c0_i32, %c0_i32_0 : i32, i32
  }
  func.func @transform_5(%arg0: i32) -> (i32, i32) {
    %c0_i32 = arith.constant 0 : i32
    %c0_i32_0 = arith.constant 0 : i32
    %c0_i32_1 = arith.constant 0 : i32
    return %c0_i32, %c0_i32_0 : i32, i32
  }
  func.func @transform_6(%arg0: i32) -> (i32, i32) {
    %c0_i32 = arith.constant 0 : i32
    %c0_i32_0 = arith.constant 0 : i32
    %c0_i32_1 = arith.constant 0 : i32
    return %c0_i32, %c0_i32_0 : i32, i32
  }
  func.func @transform_7(%arg0: i32) -> (i32, i32) {
    %c0_i32 = arith.constant 0 : i32
    %c0_i32_0 = arith.constant 0 : i32
    %c0_i32_1 = arith.constant 0 : i32
    return %c0_i32, %c0_i32_0 : i32, i32
  }
  func.func @transform_8(%arg0: i32) -> (i32, i32) {
    %c0_i32 = arith.constant 0 : i32
    %c0_i32_0 = arith.constant 0 : i32
    %c0_i32_1 = arith.constant 0 : i32
    return %c0_i32, %c0_i32_0 : i32, i32
  }
  func.func @transform_9(%arg0: i32) -> (i32, i32, i32) {
    %c0_i32 = arith.constant 0 : i32
    %c0_i32_0 = arith.constant 0 : i32
    %c0_i32_1 = arith.constant 0 : i32
    return %arg0, %c0_i32, %c0_i32_0 : i32, i32, i32
  }
}

</mosaic_0001>

<bundles_post_ra>
// kernel: tpu_custom_call.1
= control target key start
LH: loop header
LB: loop body
LE: loop exit
PB: predicated region body
PF: predicated region fallthrough
CT: control target
= control target key end

     0   :  { %s11599_s0 = inlined_call_operand.hbm [shape: f32[128,128], index: 0, kind: input, shape index: {}]   ;;  %s11600_s1 = inlined_call_operand.hbm [shape: bf16[128,2048], index: 1, kind: input, shape index: {}]   ;;  %s11601_s2 = inlined_call_operand.hbm [shape: f32[1,2048], index: 2, kind: input, shape index: {}]   ;;  %s11602_s3 = inlined_call_operand.hbm [shape: bf16[2048,512], index: 3, kind: input, shape index: {}]   ;;  %s11603_s4 = inlined_call_operand.hbm [shape: f32[1,512], index: 4, kind: input, shape index: {}]   ;;  %s11604_s5 = inlined_call_operand.hbm [shape: bf16[512,128], index: 5, kind: input, shape index: {}]   ;;  %s11605_s6 = inlined_call_operand.hbm [shape: f32[1,128], index: 6, kind: input, shape index: {}]   ;;  %s11606_s7 = inlined_call_operand.vmem [shape: f32[128,1], index: 7, kind: input, shape index: {}]   ;;  %s11607_s8 = inlined_call_operand.<no memory space> [shape: f32[1,1], index: 8, kind: input, shape index: {}]   ;;  %s11608_s9 = inlined_call_operand.hbm [shape: f32[1,1,128], index: 9, kind: output, shape index: {}]  }
   0x1   :  { %v14_v0 = vstv %s11607_s8 }
   0x2   :  { %15 = vst [vmem:[#allocation2] sm:$0x1] %v14_v0 }
   0x3   :  { %16 = vsyncpa [#allocation4], 0 }
   0x4   :  { %17 = vsyncpa [#allocation7], 0 }
   0x5   :  { %18 = vsyncpa [#allocation10], 0 }
   0x6   :  { %19 = vsyncpa [#allocation13], 0 }
   0x7   :  { %20 = vsyncpa [#allocation5], 0  ;;  %s10272_s11 = smov [#allocation6]   ;;  %s10086_s15 = scalar_lea.hbm %s11600_s1, 16384 }
   0x8   :  { %s38_s12 = sshll.u32 %s10272_s11, 4  ;;  %p10087_p0 = scmp.ne.s32.totalorder %s11600_s1, %s10086_s15  ;;  %s39_s12 = int_to_ptr.vmem [resolvable:$true] %s38_s12 }
   0x9   :  { %p10090_p1 = scmp.lt.u32.totalorder %s10086_s15, %s11600_s1 }
   0xb   :  { %p10092_p2 = pnand %p10090_p1, %p10087_p0 }
   0xd   :  { %10095 = shalt.err (!%p10092_p2)
}
   0xe   :  { %s10096_s8 = scalar_lea.vmem %s39_s12, 16384  ;;  %p10101_p4 = scmp.lt.s32.totalorder %s39_s12, %s39_s12 }
   0xf   :  { %p10097_p3 = scmp.ne.s32.totalorder %s39_s12, %s10096_s8  ;;  %p10102_p5 = scmp.lt.s32.totalorder %s10096_s8, %s10096_s8 }
  0x11   :  { %p10103_p6 = por %p10102_p5, %p10101_p4 }
  0x13   :  { %p10104_p7 = pnand %p10103_p6, %p10097_p3 }
  0x15   :  { %10107 = shalt.err (!%p10104_p7)
}
  0x16   :  { %s10273_s20 = smov 1024   ;;  %s10274_s21 = smov 64  }
  0x17   :  { %44 = dma.hbm_to_vmem [thread:$0]  %s11600_s1, 16384, %s39_s12, [#allocation7], %s10273_s20, %s10273_s20, %s10274_s21  }
  0x18   :  { %s10275_s24 = smov [#allocation9]   ;;  %s10108_s28 = scalar_lea.hbm %s11602_s3, 65536 }
  0x19   :  { %s60_s25 = sshll.u32 %s10275_s24, 4  ;;  %p10109_p8 = scmp.ne.s32.totalorder %s11602_s3, %s10108_s28  ;;  %s61_s25 = int_to_ptr.vmem [resolvable:$true] %s60_s25 }
  0x1a   :  { %p10112_p9 = scmp.lt.u32.totalorder %s10108_s28, %s11602_s3 }
  0x1c   :  { %p10114_p10 = pnand %p10112_p9, %p10109_p8 }
  0x1e   :  { %10117 = shalt.err (!%p10114_p10)
}
  0x1f   :  { %s10118_s13 = scalar_lea.vmem %s61_s25, 65536  ;;  %p10123_p12 = scmp.lt.s32.totalorder %s61_s25, %s61_s25 }
  0x20   :  { %p10119_p11 = scmp.ne.s32.totalorder %s61_s25, %s10118_s13  ;;  %p10124_p13 = scmp.lt.s32.totalorder %s10118_s13, %s10118_s13 }
  0x22   :  { %p10125_p0 = por %p10124_p13, %p10123_p12 }
  0x24   :  { %p10126_p1 = pnand %p10125_p0, %p10119_p11 }
  0x26   :  { %10129 = shalt.err (!%p10126_p1)
}
  0x27   :  { %s10276_s1 = smov 256   ;;  %s10277_s12 = smov 16  }
  0x28   :  { %66 = dma.hbm_to_vmem [thread:$0]  %s11602_s3, 65536, %s61_s25, [#allocation10], %s10276_s1, %s10276_s1, %s10277_s12  }
  0x29   :  { %s10278_s16 = smov [#allocation12]   ;;  %s10279_s18 = smov [#allocation3]  }
  0x2a   :  { %s82_s17 = sshll.u32 %s10278_s16, 4  ;;  %s26_s19 = sshll.u32 %s10279_s18, 4  ;;  %s83_s17 = int_to_ptr.vmem [resolvable:$true] %s82_s17  ;;  %s27_s19 = int_to_ptr.vmem [resolvable:$true] %s26_s19 }
  0x2b   :  { %s10130_s22 = scalar_lea.hbm %s11604_s5, 4096 }
  0x2c   :  { %p10131_p2 = scmp.ne.s32.totalorder %s11604_s5, %s10130_s22  ;;  %p10134_p3 = scmp.lt.u32.totalorder %s10130_s22, %s11604_s5 }
  0x2e   :  { %p10136_p4 = pnand %p10134_p3, %p10131_p2 }
  0x30   :  { %10139 = shalt.err (!%p10136_p4)
}
  0x31   :  { %s10140_s3 = scalar_lea.vmem %s83_s17, 4096  ;;  %p10145_p6 = scmp.lt.s32.totalorder %s83_s17, %s83_s17 }
  0x32   :  { %p10141_p5 = scmp.ne.s32.totalorder %s83_s17, %s10140_s3  ;;  %p10146_p7 = scmp.lt.s32.totalorder %s10140_s3, %s10140_s3 }
  0x34   :  { %p10147_p8 = por %p10146_p7, %p10145_p6 }
  0x36   :  { %p10148_p9 = pnand %p10147_p8, %p10141_p5 }
  0x38   :  { %10151 = shalt.err (!%p10148_p9)
}
  0x39   :  { %s10280_s25 = smov 4   ;;  %s10152_s11 = scalar_lea.hbm %s11599_s0, 2048 }
  0x3a   :  { %88 = dma.hbm_to_vmem [thread:$0]  %s11604_s5, 4096, %s83_s17, [#allocation13], %s10274_s21, %s10274_s21, %s10280_s25  }
  0x3b   :  { %p10153_p10 = scmp.ne.s32.totalorder %s11599_s0, %s10152_s11  ;;  %p10156_p11 = scmp.lt.u32.totalorder %s10152_s11, %s11599_s0 }
  0x3d   :  { %p10158_p12 = pnand %p10156_p11, %p10153_p10 }
  0x3f   :  { %10161 = shalt.err (!%p10158_p12)
}
  0x40   :  { %s10162_s15 = scalar_lea.vmem %s27_s19, 2048  ;;  %p10167_p0 = scmp.lt.s32.totalorder %s27_s19, %s27_s19 }
  0x41   :  { %p10163_p13 = scmp.ne.s32.totalorder %s27_s19, %s10162_s15  ;;  %p10168_p1 = scmp.lt.s32.totalorder %s10162_s15, %s10162_s15 }
  0x43   :  { %p10169_p2 = por %p10168_p1, %p10167_p0 }
  0x45   :  { %p10170_p3 = pnand %p10169_p2, %p10163_p13 }
  0x47   :  { %10173 = shalt.err (!%p10170_p3)
}
  0x48   :  { %s10281_s5 = smov 128   ;;  %s10282_s21 = smov 8  }
  0x49   :  { %32 = dma.hbm_to_vmem [thread:$0]  %s11599_s0, 2048, %s27_s19, [#allocation4], %s10281_s5, %s10281_s5, %s10282_s21  }
  0x4a   :  { %s10283_s18 = smov [#allocation8]   ;;  %s10284_s20 = smov [#allocation11]  }
  0x4b   :  { %s51_s8 = sshll.u32 %s10283_s18, 4  ;;  %s73_s22 = sshll.u32 %s10284_s20, 4  ;;  %s52_s8 = int_to_ptr.vmem [resolvable:$true] %s51_s8  ;;  %s74_s22 = int_to_ptr.vmem [resolvable:$true] %s73_s22 }
  0x4c   :  { %s10174_s26 = scalar_lea.hbm %s11601_s2, 256 }
  0x4d   :  { %p10175_p4 = scmp.ne.s32.totalorder %s11601_s2, %s10174_s26  ;;  %p10178_p5 = scmp.lt.u32.totalorder %s10174_s26, %s11601_s2 }
  0x4f   :  { %p10180_p6 = pnand %p10178_p5, %p10175_p4 }
  0x51   :  { %10183 = shalt.err (!%p10180_p6)
}
  0x52   :  { %s10184_s0 = scalar_lea.vmem %s52_s8, 256  ;;  %p10189_p8 = scmp.lt.s32.totalorder %s52_s8, %s52_s8 }
  0x53   :  { %p10185_p7 = scmp.ne.s32.totalorder %s52_s8, %s10184_s0  ;;  %p10190_p9 = scmp.lt.s32.totalorder %s10184_s0, %s10184_s0 }
  0x55   :  { %p10191_p10 = por %p10190_p9, %p10189_p8 }
  0x57   :  { %p10192_p11 = pnand %p10191_p10, %p10185_p7 }
  0x59   :  { %10195 = shalt.err (!%p10192_p11)
}
  0x5a   :  { %54 = dma.hbm_to_vmem [thread:$0]  %s11601_s2, 256, %s52_s8, [#allocation7]  }
  0x5b   :  { %s10196_s11 = scalar_lea.hbm %s11603_s4, 64 }
  0x5c   :  { %p10197_p12 = scmp.ne.s32.totalorder %s11603_s4, %s10196_s11  ;;  %p10200_p13 = scmp.lt.u32.totalorder %s10196_s11, %s11603_s4 }
  0x5e   :  { %p10202_p0 = pnand %p10200_p13, %p10197_p12 }
  0x60   :  { %10205 = shalt.err (!%p10202_p0)
}
  0x61   :  { %s10206_s15 = scalar_lea.vmem %s74_s22, 64  ;;  %p10211_p2 = scmp.lt.s32.totalorder %s74_s22, %s74_s22 }
  0x62   :  { %p10207_p1 = scmp.ne.s32.totalorder %s74_s22, %s10206_s15  ;;  %p10212_p3 = scmp.lt.s32.totalorder %s10206_s15, %s10206_s15 }
  0x64   :  { %p10213_p4 = por %p10212_p3, %p10211_p2 }
  0x66   :  { %p10214_p5 = pnand %p10213_p4, %p10207_p1 }
  0x68   :  { %10217 = shalt.err (!%p10214_p5)
}
  0x69   :  { %76 = dma.hbm_to_vmem [thread:$0]  %s11603_s4, 64, %s74_s22, [#allocation10]  }
  0x6a   :  { %s10285_s21 = smov [#allocation14]   ;;  %s10218_s8 = scalar_lea.hbm %s11605_s6, 16 }
  0x6b   :  { %s95_s16 = sshll.u32 %s10285_s21, 4  ;;  %p10219_p6 = scmp.ne.s32.totalorder %s11605_s6, %s10218_s8  ;;  %s96_s16 = int_to_ptr.vmem [resolvable:$true] %s95_s16 }
  0x6c   :  { %p10222_p7 = scmp.lt.u32.totalorder %s10218_s8, %s11605_s6 }
  0x6e   :  { %p10224_p8 = pnand %p10222_p7, %p10219_p6 }
  0x70   :  { %10227 = shalt.err (!%p10224_p8)
}
  0x71   :  { %s10228_s27 = scalar_lea.vmem %s96_s16, 16  ;;  %s10232_s4 = scalar_lea.vmem %s96_s16, 32 }
  0x72   :  { %p10229_p9 = scmp.ne.s32.totalorder %s96_s16, %s10228_s27  ;;  %p10233_p10 = scmp.lt.s32.totalorder %s96_s16, %s96_s16 }
  0x73   :  { %p10234_p11 = scmp.lt.s32.totalorder %s10232_s4, %s10228_s27 }
  0x75   :  { %p10235_p12 = por %p10234_p11, %p10233_p10 }
  0x77   :  { %p10236_p13 = pnand %p10235_p12, %p10229_p9 }
  0x79   :  { %10239 = shalt.err (!%p10236_p13)
}
  0x7a   :  { %98 = dma.hbm_to_vmem [thread:$0]  %s11605_s6, 16, %s96_s16, [#allocation13]  }
  0x7b   :  { %10262 = dma.done.wait [#allocation4], 2048  }
  0x7c   :  { %10263 = vsyncadd [#allocation4], 4294965248 }
  0x7d   :  { %10264 = dma.done.wait [#allocation7], 16640  }
  0x7e   :  { %10265 = vsyncadd [#allocation7], 4294950656 }
  0x7f   :  { %10266 = dma.done.wait [#allocation10], 65600  }
  0x80   :  { %10267 = vsyncadd [#allocation10], 4294901696 }
  0x81   :  { %10268 = dma.done.wait [#allocation13], 4112  }
  0x82   :  { %10269 = vsyncadd [#allocation13], 4294963184  ;;  %v11609_v1 = vmov 0   ;;  %v149_v2 = vld [vmem:[#allocation6] sm:$0xff]  ;;  %v150_v4 = vld [vmem:[#allocation6 + $0x8] sm:$0xff] }
  0x83   :  { %1033 = vmatprep.mubr.bf16.mxu0 %v11609_v1  ;;  %1146 = vmatprep.mubr.bf16.mxu1 %v11609_v1  ;;  %v157_v3 = vld [vmem:[#allocation6 + $0x40] sm:$0xff]  ;;  %v158_v6 = vld [vmem:[#allocation6 + $0x48] sm:$0xff]  ;;  %v151_v0 = vld [vmem:[#allocation6 + $0x10] sm:$0xff] }
  0x84   :  { %9284 = vset.pattern.permute.xlu1 %v11609_v1  ;;  %v7956_v5 = vcombine.high %v149_v2, %v157_v3  ;;  %v7955_v7 = vcombine.low %v149_v2, %v157_v3  ;;  %v165_v8 = vld [vmem:[#allocation6 + $0x80] sm:$0xff]  ;;  %v7958_v10 = vcombine.high %v150_v4, %v158_v6  ;;  %v7957_v11 = vcombine.low %v150_v4, %v158_v6  ;;  %v166_v13 = vld [vmem:[#allocation6 + $0x88] sm:$0xff]  ;;  %v159_v2 = vld [vmem:[#allocation6 + $0x50] sm:$0xff] }
  0x85   :  { %v173_v9 = vld [vmem:[#allocation6 + $0xc0] sm:$0xff]  ;;  %v174_v14 = vld [vmem:[#allocation6 + $0xc8] sm:$0xff]  ;;  %v152_v3 = vld [vmem:[#allocation6 + $0x18] sm:$0xff] }
  0x86   :  { %v7972_v12 = vcombine.high %v165_v8, %v173_v9  ;;  %v181_v15 = vld [vmem:[#allocation6 + $0x100] sm:$0xff]  ;;  %1001 = vmatprep.subr.bf16.mxu0 %v7956_v5  ;;  %v7974_v16 = vcombine.high %v166_v13, %v174_v14  ;;  %v182_v18 = vld [vmem:[#allocation6 + $0x108] sm:$0xff]  ;;  %1114 = vmatprep.subr.bf16.mxu1 %v7958_v10  ;;  %v7971_v20 = vcombine.low %v165_v8, %v173_v9  ;;  %v160_v4 = vld [vmem:[#allocation6 + $0x58] sm:$0xff] }
  0x87   :  { %v189_v17 = vld [vmem:[#allocation6 + $0x140] sm:$0xff]  ;;  %v190_v19 = vld [vmem:[#allocation6 + $0x148] sm:$0xff]  ;;  %1002 = vmatpush1.bf16.msra.mxu0 %v7955_v7  ;;  %1115 = vmatpush1.bf16.msra.mxu1 %v7957_v11  ;;  %v7973_v21 = vcombine.low %v166_v13, %v174_v14  ;;  %v7960_v9 = vcombine.high %v151_v0, %v159_v2  ;;  %v7962_v10 = vcombine.high %v152_v3, %v160_v4  ;;  %v175_v13 = vld [vmem:[#allocation6 + $0xd0] sm:$0xff] }
  0x88   :  { %1003 = vmatprep.subr.bf16.mxu0 %v7972_v12  ;;  %v7988_v22 = vcombine.high %v181_v15, %v189_v17  ;;  %1116 = vmatprep.subr.bf16.mxu1 %v7974_v16  ;;  %v7990_v23 = vcombine.high %v182_v18, %v190_v19  ;;  %v197_v24 = vld [vmem:[#allocation6 + $0x180] sm:$0xff]  ;;  %v198_v26 = vld [vmem:[#allocation6 + $0x188] sm:$0xff]  ;;  %v7987_v28 = vcombine.low %v181_v15, %v189_v17  ;;  %v167_v12 = vld [vmem:[#allocation6 + $0x90] sm:$0xff] }
  0x89   :  { %v205_v25 = vld [vmem:[#allocation6 + $0x1c0] sm:$0xff]  ;;  %v206_v27 = vld [vmem:[#allocation6 + $0x1c8] sm:$0xff]  ;;  %v7989_v29 = vcombine.low %v182_v18, %v190_v19  ;;  %v7959_v14 = vcombine.low %v151_v0, %v159_v2  ;;  %v168_v15 = vld [vmem:[#allocation6 + $0x98] sm:$0xff]  ;;  %v7961_v17 = vcombine.low %v152_v3, %v160_v4  ;;  %v7976_v18 = vcombine.high %v167_v12, %v175_v13 }
  0x8a   :  { %v8004_v30 = vcombine.high %v197_v24, %v205_v25  ;;  %v8006_v31 = vcombine.high %v198_v26, %v206_v27  ;;  %v213_v32 = vld [vmem:[#allocation6 + $0x200] sm:$0xff]  ;;  %v214_v34 = vld [vmem:[#allocation6 + $0x208] sm:$0xff]  ;;  %v8003_v36 = vcombine.low %v197_v24, %v205_v25  ;;  %v8005_v37 = vcombine.low %v198_v26, %v206_v27  ;;  %v176_v16 = vld [vmem:[#allocation6 + $0xd8] sm:$0xff] }
  0x8b   :  { %1004 = vmatpush1.bf16.msra.mxu0 %v7971_v20  ;;  %1117 = vmatpush1.bf16.msra.mxu1 %v7973_v21  ;;  %v221_v33 = vld [vmem:[#allocation6 + $0x240] sm:$0xff]  ;;  %v222_v35 = vld [vmem:[#allocation6 + $0x248] sm:$0xff]  ;;  %v183_v19 = vld [vmem:[#allocation6 + $0x110] sm:$0xff]  ;;  %v7978_v21 = vcombine.high %v168_v15, %v176_v16  ;;  %v7975_v26 = vcombine.low %v167_v12, %v175_v13  ;;  %v7977_v27 = vcombine.low %v168_v15, %v176_v16 }
  0x8c   :  { %1005 = vmatprep.subr.bf16.mxu0 %v7988_v22  ;;  %1118 = vmatprep.subr.bf16.mxu1 %v7990_v23  ;;  %v8020_v38 = vcombine.high %v213_v32, %v221_v33  ;;  %v8022_v39 = vcombine.high %v214_v34, %v222_v35  ;;  %v229_v40 = vld [vmem:[#allocation6 + $0x280] sm:$0xff]  ;;  %v230_v42 = vld [vmem:[#allocation6 + $0x288] sm:$0xff]  ;;  %v8019_v44 = vcombine.low %v213_v32, %v221_v33  ;;  %v191_v20 = vld [vmem:[#allocation6 + $0x150] sm:$0xff] }
  0x8d   :  { %v237_v41 = vld [vmem:[#allocation6 + $0x2c0] sm:$0xff]  ;;  %v238_v43 = vld [vmem:[#allocation6 + $0x2c8] sm:$0xff]  ;;  %v8021_v45 = vcombine.low %v214_v34, %v222_v35  ;;  %v184_v22 = vld [vmem:[#allocation6 + $0x118] sm:$0xff]  ;;  %v7991_v35 = vcombine.low %v183_v19, %v191_v20 }
  0x8e   :  { %v8036_v46 = vcombine.high %v229_v40, %v237_v41  ;;  %v8038_v47 = vcombine.high %v230_v42, %v238_v43  ;;  %v245_v48 = vld [vmem:[#allocation6 + $0x300] sm:$0xff]  ;;  %v246_v50 = vld [vmem:[#allocation6 + $0x308] sm:$0xff]  ;;  %v8035_v52 = vcombine.low %v229_v40, %v237_v41  ;;  %v8037_v53 = vcombine.low %v230_v42, %v238_v43  ;;  %v192_v23 = vld [vmem:[#allocation6 + $0x158] sm:$0xff] }
  0x8f   :  { %1006 = vmatpush1.bf16.msra.mxu0 %v7987_v28  ;;  %1119 = vmatpush1.bf16.msra.mxu1 %v7989_v29  ;;  %v253_v49 = vld [vmem:[#allocation6 + $0x340] sm:$0xff]  ;;  %v254_v51 = vld [vmem:[#allocation6 + $0x348] sm:$0xff]  ;;  %v127_v24 = vld [vmem:[#allocation3 + $0x10] sm:$0xff]  ;;  %v7992_v28 = vcombine.high %v183_v19, %v191_v20 }
  0x90   :  { %1007 = vmatprep.subr.bf16.mxu0 %v8004_v30  ;;  %1120 = vmatprep.subr.bf16.mxu1 %v8006_v31  ;;  %v8052_v54 = vcombine.high %v245_v48, %v253_v49  ;;  %v8054_v55 = vcombine.high %v246_v50, %v254_v51  ;;  %v261_v56 = vld [vmem:[#allocation6 + $0x380] sm:$0xff]  ;;  %v262_v58 = vld [vmem:[#allocation6 + $0x388] sm:$0xff]  ;;  %v8051_v60 = vcombine.low %v245_v48, %v253_v49  ;;  %v128_v25 = vld [vmem:[#allocation3 + $0x18] sm:$0xff] }
  0x91   :  { %v269_v57 = vld [vmem:[#allocation6 + $0x3c0] sm:$0xff]  ;;  %v270_v59 = vld [vmem:[#allocation6 + $0x3c8] sm:$0xff]  ;;  %v8053_v61 = vcombine.low %v246_v50, %v254_v51  ;;  %v199_v29 = vld [vmem:[#allocation6 + $0x190] sm:$0xff]  ;;  %v7994_v31 = vcombine.high %v184_v22, %v192_v23  ;;  %v10437_v34 = vpack.c.bf16 %v128_v25, %v127_v24 }
  0x92   :  { %v8068_v62 = vcombine.high %v261_v56, %v269_v57  ;;  %v8070_v63 = vcombine.high %v262_v58, %v270_v59  ;;  %v8067_v5 = vcombine.low %v261_v56, %v269_v57  ;;  %v125_v6 = vld [vmem:[#allocation3] sm:$0xff]  ;;  %v126_v7 = vld [vmem:[#allocation3 + $0x8] sm:$0xff]  ;;  %v8069_v8 = vcombine.low %v262_v58, %v270_v59  ;;  %v207_v30 = vld [vmem:[#allocation6 + $0x1d0] sm:$0xff] }
  0x93   :  { %1008 = vmatpush1.bf16.msra.mxu0 %v8003_v36  ;;  %1121 = vmatpush1.bf16.msra.mxu1 %v8005_v37  ;;  %v10431_v11 = vpack.c.bf16 %v126_v7, %v125_v6  ;;  %v200_v32 = vld [vmem:[#allocation6 + $0x198] sm:$0xff]  ;;  %v215_v36 = vld [vmem:[#allocation6 + $0x210] sm:$0xff]  ;;  %v8008_v40 = vcombine.high %v199_v29, %v207_v30  ;;  %v130_v42 = vld [vmem:[#allocation3 + $0x28] sm:$0xff] }
  0x94   :  { %1009 = vmatprep.subr.bf16.mxu0 %v8020_v38  ;;  %1122 = vmatprep.subr.bf16.mxu1 %v8022_v39  ;;  %v208_v33 = vld [vmem:[#allocation6 + $0x1d8] sm:$0xff]  ;;  %v223_v37 = vld [vmem:[#allocation6 + $0x250] sm:$0xff]  ;;  %v129_v38 = vld [vmem:[#allocation3 + $0x20] sm:$0xff]  ;;  %v7993_v39 = vcombine.low %v184_v22, %v192_v23 }
  0x95   :  { %v8010_v41 = vcombine.high %v200_v32, %v208_v33  ;;  %v216_v43 = vld [vmem:[#allocation6 + $0x218] sm:$0xff]  ;;  %v8009_v48 = vcombine.low %v200_v32, %v208_v33  ;;  %v8024_v49 = vcombine.high %v215_v36, %v223_v37  ;;  %v255_v56 = vld [vmem:[#allocation6 + $0x350] sm:$0xff]  ;;  %v10451_v12 = vld [vmem:[#allocation6 + $0x20] sm:$0xff] }
  0x96   :  { %v232_v50 = vld [vmem:[#allocation6 + $0x298] sm:$0xff]  ;;  %v131_v57 = vld [vmem:[#allocation3 + $0x30] sm:$0xff]  ;;  %v10453_v13 = vld [vmem:[#allocation6 + $0x60] sm:$0xff] }
  0x97   :  { %1010 = vmatpush1.bf16.msra.mxu0 %v8019_v44  ;;  %1123 = vmatpush1.bf16.msra.mxu1 %v8021_v45  ;;  %v224_v44 = vld [vmem:[#allocation6 + $0x258] sm:$0xff]  ;;  %v8007_v45 = vcombine.low %v199_v29, %v207_v30  ;;  %v263_v2 = vld [vmem:[#allocation6 + $0x390] sm:$0xff]  ;;  %v154_v19 = vld [vmem:[#allocation6 + $0x28] sm:$0xff]  ;;  %v7964_v23 = vcombine.high %v10451_v12, %v10453_v13 }
  0x98   :  { %1011 = vmatprep.subr.bf16.mxu0 %v8036_v46  ;;  %1124 = vmatprep.subr.bf16.mxu1 %v8038_v47  ;;  %v231_v46 = vld [vmem:[#allocation6 + $0x290] sm:$0xff]  ;;  %v240_v51 = vld [vmem:[#allocation6 + $0x2d8] sm:$0xff]  ;;  %v8025_v58 = vcombine.low %v216_v43, %v224_v44  ;;  %v162_v20 = vld [vmem:[#allocation6 + $0x68] sm:$0xff] }
  0x99   :  { %v239_v47 = vld [vmem:[#allocation6 + $0x2d0] sm:$0xff]  ;;  %v8041_v4 = vcombine.low %v232_v50, %v240_v51  ;;  %v264_v6 = vld [vmem:[#allocation6 + $0x398] sm:$0xff]  ;;  %v7966_v25 = vcombine.high %v154_v19, %v162_v20  ;;  %v137_v29 = vld [vmem:[#allocation3 + $0x60] sm:$0xff] }
  0x9a   :  { %v8040_v59 = vcombine.high %v231_v46, %v239_v47  ;;  %v8039_v0 = vcombine.low %v231_v46, %v239_v47  ;;  %v271_v3 = vld [vmem:[#allocation6 + $0x3d0] sm:$0xff]  ;;  %v272_v7 = vld [vmem:[#allocation6 + $0x3d8] sm:$0xff]  ;;  %v138_v30 = vld [vmem:[#allocation3 + $0x68] sm:$0xff] }
  0x9b   :  { %1012 = vmatpush1.bf16.msra.mxu0 %v8035_v52  ;;  %1125 = vmatpush1.bf16.msra.mxu1 %v8037_v53  ;;  %v10443_v52 = vpack.c.bf16 %v130_v42, %v129_v38  ;;  %v8026_v53 = vcombine.high %v216_v43, %v224_v44  ;;  %v8072_v16 = vcombine.high %v263_v2, %v271_v3  ;;  %v139_v32 = vld [vmem:[#allocation3 + $0x70] sm:$0xff]  ;;  %v140_v33 = vld [vmem:[#allocation3 + $0x78] sm:$0xff]  ;;  %v170_v38 = vld [vmem:[#allocation6 + $0xa8] sm:$0xff] }
  0x9c   :  { %1013 = vmatprep.subr.bf16.mxu0 %v8052_v54  ;;  %1126 = vmatprep.subr.bf16.mxu1 %v8054_v55  ;;  %v8023_v54 = vcombine.low %v215_v36, %v223_v37  ;;  %v247_v55 = vld [vmem:[#allocation6 + $0x310] sm:$0xff]  ;;  %v8073_v22 = vcombine.low %v264_v6, %v272_v7  ;;  %v169_v36 = vld [vmem:[#allocation6 + $0xa0] sm:$0xff]  ;;  %v186_v46 = vld [vmem:[#allocation6 + $0x128] sm:$0xff] }
  0x9d   :  { %v177_v37 = vld [vmem:[#allocation6 + $0xe0] sm:$0xff]  ;;  %v194_v47 = vld [vmem:[#allocation6 + $0x168] sm:$0xff] }
  0x9e   :  { %v7980_v42 = vcombine.high %v169_v36, %v177_v37  ;;  %v185_v43 = vld [vmem:[#allocation6 + $0x120] sm:$0xff] }
  0x9f   :  { %1014 = vmatpush1.bf16.msra.mxu0 %v8051_v60  ;;  %1127 = vmatpush1.bf16.msra.mxu1 %v8053_v61  ;;  %v8042_v60 = vcombine.high %v232_v50, %v240_v51  ;;  %v132_v61 = vld [vmem:[#allocation3 + $0x38] sm:$0xff]  ;;  %v193_v44 = vld [vmem:[#allocation6 + $0x160] sm:$0xff] }
  0xa0   :  { %1015 = vmatprep.subr.bf16.mxu0 %v8068_v62  ;;  %1128 = vmatprep.subr.bf16.mxu1 %v8070_v63  ;;  %v248_v62 = vld [vmem:[#allocation6 + $0x318] sm:$0xff]  ;;  %v7996_v50 = vcombine.high %v185_v43, %v193_v44  ;;  %v201_v51 = vld [vmem:[#allocation6 + $0x1a0] sm:$0xff] }
  0xa1   :  { %v256_v63 = vld [vmem:[#allocation6 + $0x358] sm:$0xff] }
  0xa2   :  { %v8057_v15 = vcombine.low %v248_v62, %v256_v63 }
  0xa3   :  { %1016 = vmatpush1.bf16.msra.mxu0 %v8067_v5  ;;  %1129 = vmatpush1.bf16.msra.mxu1 %v8069_v8  ;;  %v8056_v5 = vcombine.high %v247_v55, %v255_v56  ;;  %v10449_v8 = vpack.c.bf16 %v132_v61, %v131_v57  ;;  %v7995_v57 = vcombine.low %v185_v43, %v193_v44  ;;  %v225_v61 = vld [vmem:[#allocation6 + $0x260] sm:$0xff] }
  0xa4   :  { %1227 = vmatprep.subr.bf16.mxu0 %v7960_v9  ;;  %1340 = vmatprep.subr.bf16.mxu1 %v7962_v10  ;;  %v8058_v9 = vcombine.high %v248_v62, %v256_v63  ;;  %v8055_v10 = vcombine.low %v247_v55, %v255_v56  ;;  %v202_v55 = vld [vmem:[#allocation6 + $0x1a8] sm:$0xff] }
  0xa5   :  { %v210_v56 = vld [vmem:[#allocation6 + $0x1e8] sm:$0xff] }
  0xa6   :  { %1034 = vmatmul.mubr.bf16.vlgmr.msra.gmra.mrb[0].mxu0 %v10431_v11  ;;  %1147 = vmatmul.mubr.bf16.vlgmr.msra.gmra.mrb[0].mxu1 %v10431_v11  ;;  %v8014_v62 = vcombine.high %v202_v55, %v210_v56  ;;  %v218_v63 = vld [vmem:[#allocation6 + $0x228] sm:$0xff] }
  0xa7   :  { %1228 = vmatpush1.bf16.msra.mxu0 %v7959_v14  ;;  %1341 = vmatpush1.bf16.msra.mxu1 %v7961_v17  ;;  %v133_v14 = vld [vmem:[#allocation3 + $0x40] sm:$0xff]  ;;  %v8074_v17 = vcombine.high %v264_v6, %v272_v7  ;;  %v234_v7 = vld [vmem:[#allocation6 + $0x2a8] sm:$0xff] }
  0xa8   :  { %1043 = vmatprep.mubr.bf16.mxu0 %v11609_v1  ;;  %1156 = vmatprep.mubr.bf16.mxu1 %v11609_v1 }
  0xa9   :  { %1229 = vmatprep.subr.bf16.mxu0 %v7976_v18  ;;  %1342 = vmatprep.subr.bf16.mxu1 %v7978_v21  ;;  %v134_v18 = vld [vmem:[#allocation3 + $0x48] sm:$0xff]  ;;  %v8071_v21 = vcombine.low %v263_v2, %v271_v3  ;;  %v233_v3 = vld [vmem:[#allocation6 + $0x2a0] sm:$0xff] }
  0xaa   :  { %v10461_v24 = vpack.c.bf16 %v134_v18, %v133_v14  ;;  %v250_v18 = vld [vmem:[#allocation6 + $0x328] sm:$0xff] }
  0xab   :  { %1230 = vmatpush1.bf16.msra.mxu0 %v7975_v26  ;;  %1343 = vmatpush1.bf16.msra.mxu1 %v7977_v27  ;;  %v135_v26 = vld [vmem:[#allocation3 + $0x50] sm:$0xff]  ;;  %v136_v27 = vld [vmem:[#allocation3 + $0x58] sm:$0xff] }
  0xac   :  { %1231 = vmatprep.subr.bf16.mxu0 %v7992_v28  ;;  %1344 = vmatprep.subr.bf16.mxu1 %v7994_v31  ;;  %v10467_v28 = vpack.c.bf16 %v136_v27, %v135_v26  ;;  %v10473_v31 = vpack.c.bf16 %v138_v30, %v137_v29  ;;  %v266_v27 = vld [vmem:[#allocation6 + $0x3a8] sm:$0xff] }
  0xad   :  { %v274_v29 = vld [vmem:[#allocation6 + $0x3e8] sm:$0xff] }
  0xae   :  { %1044 = vmatmul.mubr.bf16.gmra.mrb[4].mxu0 %v10437_v34  ;;  %1157 = vmatmul.mubr.bf16.gmra.mrb[4].mxu1 %v10437_v34 }
  0xaf   :  { %1053 = vmatprep.mubr.bf16.mxu0 %v11609_v1  ;;  %1166 = vmatprep.mubr.bf16.mxu1 %v11609_v1 }
  0xb0   :  { %1232 = vmatpush1.bf16.msra.mxu0 %v7991_v35  ;;  %1345 = vmatpush1.bf16.msra.mxu1 %v7993_v39  ;;  %v10479_v35 = vpack.c.bf16 %v140_v33, %v139_v32  ;;  %v178_v39 = vld [vmem:[#allocation6 + $0xe8] sm:$0xff] }
  0xb1   :  { %1233 = vmatprep.subr.bf16.mxu0 %v8008_v40  ;;  %1346 = vmatprep.subr.bf16.mxu1 %v8010_v41  ;;  %v7963_v40 = vcombine.low %v10451_v12, %v10453_v13  ;;  %v7965_v41 = vcombine.low %v154_v19, %v162_v20  ;;  %v258_v19 = vld [vmem:[#allocation6 + $0x368] sm:$0xff] }
  0xb2   :  { %v8062_v26 = vcombine.high %v250_v18, %v258_v19  ;;  %v8061_v32 = vcombine.low %v250_v18, %v258_v19  ;;  %v243_v18 = vld [vmem:[#allocation6 + $0x2f0] sm:$0xff]  ;;  %v236_v19 = vld [vmem:[#allocation6 + $0x2b8] sm:$0xff] }
  0xb4   :  { %1234 = vmatpush1.bf16.msra.mxu0 %v8007_v45  ;;  %1347 = vmatpush1.bf16.msra.mxu1 %v8009_v48  ;;  %v7982_v45 = vcombine.high %v170_v38, %v178_v39  ;;  %v7979_v48 = vcombine.low %v169_v36, %v177_v37  ;;  %v155_v36 = vld [vmem:[#allocation6 + $0x30] sm:$0xff] }
  0xb5   :  { %1235 = vmatprep.subr.bf16.mxu0 %v8024_v49  ;;  %1348 = vmatprep.subr.bf16.mxu1 %v8026_v53  ;;  %v7981_v49 = vcombine.low %v170_v38, %v178_v39  ;;  %v209_v53 = vld [vmem:[#allocation6 + $0x1e0] sm:$0xff]  ;;  %v163_v37 = vld [vmem:[#allocation6 + $0x70] sm:$0xff]  ;;  %v8078_v38 = vcombine.high %v266_v27, %v274_v29  ;;  %v156_v39 = vld [vmem:[#allocation6 + $0x38] sm:$0xff] }
  0xb6   :  { %1054 = vmatmul.mubr.bf16.gmra.mrb[8].mxu0 %v10443_v52  ;;  %1167 = vmatmul.mubr.bf16.gmra.mrb[8].mxu1 %v10443_v52  ;;  %v8011_v2 = vcombine.low %v201_v51, %v209_v53  ;;  %v7968_v43 = vcombine.high %v155_v36, %v163_v37 }
  0xb7   :  { %1063 = vmatprep.mubr.bf16.mxu0 %v11609_v1  ;;  %1176 = vmatprep.mubr.bf16.mxu1 %v11609_v1 }
  0xb8   :  { %1236 = vmatpush1.bf16.msra.mxu0 %v8023_v54  ;;  %1349 = vmatpush1.bf16.msra.mxu1 %v8025_v58  ;;  %v7998_v54 = vcombine.high %v186_v46, %v194_v47  ;;  %v7997_v58 = vcombine.low %v186_v46, %v194_v47  ;;  %v179_v46 = vld [vmem:[#allocation6 + $0xf0] sm:$0xff]  ;;  %v172_v47 = vld [vmem:[#allocation6 + $0xb8] sm:$0xff] }
  0xb9   :  { %1237 = vmatprep.subr.bf16.mxu0 %v8040_v59  ;;  %1350 = vmatprep.subr.bf16.mxu1 %v8042_v60  ;;  %v8012_v59 = vcombine.high %v201_v51, %v209_v53  ;;  %v217_v60 = vld [vmem:[#allocation6 + $0x220] sm:$0xff]  ;;  %v195_v51 = vld [vmem:[#allocation6 + $0x170] sm:$0xff] }
  0xba   :  { %v8028_v6 = vcombine.high %v217_v60, %v225_v61  ;;  %v8027_v12 = vcombine.low %v217_v60, %v225_v61 }
  0xbc   :  { %1238 = vmatpush1.bf16.msra.mxu0 %v8039_v0  ;;  %1351 = vmatpush1.bf16.msra.mxu1 %v8041_v4  ;;  %v226_v0 = vld [vmem:[#allocation6 + $0x268] sm:$0xff]  ;;  %v241_v4 = vld [vmem:[#allocation6 + $0x2e0] sm:$0xff] }
  0xbd   :  { %1239 = vmatprep.subr.bf16.mxu0 %v8056_v5  ;;  %1352 = vmatprep.subr.bf16.mxu1 %v8058_v9  ;;  %v8013_v5 = vcombine.low %v202_v55, %v210_v56  ;;  %v242_v9 = vld [vmem:[#allocation6 + $0x2e8] sm:$0xff]  ;;  %v8029_v13 = vcombine.low %v218_v63, %v226_v0  ;;  %v8044_v14 = vcombine.high %v233_v3, %v241_v4  ;;  %v188_v56 = vld [vmem:[#allocation6 + $0x138] sm:$0xff] }
  0xbe   :  { %1064 = vmatmul.mubr.bf16.gmra.mrb[12].mxu0 %v10449_v8  ;;  %1177 = vmatmul.mubr.bf16.gmra.mrb[12].mxu1 %v10449_v8  ;;  %v8043_v20 = vcombine.low %v233_v3, %v241_v4 }
  0xbf   :  { %1073 = vmatprep.mubr.bf16.mxu0 %v11609_v1  ;;  %1186 = vmatprep.mubr.bf16.mxu1 %v11609_v1 }
  0xc0   :  { %1240 = vmatpush1.bf16.msra.mxu0 %v8055_v10  ;;  %1353 = vmatpush1.bf16.msra.mxu1 %v8057_v15  ;;  %v8030_v10 = vcombine.high %v218_v63, %v226_v0  ;;  %v249_v15 = vld [vmem:[#allocation6 + $0x320] sm:$0xff]  ;;  %v211_v63 = vld [vmem:[#allocation6 + $0x1f0] sm:$0xff]  ;;  %v204_v0 = vld [vmem:[#allocation6 + $0x1b8] sm:$0xff] }
  0xc1   :  { %1241 = vmatprep.subr.bf16.mxu0 %v8072_v16  ;;  %1354 = vmatprep.subr.bf16.mxu1 %v8074_v17  ;;  %v257_v16 = vld [vmem:[#allocation6 + $0x360] sm:$0xff]  ;;  %v8046_v17 = vcombine.high %v234_v7, %v242_v9 }
  0xc2   :  { %v8059_v30 = vcombine.low %v249_v15, %v257_v16 }
  0xc4   :  { %1242 = vmatpush1.bf16.msra.mxu0 %v8071_v21  ;;  %1355 = vmatpush1.bf16.msra.mxu1 %v8073_v22  ;;  %v8045_v21 = vcombine.low %v234_v7, %v242_v9  ;;  %v8060_v22 = vcombine.high %v249_v15, %v257_v16  ;;  %v219_v7 = vld [vmem:[#allocation6 + $0x230] sm:$0xff] }
  0xc5   :  { %1453 = vmatprep.subr.bf16.mxu0 %v7964_v23  ;;  %1566 = vmatprep.subr.bf16.mxu1 %v7966_v25  ;;  %v265_v23 = vld [vmem:[#allocation6 + $0x3a0] sm:$0xff]  ;;  %v227_v9 = vld [vmem:[#allocation6 + $0x270] sm:$0xff] }
  0xc6   :  { %1074 = vmatmul.mubr.bf16.gmra.mrb[16].mxu0 %v10461_v24  ;;  %1187 = vmatmul.mubr.bf16.gmra.mrb[16].mxu1 %v10461_v24  ;;  %v273_v25 = vld [vmem:[#allocation6 + $0x3e0] sm:$0xff]  ;;  %v8032_v15 = vcombine.high %v219_v7, %v227_v9 }
  0xc7   :  { %1083 = vmatprep.mubr.bf16.mxu0 %v11609_v1  ;;  %1196 = vmatprep.mubr.bf16.mxu1 %v11609_v1  ;;  %v8076_v33 = vcombine.high %v265_v23, %v273_v25 }
  0xce   :  { %1084 = vmatmul.mubr.bf16.gmra.mrb[20].mxu0 %v10467_v28  ;;  %1197 = vmatmul.mubr.bf16.gmra.mrb[20].mxu1 %v10467_v28 }
  0xcf   :  { %1093 = vmatprep.mubr.bf16.mxu0 %v11609_v1  ;;  %1206 = vmatprep.mubr.bf16.mxu1 %v11609_v1 }
  0xd6   :  { %1094 = vmatmul.mubr.bf16.gmra.mrb[24].mxu0 %v10473_v31  ;;  %1207 = vmatmul.mubr.bf16.gmra.mrb[24].mxu1 %v10473_v31 }
  0xd7   :  { %1103 = vmatprep.mubr.bf16.mxu0 %v11609_v1  ;;  %1216 = vmatprep.mubr.bf16.mxu1 %v11609_v1 }
  0xde   :  { %1104 = vmatmul.mubr.bf16.gmra.mrb[28].mxu0 %v10479_v35  ;;  %1217 = vmatmul.mubr.bf16.gmra.mrb[28].mxu1 %v10479_v35 }
  0xdf   :  { %1259 = vmatprep.mubr.bf16.mxu0 %v11609_v1  ;;  %1372 = vmatprep.mubr.bf16.mxu1 %v11609_v1 }
  0xe6   :  { %1260 = vmatmul.mubr.bf16.vlgmr.msra.gmra.mrb[32].mxu0 %v10431_v11  ;;  %1373 = vmatmul.mubr.bf16.vlgmr.msra.gmra.mrb[32].mxu1 %v10431_v11 }
  0xe7   :  { %1454 = vmatpush1.bf16.msra.mxu0 %v7963_v40  ;;  %1567 = vmatpush1.bf16.msra.mxu1 %v7965_v41  ;;  %v164_v40 = vld [vmem:[#allocation6 + $0x78] sm:$0xff]  ;;  %v8075_v41 = vcombine.low %v265_v23, %v273_v25 }
  0xe8   :  { %1269 = vmatprep.mubr.bf16.mxu0 %v11609_v1  ;;  %1382 = vmatprep.mubr.bf16.mxu1 %v11609_v1  ;;  %v7970_v44 = vcombine.high %v156_v39, %v164_v40  ;;  %v7969_v53 = vcombine.low %v156_v39, %v164_v40  ;;  %v275_v39 = vld [vmem:[#allocation6 + $0x3f0] sm:$0xff]  ;;  %v268_v40 = vld [vmem:[#allocation6 + $0x3b8] sm:$0xff] }
  0xe9   :  { %1455 = vmatprep.subr.bf16.mxu0 %v7980_v42  ;;  %1568 = vmatprep.subr.bf16.mxu1 %v7982_v45  ;;  %v8077_v42 = vcombine.low %v266_v27, %v274_v29  ;;  %v171_v45 = vld [vmem:[#allocation6 + $0xb0] sm:$0xff]  ;;  %v252_v29 = vld [vmem:[#allocation6 + $0x338] sm:$0xff] }
  0xea   :  { %v259_v27 = vld [vmem:[#allocation6 + $0x370] sm:$0xff] }
  0xeb   :  { %1456 = vmatpush1.bf16.msra.mxu0 %v7979_v48  ;;  %1569 = vmatpush1.bf16.msra.mxu1 %v7981_v49  ;;  %v180_v48 = vld [vmem:[#allocation6 + $0xf8] sm:$0xff]  ;;  %v7967_v49 = vcombine.low %v155_v36, %v163_v37 }
  0xec   :  { %1457 = vmatprep.subr.bf16.mxu0 %v7996_v50  ;;  %1570 = vmatprep.subr.bf16.mxu1 %v7998_v54  ;;  %v187_v50 = vld [vmem:[#allocation6 + $0x130] sm:$0xff]  ;;  %v7984_v54 = vcombine.high %v171_v45, %v179_v46  ;;  %v7986_v55 = vcombine.high %v172_v47, %v180_v48 }
  0xed   :  { %v8000_v60 = vcombine.high %v187_v50, %v195_v51  ;;  %v7999_v3 = vcombine.low %v187_v50, %v195_v51  ;;  %v9286_v50 = vld [vmem:[#allocation9] ss:$16 sps:$4 sm:$0xff]   ;;  %v9289_v51 = vld [vmem:[#allocation9 + $0x8] ss:$16 sps:$4 sm:$0xff]  }
  0xee   :  { %1270 = vmatmul.mubr.bf16.gmra.mrb[36].mxu0 %v10437_v34  ;;  %1383 = vmatmul.mubr.bf16.gmra.mrb[36].mxu1 %v10437_v34 }
  0xef   :  { %1279 = vmatprep.mubr.bf16.mxu0 %v11609_v1  ;;  %1392 = vmatprep.mubr.bf16.mxu1 %v11609_v1 }
  0xf0   :  { %1458 = vmatpush1.bf16.msra.mxu0 %v7995_v57  ;;  %1571 = vmatpush1.bf16.msra.mxu1 %v7997_v58  ;;  %v196_v57 = vld [vmem:[#allocation6 + $0x178] sm:$0xff]  ;;  %v7983_v58 = vcombine.low %v171_v45, %v179_v46  ;;  %v9288_v46 = vld [vmem:[#allocation9 + $0x4] ss:$16 sps:$4 sm:$0xff]  }
  0xf1   :  { %1459 = vmatprep.subr.bf16.mxu0 %v8012_v59  ;;  %1572 = vmatprep.subr.bf16.mxu1 %v8014_v62  ;;  %v7985_v59 = vcombine.low %v172_v47, %v180_v48  ;;  %v8002_v61 = vcombine.high %v188_v56, %v196_v57  ;;  %v203_v62 = vld [vmem:[#allocation6 + $0x1b0] sm:$0xff]  ;;  %v8001_v4 = vcombine.low %v188_v56, %v196_v57  ;;  %v9295_v56 = vld [vmem:[#allocation9 + $0x28] ss:$16 sps:$4 sm:$0xff]  }
  0xf2   :  { %v9300_v57 = vld [vmem:[#allocation9 + $0x44] ss:$16 sps:$4 sm:$0xff]  }
  0xf4   :  { %1460 = vmatpush1.bf16.msra.mxu0 %v8011_v2  ;;  %1573 = vmatpush1.bf16.msra.mxu1 %v8013_v5  ;;  %v212_v2 = vld [vmem:[#allocation6 + $0x1f8] sm:$0xff]  ;;  %v8016_v5 = vcombine.high %v203_v62, %v211_v63 }
  0xf5   :  { %1461 = vmatprep.subr.bf16.mxu0 %v8028_v6  ;;  %1574 = vmatprep.subr.bf16.mxu1 %v8030_v10  ;;  %v8018_v6 = vcombine.high %v204_v0, %v212_v2  ;;  %v220_v10 = vld [vmem:[#allocation6 + $0x238] sm:$0xff] }
  0xf6   :  { %1280 = vmatmul.mubr.bf16.gmra.mrb[40].mxu0 %v10443_v52  ;;  %1393 = vmatmul.mubr.bf16.gmra.mrb[40].mxu1 %v10443_v52 }
  0xf7   :  { %1289 = vmatprep.mubr.bf16.mxu0 %v11609_v1  ;;  %1402 = vmatprep.mubr.bf16.mxu1 %v11609_v1 }
  0xf8   :  { %1462 = vmatpush1.bf16.msra.mxu0 %v8027_v12  ;;  %1575 = vmatpush1.bf16.msra.mxu1 %v8029_v13  ;;  %v228_v12 = vld [vmem:[#allocation6 + $0x278] sm:$0xff]  ;;  %v8015_v13 = vcombine.low %v203_v62, %v211_v63  ;;  %v9306_v62 = vld [vmem:[#allocation9 + $0x64] ss:$16 sps:$4 sm:$0xff]  }
  0xf9   :  { %1463 = vmatprep.subr.bf16.mxu0 %v8044_v14  ;;  %1576 = vmatprep.subr.bf16.mxu1 %v8046_v17  ;;  %v8017_v14 = vcombine.low %v204_v0, %v212_v2  ;;  %v8034_v16 = vcombine.high %v220_v10, %v228_v12  ;;  %v235_v17 = vld [vmem:[#allocation6 + $0x2b0] sm:$0xff]  ;;  %v9309_v63 = vld [vmem:[#allocation9 + $0x6c] ss:$16 sps:$4 sm:$0xff]   ;;  %v9307_v2 = vld [vmem:[#allocation9 + $0x68] ss:$16 sps:$4 sm:$0xff]  }
  0xfa   :  { %v8048_v23 = vcombine.high %v235_v17, %v243_v18  ;;  %v9304_v0 = vld [vmem:[#allocation9 + $0x60] ss:$16 sps:$4 sm:$0xff]  }
  0xfc   :  { %1464 = vmatpush1.bf16.msra.mxu0 %v8043_v20  ;;  %1577 = vmatpush1.bf16.msra.mxu1 %v8045_v21  ;;  %v244_v20 = vld [vmem:[#allocation6 + $0x2f8] sm:$0xff]  ;;  %v8031_v21 = vcombine.low %v219_v7, %v227_v9  ;;  %v10564_v9 = vld [vmem:[#allocation8] sm:$0xff] }
  0xfd   :  { %1465 = vmatprep.subr.bf16.mxu0 %v8060_v22  ;;  %1578 = vmatprep.subr.bf16.mxu1 %v8062_v26  ;;  %v8033_v22 = vcombine.low %v220_v10, %v228_v12  ;;  %v8050_v25 = vcombine.high %v236_v19, %v244_v20  ;;  %v251_v26 = vld [vmem:[#allocation6 + $0x330] sm:$0xff]  ;;  %v9313_v7 = vld [vmem:[#allocation9 + $0x88] ss:$16 sps:$4 sm:$0xff]  }
  0xfe   :  { %1290 = vmatmul.mubr.bf16.gmra.mrb[44].mxu0 %v10449_v8  ;;  %1403 = vmatmul.mubr.bf16.gmra.mrb[44].mxu1 %v10449_v8  ;;  %v8064_v36 = vcombine.high %v251_v26, %v259_v27 }
  0xff   :  { %1299 = vmatprep.mubr.bf16.mxu0 %v11609_v1  ;;  %1412 = vmatprep.mubr.bf16.mxu1 %v11609_v1 }
 0x100   :  { %1466 = vmatpush1.bf16.msra.mxu0 %v8059_v30  ;;  %1579 = vmatpush1.bf16.msra.mxu1 %v8061_v32  ;;  %v260_v30 = vld [vmem:[#allocation6 + $0x378] sm:$0xff]  ;;  %v8047_v32 = vcombine.low %v235_v17, %v243_v18  ;;  %v9316_v18 = vld [vmem:[#allocation9 + $0xa0] ss:$16 sps:$4 sm:$0xff]  }
 0x101   :  { %1467 = vmatprep.subr.bf16.mxu0 %v8076_v33  ;;  %1580 = vmatprep.subr.bf16.mxu1 %v8078_v38  ;;  %v8049_v33 = vcombine.low %v236_v19, %v244_v20  ;;  %v8066_v37 = vcombine.high %v252_v29, %v260_v30  ;;  %v267_v38 = vld [vmem:[#allocation6 + $0x3b0] sm:$0xff]  ;;  %v9319_v19 = vld [vmem:[#allocation9 + $0xa8] ss:$16 sps:$4 sm:$0xff]  }
 0x102   :  { %v8079_v47 = vcombine.low %v267_v38, %v275_v39 }
 0x104   :  { %1468 = vmatpush1.bf16.msra.mxu0 %v8075_v41  ;;  %1581 = vmatpush1.bf16.msra.mxu1 %v8077_v42  ;;  %v276_v41 = vld [vmem:[#allocation6 + $0x3f8] sm:$0xff]  ;;  %v8063_v42 = vcombine.low %v251_v26, %v259_v27  ;;  %v9322_v27 = vld [vmem:[#allocation9 + $0xc0] ss:$16 sps:$4 sm:$0xff]  }
 0x105   :  { %1679 = vmatprep.subr.bf16.mxu0 %v7968_v43  ;;  %1792 = vmatprep.subr.bf16.mxu1 %v7970_v44  ;;  %v8065_v43 = vcombine.low %v252_v29, %v260_v30  ;;  %v8080_v44 = vcombine.high %v267_v38, %v275_v39  ;;  %v8082_v45 = vcombine.high %v268_v40, %v276_v41 }
 0x106   :  { %1300 = vmatmul.mubr.bf16.gmra.mrb[48].mxu0 %v10461_v24  ;;  %1413 = vmatmul.mubr.bf16.gmra.mrb[48].mxu1 %v10461_v24  ;;  %v8081_v48 = vcombine.low %v268_v40, %v276_v41 }
 0x107   :  { %1309 = vmatprep.mubr.bf16.mxu0 %v11609_v1  ;;  %1422 = vmatprep.mubr.bf16.mxu1 %v11609_v1 }
 0x10e   :  { %1310 = vmatmul.mubr.bf16.gmra.mrb[52].mxu0 %v10467_v28  ;;  %1423 = vmatmul.mubr.bf16.gmra.mrb[52].mxu1 %v10467_v28 }
 0x10f   :  { %1319 = vmatprep.mubr.bf16.mxu0 %v11609_v1  ;;  %1432 = vmatprep.mubr.bf16.mxu1 %v11609_v1 }
 0x116   :  { %1320 = vmatmul.mubr.bf16.gmra.mrb[56].mxu0 %v10473_v31  ;;  %1433 = vmatmul.mubr.bf16.gmra.mrb[56].mxu1 %v10473_v31 }
 0x117   :  { %1329 = vmatprep.mubr.bf16.mxu0 %v11609_v1  ;;  %1442 = vmatprep.mubr.bf16.mxu1 %v11609_v1 }
 0x11e   :  { %1330 = vmatmul.mubr.bf16.gmra.mrb[60].mxu0 %v10479_v35  ;;  %1443 = vmatmul.mubr.bf16.gmra.mrb[60].mxu1 %v10479_v35 }
 0x11f   :  { %1485 = vmatprep.mubr.bf16.mxu0 %v11609_v1  ;;  %1598 = vmatprep.mubr.bf16.mxu1 %v11609_v1 }
 0x126   :  { %1486 = vmatmul.mubr.bf16.vlgmr.msra.gmra.mrb[64].mxu0 %v10431_v11  ;;  %1599 = vmatmul.mubr.bf16.vlgmr.msra.gmra.mrb[64].mxu1 %v10431_v11 }
 0x127   :  { %1680 = vmatpush1.bf16.msra.mxu0 %v7967_v49  ;;  %1793 = vmatpush1.bf16.msra.mxu1 %v7969_v53  ;;  %v9291_v49 = vld [vmem:[#allocation9 + $0xc] ss:$16 sps:$4 sm:$0xff]   ;;  %v9294_v53 = vld [vmem:[#allocation9 + $0x24] ss:$16 sps:$4 sm:$0xff]  }
 0x128   :  { %1495 = vmatprep.mubr.bf16.mxu0 %v11609_v1  ;;  %1608 = vmatprep.mubr.bf16.mxu1 %v11609_v1 }
 0x129   :  { %1681 = vmatprep.subr.bf16.mxu0 %v7984_v54  ;;  %1794 = vmatprep.subr.bf16.mxu1 %v7986_v55  ;;  %v9297_v54 = vld [vmem:[#allocation9 + $0x2c] ss:$16 sps:$4 sm:$0xff]   ;;  %v9292_v55 = vld [vmem:[#allocation9 + $0x20] ss:$16 sps:$4 sm:$0xff]  }
 0x12b   :  { %1682 = vmatpush1.bf16.msra.mxu0 %v7983_v58  ;;  %1795 = vmatpush1.bf16.msra.mxu1 %v7985_v59  ;;  %v9303_v58 = vld [vmem:[#allocation9 + $0x4c] ss:$16 sps:$4 sm:$0xff]   ;;  %v281_v59 = vlaneseq }
 0x12c   :  { %1683 = vmatprep.subr.bf16.mxu0 %v8000_v60  ;;  %1796 = vmatprep.subr.bf16.mxu1 %v8002_v61  ;;  %v9298_v60 = vld [vmem:[#allocation9 + $0x40] ss:$16 sps:$4 sm:$0xff]   ;;  %v9301_v61 = vld [vmem:[#allocation9 + $0x48] ss:$16 sps:$4 sm:$0xff]  }
 0x12e   :  { %1496 = vmatmul.mubr.bf16.gmra.mrb[68].mxu0 %v10437_v34  ;;  %1609 = vmatmul.mubr.bf16.gmra.mrb[68].mxu1 %v10437_v34 }
 0x12f   :  { %1505 = vmatprep.mubr.bf16.mxu0 %v11609_v1  ;;  %1618 = vmatprep.mubr.bf16.mxu1 %v11609_v1 }
 0x130   :  { %1684 = vmatpush1.bf16.msra.mxu0 %v7999_v3  ;;  %1797 = vmatpush1.bf16.msra.mxu1 %v8001_v4  ;;  %v9312_v3 = vld [vmem:[#allocation9 + $0x84] ss:$16 sps:$4 sm:$0xff]   ;;  %v9315_v4 = vld [vmem:[#allocation9 + $0x8c] ss:$16 sps:$4 sm:$0xff]  }
 0x131   :  { %1685 = vmatprep.subr.bf16.mxu0 %v8016_v5  ;;  %1798 = vmatprep.subr.bf16.mxu1 %v8018_v6  ;;  %v9310_v5 = vld [vmem:[#allocation9 + $0x80] ss:$16 sps:$4 sm:$0xff]  }
 0x134   :  { %1686 = vmatpush1.bf16.msra.mxu0 %v8015_v13  ;;  %1799 = vmatpush1.bf16.msra.mxu1 %v8017_v14  ;;  %v9318_v13 = vld [vmem:[#allocation9 + $0xa4] ss:$16 sps:$4 sm:$0xff]   ;;  %v9321_v14 = vld [vmem:[#allocation9 + $0xac] ss:$16 sps:$4 sm:$0xff]  }
 0x135   :  { %1687 = vmatprep.subr.bf16.mxu0 %v8032_v15  ;;  %1800 = vmatprep.subr.bf16.mxu1 %v8034_v16 }
 0x136   :  { %1506 = vmatmul.mubr.bf16.gmra.mrb[72].mxu0 %v10443_v52  ;;  %1619 = vmatmul.mubr.bf16.gmra.mrb[72].mxu1 %v10443_v52 }
 0x137   :  { %1515 = vmatprep.mubr.bf16.mxu0 %v11609_v1  ;;  %1628 = vmatprep.mubr.bf16.mxu1 %v11609_v1 }
 0x138   :  { %1688 = vmatpush1.bf16.msra.mxu0 %v8031_v21  ;;  %1801 = vmatpush1.bf16.msra.mxu1 %v8033_v22  ;;  %v9324_v21 = vld [vmem:[#allocation9 + $0xc4] ss:$16 sps:$4 sm:$0xff]   ;;  %v9327_v22 = vld [vmem:[#allocation9 + $0xcc] ss:$16 sps:$4 sm:$0xff]  }
 0x139   :  { %1689 = vmatprep.subr.bf16.mxu0 %v8048_v23  ;;  %1802 = vmatprep.subr.bf16.mxu1 %v8050_v25 }
 0x13c   :  { %1690 = vmatpush1.bf16.msra.mxu0 %v8047_v32  ;;  %1803 = vmatpush1.bf16.msra.mxu1 %v8049_v33 }
 0x13d   :  { %1691 = vmatprep.subr.bf16.mxu0 %v8064_v36  ;;  %1804 = vmatprep.subr.bf16.mxu1 %v8066_v37  ;;  %v9325_v36 = vld [vmem:[#allocation9 + $0xc8] ss:$16 sps:$4 sm:$0xff]   ;;  %v9330_v37 = vld [vmem:[#allocation9 + $0xe4] ss:$16 sps:$4 sm:$0xff]  }
 0x13e   :  { %1516 = vmatmul.mubr.bf16.gmra.mrb[76].mxu0 %v10449_v8  ;;  %1629 = vmatmul.mubr.bf16.gmra.mrb[76].mxu1 %v10449_v8 }
 0x13f   :  { %1525 = vmatprep.mubr.bf16.mxu0 %v11609_v1  ;;  %1638 = vmatprep.mubr.bf16.mxu1 %v11609_v1 }
 0x140   :  { %1692 = vmatpush1.bf16.msra.mxu0 %v8063_v42  ;;  %1805 = vmatpush1.bf16.msra.mxu1 %v8065_v43  ;;  %v9333_v42 = vld [vmem:[#allocation9 + $0xec] ss:$16 sps:$4 sm:$0xff]  }
 0x141   :  { %1693 = vmatprep.subr.bf16.mxu0 %v8080_v44  ;;  %1806 = vmatprep.subr.bf16.mxu1 %v8082_v45 }
 0x144   :  { %1694 = vmatpush1.bf16.msra.mxu0 %v8079_v47  ;;  %1807 = vmatpush1.bf16.msra.mxu1 %v8081_v48  ;;  %v9328_v47 = vld [vmem:[#allocation9 + $0xe0] ss:$16 sps:$4 sm:$0xff]  }
 0x145   :  { %5383 = vmatprep.subr.bf16.mxu0 %v9288_v46  ;;  %6287 = vmatprep.subr.bf16.mxu1 %v9291_v49 }
 0x146   :  { %1526 = vmatmul.mubr.bf16.gmra.mrb[80].mxu0 %v10461_v24  ;;  %1639 = vmatmul.mubr.bf16.gmra.mrb[80].mxu1 %v10461_v24 }
 0x147   :  { %1535 = vmatprep.mubr.bf16.mxu0 %v11609_v1  ;;  %1648 = vmatprep.mubr.bf16.mxu1 %v11609_v1 }
 0x14e   :  { %1536 = vmatmul.mubr.bf16.gmra.mrb[84].mxu0 %v10467_v28  ;;  %1649 = vmatmul.mubr.bf16.gmra.mrb[84].mxu1 %v10467_v28 }
 0x14f   :  { %1545 = vmatprep.mubr.bf16.mxu0 %v11609_v1  ;;  %1658 = vmatprep.mubr.bf16.mxu1 %v11609_v1 }
 0x156   :  { %1546 = vmatmul.mubr.bf16.gmra.mrb[88].mxu0 %v10473_v31  ;;  %1659 = vmatmul.mubr.bf16.gmra.mrb[88].mxu1 %v10473_v31 }
 0x157   :  { %1555 = vmatprep.mubr.bf16.mxu0 %v11609_v1  ;;  %1668 = vmatprep.mubr.bf16.mxu1 %v11609_v1 }
 0x15e   :  { %1556 = vmatmul.mubr.bf16.gmra.mrb[92].mxu0 %v10479_v35  ;;  %1669 = vmatmul.mubr.bf16.gmra.mrb[92].mxu1 %v10479_v35 }
 0x15f   :  { %1711 = vmatprep.mubr.bf16.mxu0 %v11609_v1  ;;  %1824 = vmatprep.mubr.bf16.mxu1 %v11609_v1 }
 0x166   :  { %1712 = vmatmul.mubr.bf16.vlgmr.msra.gmra.mrb[96].mxu0 %v10431_v11  ;;  %1825 = vmatmul.mubr.bf16.vlgmr.msra.gmra.mrb[96].mxu1 %v10431_v11  ;;  %v10556_v11 = vshrl.u32 %v281_v59, 7  ;;  %v9336_v59 = vld [vmem:[#allocation9 + $0x104] ss:$16 sps:$4 sm:$0xff]  }
 0x167   :  { %5384 = vmatpush1.bf16.msra.mxu0 %v9286_v50  ;;  %6288 = vmatpush1.bf16.msra.mxu1 %v9289_v51 }
 0x168   :  { %5385 = vmatprep.subr.bf16.mxu0 %v9294_v53  ;;  %6289 = vmatprep.subr.bf16.mxu1 %v9297_v54  ;;  %v10562_v6 = vsub.s32 0, %v10556_v11  ;;  %v10570_v10 = vsub.s32 1, %v10556_v11  ;;  %v10573_v12 = vsub.s32 3, %v10556_v11 }
 0x169   :  { %1721 = vmatprep.mubr.bf16.mxu0 %v11609_v1  ;;  %1834 = vmatprep.mubr.bf16.mxu1 %v11609_v1 }
 0x16a   :  { %11655 = vst [vmem:[#allocation21_spill] sm:$0xff] %v10562_v6  ;;  %11657 = vst [vmem:[#allocation23_spill] sm:$0xff] %v10570_v10  ;;  %v10578_v15 = vrot.slane %v10564_v9, %v10562_v6  ;;  %v10587_v17 = vrot.slane %v10564_v9, %v10570_v10  ;;  %v10591_v20 = vrot.slane %v10564_v9, %v10573_v12 }
 0x16b   :  { %5386 = vmatpush1.bf16.msra.mxu0 %v9292_v55  ;;  %6290 = vmatpush1.bf16.msra.mxu1 %v9295_v56  ;;  %11658 = vst [vmem:[#allocation24_spill] sm:$0xff] %v10573_v12  ;;  %v9331_v56 = vld [vmem:[#allocation9 + $0xe8] ss:$16 sps:$4 sm:$0xff]  }
 0x16c   :  { %5387 = vmatprep.subr.bf16.mxu0 %v9300_v57  ;;  %6291 = vmatprep.subr.bf16.mxu1 %v9303_v58 }
 0x16e   :  { %1722 = vmatmul.mubr.bf16.gmra.mrb[100].mxu0 %v10437_v34  ;;  %1835 = vmatmul.mubr.bf16.gmra.mrb[100].mxu1 %v10437_v34  ;;  %v10567_v34 = vsub.s32 2, %v10556_v11 }
 0x16f   :  { %5388 = vmatpush1.bf16.msra.mxu0 %v9298_v60  ;;  %6292 = vmatpush1.bf16.msra.mxu1 %v9301_v61  ;;  %v9339_v60 = vld [vmem:[#allocation9 + $0x10c] ss:$16 sps:$4 sm:$0xff]  }
 0x170   :  { %5389 = vmatprep.subr.bf16.mxu0 %v9306_v62  ;;  %6293 = vmatprep.subr.bf16.mxu1 %v9309_v63  ;;  %11656 = vst [vmem:[#allocation22_spill] sm:$0xff] %v10567_v34  ;;  %v10583_v16 = vrot.slane %v10564_v9, %v10567_v34 }
 0x171   :  { %1731 = vmatprep.mubr.bf16.mxu0 %v11609_v1  ;;  %1844 = vmatprep.mubr.bf16.mxu1 %v11609_v1 }
 0x173   :  { %5390 = vmatpush1.bf16.msra.mxu0 %v9304_v0  ;;  %6294 = vmatpush1.bf16.msra.mxu1 %v9307_v2  ;;  %v9334_v0 = vld [vmem:[#allocation9 + $0x100] ss:$16 sps:$4 sm:$0xff]  }
 0x174   :  { %5391 = vmatprep.subr.bf16.mxu0 %v9312_v3  ;;  %6295 = vmatprep.subr.bf16.mxu1 %v9315_v4 }
 0x176   :  { %1732 = vmatmul.mubr.bf16.gmra.mrb[104].mxu0 %v10443_v52  ;;  %1845 = vmatmul.mubr.bf16.gmra.mrb[104].mxu1 %v10443_v52 }
 0x177   :  { %5392 = vmatpush1.bf16.msra.mxu0 %v9310_v5  ;;  %6296 = vmatpush1.bf16.msra.mxu1 %v9313_v7 }
 0x178   :  { %5393 = vmatprep.subr.bf16.mxu0 %v9318_v13  ;;  %6297 = vmatprep.subr.bf16.mxu1 %v9321_v14 }
 0x179   :  { %v1035_v52 = vpop.f32.mrb[0].mxu0  ;;  %1741 = vmatprep.mubr.bf16.mxu0 %v11609_v1  ;;  %v1148_v25 = vpop.f32.mrb[0].mxu1  ;;  %1854 = vmatprep.mubr.bf16.mxu1 %v11609_v1 }
 0x17a   :  { %v1036_v23 = vadd.f32 %v1035_v52, %v10578_v15  ;;  %v1037_v26 = vpop.f32.mrb[1].mxu0  ;;  %v1149_v29 = vadd.f32 %v1148_v25, %v10583_v16  ;;  %v1150_v32 = vpop.f32.mrb[1].mxu1  ;;  %v9345_v25 = vld [vmem:[#allocation9 + $0x12c] ss:$16 sps:$4 sm:$0xff]  }
 0x17b   :  { %v1038_v30 = vadd.f32 %v1037_v26, %v10587_v17  ;;  %v1039_v33 = vpop.f32.mrb[2].mxu0  ;;  %5394 = vmatpush1.bf16.msra.mxu0 %v9316_v18  ;;  %v1151_v38 = vadd.f32 %v1150_v32, %v10591_v20  ;;  %v1152_v40 = vpop.f32.mrb[2].mxu1  ;;  %6298 = vmatpush1.bf16.msra.mxu1 %v9319_v19  ;;  %v9337_v18 = vld [vmem:[#allocation9 + $0x108] ss:$16 sps:$4 sm:$0xff]   ;;  %v9342_v19 = vld [vmem:[#allocation9 + $0x124] ss:$16 sps:$4 sm:$0xff]  }
 0x17c   :  { %v1040_v39 = vadd.f32 %v1039_v33, %v10578_v15  ;;  %v1041_v41 = vpop.f32.mrb[3].mxu0  ;;  %5395 = vmatprep.subr.bf16.mxu0 %v9324_v21  ;;  %v1907_v43 = vmax.f32 %v1149_v29, 0.0  ;;  %v1153_v44 = vadd.f32 %v1152_v40, %v10583_v16  ;;  %v1154_v46 = vpop.f32.mrb[3].mxu1  ;;  %6299 = vmatprep.subr.bf16.mxu1 %v9327_v22  ;;  %v1905_v48 = vmax.f32 %v1036_v23, 0.0  ;;  %v9340_v32 = vld [vmem:[#allocation9 + $0x120] ss:$16 sps:$4 sm:$0xff]  }
 0x17d   :  { %v1042_v45 = vadd.f32 %v1041_v41, %v10587_v17  ;;  %v1908_v49 = vmax.f32 %v1151_v38, 0.0  ;;  %v1155_v51 = vadd.f32 %v1154_v46, %v10591_v20  ;;  %v1906_v53 = vmax.f32 %v1038_v30, 0.0  ;;  %v9351_v46 = vld [vmem:[#allocation9 + $0x14c] ss:$16 sps:$4 sm:$0xff]  }
 0x17e   :  { %v1921_v50 = vmax.f32 %v1040_v39, 0.0  ;;  %1742 = vmatmul.mubr.bf16.gmra.mrb[108].mxu0 %v10449_v8  ;;  %v1923_v54 = vmax.f32 %v1153_v44, 0.0  ;;  %1855 = vmatmul.mubr.bf16.gmra.mrb[108].mxu1 %v10449_v8 }
 0x17f   :  { %v1922_v55 = vmax.f32 %v1042_v45, 0.0  ;;  %5396 = vmatpush1.bf16.msra.mxu0 %v9322_v27  ;;  %v1924_v58 = vmax.f32 %v1155_v51, 0.0  ;;  %6300 = vmatpush1.bf16.msra.mxu1 %v9325_v36  ;;  %v9348_v45 = vld [vmem:[#allocation9 + $0x144] ss:$16 sps:$4 sm:$0xff]  }
 0x180   :  { %v10605_v57 = vpack.c.bf16 %v1921_v50, %v1905_v48  ;;  %5397 = vmatprep.subr.bf16.mxu0 %v9330_v37  ;;  %v10607_v61 = vpack.c.bf16 %v1923_v54, %v1907_v43  ;;  %6301 = vmatprep.subr.bf16.mxu1 %v9333_v42  ;;  %v9343_v42 = vld [vmem:[#allocation9 + $0x128] ss:$16 sps:$4 sm:$0xff]   ;;  %v9346_v50 = vld [vmem:[#allocation9 + $0x140] ss:$16 sps:$4 sm:$0xff]  }
 0x181   :  { %v10609_v62 = vpack.c.bf16 %v1922_v55, %v1906_v53  ;;  %v1045_v63 = vpop.f32.mrb[4].mxu0  ;;  %1751 = vmatprep.mubr.bf16.mxu0 %v11609_v1  ;;  %v10612_v2 = vpack.c.bf16 %v1924_v58, %v1908_v49  ;;  %v1158_v3 = vpop.f32.mrb[4].mxu1  ;;  %1864 = vmatprep.mubr.bf16.mxu1 %v11609_v1 }
 0x182   :  { %v1046_v8 = vadd.f32 %v1045_v63, %v10578_v15  ;;  %v1047_v4 = vpop.f32.mrb[5].mxu0  ;;  %v1159_v5 = vadd.f32 %v1158_v3, %v10583_v16  ;;  %v1160_v13 = vpop.f32.mrb[5].mxu1  ;;  %v9354_v63 = vld [vmem:[#allocation9 + $0x164] ss:$16 sps:$4 sm:$0xff]  }
 0x183   :  { %v1048_v7 = vadd.f32 %v1047_v4, %v10587_v17  ;;  %v1049_v14 = vpop.f32.mrb[6].mxu0  ;;  %5398 = vmatpush1.bf16.msra.mxu0 %v9328_v47  ;;  %v1161_v21 = vadd.f32 %v1160_v13, %v10591_v20  ;;  %v1162_v52 = vpop.f32.mrb[6].mxu1  ;;  %6302 = vmatpush1.bf16.msra.mxu1 %v9331_v56 }
 0x184   :  { %v1050_v22 = vadd.f32 %v1049_v14, %v10578_v15  ;;  %v1051_v23 = vpop.f32.mrb[7].mxu0  ;;  %5399 = vmatprep.subr.bf16.mxu0 %v9336_v59  ;;  %v1939_v26 = vmax.f32 %v1159_v5, 0.0  ;;  %v1163_v27 = vadd.f32 %v1162_v52, %v10583_v16  ;;  %v1164_v30 = vpop.f32.mrb[7].mxu1  ;;  %6303 = vmatprep.subr.bf16.mxu1 %v9339_v60  ;;  %v1937_v33 = vmax.f32 %v1046_v8, 0.0  ;;  %v9349_v60 = vld [vmem:[#allocation9 + $0x148] ss:$16 sps:$4 sm:$0xff]  }
 0x185   :  { %v1052_v29 = vadd.f32 %v1051_v23, %v10587_v17  ;;  %v1940_v36 = vmax.f32 %v1161_v21, 0.0  ;;  %v1165_v38 = vadd.f32 %v1164_v30, %v10591_v20  ;;  %v1938_v39 = vmax.f32 %v1048_v7, 0.0  ;;  %v9357_v5 = vld [vmem:[#allocation9 + $0x16c] ss:$16 sps:$4 sm:$0xff]  }
 0x186   :  { %v1953_v37 = vmax.f32 %v1050_v22, 0.0  ;;  %1752 = vmatmul.mubr.bf16.gmra.mrb[112].mxu0 %v10461_v24  ;;  %v1955_v40 = vmax.f32 %v1163_v27, 0.0  ;;  %1865 = vmatmul.mubr.bf16.gmra.mrb[112].mxu1 %v10461_v24 }
 0x187   :  { %v1954_v41 = vmax.f32 %v1052_v29, 0.0  ;;  %5400 = vmatpush1.bf16.msra.mxu0 %v9334_v0  ;;  %v1956_v44 = vmax.f32 %v1165_v38, 0.0  ;;  %6304 = vmatpush1.bf16.msra.mxu1 %v9337_v18  ;;  %v9355_v29 = vld [vmem:[#allocation9 + $0x168] ss:$16 sps:$4 sm:$0xff]  }
 0x188   :  { %v10625_v43 = vpack.c.bf16 %v1953_v37, %v1937_v33  ;;  %5401 = vmatprep.subr.bf16.mxu0 %v9342_v19  ;;  %v10627_v47 = vpack.c.bf16 %v1955_v40, %v1939_v26  ;;  %6305 = vmatprep.subr.bf16.mxu1 %v9345_v25  ;;  %v9352_v19 = vld [vmem:[#allocation9 + $0x160] ss:$16 sps:$4 sm:$0xff]   ;;  %v9360_v33 = vld [vmem:[#allocation9 + $0x184] ss:$16 sps:$4 sm:$0xff]  }
 0x189   :  { %v10629_v48 = vpack.c.bf16 %v1954_v41, %v1938_v39  ;;  %v1055_v49 = vpop.f32.mrb[8].mxu0  ;;  %1761 = vmatprep.mubr.bf16.mxu0 %v11609_v1  ;;  %v10632_v51 = vpack.c.bf16 %v1956_v44, %v1940_v36  ;;  %v1168_v53 = vpop.f32.mrb[8].mxu1  ;;  %1874 = vmatprep.mubr.bf16.mxu1 %v11609_v1  ;;  %v9363_v36 = vld [vmem:[#allocation9 + $0x18c] ss:$16 sps:$4 sm:$0xff]   ;;  %v9358_v40 = vld [vmem:[#allocation9 + $0x180] ss:$16 sps:$4 sm:$0xff]  }
 0x18a   :  { %v1056_v24 = vadd.f32 %v1055_v49, %v10578_v15  ;;  %v1057_v54 = vpop.f32.mrb[9].mxu0  ;;  %v1169_v55 = vadd.f32 %v1168_v53, %v10583_v16  ;;  %v1170_v58 = vpop.f32.mrb[9].mxu1  ;;  %v9366_v53 = vld [vmem:[#allocation9 + $0x1a4] ss:$16 sps:$4 sm:$0xff]  }
 0x18b   :  { %v1058_v56 = vadd.f32 %v1057_v54, %v10587_v17  ;;  %v1059_v59 = vpop.f32.mrb[10].mxu0  ;;  %5402 = vmatpush1.bf16.msra.mxu0 %v9340_v32  ;;  %v1171_v0 = vadd.f32 %v1170_v58, %v10591_v20  ;;  %v1172_v3 = vpop.f32.mrb[10].mxu1  ;;  %6306 = vmatpush1.bf16.msra.mxu1 %v9343_v42 }
 0x18c   :  { %v1060_v8 = vadd.f32 %v1059_v59, %v10578_v15  ;;  %v1061_v4 = vpop.f32.mrb[11].mxu0  ;;  %5403 = vmatprep.subr.bf16.mxu0 %v9348_v45  ;;  %v1971_v7 = vmax.f32 %v1169_v55, 0.0  ;;  %v1173_v13 = vadd.f32 %v1172_v3, %v10583_v16  ;;  %v1174_v18 = vpop.f32.mrb[11].mxu1  ;;  %6307 = vmatprep.subr.bf16.mxu1 %v9351_v46  ;;  %v1969_v21 = vmax.f32 %v1056_v24, 0.0  ;;  %v9361_v24 = vld [vmem:[#allocation9 + $0x188] ss:$16 sps:$4 sm:$0xff]  }
 0x18d   :  { %v1062_v14 = vadd.f32 %v1061_v4, %v10587_v17  ;;  %v1972_v22 = vmax.f32 %v1171_v0, 0.0  ;;  %v1175_v23 = vadd.f32 %v1174_v18, %v10591_v20  ;;  %v1970_v25 = vmax.f32 %v1058_v56, 0.0  ;;  %v9369_v59 = vld [vmem:[#allocation9 + $0x1ac] ss:$16 sps:$4 sm:$0xff]   ;;  %v9364_v3 = vld [vmem:[#allocation9 + $0x1a0] ss:$16 sps:$4 sm:$0xff]  }
 0x18e   :  { %v1985_v52 = vmax.f32 %v1060_v8, 0.0  ;;  %1762 = vmatmul.mubr.bf16.gmra.mrb[116].mxu0 %v10467_v28  ;;  %v1987_v26 = vmax.f32 %v1173_v13, 0.0  ;;  %1875 = vmatmul.mubr.bf16.gmra.mrb[116].mxu1 %v10467_v28 }
 0x18f   :  { %v1986_v27 = vmax.f32 %v1062_v14, 0.0  ;;  %5404 = vmatpush1.bf16.msra.mxu0 %v9346_v50  ;;  %v1988_v32 = vmax.f32 %v1175_v23, 0.0  ;;  %6308 = vmatpush1.bf16.msra.mxu1 %v9349_v60  ;;  %v9372_v23 = vld [vmem:[#allocation9 + $0x1c4] ss:$16 sps:$4 sm:$0xff]  }
 0x190   :  { %v10645_v30 = vpack.c.bf16 %v1985_v52, %v1969_v21  ;;  %5405 = vmatprep.subr.bf16.mxu0 %v9354_v63  ;;  %v10647_v37 = vpack.c.bf16 %v1987_v26, %v1971_v7  ;;  %6309 = vmatprep.subr.bf16.mxu1 %v9357_v5  ;;  %v9367_v21 = vld [vmem:[#allocation9 + $0x1a8] ss:$16 sps:$4 sm:$0xff]  }
 0x191   :  { %v10649_v38 = vpack.c.bf16 %v1986_v27, %v1970_v25  ;;  %v1065_v39 = vpop.f32.mrb[12].mxu0  ;;  %1771 = vmatprep.mubr.bf16.mxu0 %v11609_v1  ;;  %v10652_v41 = vpack.c.bf16 %v1988_v32, %v1972_v22  ;;  %v1178_v42 = vpop.f32.mrb[12].mxu1  ;;  %1884 = vmatprep.mubr.bf16.mxu1 %v11609_v1  ;;  %v9375_v25 = vld [vmem:[#allocation9 + $0x1cc] ss:$16 sps:$4 sm:$0xff]   ;;  %v9370_v32 = vld [vmem:[#allocation9 + $0x1c0] ss:$16 sps:$4 sm:$0xff]  }
 0x192   :  { %v1066_v28 = vadd.f32 %v1065_v39, %v10578_v15  ;;  %v1067_v44 = vpop.f32.mrb[13].mxu0  ;;  %v1179_v45 = vadd.f32 %v1178_v42, %v10583_v16  ;;  %v1180_v49 = vpop.f32.mrb[13].mxu1 }
 0x193   :  { %v1068_v46 = vadd.f32 %v1067_v44, %v10587_v17  ;;  %v1069_v50 = vpop.f32.mrb[14].mxu0  ;;  %5406 = vmatpush1.bf16.msra.mxu0 %v9352_v19  ;;  %v1181_v54 = vadd.f32 %v1180_v49, %v10591_v20  ;;  %v1182_v56 = vpop.f32.mrb[14].mxu1  ;;  %6310 = vmatpush1.bf16.msra.mxu1 %v9355_v29 }
 0x194   :  { %v1070_v55 = vadd.f32 %v1069_v50, %v10578_v15  ;;  %v1071_v58 = vpop.f32.mrb[15].mxu0  ;;  %5407 = vmatprep.subr.bf16.mxu0 %v9360_v33  ;;  %v2003_v60 = vmax.f32 %v1179_v45, 0.0  ;;  %v1183_v63 = vadd.f32 %v1182_v56, %v10583_v16  ;;  %v1184_v8 = vpop.f32.mrb[15].mxu1  ;;  %6311 = vmatprep.subr.bf16.mxu1 %v9363_v36  ;;  %v2001_v4 = vmax.f32 %v1066_v28, 0.0  ;;  %v9373_v45 = vld [vmem:[#allocation9 + $0x1c8] ss:$16 sps:$4 sm:$0xff]  }
 0x195   :  { %v1072_v0 = vadd.f32 %v1071_v58, %v10587_v17  ;;  %v2004_v5 = vmax.f32 %v1181_v54, 0.0  ;;  %v1185_v13 = vadd.f32 %v1184_v8, %v10591_v20  ;;  %v2002_v14 = vmax.f32 %v1068_v46, 0.0  ;;  %v9378_v46 = vld [vmem:[#allocation9 + $0x1e4] ss:$16 sps:$4 sm:$0xff]   ;;  %v9381_v54 = vld [vmem:[#allocation9 + $0x1ec] ss:$16 sps:$4 sm:$0xff]  }
 0x196   :  { %v2017_v7 = vmax.f32 %v1070_v55, 0.0  ;;  %1772 = vmatmul.mubr.bf16.gmra.mrb[120].mxu0 %v10473_v31  ;;  %v2019_v18 = vmax.f32 %v1183_v63, 0.0  ;;  %1885 = vmatmul.mubr.bf16.gmra.mrb[120].mxu1 %v10473_v31 }
 0x197   :  { %v2018_v19 = vmax.f32 %v1072_v0, 0.0  ;;  %5408 = vmatpush1.bf16.msra.mxu0 %v9358_v40  ;;  %v2020_v52 = vmax.f32 %v1185_v13, 0.0  ;;  %6312 = vmatpush1.bf16.msra.mxu1 %v9361_v24  ;;  %v9379_v13 = vld [vmem:[#allocation9 + $0x1e8] ss:$16 sps:$4 sm:$0xff]  }
 0x198   :  { %v10665_v22 = vpack.c.bf16 %v2017_v7, %v2001_v4  ;;  %5409 = vmatprep.subr.bf16.mxu0 %v9366_v53  ;;  %v10667_v26 = vpack.c.bf16 %v2019_v18, %v2003_v60  ;;  %6313 = vmatprep.subr.bf16.mxu1 %v9369_v59  ;;  %v9376_v60 = vld [vmem:[#allocation9 + $0x1e0] ss:$16 sps:$4 sm:$0xff]  }
 0x199   :  { %v10669_v27 = vpack.c.bf16 %v2018_v19, %v2002_v14  ;;  %v1075_v29 = vpop.f32.mrb[16].mxu0  ;;  %1781 = vmatprep.mubr.bf16.mxu0 %v11609_v1  ;;  %v10672_v33 = vpack.c.bf16 %v2020_v52, %v2004_v5  ;;  %v1188_v36 = vpop.f32.mrb[16].mxu1  ;;  %1894 = vmatprep.mubr.bf16.mxu1 %v11609_v1  ;;  %v9384_v19 = vld [vmem:[#allocation9 + $0x204] ss:$16 sps:$4 sm:$0xff]  }
 0x19a   :  { %v1076_v31 = vadd.f32 %v1075_v29, %v10578_v15  ;;  %v1077_v39 = vpop.f32.mrb[17].mxu0  ;;  %v1189_v40 = vadd.f32 %v1188_v36, %v10583_v16  ;;  %v1190_v42 = vpop.f32.mrb[17].mxu1 }
 0x19b   :  { %v1078_v28 = vadd.f32 %v1077_v39, %v10587_v17  ;;  %v1079_v44 = vpop.f32.mrb[18].mxu0  ;;  %5410 = vmatpush1.bf16.msra.mxu0 %v9364_v3  ;;  %v1191_v49 = vadd.f32 %v1190_v42, %v10591_v20  ;;  %v1192_v24 = vpop.f32.mrb[18].mxu1  ;;  %6314 = vmatpush1.bf16.msra.mxu1 %v9367_v21  ;;  %v9387_v21 = vld [vmem:[#allocation9 + $0x20c] ss:$16 sps:$4 sm:$0xff]   ;;  %v9382_v42 = vld [vmem:[#allocation9 + $0x200] ss:$16 sps:$4 sm:$0xff]  }
 0x19c   :  { %v1080_v50 = vadd.f32 %v1079_v44, %v10578_v15  ;;  %v1081_v53 = vpop.f32.mrb[19].mxu0  ;;  %5411 = vmatprep.subr.bf16.mxu0 %v9372_v23  ;;  %v2035_v55 = vmax.f32 %v1189_v40, 0.0  ;;  %v1193_v56 = vadd.f32 %v1192_v24, %v10583_v16  ;;  %v1194_v59 = vpop.f32.mrb[19].mxu1  ;;  %6315 = vmatprep.subr.bf16.mxu1 %v9375_v25  ;;  %v2033_v63 = vmax.f32 %v1076_v31, 0.0  ;;  %v9385_v44 = vld [vmem:[#allocation9 + $0x208] ss:$16 sps:$4 sm:$0xff]  }
 0x19d   :  { %v1082_v58 = vadd.f32 %v1081_v53, %v10587_v17  ;;  %v2036_v0 = vmax.f32 %v1191_v49, 0.0  ;;  %v1195_v3 = vadd.f32 %v1194_v59, %v10591_v20  ;;  %v2034_v4 = vmax.f32 %v1078_v28, 0.0 }
 0x19e   :  { %v2049_v8 = vmax.f32 %v1080_v50, 0.0  ;;  %1782 = vmatmul.mubr.bf16.gmra.mrb[124].mxu0 %v10479_v35  ;;  %v2051_v5 = vmax.f32 %v1193_v56, 0.0  ;;  %1895 = vmatmul.mubr.bf16.gmra.mrb[124].mxu1 %v10479_v35  ;;  %v9390_v50 = vld [vmem:[#allocation9 + $0x224] ss:$16 sps:$4 sm:$0xff]  }
 0x19f   :  { %v2050_v7 = vmax.f32 %v1082_v58, 0.0  ;;  %5412 = vmatpush1.bf16.msra.mxu0 %v9370_v32  ;;  %v2052_v18 = vmax.f32 %v1195_v3, 0.0  ;;  %5415 = vmatprep.mubr.bf16.mxu0 %v10609_v62  ;;  %v9393_v58 = vld [vmem:[#allocation9 + $0x22c] ss:$16 sps:$4 sm:$0xff]  }
 0x1a0   :  { %v10685_v14 = vpack.c.bf16 %v2049_v8, %v2033_v63  ;;  %6316 = vmatpush1.bf16.msra.mxu1 %v9373_v45  ;;  %v10688_v52 = vpack.c.bf16 %v2051_v5, %v2035_v55  ;;  %6319 = vmatprep.mubr.bf16.mxu1 %v10609_v62  ;;  %v9391_v5 = vld [vmem:[#allocation9 + $0x228] ss:$16 sps:$4 sm:$0xff]  }
 0x1a1   :  { %v10690_v23 = vpack.c.bf16 %v2050_v7, %v2034_v4  ;;  %v1085_v25 = vpop.f32.mrb[20].mxu0  ;;  %5413 = vmatprep.subr.bf16.mxu0 %v9378_v46  ;;  %v10693_v29 = vpack.c.bf16 %v2052_v18, %v2036_v0  ;;  %v1198_v32 = vpop.f32.mrb[20].mxu1  ;;  %6317 = vmatprep.subr.bf16.mxu1 %v9381_v54  ;;  %v9388_v0 = vld [vmem:[#allocation9 + $0x220] ss:$16 sps:$4 sm:$0xff]   ;;  %v9396_v18 = vld [vmem:[#allocation9 + $0x244] ss:$16 sps:$4 sm:$0xff]  }
 0x1a2   :  { %v1086_v35 = vadd.f32 %v1085_v25, %v10578_v15  ;;  %v1087_v31 = vpop.f32.mrb[21].mxu0  ;;  %v1199_v36 = vadd.f32 %v1198_v32, %v10583_v16  ;;  %v1200_v40 = vpop.f32.mrb[21].mxu1 }
 0x1a3   :  { %v1088_v39 = vadd.f32 %v1087_v31, %v10587_v17  ;;  %v1089_v28 = vpop.f32.mrb[22].mxu0  ;;  %5414 = vmatpush1.bf16.msra.mxu0 %v9376_v60  ;;  %v1201_v62 = vadd.f32 %v1200_v40, %v10591_v20  ;;  %v1202_v46 = vpop.f32.mrb[22].mxu1 }
 0x1a4   :  { %v1090_v45 = vadd.f32 %v1089_v28, %v10578_v15  ;;  %6318 = vmatpush1.bf16.msra.mxu1 %v9379_v13  ;;  %v1091_v49 = vpop.f32.mrb[23].mxu0  ;;  %5496 = vmatprep.subr.bf16.mxu0 %v9384_v19  ;;  %v2065_v24 = vmax.f32 %v1086_v35, 0.0  ;;  %v2067_v53 = vmax.f32 %v1199_v36, 0.0  ;;  %v1203_v54 = vadd.f32 %v1202_v46, %v10583_v16  ;;  %v1204_v56 = vpop.f32.mrb[23].mxu1  ;;  %v9399_v19 = vld [vmem:[#allocation9 + $0x24c] ss:$16 sps:$4 sm:$0xff]  }
 0x1a5   :  { %v1092_v55 = vadd.f32 %v1091_v49, %v10587_v17  ;;  %6400 = vmatprep.subr.bf16.mxu1 %v9387_v21  ;;  %v2068_v59 = vmax.f32 %v1201_v62, 0.0  ;;  %v1205_v63 = vadd.f32 %v1204_v56, %v10591_v20  ;;  %v2066_v8 = vmax.f32 %v1088_v39, 0.0  ;;  %v9394_v39 = vld [vmem:[#allocation9 + $0x240] ss:$16 sps:$4 sm:$0xff]   ;;  %v9397_v49 = vld [vmem:[#allocation9 + $0x248] ss:$16 sps:$4 sm:$0xff]  }
 0x1a6   :  { %v2081_v60 = vmax.f32 %v1090_v45, 0.0  ;;  %5416 = vmatmul.mubr.bf16.vlgmr.msra.gmra.mrb[128].mxu0 %v10605_v57  ;;  %v2083_v3 = vmax.f32 %v1203_v54, 0.0 }
 0x1a7   :  { %v2082_v4 = vmax.f32 %v1092_v55, 0.0  ;;  %6320 = vmatmul.mubr.bf16.vlgmr.msra.gmra.mrb[128].mxu1 %v10605_v57  ;;  %5425 = vmatprep.mubr.bf16.mxu0 %v10629_v48  ;;  %v2084_v13 = vmax.f32 %v1205_v63, 0.0 }
 0x1a8   :  { %v10706_v7 = vpack.c.bf16 %v2081_v60, %v2065_v24  ;;  %5497 = vmatpush1.bf16.msra.mxu0 %v9382_v42  ;;  %6329 = vmatprep.mubr.bf16.mxu1 %v10629_v48  ;;  %v10709_v21 = vpack.c.bf16 %v2083_v3, %v2067_v53 }
 0x1a9   :  { %v10711_v25 = vpack.c.bf16 %v2082_v4, %v2066_v8  ;;  %6401 = vmatpush1.bf16.msra.mxu1 %v9385_v44  ;;  %v1095_v35 = vpop.f32.mrb[24].mxu0  ;;  %5498 = vmatprep.subr.bf16.mxu0 %v9390_v50  ;;  %v10713_v32 = vpack.c.bf16 %v2084_v13, %v2068_v59  ;;  %v1208_v31 = vpop.f32.mrb[24].mxu1  ;;  %v9402_v50 = vld [vmem:[#allocation9 + $0x264] ss:$16 sps:$4 sm:$0xff]  }
 0x1aa   :  { %v1096_v57 = vadd.f32 %v1095_v35, %v10578_v15  ;;  %v1097_v36 = vpop.f32.mrb[25].mxu0  ;;  %6402 = vmatprep.subr.bf16.mxu1 %v9393_v58  ;;  %v1209_v40 = vadd.f32 %v1208_v31, %v10583_v16  ;;  %v1210_v28 = vpop.f32.mrb[25].mxu1  ;;  %v9405_v58 = vld [vmem:[#allocation9 + $0x26c] ss:$16 sps:$4 sm:$0xff]   ;;  %v9408_v35 = vld [vmem:[#allocation9 + $0x284] ss:$16 sps:$4 sm:$0xff]  }
 0x1ab   :  { %v1098_v48 = vadd.f32 %v1097_v36, %v10587_v17  ;;  %v1099_v42 = vpop.f32.mrb[26].mxu0  ;;  %v1211_v62 = vadd.f32 %v1210_v28, %v10591_v20  ;;  %v1212_v45 = vpop.f32.mrb[26].mxu1 }
 0x1ac   :  { %v1100_v44 = vadd.f32 %v1099_v42, %v10578_v15  ;;  %5499 = vmatpush1.bf16.msra.mxu0 %v9388_v0  ;;  %v1101_v46 = vpop.f32.mrb[27].mxu0  ;;  %v2097_v24 = vmax.f32 %v1096_v57, 0.0  ;;  %v2099_v53 = vmax.f32 %v1209_v40, 0.0  ;;  %v1213_v54 = vadd.f32 %v1212_v45, %v10583_v16  ;;  %v1214_v56 = vpop.f32.mrb[27].mxu1  ;;  %v9400_v0 = vld [vmem:[#allocation9 + $0x260] ss:$16 sps:$4 sm:$0xff]  }
 0x1ad   :  { %6403 = vmatpush1.bf16.msra.mxu1 %v9391_v5  ;;  %v1102_v55 = vadd.f32 %v1101_v46, %v10587_v17  ;;  %5500 = vmatprep.subr.bf16.mxu0 %v9396_v18  ;;  %v2098_v59 = vmax.f32 %v1098_v48, 0.0  ;;  %v2100_v60 = vmax.f32 %v1211_v62, 0.0  ;;  %v1215_v8 = vadd.f32 %v1214_v56, %v10591_v20  ;;  %v9403_v18 = vld [vmem:[#allocation9 + $0x268] ss:$16 sps:$4 sm:$0xff]   ;;  %v9406_v62 = vld [vmem:[#allocation9 + $0x280] ss:$16 sps:$4 sm:$0xff]  }
 0x1ae   :  { %v2113_v63 = vmax.f32 %v1100_v44, 0.0  ;;  %5426 = vmatmul.mubr.bf16.gmra.mrb[132].mxu0 %v10625_v43  ;;  %6404 = vmatprep.subr.bf16.mxu1 %v9399_v19  ;;  %v2115_v3 = vmax.f32 %v1213_v54, 0.0  ;;  %v11613_v57 = vsub.s32 4, %v10556_v11  ;;  %v11612_v40 = vsub.s32 6, %v10556_v11 }
 0x1af   :  { %v2114_v4 = vmax.f32 %v1102_v55, 0.0  ;;  %6330 = vmatmul.mubr.bf16.gmra.mrb[132].mxu1 %v10625_v43  ;;  %5435 = vmatprep.mubr.bf16.mxu0 %v10649_v38  ;;  %v2116_v13 = vmax.f32 %v1215_v8, 0.0  ;;  %v9411_v43 = vld [vmem:[#allocation9 + $0x28c] ss:$16 sps:$4 sm:$0xff]   ;;  %v11611_v48 = vsub.s32 5, %v10556_v11 }
 0x1b0   :  { %v10726_v5 = vpack.c.bf16 %v2113_v63, %v2097_v24  ;;  %5501 = vmatpush1.bf16.msra.mxu0 %v9394_v39  ;;  %6339 = vmatprep.mubr.bf16.mxu1 %v10649_v38  ;;  %v10730_v31 = vpack.c.bf16 %v2115_v3, %v2099_v53  ;;  %v9409_v55 = vld [vmem:[#allocation9 + $0x288] ss:$16 sps:$4 sm:$0xff]   ;;  %v10746_v56 = vrot.slane %v10564_v9, %v11613_v57 }
 0x1b1   :  { %v10732_v19 = vpack.c.bf16 %v2114_v4, %v2098_v59  ;;  %6405 = vmatpush1.bf16.msra.mxu1 %v9397_v49  ;;  %v1105_v36 = vpop.f32.mrb[28].mxu0  ;;  %5502 = vmatprep.subr.bf16.mxu0 %v9402_v50  ;;  %v10736_v28 = vpack.c.bf16 %v2116_v13, %v2100_v60  ;;  %v1218_v39 = vpop.f32.mrb[28].mxu1 }
 0x1b2   :  { %v1106_v38 = vadd.f32 %v1105_v36, %v10578_v15  ;;  %v1107_v42 = vpop.f32.mrb[29].mxu0  ;;  %6406 = vmatprep.subr.bf16.mxu1 %v9405_v58  ;;  %v1219_v44 = vadd.f32 %v1218_v39, %v10583_v16  ;;  %v1220_v46 = vpop.f32.mrb[29].mxu1  ;;  %v11610_v58 = vsub.s32 7, %v10556_v11  ;;  %v9417_v39 = vld [vmem:[#allocation9 + $0x2ac] ss:$16 sps:$4 sm:$0xff]  }
 0x1b3   :  { %v1108_v45 = vadd.f32 %v1107_v42, %v10587_v17  ;;  %v1109_v49 = vpop.f32.mrb[30].mxu0  ;;  %v1221_v50 = vadd.f32 %v1220_v46, %v10591_v20  ;;  %v1222_v53 = vpop.f32.mrb[30].mxu1 }
 0x1b4   :  { %v1110_v24 = vadd.f32 %v1109_v49, %v10578_v15  ;;  %5503 = vmatpush1.bf16.msra.mxu0 %v9400_v0  ;;  %v1111_v54 = vpop.f32.mrb[31].mxu0  ;;  %v2129_v59 = vmax.f32 %v1106_v38, 0.0  ;;  %v2131_v60 = vmax.f32 %v1219_v44, 0.0  ;;  %v1223_v63 = vadd.f32 %v1222_v53, %v10583_v16  ;;  %v1224_v3 = vpop.f32.mrb[31].mxu1  ;;  %v9414_v15 = vld [vmem:[#allocation9 + $0x2a4] ss:$16 sps:$4 sm:$0xff]  }
 0x1b5   :  { %6407 = vmatpush1.bf16.msra.mxu1 %v9403_v18  ;;  %v1112_v8 = vadd.f32 %v1111_v54, %v10587_v17  ;;  %5504 = vmatprep.subr.bf16.mxu0 %v9408_v35  ;;  %v2130_v0 = vmax.f32 %v1108_v45, 0.0  ;;  %v2132_v4 = vmax.f32 %v1221_v50, 0.0  ;;  %v1225_v36 = vadd.f32 %v1224_v3, %v10591_v20  ;;  %v9412_v35 = vld [vmem:[#allocation9 + $0x2a0] ss:$16 sps:$4 sm:$0xff]   ;;  %v9420_v49 = vld [vmem:[#allocation9 + $0x2c4] ss:$16 sps:$4 sm:$0xff]  }
 0x1b6   :  { %v2145_v13 = vmax.f32 %v1110_v24, 0.0  ;;  %5436 = vmatmul.mubr.bf16.gmra.mrb[136].mxu0 %v10645_v30  ;;  %6408 = vmatprep.subr.bf16.mxu1 %v9411_v43  ;;  %v2147_v42 = vmax.f32 %v1223_v63, 0.0  ;;  %v10758_v16 = vrot.slane %v10564_v9, %v11612_v40  ;;  %v10763_v17 = vrot.slane %v10564_v9, %v11611_v48  ;;  %v9415_v43 = vld [vmem:[#allocation9 + $0x2a8] ss:$16 sps:$4 sm:$0xff]   ;;  %v9423_v50 = vld [vmem:[#allocation9 + $0x2cc] ss:$16 sps:$4 sm:$0xff]  }
 0x1b7   :  { %v2146_v38 = vmax.f32 %v1112_v8, 0.0  ;;  %6340 = vmatmul.mubr.bf16.gmra.mrb[136].mxu1 %v10645_v30  ;;  %5445 = vmatprep.mubr.bf16.mxu0 %v10669_v27  ;;  %v2148_v18 = vmax.f32 %v1225_v36, 0.0  ;;  %v10771_v30 = vrot.slane %v10564_v9, %v11610_v58 }
 0x1b8   :  { %v10765_v20 = vpack.c.bf16 %v2145_v13, %v2129_v59  ;;  %5505 = vmatpush1.bf16.msra.mxu0 %v9406_v62  ;;  %6349 = vmatprep.mubr.bf16.mxu1 %v10669_v27  ;;  %v10773_v44 = vpack.c.bf16 %v2147_v42, %v2131_v60 }
 0x1b9   :  { %v10775_v45 = vpack.c.bf16 %v2146_v38, %v2130_v0  ;;  %6409 = vmatpush1.bf16.msra.mxu1 %v9409_v55  ;;  %v1261_v46 = vpop.f32.mrb[32].mxu0  ;;  %5506 = vmatprep.subr.bf16.mxu0 %v9414_v15  ;;  %v10777_v24 = vpack.c.bf16 %v2148_v18, %v2132_v4  ;;  %v1374_v62 = vpop.f32.mrb[32].mxu1  ;;  %v9418_v15 = vld [vmem:[#allocation9 + $0x2c0] ss:$16 sps:$4 sm:$0xff]   ;;  %v9421_v0 = vld [vmem:[#allocation9 + $0x2c8] ss:$16 sps:$4 sm:$0xff]  }
 0x1ba   :  { %v1262_v27 = vadd.f32 %v1261_v46, %v10746_v56  ;;  %v1263_v53 = vpop.f32.mrb[33].mxu0  ;;  %6410 = vmatprep.subr.bf16.mxu1 %v9417_v39  ;;  %v1375_v9 = vadd.f32 %v1374_v62, %v10758_v16  ;;  %v1376_v59 = vpop.f32.mrb[33].mxu1  ;;  %v9426_v38 = vld [vmem:[#allocation9 + $0x2e4] ss:$16 sps:$4 sm:$0xff]  }
 0x1bb   :  { %v1264_v54 = vadd.f32 %v1263_v53, %v10763_v17  ;;  %v1265_v60 = vpop.f32.mrb[34].mxu0  ;;  %v1377_v63 = vadd.f32 %v1376_v59, %v10771_v30  ;;  %v1378_v8 = vpop.f32.mrb[34].mxu1 }
 0x1bc   :  { %v1266_v55 = vadd.f32 %v1265_v60, %v10746_v56  ;;  %5507 = vmatpush1.bf16.msra.mxu0 %v9412_v35  ;;  %v1267_v3 = vpop.f32.mrb[35].mxu0  ;;  %v1909_v4 = vmax.f32 %v1262_v27, 0.0  ;;  %v1911_v13 = vmax.f32 %v1375_v9, 0.0  ;;  %v1379_v36 = vadd.f32 %v1378_v8, %v10758_v16  ;;  %v1380_v42 = vpop.f32.mrb[35].mxu1  ;;  %v9429_v35 = vld [vmem:[#allocation9 + $0x2ec] ss:$16 sps:$4 sm:$0xff]  }
 0x1bd   :  { %6411 = vmatpush1.bf16.msra.mxu1 %v9415_v43  ;;  %v1268_v39 = vadd.f32 %v1267_v3, %v10763_v17  ;;  %5508 = vmatprep.subr.bf16.mxu0 %v9420_v49  ;;  %v1910_v18 = vmax.f32 %v1264_v54, 0.0  ;;  %v1912_v46 = vmax.f32 %v1377_v63, 0.0  ;;  %v1381_v53 = vadd.f32 %v1380_v42, %v10771_v30  ;;  %v9424_v49 = vld [vmem:[#allocation9 + $0x2e0] ss:$16 sps:$4 sm:$0xff]   ;;  %v9427_v54 = vld [vmem:[#allocation9 + $0x2e8] ss:$16 sps:$4 sm:$0xff]  }
 0x1be   :  { %v1925_v62 = vmax.f32 %v1266_v55, 0.0  ;;  %5446 = vmatmul.mubr.bf16.gmra.mrb[140].mxu0 %v10665_v22  ;;  %6412 = vmatprep.subr.bf16.mxu1 %v9423_v50  ;;  %v1927_v59 = vmax.f32 %v1379_v36, 0.0  ;;  %v9432_v55 = vld [vmem:[#allocation9 + $0x304] ss:$16 sps:$4 sm:$0xff]   ;;  %v9435_v8 = vld [vmem:[#allocation9 + $0x30c] ss:$16 sps:$4 sm:$0xff]  }
 0x1bf   :  { %v1926_v27 = vmax.f32 %v1268_v39, 0.0  ;;  %6350 = vmatmul.mubr.bf16.gmra.mrb[140].mxu1 %v10665_v22  ;;  %5455 = vmatprep.mubr.bf16.mxu0 %v10690_v23  ;;  %v1928_v9 = vmax.f32 %v1381_v53, 0.0 }
 0x1c0   :  { %v10790_v43 = vpack.c.bf16 %v1925_v62, %v1909_v4  ;;  %5509 = vmatpush1.bf16.msra.mxu0 %v9418_v15  ;;  %6359 = vmatprep.mubr.bf16.mxu1 %v10690_v23  ;;  %v10793_v60 = vpack.c.bf16 %v1927_v59, %v1911_v13  ;;  %v9433_v62 = vld [vmem:[#allocation9 + $0x308] ss:$16 sps:$4 sm:$0xff]  }
 0x1c1   :  { %v10795_v63 = vpack.c.bf16 %v1926_v27, %v1910_v18  ;;  %6413 = vmatpush1.bf16.msra.mxu1 %v9421_v0  ;;  %v1271_v50 = vpop.f32.mrb[36].mxu0  ;;  %5510 = vmatprep.subr.bf16.mxu0 %v9426_v38  ;;  %v10797_v22 = vpack.c.bf16 %v1928_v9, %v1912_v46  ;;  %v1384_v4 = vpop.f32.mrb[36].mxu1  ;;  %v9430_v46 = vld [vmem:[#allocation9 + $0x300] ss:$16 sps:$4 sm:$0xff]  }
 0x1c2   :  { %v1272_v3 = vadd.f32 %v1271_v50, %v10746_v56  ;;  %v1273_v36 = vpop.f32.mrb[37].mxu0  ;;  %6414 = vmatprep.subr.bf16.mxu1 %v9429_v35  ;;  %v1385_v23 = vadd.f32 %v1384_v4, %v10758_v16  ;;  %v1386_v13 = vpop.f32.mrb[37].mxu1  ;;  %v9438_v50 = vld [vmem:[#allocation9 + $0x324] ss:$16 sps:$4 sm:$0xff]  }
 0x1c3   :  { %v1274_v15 = vadd.f32 %v1273_v36, %v10763_v17  ;;  %v1275_v39 = vpop.f32.mrb[38].mxu0  ;;  %v1387_v42 = vadd.f32 %v1386_v13, %v10771_v30  ;;  %v1388_v38 = vpop.f32.mrb[38].mxu1 }
 0x1c4   :  { %v1276_v0 = vadd.f32 %v1275_v39, %v10746_v56  ;;  %5511 = vmatpush1.bf16.msra.mxu0 %v9424_v49  ;;  %v1277_v18 = vpop.f32.mrb[39].mxu0  ;;  %v1941_v53 = vmax.f32 %v1272_v3, 0.0  ;;  %v1943_v59 = vmax.f32 %v1385_v23, 0.0  ;;  %v1389_v27 = vadd.f32 %v1388_v38, %v10758_v16  ;;  %v1390_v9 = vpop.f32.mrb[39].mxu1  ;;  %v9441_v49 = vld [vmem:[#allocation9 + $0x32c] ss:$16 sps:$4 sm:$0xff]  }
 0x1c5   :  { %6415 = vmatpush1.bf16.msra.mxu1 %v9427_v54  ;;  %v1278_v35 = vadd.f32 %v1277_v18, %v10763_v17  ;;  %5512 = vmatprep.subr.bf16.mxu0 %v9432_v55  ;;  %v1942_v4 = vmax.f32 %v1274_v15, 0.0  ;;  %v1944_v36 = vmax.f32 %v1387_v42, 0.0  ;;  %v1391_v39 = vadd.f32 %v1390_v9, %v10771_v30  ;;  %v9436_v55 = vld [vmem:[#allocation9 + $0x320] ss:$16 sps:$4 sm:$0xff]   ;;  %v9439_v15 = vld [vmem:[#allocation9 + $0x328] ss:$16 sps:$4 sm:$0xff]  }
 0x1c6   :  { %v1957_v13 = vmax.f32 %v1276_v0, 0.0  ;;  %5456 = vmatmul.mubr.bf16.gmra.mrb[144].mxu0 %v10685_v14  ;;  %6416 = vmatprep.subr.bf16.mxu1 %v9435_v8  ;;  %v1959_v1 = vmax.f32 %v1389_v27, 0.0  ;;  %v9444_v38 = vld [vmem:[#allocation9 + $0x344] ss:$16 sps:$4 sm:$0xff]   ;;  %v9447_v18 = vld [vmem:[#allocation9 + $0x34c] ss:$16 sps:$4 sm:$0xff]  }
 0x1c7   :  { %v1958_v3 = vmax.f32 %v1278_v35, 0.0  ;;  %6360 = vmatmul.mubr.bf16.gmra.mrb[144].mxu1 %v10685_v14  ;;  %5465 = vmatprep.mubr.bf16.mxu0 %v10711_v25  ;;  %v1960_v23 = vmax.f32 %v1391_v39, 0.0 }
 0x1c8   :  { %v10810_v54 = vpack.c.bf16 %v1957_v13, %v1941_v53  ;;  %5513 = vmatpush1.bf16.msra.mxu0 %v9430_v46  ;;  %6369 = vmatprep.mubr.bf16.mxu1 %v10711_v25  ;;  %v10813_v42 = vpack.c.bf16 %v1959_v1, %v1943_v59  ;;  %v9445_v13 = vld [vmem:[#allocation9 + $0x348] ss:$16 sps:$4 sm:$0xff]  }
 0x1c9   :  { %v10815_v0 = vpack.c.bf16 %v1958_v3, %v1942_v4  ;;  %6417 = vmatpush1.bf16.msra.mxu1 %v9433_v62  ;;  %v1281_v8 = vpop.f32.mrb[40].mxu0  ;;  %5514 = vmatprep.subr.bf16.mxu0 %v9438_v50  ;;  %v10817_v14 = vpack.c.bf16 %v1960_v23, %v1944_v36  ;;  %v1394_v27 = vpop.f32.mrb[40].mxu1  ;;  %v9442_v36 = vld [vmem:[#allocation9 + $0x340] ss:$16 sps:$4 sm:$0xff]  }
 0x1ca   :  { %v1282_v53 = vadd.f32 %v1281_v8, %v10746_v56  ;;  %v1283_v35 = vpop.f32.mrb[41].mxu0  ;;  %6418 = vmatprep.subr.bf16.mxu1 %v9441_v49  ;;  %v1395_v25 = vadd.f32 %v1394_v27, %v10758_v16  ;;  %v1396_v1 = vpop.f32.mrb[41].mxu1  ;;  %v9450_v27 = vld [vmem:[#allocation9 + $0x364] ss:$16 sps:$4 sm:$0xff]  }
 0x1cb   :  { %v1284_v46 = vadd.f32 %v1283_v35, %v10763_v17  ;;  %v1285_v59 = vpop.f32.mrb[42].mxu0  ;;  %v1397_v9 = vadd.f32 %v1396_v1, %v10771_v30  ;;  %v1398_v50 = vpop.f32.mrb[42].mxu1 }
 0x1cc   :  { %v1286_v62 = vadd.f32 %v1285_v59, %v10746_v56  ;;  %5515 = vmatpush1.bf16.msra.mxu0 %v9436_v55  ;;  %v1287_v4 = vpop.f32.mrb[43].mxu0  ;;  %v1973_v39 = vmax.f32 %v1282_v53, 0.0  ;;  %v1975_v3 = vmax.f32 %v1395_v25, 0.0  ;;  %v1399_v23 = vadd.f32 %v1398_v50, %v10758_v16  ;;  %v1400_v8 = vpop.f32.mrb[43].mxu1  ;;  %v9453_v55 = vld [vmem:[#allocation9 + $0x36c] ss:$16 sps:$4 sm:$0xff]  }
 0x1cd   :  { %6419 = vmatpush1.bf16.msra.mxu1 %v9439_v15  ;;  %v1288_v49 = vadd.f32 %v1287_v4, %v10763_v17  ;;  %5516 = vmatprep.subr.bf16.mxu0 %v9444_v38  ;;  %v1974_v35 = vmax.f32 %v1284_v46, 0.0  ;;  %v1976_v58 = vmax.f32 %v1397_v9, 0.0  ;;  %v1401_v59 = vadd.f32 %v1400_v8, %v10771_v30  ;;  %v9448_v38 = vld [vmem:[#allocation9 + $0x360] ss:$16 sps:$4 sm:$0xff]   ;;  %v9451_v46 = vld [vmem:[#allocation9 + $0x368] ss:$16 sps:$4 sm:$0xff]  }
 0x1ce   :  { %v1989_v1 = vmax.f32 %v1286_v62, 0.0  ;;  %5466 = vmatmul.mubr.bf16.gmra.mrb[148].mxu0 %v10706_v7  ;;  %6420 = vmatprep.subr.bf16.mxu1 %v9447_v18  ;;  %v1991_v48 = vmax.f32 %v1399_v23, 0.0  ;;  %v9456_v50 = vld [vmem:[#allocation9 + $0x384] ss:$16 sps:$4 sm:$0xff]   ;;  %v9459_v4 = vld [vmem:[#allocation9 + $0x38c] ss:$16 sps:$4 sm:$0xff]  }
 0x1cf   :  { %v1990_v53 = vmax.f32 %v1288_v49, 0.0  ;;  %6370 = vmatmul.mubr.bf16.gmra.mrb[148].mxu1 %v10706_v7  ;;  %5475 = vmatprep.mubr.bf16.mxu0 %v10732_v19  ;;  %v1992_v25 = vmax.f32 %v1401_v59, 0.0 }
 0x1d0   :  { %v10830_v15 = vpack.c.bf16 %v1989_v1, %v1973_v39  ;;  %5517 = vmatpush1.bf16.msra.mxu0 %v9442_v36  ;;  %6379 = vmatprep.mubr.bf16.mxu1 %v10732_v19  ;;  %v10833_v9 = vpack.c.bf16 %v1991_v48, %v1975_v3  ;;  %v9457_v1 = vld [vmem:[#allocation9 + $0x388] ss:$16 sps:$4 sm:$0xff]  }
 0x1d1   :  { %v10835_v62 = vpack.c.bf16 %v1990_v53, %v1974_v35  ;;  %6421 = vmatpush1.bf16.msra.mxu1 %v9445_v13  ;;  %v1291_v18 = vpop.f32.mrb[44].mxu0  ;;  %5518 = vmatprep.subr.bf16.mxu0 %v9450_v27  ;;  %v10837_v7 = vpack.c.bf16 %v1992_v25, %v1976_v58  ;;  %v1404_v23 = vpop.f32.mrb[44].mxu1  ;;  %v9454_v58 = vld [vmem:[#allocation9 + $0x380] ss:$16 sps:$4 sm:$0xff]  }
 0x1d2   :  { %11659 = vst [vmem:[#allocation25_spill] sm:$0xff] %v10833_v9  ;;  %v1292_v39 = vadd.f32 %v1291_v18, %v10746_v56  ;;  %v1293_v49 = vpop.f32.mrb[45].mxu0  ;;  %6422 = vmatprep.subr.bf16.mxu1 %v9453_v55  ;;  %v1405_v19 = vadd.f32 %v1404_v23, %v10758_v16  ;;  %v1406_v48 = vpop.f32.mrb[45].mxu1  ;;  %v9462_v23 = vld [vmem:[#allocation9 + $0x3a4] ss:$16 sps:$4 sm:$0xff]  }
 0x1d3   :  { %11660 = vst [vmem:[#allocation26_spill] sm:$0xff] %v10837_v7  ;;  %v1294_v36 = vadd.f32 %v1293_v49, %v10763_v17  ;;  %v1295_v3 = vpop.f32.mrb[46].mxu0  ;;  %v1407_v8 = vadd.f32 %v1406_v48, %v10771_v30  ;;  %v1408_v27 = vpop.f32.mrb[46].mxu1 }
 0x1d4   :  { %v1296_v13 = vadd.f32 %v1295_v3, %v10746_v56  ;;  %5519 = vmatpush1.bf16.msra.mxu0 %v9448_v38  ;;  %v1297_v35 = vpop.f32.mrb[47].mxu0  ;;  %v2005_v59 = vmax.f32 %v1292_v39, 0.0  ;;  %v2007_v53 = vmax.f32 %v1405_v19, 0.0  ;;  %v1409_v25 = vadd.f32 %v1408_v27, %v10758_v16  ;;  %v1410_v18 = vpop.f32.mrb[47].mxu1  ;;  %v9465_v38 = vld [vmem:[#allocation9 + $0x3ac] ss:$16 sps:$4 sm:$0xff]  }
 0x1d5   :  { %6423 = vmatpush1.bf16.msra.mxu1 %v9451_v46  ;;  %v1298_v55 = vadd.f32 %v1297_v35, %v10763_v17  ;;  %5520 = vmatprep.subr.bf16.mxu0 %v9456_v50  ;;  %v2006_v49 = vmax.f32 %v1294_v36, 0.0  ;;  %v2008_v40 = vmax.f32 %v1407_v8, 0.0  ;;  %v1411_v3 = vadd.f32 %v1410_v18, %v10771_v30  ;;  %v9460_v50 = vld [vmem:[#allocation9 + $0x3a0] ss:$16 sps:$4 sm:$0xff]   ;;  %v9463_v36 = vld [vmem:[#allocation9 + $0x3a8] ss:$16 sps:$4 sm:$0xff]  }
 0x1d6   :  { %v2021_v48 = vmax.f32 %v1296_v13, 0.0  ;;  %5476 = vmatmul.mubr.bf16.gmra.mrb[152].mxu0 %v10726_v5  ;;  %6424 = vmatprep.subr.bf16.mxu1 %v9459_v4  ;;  %v2023_v57 = vmax.f32 %v1409_v25, 0.0  ;;  %v9468_v27 = vld [vmem:[#allocation9 + $0x3c4] ss:$16 sps:$4 sm:$0xff]   ;;  %v9471_v35 = vld [vmem:[#allocation9 + $0x3cc] ss:$16 sps:$4 sm:$0xff]  }
 0x1d7   :  { %v2022_v39 = vmax.f32 %v1298_v55, 0.0  ;;  %6380 = vmatmul.mubr.bf16.gmra.mrb[152].mxu1 %v10726_v5  ;;  %5485 = vmatprep.mubr.bf16.mxu0 %v10775_v45  ;;  %v2024_v19 = vmax.f32 %v1411_v3, 0.0 }
 0x1d8   :  { %v10850_v46 = vpack.c.bf16 %v2021_v48, %v2005_v59  ;;  %5521 = vmatpush1.bf16.msra.mxu0 %v9454_v58  ;;  %6389 = vmatprep.mubr.bf16.mxu1 %v10775_v45  ;;  %v10853_v8 = vpack.c.bf16 %v2023_v57, %v2007_v53  ;;  %v9469_v48 = vld [vmem:[#allocation9 + $0x3c8] ss:$16 sps:$4 sm:$0xff]  }
 0x1d9   :  { %v10855_v13 = vpack.c.bf16 %v2022_v39, %v2006_v49  ;;  %6425 = vmatpush1.bf16.msra.mxu1 %v9457_v1  ;;  %v1301_v4 = vpop.f32.mrb[48].mxu0  ;;  %5522 = vmatprep.subr.bf16.mxu0 %v9462_v23  ;;  %v10857_v5 = vpack.c.bf16 %v2024_v19, %v2008_v40  ;;  %v1414_v25 = vpop.f32.mrb[48].mxu1  ;;  %v9466_v40 = vld [vmem:[#allocation9 + $0x3c0] ss:$16 sps:$4 sm:$0xff]  }
 0x1da   :  { %11661 = vst [vmem:[#allocation27_spill] sm:$0xff] %v10853_v8  ;;  %v1302_v59 = vadd.f32 %v1301_v4, %v10746_v56  ;;  %v1303_v55 = vpop.f32.mrb[49].mxu0  ;;  %6426 = vmatprep.subr.bf16.mxu1 %v9465_v38  ;;  %v1415_v45 = vadd.f32 %v1414_v25, %v10758_v16  ;;  %v1416_v57 = vpop.f32.mrb[49].mxu1  ;;  %v9474_v25 = vld [vmem:[#allocation9 + $0x3e4] ss:$16 sps:$4 sm:$0xff]  }
 0x1db   :  { %11662 = vst [vmem:[#allocation28_spill] sm:$0xff] %v10857_v5  ;;  %v1304_v58 = vadd.f32 %v1303_v55, %v10763_v17  ;;  %v1305_v53 = vpop.f32.mrb[50].mxu0  ;;  %v1417_v18 = vadd.f32 %v1416_v57, %v10771_v30  ;;  %v1418_v23 = vpop.f32.mrb[50].mxu1 }
 0x1dc   :  { %v1306_v1 = vadd.f32 %v1305_v53, %v10746_v56  ;;  %5523 = vmatpush1.bf16.msra.mxu0 %v9460_v50  ;;  %v1307_v49 = vpop.f32.mrb[51].mxu0  ;;  %v2037_v3 = vmax.f32 %v1302_v59, 0.0  ;;  %v2039_v39 = vmax.f32 %v1415_v45, 0.0  ;;  %v1419_v19 = vadd.f32 %v1418_v23, %v10758_v16  ;;  %v1420_v4 = vpop.f32.mrb[51].mxu1  ;;  %v9477_v50 = vld [vmem:[#allocation9 + $0x3ec] ss:$16 sps:$4 sm:$0xff]  }
 0x1dd   :  { %6427 = vmatpush1.bf16.msra.mxu1 %v9463_v36  ;;  %v1308_v38 = vadd.f32 %v1307_v49, %v10763_v17  ;;  %5524 = vmatprep.subr.bf16.mxu0 %v9468_v27  ;;  %v2038_v55 = vmax.f32 %v1304_v58, 0.0  ;;  %v2040_v8 = vmax.f32 %v1417_v18, 0.0  ;;  %v1421_v53 = vadd.f32 %v1420_v4, %v10771_v30  ;;  %v9472_v27 = vld [vmem:[#allocation9 + $0x3e0] ss:$16 sps:$4 sm:$0xff]   ;;  %v9475_v58 = vld [vmem:[#allocation9 + $0x3e8] ss:$16 sps:$4 sm:$0xff]  }
 0x1de   :  { %v2053_v57 = vmax.f32 %v1306_v1, 0.0  ;;  %5486 = vmatmul.mubr.bf16.gmra.mrb[156].mxu0 %v10765_v20  ;;  %6428 = vmatprep.subr.bf16.mxu1 %v9471_v35  ;;  %v2055_v5 = vmax.f32 %v1419_v19, 0.0  ;;  %v9480_v23 = vld [vmem:[#allocation9 + $0x404] ss:$16 sps:$4 sm:$0xff]   ;;  %v9483_v49 = vld [vmem:[#allocation9 + $0x40c] ss:$16 sps:$4 sm:$0xff]  }
 0x1df   :  { %v2054_v59 = vmax.f32 %v1308_v38, 0.0  ;;  %6390 = vmatmul.mubr.bf16.gmra.mrb[156].mxu1 %v10765_v20  ;;  %5528 = vmatprep.mubr.bf16.mxu0 %v10612_v2  ;;  %v2056_v45 = vmax.f32 %v1421_v53, 0.0 }
 0x1e0   :  { %v10870_v36 = vpack.c.bf16 %v2053_v57, %v2037_v3  ;;  %5525 = vmatpush1.bf16.msra.mxu0 %v9466_v40  ;;  %6432 = vmatprep.mubr.bf16.mxu1 %v10612_v2  ;;  %v10873_v18 = vpack.c.bf16 %v2055_v5, %v2039_v39  ;;  %v9481_v57 = vld [vmem:[#allocation9 + $0x408] ss:$16 sps:$4 sm:$0xff]  }
 0x1e1   :  { %v10875_v1 = vpack.c.bf16 %v2054_v59, %v2038_v55  ;;  %6429 = vmatpush1.bf16.msra.mxu1 %v9469_v48  ;;  %v1311_v35 = vpop.f32.mrb[52].mxu0  ;;  %5526 = vmatprep.subr.bf16.mxu0 %v9474_v25  ;;  %v10877_v20 = vpack.c.bf16 %v2056_v45, %v2040_v8  ;;  %v1424_v19 = vpop.f32.mrb[52].mxu1  ;;  %v9478_v8 = vld [vmem:[#allocation9 + $0x400] ss:$16 sps:$4 sm:$0xff]  }
 0x1e2   :  { %11663 = vst [vmem:[#allocation29_spill] sm:$0xff] %v10873_v18  ;;  %v1312_v3 = vadd.f32 %v1311_v35, %v10746_v56  ;;  %v1313_v38 = vpop.f32.mrb[53].mxu0  ;;  %6430 = vmatprep.subr.bf16.mxu1 %v9477_v50  ;;  %v1425_v2 = vadd.f32 %v1424_v19, %v10758_v16  ;;  %v1426_v5 = vpop.f32.mrb[53].mxu1  ;;  %v9486_v19 = vld [vmem:[#allocation9 + $0x424] ss:$16 sps:$4 sm:$0xff]  }
 0x1e3   :  { %11664 = vst [vmem:[#allocation30_spill] sm:$0xff] %v10877_v20  ;;  %v1314_v40 = vadd.f32 %v1313_v38, %v10763_v17  ;;  %v1315_v39 = vpop.f32.mrb[54].mxu0  ;;  %v1427_v4 = vadd.f32 %v1426_v5, %v10771_v30  ;;  %v1428_v25 = vpop.f32.mrb[54].mxu1 }
 0x1e4   :  { %v1316_v48 = vadd.f32 %v1315_v39, %v10746_v56  ;;  %5527 = vmatpush1.bf16.msra.mxu0 %v9472_v27  ;;  %v1317_v55 = vpop.f32.mrb[55].mxu0  ;;  %v2069_v53 = vmax.f32 %v1312_v3, 0.0  ;;  %v2071_v59 = vmax.f32 %v1425_v2, 0.0  ;;  %v1429_v45 = vadd.f32 %v1428_v25, %v10758_v16  ;;  %v1430_v35 = vpop.f32.mrb[55].mxu1  ;;  %v9489_v27 = vld [vmem:[#allocation9 + $0x42c] ss:$16 sps:$4 sm:$0xff]  }
 0x1e5   :  { %6431 = vmatpush1.bf16.msra.mxu1 %v9475_v58  ;;  %v1318_v50 = vadd.f32 %v1317_v55, %v10763_v17  ;;  %5609 = vmatprep.subr.bf16.mxu0 %v9480_v23  ;;  %v2070_v38 = vmax.f32 %v1314_v40, 0.0  ;;  %v2072_v18 = vmax.f32 %v1427_v4, 0.0  ;;  %v1431_v39 = vadd.f32 %v1430_v35, %v10771_v30  ;;  %v9484_v58 = vld [vmem:[#allocation9 + $0x420] ss:$16 sps:$4 sm:$0xff]   ;;  %v9487_v23 = vld [vmem:[#allocation9 + $0x428] ss:$16 sps:$4 sm:$0xff]  }
 0x1e6   :  { %v2085_v5 = vmax.f32 %v1316_v48, 0.0  ;;  %6513 = vmatprep.subr.bf16.mxu1 %v9483_v49  ;;  %v2087_v20 = vmax.f32 %v1429_v45, 0.0  ;;  %v9492_v48 = vld [vmem:[#allocation9 + $0x444] ss:$16 sps:$4 sm:$0xff]   ;;  %v9495_v25 = vld [vmem:[#allocation9 + $0x44c] ss:$16 sps:$4 sm:$0xff]  }
 0x1e7   :  { %v2086_v9 = vmax.f32 %v1318_v50, 0.0  ;;  %5529 = vmatmul.mubr.bf16.vlgmr.msra.gmra.mrb[128].mxu0 %v10607_v61  ;;  %v2088_v2 = vmax.f32 %v1431_v39, 0.0 }
 0x1e8   :  { %v10888_v3 = vpack.c.bf16 %v2085_v5, %v2069_v53  ;;  %6433 = vmatmul.mubr.bf16.vlgmr.msra.gmra.mrb[128].mxu1 %v10607_v61  ;;  %5538 = vmatprep.mubr.bf16.mxu0 %v10632_v51  ;;  %v10892_v40 = vpack.c.bf16 %v2087_v20, %v2071_v59 }
 0x1e9   :  { %v10894_v4 = vpack.c.bf16 %v2086_v9, %v2070_v38  ;;  %5610 = vmatpush1.bf16.msra.mxu0 %v9478_v8  ;;  %6442 = vmatprep.mubr.bf16.mxu1 %v10632_v51  ;;  %v1321_v49 = vpop.f32.mrb[56].mxu0  ;;  %v10897_v55 = vpack.c.bf16 %v2088_v2, %v2072_v18  ;;  %v1434_v61 = vpop.f32.mrb[56].mxu1  ;;  %v9490_v38 = vld [vmem:[#allocation9 + $0x440] ss:$16 sps:$4 sm:$0xff]   ;;  %v9493_v2 = vld [vmem:[#allocation9 + $0x448] ss:$16 sps:$4 sm:$0xff]  }
 0x1ea   :  { %11665 = vst [vmem:[#allocation31_spill] sm:$0xff] %v10892_v40  ;;  %6514 = vmatpush1.bf16.msra.mxu1 %v9481_v57  ;;  %v1322_v53 = vadd.f32 %v1321_v49, %v10746_v56  ;;  %v1323_v45 = vpop.f32.mrb[57].mxu0  ;;  %5611 = vmatprep.subr.bf16.mxu0 %v9486_v19  ;;  %v1435_v50 = vadd.f32 %v1434_v61, %v10758_v16  ;;  %v1436_v9 = vpop.f32.mrb[57].mxu1  ;;  %v9498_v49 = vld [vmem:[#allocation9 + $0x464] ss:$16 sps:$4 sm:$0xff]  }
 0x1eb   :  { %11666 = vst [vmem:[#allocation32_spill] sm:$0xff] %v10897_v55  ;;  %v1324_v20 = vadd.f32 %v1323_v45, %v10763_v17  ;;  %6515 = vmatprep.subr.bf16.mxu1 %v9489_v27  ;;  %v1325_v8 = vpop.f32.mrb[58].mxu0  ;;  %v1437_v51 = vadd.f32 %v1436_v9, %v10771_v30  ;;  %v1438_v35 = vpop.f32.mrb[58].mxu1 }
 0x1ec   :  { %v1326_v59 = vadd.f32 %v1325_v8, %v10746_v56  ;;  %v1327_v18 = vpop.f32.mrb[59].mxu0  ;;  %v2103_v57 = vmax.f32 %v1435_v50, 0.0  ;;  %v1439_v5 = vadd.f32 %v1438_v35, %v10758_v16  ;;  %v1440_v39 = vpop.f32.mrb[59].mxu1  ;;  %v2101_v61 = vmax.f32 %v1322_v53, 0.0  ;;  %v9501_v8 = vld [vmem:[#allocation9 + $0x46c] ss:$16 sps:$4 sm:$0xff]  }
 0x1ed   :  { %5612 = vmatpush1.bf16.msra.mxu0 %v9484_v58  ;;  %v1328_v19 = vadd.f32 %v1327_v18, %v10763_v17  ;;  %v2104_v45 = vmax.f32 %v1437_v51, 0.0  ;;  %v1441_v9 = vadd.f32 %v1440_v39, %v10771_v30  ;;  %v2102_v40 = vmax.f32 %v1324_v20, 0.0  ;;  %v9496_v20 = vld [vmem:[#allocation9 + $0x460] ss:$16 sps:$4 sm:$0xff]   ;;  %v9499_v51 = vld [vmem:[#allocation9 + $0x468] ss:$16 sps:$4 sm:$0xff]  }
 0x1ee   :  { %v2117_v27 = vmax.f32 %v1326_v59, 0.0  ;;  %6516 = vmatpush1.bf16.msra.mxu1 %v9487_v23  ;;  %5613 = vmatprep.subr.bf16.mxu0 %v9492_v48  ;;  %v2119_v55 = vmax.f32 %v1439_v5, 0.0  ;;  %v10917_v59 = vld [vmem:[#allocation8 + $0x8] sm:$0xff] }
 0x1ef   :  { %v2118_v7 = vmax.f32 %v1328_v19, 0.0  ;;  %5539 = vmatmul.mubr.bf16.gmra.mrb[132].mxu0 %v10627_v47  ;;  %6517 = vmatprep.subr.bf16.mxu1 %v9495_v25  ;;  %v2120_v50 = vmax.f32 %v1441_v9, 0.0 }
 0x1f0   :  { %v10908_v58 = vpack.c.bf16 %v2117_v27, %v2101_v61  ;;  %6443 = vmatmul.mubr.bf16.gmra.mrb[132].mxu1 %v10627_v47  ;;  %5548 = vmatprep.mubr.bf16.mxu0 %v10652_v41  ;;  %v10912_v53 = vpack.c.bf16 %v2119_v55, %v2103_v57  ;;  %v9504_v55 = vld [vmem:[#allocation9 + $0x484] ss:$16 sps:$4 sm:$0xff]   ;;  %v9507_v57 = vld [vmem:[#allocation9 + $0x48c] ss:$16 sps:$4 sm:$0xff]   ;;  %v9502_v61 = vld [vmem:[#allocation9 + $0x480] ss:$16 sps:$4 sm:$0xff]  }
 0x1f1   :  { %v10914_v23 = vpack.c.bf16 %v2118_v7, %v2102_v40  ;;  %5614 = vmatpush1.bf16.msra.mxu0 %v9490_v38  ;;  %6452 = vmatprep.mubr.bf16.mxu1 %v10652_v41  ;;  %v1331_v48 = vpop.f32.mrb[60].mxu0  ;;  %v10919_v25 = vpack.c.bf16 %v2120_v50, %v2104_v45  ;;  %v1444_v47 = vpop.f32.mrb[60].mxu1  ;;  %v10928_v45 = vrot.slane %v10917_v59, %v10562_v6 }
 0x1f2   :  { %6518 = vmatpush1.bf16.msra.mxu1 %v9493_v2  ;;  %v1332_v35 = vadd.f32 %v1331_v48, %v10746_v56  ;;  %v1333_v18 = vpop.f32.mrb[61].mxu0  ;;  %5615 = vmatprep.subr.bf16.mxu0 %v9498_v49  ;;  %v1445_v7 = vadd.f32 %v1444_v47, %v10758_v16  ;;  %v1446_v41 = vpop.f32.mrb[61].mxu1  ;;  %v10934_v48 = vrot.slane %v10917_v59, %v10567_v34 }
 0x1f3   :  { %v1334_v40 = vadd.f32 %v1333_v18, %v10763_v17  ;;  %6519 = vmatprep.subr.bf16.mxu1 %v9501_v8  ;;  %v1335_v38 = vpop.f32.mrb[62].mxu0  ;;  %v1447_v5 = vadd.f32 %v1446_v41, %v10771_v30  ;;  %v1448_v39 = vpop.f32.mrb[62].mxu1  ;;  %v9505_v8 = vld [vmem:[#allocation9 + $0x488] ss:$16 sps:$4 sm:$0xff]  }
 0x1f4   :  { %v1336_v19 = vadd.f32 %v1335_v38, %v10746_v56  ;;  %v1337_v2 = vpop.f32.mrb[63].mxu0  ;;  %v2135_v49 = vmax.f32 %v1445_v7, 0.0  ;;  %v1449_v27 = vadd.f32 %v1448_v39, %v10758_v16  ;;  %v1450_v50 = vpop.f32.mrb[63].mxu1  ;;  %v9510_v56 = vld [vmem:[#allocation9 + $0x4a4] ss:$16 sps:$4 sm:$0xff]   ;;  %v2133_v47 = vmax.f32 %v1332_v35, 0.0 }
 0x1f5   :  { %5616 = vmatpush1.bf16.msra.mxu0 %v9496_v20  ;;  %v1338_v9 = vadd.f32 %v1337_v2, %v10763_v17  ;;  %v2136_v18 = vmax.f32 %v1447_v5, 0.0  ;;  %v1451_v38 = vadd.f32 %v1450_v50, %v10771_v30  ;;  %v9513_v7 = vld [vmem:[#allocation9 + $0x4ac] ss:$16 sps:$4 sm:$0xff]   ;;  %v2134_v6 = vmax.f32 %v1334_v40, 0.0  ;;  %v9508_v40 = vld [vmem:[#allocation9 + $0x4a0] ss:$16 sps:$4 sm:$0xff]  }
 0x1f6   :  { %v2149_v41 = vmax.f32 %v1336_v19, 0.0  ;;  %6520 = vmatpush1.bf16.msra.mxu1 %v9499_v51  ;;  %5617 = vmatprep.subr.bf16.mxu0 %v9504_v55  ;;  %v2151_v16 = vmax.f32 %v1449_v27, 0.0  ;;  %v10940_v17 = vrot.slane %v10917_v59, %v10570_v10  ;;  %v10948_v30 = vrot.slane %v10917_v59, %v10573_v12  ;;  %v9511_v27 = vld [vmem:[#allocation9 + $0x4a8] ss:$16 sps:$4 sm:$0xff]  }
 0x1f7   :  { %v2150_v20 = vmax.f32 %v1338_v9, 0.0  ;;  %5549 = vmatmul.mubr.bf16.gmra.mrb[136].mxu0 %v10647_v37  ;;  %6521 = vmatprep.subr.bf16.mxu1 %v9507_v57  ;;  %v2152_v35 = vmax.f32 %v1451_v38, 0.0  ;;  %v9516_v9 = vld [vmem:[#allocation9 + $0x4c4] ss:$16 sps:$4 sm:$0xff]  }
 0x1f8   :  { %v10942_v39 = vpack.c.bf16 %v2149_v41, %v2133_v47  ;;  %6453 = vmatmul.mubr.bf16.gmra.mrb[136].mxu1 %v10647_v37  ;;  %5558 = vmatprep.mubr.bf16.mxu0 %v10672_v33  ;;  %v10950_v51 = vpack.c.bf16 %v2151_v16, %v2135_v49 }
 0x1f9   :  { %v10952_v55 = vpack.c.bf16 %v2150_v20, %v2134_v6  ;;  %5618 = vmatpush1.bf16.msra.mxu0 %v9502_v61  ;;  %6462 = vmatprep.mubr.bf16.mxu1 %v10672_v33  ;;  %v1487_v57 = vpop.f32.mrb[64].mxu0  ;;  %v10955_v5 = vpack.c.bf16 %v2152_v35, %v2136_v18  ;;  %v1600_v19 = vpop.f32.mrb[64].mxu1  ;;  %v9519_v33 = vld [vmem:[#allocation9 + $0x4cc] ss:$16 sps:$4 sm:$0xff]   ;;  %v9514_v35 = vld [vmem:[#allocation9 + $0x4c0] ss:$16 sps:$4 sm:$0xff]  }
 0x1fa   :  { %6522 = vmatpush1.bf16.msra.mxu1 %v9505_v8  ;;  %v1488_v37 = vadd.f32 %v1487_v57, %v10928_v45  ;;  %v1489_v2 = vpop.f32.mrb[65].mxu0  ;;  %5619 = vmatprep.subr.bf16.mxu0 %v9510_v56  ;;  %v1601_v49 = vadd.f32 %v1600_v19, %v10934_v48  ;;  %v1602_v50 = vpop.f32.mrb[65].mxu1  ;;  %v9517_v57 = vld [vmem:[#allocation9 + $0x4c8] ss:$16 sps:$4 sm:$0xff]  }
 0x1fb   :  { %v1490_v6 = vadd.f32 %v1489_v2, %v10940_v17  ;;  %6523 = vmatprep.subr.bf16.mxu1 %v9513_v7  ;;  %v1491_v61 = vpop.f32.mrb[66].mxu0  ;;  %v1603_v47 = vadd.f32 %v1602_v50, %v10948_v30  ;;  %v1604_v8 = vpop.f32.mrb[66].mxu1  ;;  %v9522_v50 = vld [vmem:[#allocation9 + $0x4e4] ss:$16 sps:$4 sm:$0xff]  }
 0x1fc   :  { %v1492_v18 = vadd.f32 %v1491_v61, %v10928_v45  ;;  %v1493_v41 = vpop.f32.mrb[67].mxu0  ;;  %v1915_v38 = vmax.f32 %v1601_v49, 0.0  ;;  %v1605_v16 = vadd.f32 %v1604_v8, %v10934_v48  ;;  %v1606_v20 = vpop.f32.mrb[67].mxu1  ;;  %v1913_v19 = vmax.f32 %v1488_v37, 0.0 }
 0x1fd   :  { %5620 = vmatpush1.bf16.msra.mxu0 %v9508_v40  ;;  %v1494_v56 = vadd.f32 %v1493_v41, %v10940_v17  ;;  %v1916_v2 = vmax.f32 %v1603_v47, 0.0  ;;  %v1607_v12 = vadd.f32 %v1606_v20, %v10948_v30  ;;  %v1914_v61 = vmax.f32 %v1490_v6, 0.0  ;;  %v9525_v40 = vld [vmem:[#allocation9 + $0x4ec] ss:$16 sps:$4 sm:$0xff]   ;;  %v9520_v6 = vld [vmem:[#allocation9 + $0x4e0] ss:$16 sps:$4 sm:$0xff]  }
 0x1fe   :  { %v1929_v7 = vmax.f32 %v1492_v18, 0.0  ;;  %6524 = vmatpush1.bf16.msra.mxu1 %v9511_v27  ;;  %5621 = vmatprep.subr.bf16.mxu0 %v9516_v9  ;;  %v1931_v10 = vmax.f32 %v1605_v16, 0.0  ;;  %v9528_v41 = vld [vmem:[#allocation9 + $0x504] ss:$16 sps:$4 sm:$0xff]  }
 0x1ff   :  { %v1930_v34 = vmax.f32 %v1494_v56, 0.0  ;;  %5559 = vmatmul.mubr.bf16.gmra.mrb[140].mxu0 %v10667_v26  ;;  %6525 = vmatprep.subr.bf16.mxu1 %v9519_v33  ;;  %v1932_v8 = vmax.f32 %v1607_v12, 0.0 }
 0x200   :  { %v10966_v49 = vpack.c.bf16 %v1929_v7, %v1913_v19  ;;  %6463 = vmatmul.mubr.bf16.gmra.mrb[140].mxu1 %v10667_v26  ;;  %5568 = vmatprep.mubr.bf16.mxu0 %v10693_v29  ;;  %v10970_v37 = vpack.c.bf16 %v1931_v10, %v1915_v38  ;;  %v9523_v26 = vld [vmem:[#allocation9 + $0x4e8] ss:$16 sps:$4 sm:$0xff]  }
 0x201   :  { %v10972_v27 = vpack.c.bf16 %v1930_v34, %v1914_v61  ;;  %5622 = vmatpush1.bf16.msra.mxu0 %v9514_v35  ;;  %6472 = vmatprep.mubr.bf16.mxu1 %v10693_v29  ;;  %v1497_v9 = vpop.f32.mrb[68].mxu0  ;;  %v10975_v47 = vpack.c.bf16 %v1932_v8, %v1916_v2  ;;  %v1610_v18 = vpop.f32.mrb[68].mxu1  ;;  %v9531_v29 = vld [vmem:[#allocation9 + $0x50c] ss:$16 sps:$4 sm:$0xff]   ;;  %v9526_v61 = vld [vmem:[#allocation9 + $0x500] ss:$16 sps:$4 sm:$0xff]  }
 0x202   :  { %11667 = vst [vmem:[#allocation33_spill] sm:$0xff] %v10970_v37  ;;  %6526 = vmatpush1.bf16.msra.mxu1 %v9517_v57  ;;  %v1498_v33 = vadd.f32 %v1497_v9, %v10928_v45  ;;  %v1499_v12 = vpop.f32.mrb[69].mxu0  ;;  %5623 = vmatprep.subr.bf16.mxu0 %v9522_v50  ;;  %v1611_v10 = vadd.f32 %v1610_v18, %v10934_v48  ;;  %v1612_v38 = vpop.f32.mrb[69].mxu1  ;;  %v9529_v8 = vld [vmem:[#allocation9 + $0x508] ss:$16 sps:$4 sm:$0xff]  }
 0x203   :  { %11668 = vst [vmem:[#allocation34_spill] sm:$0xff] %v10975_v47  ;;  %v1500_v34 = vadd.f32 %v1499_v12, %v10940_v17  ;;  %6527 = vmatprep.subr.bf16.mxu1 %v9525_v40  ;;  %v1501_v16 = vpop.f32.mrb[70].mxu0  ;;  %v1613_v56 = vadd.f32 %v1612_v38, %v10948_v30  ;;  %v1614_v35 = vpop.f32.mrb[70].mxu1  ;;  %v9534_v38 = vld [vmem:[#allocation9 + $0x524] ss:$16 sps:$4 sm:$0xff]  }
 0x204   :  { %v1502_v20 = vadd.f32 %v1501_v16, %v10928_v45  ;;  %v1503_v57 = vpop.f32.mrb[71].mxu0  ;;  %v1947_v19 = vmax.f32 %v1611_v10, 0.0  ;;  %v1615_v2 = vadd.f32 %v1614_v35, %v10934_v48  ;;  %v1616_v50 = vpop.f32.mrb[71].mxu1  ;;  %v1945_v9 = vmax.f32 %v1498_v33, 0.0 }
 0x205   :  { %5624 = vmatpush1.bf16.msra.mxu0 %v9520_v6  ;;  %v1504_v7 = vadd.f32 %v1503_v57, %v10940_v17  ;;  %v1948_v18 = vmax.f32 %v1613_v56, 0.0  ;;  %v1617_v12 = vadd.f32 %v1616_v50, %v10948_v30  ;;  %v1946_v16 = vmax.f32 %v1500_v34, 0.0  ;;  %v9537_v6 = vld [vmem:[#allocation9 + $0x52c] ss:$16 sps:$4 sm:$0xff]   ;;  %v9532_v34 = vld [vmem:[#allocation9 + $0x520] ss:$16 sps:$4 sm:$0xff]  }
 0x206   :  { %v1961_v40 = vmax.f32 %v1502_v20, 0.0  ;;  %6528 = vmatpush1.bf16.msra.mxu1 %v9523_v26  ;;  %5625 = vmatprep.subr.bf16.mxu0 %v9528_v41  ;;  %v1963_v37 = vmax.f32 %v1615_v2, 0.0  ;;  %v9540_v2 = vld [vmem:[#allocation9 + $0x544] ss:$16 sps:$4 sm:$0xff]  }
 0x207   :  { %v1962_v47 = vmax.f32 %v1504_v7, 0.0  ;;  %5569 = vmatmul.mubr.bf16.gmra.mrb[144].mxu0 %v10688_v52  ;;  %6529 = vmatprep.subr.bf16.mxu1 %v9531_v29  ;;  %v1964_v35 = vmax.f32 %v1617_v12, 0.0 }
 0x208   :  { %v10986_v10 = vpack.c.bf16 %v1961_v40, %v1945_v9  ;;  %6473 = vmatmul.mubr.bf16.gmra.mrb[144].mxu1 %v10688_v52  ;;  %5578 = vmatprep.mubr.bf16.mxu0 %v10713_v32  ;;  %v10990_v33 = vpack.c.bf16 %v1963_v37, %v1947_v19  ;;  %v9535_v52 = vld [vmem:[#allocation9 + $0x528] ss:$16 sps:$4 sm:$0xff]  }
 0x209   :  { %v10992_v26 = vpack.c.bf16 %v1962_v47, %v1946_v16  ;;  %5626 = vmatpush1.bf16.msra.mxu0 %v9526_v61  ;;  %6482 = vmatprep.mubr.bf16.mxu1 %v10713_v32  ;;  %v1507_v41 = vpop.f32.mrb[72].mxu0  ;;  %v10995_v56 = vpack.c.bf16 %v1964_v35, %v1948_v18  ;;  %v1620_v20 = vpop.f32.mrb[72].mxu1  ;;  %v9543_v32 = vld [vmem:[#allocation9 + $0x54c] ss:$16 sps:$4 sm:$0xff]   ;;  %v9538_v16 = vld [vmem:[#allocation9 + $0x540] ss:$16 sps:$4 sm:$0xff]  }
 0x20a   :  { %11669 = vst [vmem:[#allocation35_spill] sm:$0xff] %v10990_v33  ;;  %6530 = vmatpush1.bf16.msra.mxu1 %v9529_v8  ;;  %v1508_v29 = vadd.f32 %v1507_v41, %v10928_v45  ;;  %v1509_v57 = vpop.f32.mrb[73].mxu0  ;;  %5627 = vmatprep.subr.bf16.mxu0 %v9534_v38  ;;  %v1621_v37 = vadd.f32 %v1620_v20, %v10934_v48  ;;  %v1622_v19 = vpop.f32.mrb[73].mxu1  ;;  %v9541_v35 = vld [vmem:[#allocation9 + $0x548] ss:$16 sps:$4 sm:$0xff]  }
 0x20b   :  { %11670 = vst [vmem:[#allocation36_spill] sm:$0xff] %v10995_v56  ;;  %v1510_v47 = vadd.f32 %v1509_v57, %v10940_v17  ;;  %6531 = vmatprep.subr.bf16.mxu1 %v9537_v6  ;;  %v1511_v7 = vpop.f32.mrb[74].mxu0  ;;  %v1623_v50 = vadd.f32 %v1622_v19, %v10948_v30  ;;  %v1624_v8 = vpop.f32.mrb[74].mxu1  ;;  %v9546_v19 = vld [vmem:[#allocation9 + $0x564] ss:$16 sps:$4 sm:$0xff]  }
 0x20c   :  { %v1512_v61 = vadd.f32 %v1511_v7, %v10928_v45  ;;  %v1513_v9 = vpop.f32.mrb[75].mxu0  ;;  %v1979_v18 = vmax.f32 %v1621_v37, 0.0  ;;  %v1625_v40 = vadd.f32 %v1624_v8, %v10934_v48  ;;  %v1626_v38 = vpop.f32.mrb[75].mxu1  ;;  %v1977_v41 = vmax.f32 %v1508_v29, 0.0 }
 0x20d   :  { %5628 = vmatpush1.bf16.msra.mxu0 %v9532_v34  ;;  %v1514_v12 = vadd.f32 %v1513_v9, %v10940_v17  ;;  %v1980_v20 = vmax.f32 %v1623_v50, 0.0  ;;  %v1627_v57 = vadd.f32 %v1626_v38, %v10948_v30  ;;  %v1978_v7 = vmax.f32 %v1510_v47, 0.0  ;;  %v9549_v34 = vld [vmem:[#allocation9 + $0x56c] ss:$16 sps:$4 sm:$0xff]   ;;  %v9544_v47 = vld [vmem:[#allocation9 + $0x560] ss:$16 sps:$4 sm:$0xff]  }
 0x20e   :  { %v1993_v6 = vmax.f32 %v1512_v61, 0.0  ;;  %6532 = vmatpush1.bf16.msra.mxu1 %v9535_v52  ;;  %5629 = vmatprep.subr.bf16.mxu0 %v9540_v2  ;;  %v1995_v33 = vmax.f32 %v1625_v40, 0.0  ;;  %v9552_v40 = vld [vmem:[#allocation9 + $0x584] ss:$16 sps:$4 sm:$0xff]  }
 0x20f   :  { %v1994_v56 = vmax.f32 %v1514_v12, 0.0  ;;  %5579 = vmatmul.mubr.bf16.gmra.mrb[148].mxu0 %v10709_v21  ;;  %6533 = vmatprep.subr.bf16.mxu1 %v9543_v32  ;;  %v1996_v8 = vmax.f32 %v1627_v57, 0.0 }
 0x210   :  { %v11006_v37 = vpack.c.bf16 %v1993_v6, %v1977_v41  ;;  %6483 = vmatmul.mubr.bf16.gmra.mrb[148].mxu1 %v10709_v21  ;;  %5588 = vmatprep.mubr.bf16.mxu0 %v10736_v28  ;;  %v11010_v29 = vpack.c.bf16 %v1995_v33, %v1979_v18  ;;  %v9547_v21 = vld [vmem:[#allocation9 + $0x568] ss:$16 sps:$4 sm:$0xff]  }
 0x211   :  { %v11012_v52 = vpack.c.bf16 %v1994_v56, %v1978_v7  ;;  %5630 = vmatpush1.bf16.msra.mxu0 %v9538_v16  ;;  %6492 = vmatprep.mubr.bf16.mxu1 %v10736_v28  ;;  %v1517_v2 = vpop.f32.mrb[76].mxu0  ;;  %v11015_v50 = vpack.c.bf16 %v1996_v8, %v1980_v20  ;;  %v1630_v61 = vpop.f32.mrb[76].mxu1  ;;  %v9555_v28 = vld [vmem:[#allocation9 + $0x58c] ss:$16 sps:$4 sm:$0xff]   ;;  %v9550_v7 = vld [vmem:[#allocation9 + $0x580] ss:$16 sps:$4 sm:$0xff]  }
 0x212   :  { %11671 = vst [vmem:[#allocation37_spill] sm:$0xff] %v11010_v29  ;;  %6534 = vmatpush1.bf16.msra.mxu1 %v9541_v35  ;;  %v1518_v32 = vadd.f32 %v1517_v2, %v10928_v45  ;;  %v1519_v9 = vpop.f32.mrb[77].mxu0  ;;  %5631 = vmatprep.subr.bf16.mxu0 %v9546_v19  ;;  %v1631_v33 = vadd.f32 %v1630_v61, %v10934_v48  ;;  %v1632_v18 = vpop.f32.mrb[77].mxu1  ;;  %v9553_v8 = vld [vmem:[#allocation9 + $0x588] ss:$16 sps:$4 sm:$0xff]  }
 0x213   :  { %11672 = vst [vmem:[#allocation38_spill] sm:$0xff] %v11015_v50  ;;  %v1520_v56 = vadd.f32 %v1519_v9, %v10940_v17  ;;  %6535 = vmatprep.subr.bf16.mxu1 %v9549_v34  ;;  %v1521_v12 = vpop.f32.mrb[78].mxu0  ;;  %v1633_v38 = vadd.f32 %v1632_v18, %v10948_v30  ;;  %v1634_v35 = vpop.f32.mrb[78].mxu1  ;;  %v9558_v18 = vld [vmem:[#allocation9 + $0x5a4] ss:$16 sps:$4 sm:$0xff]  }
 0x214   :  { %v1522_v16 = vadd.f32 %v1521_v12, %v10928_v45  ;;  %v1523_v41 = vpop.f32.mrb[79].mxu0  ;;  %v2011_v20 = vmax.f32 %v1631_v33, 0.0  ;;  %v1635_v6 = vadd.f32 %v1634_v35, %v10934_v48  ;;  %v1636_v19 = vpop.f32.mrb[79].mxu1  ;;  %v2009_v2 = vmax.f32 %v1518_v32, 0.0 }
 0x215   :  { %5632 = vmatpush1.bf16.msra.mxu0 %v9544_v47  ;;  %v1524_v57 = vadd.f32 %v1523_v41, %v10940_v17  ;;  %v2012_v61 = vmax.f32 %v1633_v38, 0.0  ;;  %v1637_v9 = vadd.f32 %v1636_v19, %v10948_v30  ;;  %v2010_v12 = vmax.f32 %v1520_v56, 0.0  ;;  %v9561_v47 = vld [vmem:[#allocation9 + $0x5ac] ss:$16 sps:$4 sm:$0xff]   ;;  %v9556_v56 = vld [vmem:[#allocation9 + $0x5a0] ss:$16 sps:$4 sm:$0xff]  }
 0x216   :  { %v2025_v34 = vmax.f32 %v1522_v16, 0.0  ;;  %6536 = vmatpush1.bf16.msra.mxu1 %v9547_v21  ;;  %5633 = vmatprep.subr.bf16.mxu0 %v9552_v40  ;;  %v2027_v29 = vmax.f32 %v1635_v6, 0.0  ;;  %v9564_v6 = vld [vmem:[#allocation9 + $0x5c4] ss:$16 sps:$4 sm:$0xff]  }
 0x217   :  { %v2026_v50 = vmax.f32 %v1524_v57, 0.0  ;;  %5589 = vmatmul.mubr.bf16.gmra.mrb[152].mxu0 %v10730_v31  ;;  %6537 = vmatprep.subr.bf16.mxu1 %v9555_v28  ;;  %v2028_v35 = vmax.f32 %v1637_v9, 0.0 }
 0x218   :  { %v11026_v33 = vpack.c.bf16 %v2025_v34, %v2009_v2  ;;  %6493 = vmatmul.mubr.bf16.gmra.mrb[152].mxu1 %v10730_v31  ;;  %5598 = vmatprep.mubr.bf16.mxu0 %v10777_v24  ;;  %v11030_v32 = vpack.c.bf16 %v2027_v29, %v2011_v20  ;;  %v9559_v31 = vld [vmem:[#allocation9 + $0x5a8] ss:$16 sps:$4 sm:$0xff]  }
 0x219   :  { %v11032_v21 = vpack.c.bf16 %v2026_v50, %v2010_v12  ;;  %5634 = vmatpush1.bf16.msra.mxu0 %v9550_v7  ;;  %6502 = vmatprep.mubr.bf16.mxu1 %v10777_v24  ;;  %v1527_v40 = vpop.f32.mrb[80].mxu0  ;;  %v11035_v38 = vpack.c.bf16 %v2028_v35, %v2012_v61  ;;  %v1640_v16 = vpop.f32.mrb[80].mxu1  ;;  %v9567_v24 = vld [vmem:[#allocation9 + $0x5cc] ss:$16 sps:$4 sm:$0xff]   ;;  %v9562_v12 = vld [vmem:[#allocation9 + $0x5c0] ss:$16 sps:$4 sm:$0xff]  }
 0x21a   :  { %11673 = vst [vmem:[#allocation39_spill] sm:$0xff] %v11030_v32  ;;  %6538 = vmatpush1.bf16.msra.mxu1 %v9553_v8  ;;  %v1528_v28 = vadd.f32 %v1527_v40, %v10928_v45  ;;  %v1529_v41 = vpop.f32.mrb[81].mxu0  ;;  %5635 = vmatprep.subr.bf16.mxu0 %v9558_v18  ;;  %v1641_v29 = vadd.f32 %v1640_v16, %v10934_v48  ;;  %v1642_v20 = vpop.f32.mrb[81].mxu1  ;;  %v9565_v35 = vld [vmem:[#allocation9 + $0x5c8] ss:$16 sps:$4 sm:$0xff]  }
 0x21b   :  { %11674 = vst [vmem:[#allocation40_spill] sm:$0xff] %v11035_v38  ;;  %v1530_v50 = vadd.f32 %v1529_v41, %v10940_v17  ;;  %6539 = vmatprep.subr.bf16.mxu1 %v9561_v47  ;;  %v1531_v57 = vpop.f32.mrb[82].mxu0  ;;  %v1643_v19 = vadd.f32 %v1642_v20, %v10948_v30  ;;  %v1644_v8 = vpop.f32.mrb[82].mxu1  ;;  %v9570_v20 = vld [vmem:[#allocation9 + $0x5e4] ss:$16 sps:$4 sm:$0xff]  }
 0x21c   :  { %v1532_v7 = vadd.f32 %v1531_v57, %v10928_v45  ;;  %v1533_v2 = vpop.f32.mrb[83].mxu0  ;;  %v2043_v61 = vmax.f32 %v1641_v29, 0.0  ;;  %v1645_v34 = vadd.f32 %v1644_v8, %v10934_v48  ;;  %v1646_v18 = vpop.f32.mrb[83].mxu1  ;;  %v2041_v40 = vmax.f32 %v1528_v28, 0.0 }
 0x21d   :  { %5636 = vmatpush1.bf16.msra.mxu0 %v9556_v56  ;;  %v1534_v9 = vadd.f32 %v1533_v2, %v10940_v17  ;;  %v2044_v16 = vmax.f32 %v1643_v19, 0.0  ;;  %v1647_v41 = vadd.f32 %v1646_v18, %v10948_v30  ;;  %v2042_v57 = vmax.f32 %v1530_v50, 0.0  ;;  %v9573_v56 = vld [vmem:[#allocation9 + $0x5ec] ss:$16 sps:$4 sm:$0xff]   ;;  %v9568_v50 = vld [vmem:[#allocation9 + $0x5e0] ss:$16 sps:$4 sm:$0xff]  }
 0x21e   :  { %v2057_v47 = vmax.f32 %v1532_v7, 0.0  ;;  %6540 = vmatpush1.bf16.msra.mxu1 %v9559_v31  ;;  %5637 = vmatprep.subr.bf16.mxu0 %v9564_v6  ;;  %v2059_v32 = vmax.f32 %v1645_v34, 0.0  ;;  %v9576_v34 = vld [vmem:[#allocation9 + $0x604] ss:$16 sps:$4 sm:$0xff]  }
 0x21f   :  { %v2058_v38 = vmax.f32 %v1534_v9, 0.0  ;;  %5599 = vmatmul.mubr.bf16.gmra.mrb[156].mxu0 %v10773_v44  ;;  %6541 = vmatprep.subr.bf16.mxu1 %v9567_v24  ;;  %v2060_v8 = vmax.f32 %v1647_v41, 0.0 }
 0x220   :  { %v11046_v29 = vpack.c.bf16 %v2057_v47, %v2041_v40  ;;  %6503 = vmatmul.mubr.bf16.gmra.mrb[156].mxu1 %v10773_v44  ;;  %5641 = vmatprep.mubr.bf16.mxu0 %v10795_v63  ;;  %v11050_v28 = vpack.c.bf16 %v2059_v32, %v2043_v61  ;;  %v9571_v44 = vld [vmem:[#allocation9 + $0x5e8] ss:$16 sps:$4 sm:$0xff]  }
 0x221   :  { %v11052_v31 = vpack.c.bf16 %v2058_v38, %v2042_v57  ;;  %5638 = vmatpush1.bf16.msra.mxu0 %v9562_v12  ;;  %6545 = vmatprep.mubr.bf16.mxu1 %v10795_v63  ;;  %v1537_v6 = vpop.f32.mrb[84].mxu0  ;;  %v11055_v19 = vpack.c.bf16 %v2060_v8, %v2044_v16  ;;  %v1650_v7 = vpop.f32.mrb[84].mxu1  ;;  %v9579_v63 = vld [vmem:[#allocation9 + $0x60c] ss:$16 sps:$4 sm:$0xff]   ;;  %v9574_v57 = vld [vmem:[#allocation9 + $0x600] ss:$16 sps:$4 sm:$0xff]  }
 0x222   :  { %11675 = vst [vmem:[#allocation41_spill] sm:$0xff] %v11050_v28  ;;  %6542 = vmatpush1.bf16.msra.mxu1 %v9565_v35  ;;  %v1538_v24 = vadd.f32 %v1537_v6, %v10928_v45  ;;  %v1539_v2 = vpop.f32.mrb[85].mxu0  ;;  %5639 = vmatprep.subr.bf16.mxu0 %v9570_v20  ;;  %v1651_v32 = vadd.f32 %v1650_v7, %v10934_v48  ;;  %v1652_v61 = vpop.f32.mrb[85].mxu1 }
 0x223   :  { %11676 = vst [vmem:[#allocation42_spill] sm:$0xff] %v11055_v19  ;;  %v1540_v38 = vadd.f32 %v1539_v2, %v10940_v17  ;;  %6543 = vmatprep.subr.bf16.mxu1 %v9573_v56  ;;  %v1541_v9 = vpop.f32.mrb[86].mxu0  ;;  %v1653_v18 = vadd.f32 %v1652_v61, %v10948_v30  ;;  %v1654_v35 = vpop.f32.mrb[86].mxu1  ;;  %v9577_v2 = vld [vmem:[#allocation9 + $0x608] ss:$16 sps:$4 sm:$0xff]  }
 0x224   :  { %v1542_v12 = vadd.f32 %v1541_v9, %v10928_v45  ;;  %v1543_v40 = vpop.f32.mrb[87].mxu0  ;;  %v2075_v16 = vmax.f32 %v1651_v32, 0.0  ;;  %v1655_v47 = vadd.f32 %v1654_v35, %v10934_v48  ;;  %v1656_v20 = vpop.f32.mrb[87].mxu1  ;;  %v2073_v8 = vmax.f32 %v1538_v24, 0.0  ;;  %v9582_v32 = vld [vmem:[#allocation9 + $0x624] ss:$16 sps:$4 sm:$0xff]  }
 0x225   :  { %5640 = vmatpush1.bf16.msra.mxu0 %v9568_v50  ;;  %v1544_v41 = vadd.f32 %v1543_v40, %v10940_v17  ;;  %v2076_v6 = vmax.f32 %v1653_v18, 0.0  ;;  %v1657_v56 = vadd.f32 %v1656_v20, %v10948_v30  ;;  %v2074_v61 = vmax.f32 %v1540_v38, 0.0  ;;  %v9585_v35 = vld [vmem:[#allocation9 + $0x62c] ss:$16 sps:$4 sm:$0xff]   ;;  %v9588_v20 = vld [vmem:[#allocation9 + $0x644] ss:$16 sps:$4 sm:$0xff]  }
 0x226   :  { %v2089_v7 = vmax.f32 %v1542_v12, 0.0  ;;  %6544 = vmatpush1.bf16.msra.mxu1 %v9571_v44  ;;  %5722 = vmatprep.subr.bf16.mxu0 %v9576_v34  ;;  %v2091_v9 = vmax.f32 %v1655_v47, 0.0  ;;  %v9580_v12 = vld [vmem:[#allocation9 + $0x620] ss:$16 sps:$4 sm:$0xff]  }
 0x227   :  { %v2090_v28 = vmax.f32 %v1544_v41, 0.0  ;;  %6626 = vmatprep.subr.bf16.mxu1 %v9579_v63  ;;  %v2092_v50 = vmax.f32 %v1657_v56, 0.0 }
 0x228   :  { %v11065_v19 = vpack.c.bf16 %v2089_v7, %v2073_v8  ;;  %5642 = vmatmul.mubr.bf16.vlgmr.msra.gmra.mrb[128].mxu0 %v10790_v43  ;;  %v11068_v40 = vpack.c.bf16 %v2091_v9, %v2075_v16  ;;  %v9591_v7 = vld [vmem:[#allocation9 + $0x64c] ss:$16 sps:$4 sm:$0xff]  }
 0x229   :  { %v11070_v24 = vpack.c.bf16 %v2090_v28, %v2074_v61  ;;  %6546 = vmatmul.mubr.bf16.vlgmr.msra.gmra.mrb[128].mxu1 %v10790_v43  ;;  %5651 = vmatprep.mubr.bf16.mxu0 %v10815_v0  ;;  %v1547_v44 = vpop.f32.mrb[88].mxu0  ;;  %v11074_v34 = vpack.c.bf16 %v2092_v50, %v2076_v6  ;;  %v1660_v63 = vpop.f32.mrb[88].mxu1  ;;  %v9583_v43 = vld [vmem:[#allocation9 + $0x628] ss:$16 sps:$4 sm:$0xff]   ;;  %v9586_v50 = vld [vmem:[#allocation9 + $0x640] ss:$16 sps:$4 sm:$0xff]  }
 0x22a   :  { %11677 = vst [vmem:[#allocation43_spill] sm:$0xff] %v11068_v40  ;;  %5723 = vmatpush1.bf16.msra.mxu0 %v9574_v57  ;;  %6555 = vmatprep.mubr.bf16.mxu1 %v10815_v0  ;;  %v1548_v38 = vadd.f32 %v1547_v44, %v10928_v45  ;;  %v1549_v18 = vpop.f32.mrb[89].mxu0  ;;  %v1661_v16 = vadd.f32 %v1660_v63, %v10934_v48  ;;  %v1662_v47 = vpop.f32.mrb[89].mxu1 }
 0x22b   :  { %11678 = vst [vmem:[#allocation44_spill] sm:$0xff] %v11074_v34  ;;  %6627 = vmatpush1.bf16.msra.mxu1 %v9577_v2  ;;  %v1550_v28 = vadd.f32 %v1549_v18, %v10940_v17  ;;  %5724 = vmatprep.subr.bf16.mxu0 %v9582_v32  ;;  %v1551_v41 = vpop.f32.mrb[90].mxu0  ;;  %v1663_v8 = vadd.f32 %v1662_v47, %v10948_v30  ;;  %v1664_v57 = vpop.f32.mrb[90].mxu1  ;;  %v9589_v47 = vld [vmem:[#allocation9 + $0x648] ss:$16 sps:$4 sm:$0xff]  }
 0x22c   :  { %6628 = vmatprep.subr.bf16.mxu1 %v9585_v35  ;;  %v1552_v0 = vadd.f32 %v1551_v41, %v10928_v45  ;;  %v1553_v6 = vpop.f32.mrb[91].mxu0  ;;  %v2107_v56 = vmax.f32 %v1661_v16, 0.0  ;;  %v1665_v2 = vadd.f32 %v1664_v57, %v10934_v48  ;;  %v1666_v9 = vpop.f32.mrb[91].mxu1  ;;  %v2105_v44 = vmax.f32 %v1548_v38, 0.0  ;;  %v9594_v34 = vld [vmem:[#allocation9 + $0x664] ss:$16 sps:$4 sm:$0xff]  }
 0x22d   :  { %v1554_v61 = vadd.f32 %v1553_v6, %v10940_v17  ;;  %v2108_v32 = vmax.f32 %v1663_v8, 0.0  ;;  %v1667_v18 = vadd.f32 %v1666_v9, %v10948_v30  ;;  %v2106_v35 = vmax.f32 %v1550_v28, 0.0  ;;  %v9597_v6 = vld [vmem:[#allocation9 + $0x66c] ss:$16 sps:$4 sm:$0xff]   ;;  %v9600_v9 = vld [vmem:[#allocation9 + $0x684] ss:$16 sps:$4 sm:$0xff]  }
 0x22e   :  { %v2121_v63 = vmax.f32 %v1552_v0, 0.0  ;;  %5725 = vmatpush1.bf16.msra.mxu0 %v9580_v12  ;;  %v2123_v40 = vmax.f32 %v1665_v2, 0.0 }
 0x22f   :  { %6629 = vmatpush1.bf16.msra.mxu1 %v9583_v43  ;;  %v2122_v41 = vmax.f32 %v1554_v61, 0.0  ;;  %5726 = vmatprep.subr.bf16.mxu0 %v9588_v20  ;;  %v2124_v57 = vmax.f32 %v1667_v18, 0.0  ;;  %v11680_v18 = vsub.s32 4, %v10556_v11 }
 0x230   :  { %v11085_v16 = vpack.c.bf16 %v2121_v63, %v2105_v44  ;;  %5652 = vmatmul.mubr.bf16.gmra.mrb[132].mxu0 %v10810_v54  ;;  %6630 = vmatprep.subr.bf16.mxu1 %v9591_v7  ;;  %v11088_v38 = vpack.c.bf16 %v2123_v40, %v2107_v56  ;;  %v9592_v7 = vld [vmem:[#allocation9 + $0x660] ss:$16 sps:$4 sm:$0xff]   ;;  %v9603_v63 = vld [vmem:[#allocation9 + $0x68c] ss:$16 sps:$4 sm:$0xff]  }
 0x231   :  { %v11090_v8 = vpack.c.bf16 %v2122_v41, %v2106_v35  ;;  %6556 = vmatmul.mubr.bf16.gmra.mrb[132].mxu1 %v10810_v54  ;;  %5661 = vmatprep.mubr.bf16.mxu0 %v10835_v62  ;;  %v1557_v12 = vpop.f32.mrb[92].mxu0  ;;  %v11094_v28 = vpack.c.bf16 %v2124_v57, %v2108_v32  ;;  %v1670_v20 = vpop.f32.mrb[92].mxu1  ;;  %v9595_v54 = vld [vmem:[#allocation9 + $0x668] ss:$16 sps:$4 sm:$0xff]  }
 0x232   :  { %11679 = vst [vmem:[#allocation45_spill] sm:$0xff] %v11088_v38  ;;  %5727 = vmatpush1.bf16.msra.mxu0 %v9586_v50  ;;  %6565 = vmatprep.mubr.bf16.mxu1 %v10835_v62  ;;  %v1558_v43 = vadd.f32 %v1557_v12, %v10928_v45  ;;  %v1559_v0 = vpop.f32.mrb[93].mxu0  ;;  %v1671_v40 = vadd.f32 %v1670_v20, %v10934_v48  ;;  %v1672_v2 = vpop.f32.mrb[93].mxu1  ;;  %v9598_v12 = vld [vmem:[#allocation9 + $0x680] ss:$16 sps:$4 sm:$0xff]   ;;  %v11681_v20 = vsub.s32 6, %v10556_v11 }
 0x233   :  { %6631 = vmatpush1.bf16.msra.mxu1 %v9589_v47  ;;  %v1560_v56 = vadd.f32 %v1559_v0, %v10940_v17  ;;  %5728 = vmatprep.subr.bf16.mxu0 %v9594_v34  ;;  %v1561_v61 = vpop.f32.mrb[94].mxu0  ;;  %v1673_v44 = vadd.f32 %v1672_v2, %v10948_v30  ;;  %v1674_v50 = vpop.f32.mrb[94].mxu1  ;;  %v11105_v47 = vrot.slane %v10917_v59, %v11680_v18  ;;  %v9601_v18 = vld [vmem:[#allocation9 + $0x688] ss:$16 sps:$4 sm:$0xff]  }
 0x234   :  { %6632 = vmatprep.subr.bf16.mxu1 %v9597_v6  ;;  %v1562_v62 = vadd.f32 %v1561_v61, %v10928_v45  ;;  %v1563_v32 = vpop.f32.mrb[95].mxu0  ;;  %v2139_v35 = vmax.f32 %v1671_v40, 0.0  ;;  %v1675_v41 = vadd.f32 %v1674_v50, %v10934_v48  ;;  %v1676_v57 = vpop.f32.mrb[95].mxu1  ;;  %v11112_v6 = vrot.slane %v10917_v59, %v11681_v20 }
 0x235   :  { %v1564_v34 = vadd.f32 %v1563_v32, %v10940_v17  ;;  %v2137_v45 = vmax.f32 %v1558_v43, 0.0  ;;  %v2140_v0 = vmax.f32 %v1673_v44, 0.0  ;;  %v1677_v61 = vadd.f32 %v1676_v57, %v10948_v30  ;;  %v9606_v32 = vld [vmem:[#allocation9 + $0x6a4] ss:$16 sps:$4 sm:$0xff]  }
 0x236   :  { %v2153_v2 = vmax.f32 %v1562_v62, 0.0  ;;  %5729 = vmatpush1.bf16.msra.mxu0 %v9592_v7  ;;  %v2138_v38 = vmax.f32 %v1560_v56, 0.0  ;;  %v2155_v40 = vmax.f32 %v1675_v41, 0.0  ;;  %v11682_v17 = vsub.s32 5, %v10556_v11  ;;  %v9609_v56 = vld [vmem:[#allocation9 + $0x6ac] ss:$16 sps:$4 sm:$0xff]  }
 0x237   :  { %6633 = vmatpush1.bf16.msra.mxu1 %v9595_v54  ;;  %v2154_v48 = vmax.f32 %v1564_v34, 0.0  ;;  %5730 = vmatprep.subr.bf16.mxu0 %v9600_v9  ;;  %v2156_v43 = vmax.f32 %v1677_v61, 0.0  ;;  %v11683_v30 = vsub.s32 7, %v10556_v11  ;;  %v9604_v41 = vld [vmem:[#allocation9 + $0x6a0] ss:$16 sps:$4 sm:$0xff]  }
 0x238   :  { %v11118_v50 = vrot.slane %v10917_v59, %v11682_v17  ;;  %v11120_v20 = vpack.c.bf16 %v2153_v2, %v2137_v45  ;;  %5662 = vmatmul.mubr.bf16.gmra.mrb[136].mxu0 %v10830_v15  ;;  %6634 = vmatprep.subr.bf16.mxu1 %v9603_v63  ;;  %v11128_v54 = vpack.c.bf16 %v2155_v40, %v2139_v35  ;;  %v9612_v45 = vld [vmem:[#allocation9 + $0x6c4] ss:$16 sps:$4 sm:$0xff]   ;;  %v9615_v61 = vld [vmem:[#allocation9 + $0x6cc] ss:$16 sps:$4 sm:$0xff]  }
 0x239   :  { %v11126_v7 = vrot.slane %v10917_v59, %v11683_v30  ;;  %v11130_v9 = vpack.c.bf16 %v2154_v48, %v2138_v38  ;;  %6566 = vmatmul.mubr.bf16.gmra.mrb[136].mxu1 %v10830_v15  ;;  %5671 = vmatprep.mubr.bf16.mxu0 %v10855_v13  ;;  %v1713_v44 = vpop.f32.mrb[96].mxu0  ;;  %v11134_v62 = vpack.c.bf16 %v2156_v43, %v2140_v0  ;;  %v1826_v63 = vpop.f32.mrb[96].mxu1  ;;  %v9607_v15 = vld [vmem:[#allocation9 + $0x6a8] ss:$16 sps:$4 sm:$0xff]   ;;  %v9610_v43 = vld [vmem:[#allocation9 + $0x6c0] ss:$16 sps:$4 sm:$0xff]  }
 0x23a   :  { %11684 = vst [vmem:[#allocation46_spill] sm:$0xff] %v11128_v54  ;;  %5731 = vmatpush1.bf16.msra.mxu0 %v9598_v12  ;;  %6575 = vmatprep.mubr.bf16.mxu1 %v10855_v13  ;;  %v1714_v11 = vadd.f32 %v1713_v44, %v11105_v47  ;;  %v1715_v59 = vpop.f32.mrb[97].mxu0  ;;  %v1827_v35 = vadd.f32 %v1826_v63, %v11112_v6  ;;  %v1828_v34 = vpop.f32.mrb[97].mxu1  ;;  %v9618_v54 = vld [vmem:[#allocation9 + $0x6e4] ss:$16 sps:$4 sm:$0xff]  }
 0x23b   :  { %6635 = vmatpush1.bf16.msra.mxu1 %v9601_v18  ;;  %v1716_v38 = vadd.f32 %v1715_v59, %v11118_v50  ;;  %5732 = vmatprep.subr.bf16.mxu0 %v9606_v32  ;;  %v1717_v57 = vpop.f32.mrb[98].mxu0  ;;  %v1829_v0 = vadd.f32 %v1828_v34, %v11126_v7  ;;  %v1830_v12 = vpop.f32.mrb[98].mxu1  ;;  %v9613_v59 = vld [vmem:[#allocation9 + $0x6c8] ss:$16 sps:$4 sm:$0xff]  }
 0x23c   :  { %6636 = vmatprep.subr.bf16.mxu1 %v9609_v56  ;;  %v1718_v13 = vadd.f32 %v1717_v57, %v11105_v47  ;;  %v1719_v2 = vpop.f32.mrb[99].mxu0  ;;  %v1919_v40 = vmax.f32 %v1827_v35, 0.0  ;;  %v1831_v18 = vadd.f32 %v1830_v12, %v11112_v6  ;;  %v1832_v17 = vpop.f32.mrb[99].mxu1  ;;  %v1917_v30 = vmax.f32 %v1714_v11, 0.0 }
 0x23d   :  { %v1720_v48 = vadd.f32 %v1719_v2, %v11118_v50  ;;  %v1920_v32 = vmax.f32 %v1829_v0, 0.0  ;;  %v1833_v63 = vadd.f32 %v1832_v17, %v11126_v7  ;;  %v1918_v56 = vmax.f32 %v1716_v38, 0.0  ;;  %v9621_v2 = vld [vmem:[#allocation9 + $0x6ec] ss:$16 sps:$4 sm:$0xff]  }
 0x23e   :  { %v1933_v44 = vmax.f32 %v1718_v13, 0.0  ;;  %5733 = vmatpush1.bf16.msra.mxu0 %v9604_v41  ;;  %v1935_v34 = vmax.f32 %v1831_v18, 0.0 }
 0x23f   :  { %6637 = vmatpush1.bf16.msra.mxu1 %v9607_v15  ;;  %v1934_v57 = vmax.f32 %v1720_v48, 0.0  ;;  %5734 = vmatprep.subr.bf16.mxu0 %v9612_v45  ;;  %v1936_v12 = vmax.f32 %v1833_v63, 0.0  ;;  %v9627_v63 = vld [vmem:[#allocation9 + $0x70c] ss:$16 sps:$4 sm:$0xff]  }
 0x240   :  { %v11145_v35 = vpack.c.bf16 %v1933_v44, %v1917_v30  ;;  %5672 = vmatmul.mubr.bf16.gmra.mrb[140].mxu0 %v10850_v46  ;;  %6638 = vmatprep.subr.bf16.mxu1 %v9615_v61  ;;  %v11148_v11 = vpack.c.bf16 %v1935_v34, %v1919_v40  ;;  %v9616_v61 = vld [vmem:[#allocation9 + $0x6e0] ss:$16 sps:$4 sm:$0xff]   ;;  %v9624_v30 = vld [vmem:[#allocation9 + $0x704] ss:$16 sps:$4 sm:$0xff]  }
 0x241   :  { %v11150_v0 = vpack.c.bf16 %v1934_v57, %v1918_v56  ;;  %6576 = vmatmul.mubr.bf16.gmra.mrb[140].mxu1 %v10850_v46  ;;  %5681 = vmatprep.mubr.bf16.mxu0 %v10875_v1  ;;  %v1723_v41 = vpop.f32.mrb[100].mxu0  ;;  %v11154_v38 = vpack.c.bf16 %v1936_v12, %v1920_v32  ;;  %v1836_v45 = vpop.f32.mrb[100].mxu1  ;;  %v9619_v46 = vld [vmem:[#allocation9 + $0x6e8] ss:$16 sps:$4 sm:$0xff]   ;;  %v9622_v12 = vld [vmem:[#allocation9 + $0x700] ss:$16 sps:$4 sm:$0xff]  }
 0x242   :  { %11685 = vst [vmem:[#allocation47_spill] sm:$0xff] %v11148_v11  ;;  %5735 = vmatpush1.bf16.msra.mxu0 %v9610_v43  ;;  %6585 = vmatprep.mubr.bf16.mxu1 %v10875_v1  ;;  %v1724_v15 = vadd.f32 %v1723_v41, %v11105_v47  ;;  %v1725_v13 = vpop.f32.mrb[101].mxu0  ;;  %v1837_v40 = vadd.f32 %v1836_v45, %v11112_v6  ;;  %v1838_v48 = vpop.f32.mrb[101].mxu1 }
 0x243   :  { %11686 = vst [vmem:[#allocation48_spill] sm:$0xff] %v11154_v38  ;;  %6639 = vmatpush1.bf16.msra.mxu1 %v9613_v59  ;;  %v1726_v18 = vadd.f32 %v1725_v13, %v11118_v50  ;;  %5736 = vmatprep.subr.bf16.mxu0 %v9618_v54  ;;  %v1727_v17 = vpop.f32.mrb[102].mxu0  ;;  %v1839_v32 = vadd.f32 %v1838_v48, %v11126_v7  ;;  %v1840_v43 = vpop.f32.mrb[102].mxu1  ;;  %v9625_v48 = vld [vmem:[#allocation9 + $0x708] ss:$16 sps:$4 sm:$0xff]  }
 0x244   :  { %6640 = vmatprep.subr.bf16.mxu1 %v9621_v2  ;;  %v1728_v1 = vadd.f32 %v1727_v17, %v11105_v47  ;;  %v1729_v44 = vpop.f32.mrb[103].mxu0  ;;  %v1951_v56 = vmax.f32 %v1837_v40, 0.0  ;;  %v1841_v59 = vadd.f32 %v1840_v43, %v11112_v6  ;;  %v1842_v57 = vpop.f32.mrb[103].mxu1  ;;  %v1949_v41 = vmax.f32 %v1724_v15, 0.0  ;;  %v9630_v38 = vld [vmem:[#allocation9 + $0x724] ss:$16 sps:$4 sm:$0xff]  }
 0x245   :  { %v1730_v34 = vadd.f32 %v1729_v44, %v11118_v50  ;;  %v1952_v54 = vmax.f32 %v1839_v32, 0.0  ;;  %v1843_v13 = vadd.f32 %v1842_v57, %v11126_v7  ;;  %v1950_v2 = vmax.f32 %v1726_v18, 0.0  ;;  %v9633_v44 = vld [vmem:[#allocation9 + $0x72c] ss:$16 sps:$4 sm:$0xff]   ;;  %v9636_v57 = vld [vmem:[#allocation9 + $0x744] ss:$16 sps:$4 sm:$0xff]  }
 0x246   :  { %v1965_v45 = vmax.f32 %v1728_v1, 0.0  ;;  %5737 = vmatpush1.bf16.msra.mxu0 %v9616_v61  ;;  %v1967_v11 = vmax.f32 %v1841_v59, 0.0 }
 0x247   :  { %6641 = vmatpush1.bf16.msra.mxu1 %v9619_v46  ;;  %v1966_v17 = vmax.f32 %v1730_v34, 0.0  ;;  %5738 = vmatprep.subr.bf16.mxu0 %v9624_v30  ;;  %v1968_v43 = vmax.f32 %v1843_v13, 0.0 }
 0x248   :  { %v11165_v40 = vpack.c.bf16 %v1965_v45, %v1949_v41  ;;  %5682 = vmatmul.mubr.bf16.gmra.mrb[144].mxu0 %v10870_v36  ;;  %6642 = vmatprep.subr.bf16.mxu1 %v9627_v63  ;;  %v11168_v15 = vpack.c.bf16 %v1967_v11, %v1951_v56  ;;  %v9628_v63 = vld [vmem:[#allocation9 + $0x720] ss:$16 sps:$4 sm:$0xff]   ;;  %v9639_v45 = vld [vmem:[#allocation9 + $0x74c] ss:$16 sps:$4 sm:$0xff]  }
 0x249   :  { %v11170_v32 = vpack.c.bf16 %v1966_v17, %v1950_v2  ;;  %6586 = vmatmul.mubr.bf16.gmra.mrb[144].mxu1 %v10870_v36  ;;  %5691 = vmatprep.mubr.bf16.mxu0 %v10894_v4  ;;  %v1733_v61 = vpop.f32.mrb[104].mxu0  ;;  %v11174_v18 = vpack.c.bf16 %v1968_v43, %v1952_v54  ;;  %v1846_v30 = vpop.f32.mrb[104].mxu1  ;;  %v9631_v36 = vld [vmem:[#allocation9 + $0x728] ss:$16 sps:$4 sm:$0xff]   ;;  %v9634_v43 = vld [vmem:[#allocation9 + $0x740] ss:$16 sps:$4 sm:$0xff]  }
 0x24a   :  { %11687 = vst [vmem:[#allocation49_spill] sm:$0xff] %v11168_v15  ;;  %5739 = vmatpush1.bf16.msra.mxu0 %v9622_v12  ;;  %6595 = vmatprep.mubr.bf16.mxu1 %v10894_v4  ;;  %v1734_v46 = vadd.f32 %v1733_v61, %v11105_v47  ;;  %v1735_v1 = vpop.f32.mrb[105].mxu0  ;;  %v1847_v11 = vadd.f32 %v1846_v30, %v11112_v6  ;;  %v1848_v59 = vpop.f32.mrb[105].mxu1 }
 0x24b   :  { %11688 = vst [vmem:[#allocation50_spill] sm:$0xff] %v11174_v18  ;;  %6643 = vmatpush1.bf16.msra.mxu1 %v9625_v48  ;;  %v1736_v56 = vadd.f32 %v1735_v1, %v11118_v50  ;;  %5740 = vmatprep.subr.bf16.mxu0 %v9630_v38  ;;  %v1737_v34 = vpop.f32.mrb[106].mxu0  ;;  %v1849_v41 = vadd.f32 %v1848_v59, %v11126_v7  ;;  %v1850_v12 = vpop.f32.mrb[106].mxu1  ;;  %v9637_v59 = vld [vmem:[#allocation9 + $0x748] ss:$16 sps:$4 sm:$0xff]  }
 0x24c   :  { %6644 = vmatprep.subr.bf16.mxu1 %v9633_v44  ;;  %v1738_v4 = vadd.f32 %v1737_v34, %v11105_v47  ;;  %v1739_v54 = vpop.f32.mrb[107].mxu0  ;;  %v1983_v13 = vmax.f32 %v1847_v11, 0.0  ;;  %v1851_v48 = vadd.f32 %v1850_v12, %v11112_v6  ;;  %v1852_v17 = vpop.f32.mrb[107].mxu1  ;;  %v1981_v61 = vmax.f32 %v1734_v46, 0.0  ;;  %v9642_v18 = vld [vmem:[#allocation9 + $0x764] ss:$16 sps:$4 sm:$0xff]  }
 0x24d   :  { %v1740_v2 = vadd.f32 %v1739_v54, %v11118_v50  ;;  %v1984_v38 = vmax.f32 %v1849_v41, 0.0  ;;  %v1853_v1 = vadd.f32 %v1852_v17, %v11126_v7  ;;  %v1982_v44 = vmax.f32 %v1736_v56, 0.0  ;;  %v9645_v54 = vld [vmem:[#allocation9 + $0x76c] ss:$16 sps:$4 sm:$0xff]   ;;  %v9648_v17 = vld [vmem:[#allocation9 + $0x784] ss:$16 sps:$4 sm:$0xff]  }
 0x24e   :  { %v1997_v30 = vmax.f32 %v1738_v4, 0.0  ;;  %5741 = vmatpush1.bf16.msra.mxu0 %v9628_v63  ;;  %v1999_v15 = vmax.f32 %v1851_v48, 0.0 }
 0x24f   :  { %6645 = vmatpush1.bf16.msra.mxu1 %v9631_v36  ;;  %v1998_v34 = vmax.f32 %v1740_v2, 0.0  ;;  %5742 = vmatprep.subr.bf16.mxu0 %v9636_v57  ;;  %v2000_v12 = vmax.f32 %v1853_v1, 0.0 }
 0x250   :  { %v11185_v11 = vpack.c.bf16 %v1997_v30, %v1981_v61  ;;  %5692 = vmatmul.mubr.bf16.gmra.mrb[148].mxu0 %v10888_v3  ;;  %6646 = vmatprep.subr.bf16.mxu1 %v9639_v45  ;;  %v11188_v46 = vpack.c.bf16 %v1999_v15, %v1983_v13  ;;  %v9640_v45 = vld [vmem:[#allocation9 + $0x760] ss:$16 sps:$4 sm:$0xff]   ;;  %v9651_v30 = vld [vmem:[#allocation9 + $0x78c] ss:$16 sps:$4 sm:$0xff]  }
 0x251   :  { %v11190_v41 = vpack.c.bf16 %v1998_v34, %v1982_v44  ;;  %6596 = vmatmul.mubr.bf16.gmra.mrb[148].mxu1 %v10888_v3  ;;  %5701 = vmatprep.mubr.bf16.mxu0 %v10914_v23  ;;  %v1743_v63 = vpop.f32.mrb[108].mxu0  ;;  %v11194_v56 = vpack.c.bf16 %v2000_v12, %v1984_v38  ;;  %v1856_v57 = vpop.f32.mrb[108].mxu1  ;;  %v9643_v3 = vld [vmem:[#allocation9 + $0x768] ss:$16 sps:$4 sm:$0xff]   ;;  %v9646_v12 = vld [vmem:[#allocation9 + $0x780] ss:$16 sps:$4 sm:$0xff]  }
 0x252   :  { %11689 = vst [vmem:[#allocation51_spill] sm:$0xff] %v11188_v46  ;;  %5743 = vmatpush1.bf16.msra.mxu0 %v9634_v43  ;;  %6605 = vmatprep.mubr.bf16.mxu1 %v10914_v23  ;;  %v1744_v36 = vadd.f32 %v1743_v63, %v11105_v47  ;;  %v1745_v4 = vpop.f32.mrb[109].mxu0  ;;  %v1857_v15 = vadd.f32 %v1856_v57, %v11112_v6  ;;  %v1858_v48 = vpop.f32.mrb[109].mxu1 }
 0x253   :  { %11690 = vst [vmem:[#allocation52_spill] sm:$0xff] %v11194_v56  ;;  %6647 = vmatpush1.bf16.msra.mxu1 %v9637_v59  ;;  %v1746_v13 = vadd.f32 %v1745_v4, %v11118_v50  ;;  %5744 = vmatprep.subr.bf16.mxu0 %v9642_v18  ;;  %v1747_v2 = vpop.f32.mrb[110].mxu0  ;;  %v1859_v61 = vadd.f32 %v1858_v48, %v11126_v7  ;;  %v1860_v43 = vpop.f32.mrb[110].mxu1  ;;  %v9649_v48 = vld [vmem:[#allocation9 + $0x788] ss:$16 sps:$4 sm:$0xff]  }
 0x254   :  { %6648 = vmatprep.subr.bf16.mxu1 %v9645_v54  ;;  %v1748_v23 = vadd.f32 %v1747_v2, %v11105_v47  ;;  %v1749_v38 = vpop.f32.mrb[111].mxu0  ;;  %v2015_v1 = vmax.f32 %v1857_v15, 0.0  ;;  %v1861_v59 = vadd.f32 %v1860_v43, %v11112_v6  ;;  %v1862_v34 = vpop.f32.mrb[111].mxu1  ;;  %v2013_v63 = vmax.f32 %v1744_v36, 0.0  ;;  %v9654_v56 = vld [vmem:[#allocation9 + $0x7a4] ss:$16 sps:$4 sm:$0xff]  }
 0x255   :  { %v1750_v44 = vadd.f32 %v1749_v38, %v11118_v50  ;;  %v2016_v18 = vmax.f32 %v1859_v61, 0.0  ;;  %v1863_v4 = vadd.f32 %v1862_v34, %v11126_v7  ;;  %v2014_v54 = vmax.f32 %v1746_v13, 0.0  ;;  %v9657_v38 = vld [vmem:[#allocation9 + $0x7ac] ss:$16 sps:$4 sm:$0xff]   ;;  %v9660_v34 = vld [vmem:[#allocation9 + $0x7c4] ss:$16 sps:$4 sm:$0xff]  }
 0x256   :  { %v2029_v57 = vmax.f32 %v1748_v23, 0.0  ;;  %5745 = vmatpush1.bf16.msra.mxu0 %v9640_v45  ;;  %v2031_v46 = vmax.f32 %v1861_v59, 0.0 }
 0x257   :  { %6649 = vmatpush1.bf16.msra.mxu1 %v9643_v3  ;;  %v2030_v2 = vmax.f32 %v1750_v44, 0.0  ;;  %5746 = vmatprep.subr.bf16.mxu0 %v9648_v17  ;;  %v2032_v43 = vmax.f32 %v1863_v4, 0.0 }
 0x258   :  { %v11205_v15 = vpack.c.bf16 %v2029_v57, %v2013_v63  ;;  %5702 = vmatmul.mubr.bf16.gmra.mrb[152].mxu0 %v10908_v58  ;;  %6650 = vmatprep.subr.bf16.mxu1 %v9651_v30  ;;  %v11208_v36 = vpack.c.bf16 %v2031_v46, %v2015_v1  ;;  %v9652_v30 = vld [vmem:[#allocation9 + $0x7a0] ss:$16 sps:$4 sm:$0xff]   ;;  %v9663_v57 = vld [vmem:[#allocation9 + $0x7cc] ss:$16 sps:$4 sm:$0xff]  }
 0x259   :  { %v11210_v61 = vpack.c.bf16 %v2030_v2, %v2014_v54  ;;  %6606 = vmatmul.mubr.bf16.gmra.mrb[152].mxu1 %v10908_v58  ;;  %5711 = vmatprep.mubr.bf16.mxu0 %v10952_v55  ;;  %v1753_v45 = vpop.f32.mrb[112].mxu0  ;;  %v11214_v13 = vpack.c.bf16 %v2032_v43, %v2016_v18  ;;  %v1866_v17 = vpop.f32.mrb[112].mxu1  ;;  %v9655_v58 = vld [vmem:[#allocation9 + $0x7a8] ss:$16 sps:$4 sm:$0xff]   ;;  %v9658_v43 = vld [vmem:[#allocation9 + $0x7c0] ss:$16 sps:$4 sm:$0xff]  }
 0x25a   :  { %11691 = vst [vmem:[#allocation53_spill] sm:$0xff] %v11208_v36  ;;  %5747 = vmatpush1.bf16.msra.mxu0 %v9646_v12  ;;  %6615 = vmatprep.mubr.bf16.mxu1 %v10952_v55  ;;  %v1754_v3 = vadd.f32 %v1753_v45, %v11105_v47  ;;  %v1755_v23 = vpop.f32.mrb[113].mxu0  ;;  %v1867_v46 = vadd.f32 %v1866_v17, %v11112_v6  ;;  %v1868_v59 = vpop.f32.mrb[113].mxu1 }
 0x25b   :  { %11692 = vst [vmem:[#allocation54_spill] sm:$0xff] %v11214_v13  ;;  %6651 = vmatpush1.bf16.msra.mxu1 %v9649_v48  ;;  %v1756_v1 = vadd.f32 %v1755_v23, %v11118_v50  ;;  %5748 = vmatprep.subr.bf16.mxu0 %v9654_v56  ;;  %v1757_v44 = vpop.f32.mrb[114].mxu0  ;;  %v1869_v63 = vadd.f32 %v1868_v59, %v11126_v7  ;;  %v1870_v12 = vpop.f32.mrb[114].mxu1  ;;  %v9661_v59 = vld [vmem:[#allocation9 + $0x7c8] ss:$16 sps:$4 sm:$0xff]  }
 0x25c   :  { %6652 = vmatprep.subr.bf16.mxu1 %v9657_v38  ;;  %v1758_v55 = vadd.f32 %v1757_v44, %v11105_v47  ;;  %v1759_v18 = vpop.f32.mrb[115].mxu0  ;;  %v2047_v4 = vmax.f32 %v1867_v46, 0.0  ;;  %v1871_v48 = vadd.f32 %v1870_v12, %v11112_v6  ;;  %v1872_v2 = vpop.f32.mrb[115].mxu1  ;;  %v2045_v45 = vmax.f32 %v1754_v3, 0.0  ;;  %v9666_v13 = vld [vmem:[#allocation9 + $0x7e4] ss:$16 sps:$4 sm:$0xff]  }
 0x25d   :  { %v1760_v54 = vadd.f32 %v1759_v18, %v11118_v50  ;;  %v2048_v56 = vmax.f32 %v1869_v63, 0.0  ;;  %v1873_v23 = vadd.f32 %v1872_v2, %v11126_v7  ;;  %v2046_v38 = vmax.f32 %v1756_v1, 0.0  ;;  %v9669_v18 = vld [vmem:[#allocation9 + $0x7ec] ss:$16 sps:$4 sm:$0xff]   ;;  %v9672_v2 = vld [vmem:[#allocation9 + $0x804] ss:$16 sps:$4 sm:$0xff]  }
 0x25e   :  { %v2061_v17 = vmax.f32 %v1758_v55, 0.0  ;;  %5749 = vmatpush1.bf16.msra.mxu0 %v9652_v30  ;;  %v2063_v36 = vmax.f32 %v1871_v48, 0.0 }
 0x25f   :  { %6653 = vmatpush1.bf16.msra.mxu1 %v9655_v58  ;;  %v2062_v44 = vmax.f32 %v1760_v54, 0.0  ;;  %5750 = vmatprep.subr.bf16.mxu0 %v9660_v34  ;;  %v2064_v12 = vmax.f32 %v1873_v23, 0.0 }
 0x260   :  { %v11225_v46 = vpack.c.bf16 %v2061_v17, %v2045_v45  ;;  %5712 = vmatmul.mubr.bf16.gmra.mrb[156].mxu0 %v10942_v39  ;;  %6654 = vmatprep.subr.bf16.mxu1 %v9663_v57  ;;  %v11228_v3 = vpack.c.bf16 %v2063_v36, %v2047_v4  ;;  %v9664_v57 = vld [vmem:[#allocation9 + $0x7e0] ss:$16 sps:$4 sm:$0xff]   ;;  %v9675_v17 = vld [vmem:[#allocation9 + $0x80c] ss:$16 sps:$4 sm:$0xff]  }
 0x261   :  { %v11230_v63 = vpack.c.bf16 %v2062_v44, %v2046_v38  ;;  %6616 = vmatmul.mubr.bf16.gmra.mrb[156].mxu1 %v10942_v39  ;;  %5754 = vmatprep.mubr.bf16.mxu0 %v10797_v22  ;;  %v1763_v30 = vpop.f32.mrb[116].mxu0  ;;  %v11234_v1 = vpack.c.bf16 %v2064_v12, %v2048_v56  ;;  %v1876_v34 = vpop.f32.mrb[116].mxu1  ;;  %v9667_v39 = vld [vmem:[#allocation9 + $0x7e8] ss:$16 sps:$4 sm:$0xff]  }
 0x262   :  { %11693 = vst [vmem:[#allocation55_spill] sm:$0xff] %v11228_v3  ;;  %5751 = vmatpush1.bf16.msra.mxu0 %v9658_v43  ;;  %6658 = vmatprep.mubr.bf16.mxu1 %v10797_v22  ;;  %v1764_v58 = vadd.f32 %v1763_v30, %v11105_v47  ;;  %v1765_v55 = vpop.f32.mrb[117].mxu0  ;;  %v1877_v36 = vadd.f32 %v1876_v34, %v11112_v6  ;;  %v1878_v48 = vpop.f32.mrb[117].mxu1 }
 0x263   :  { %11694 = vst [vmem:[#allocation56_spill] sm:$0xff] %v11234_v1  ;;  %6655 = vmatpush1.bf16.msra.mxu1 %v9661_v59  ;;  %v1766_v4 = vadd.f32 %v1765_v55, %v11118_v50  ;;  %5752 = vmatprep.subr.bf16.mxu0 %v9666_v13  ;;  %v1767_v54 = vpop.f32.mrb[118].mxu0  ;;  %v1879_v45 = vadd.f32 %v1878_v48, %v11126_v7  ;;  %v1880_v43 = vpop.f32.mrb[118].mxu1  ;;  %v9673_v1 = vld [vmem:[#allocation9 + $0x808] ss:$16 sps:$4 sm:$0xff]  }
 0x264   :  { %6656 = vmatprep.subr.bf16.mxu1 %v9669_v18  ;;  %v1768_v22 = vadd.f32 %v1767_v54, %v11105_v47  ;;  %v1769_v56 = vpop.f32.mrb[119].mxu0  ;;  %v2079_v23 = vmax.f32 %v1877_v36, 0.0  ;;  %v1881_v59 = vadd.f32 %v1880_v43, %v11112_v6  ;;  %v1882_v44 = vpop.f32.mrb[119].mxu1  ;;  %v2077_v12 = vmax.f32 %v1764_v58, 0.0  ;;  %v9670_v54 = vld [vmem:[#allocation9 + $0x800] ss:$16 sps:$4 sm:$0xff]  }
 0x265   :  { %v1770_v38 = vadd.f32 %v1769_v56, %v11118_v50  ;;  %v2080_v30 = vmax.f32 %v1879_v45, 0.0  ;;  %v1883_v34 = vadd.f32 %v1882_v44, %v11126_v7  ;;  %v2078_v55 = vmax.f32 %v1766_v4, 0.0  ;;  %v9678_v43 = vld [vmem:[#allocation9 + $0x824] ss:$16 sps:$4 sm:$0xff]   ;;  %v9681_v45 = vld [vmem:[#allocation9 + $0x82c] ss:$16 sps:$4 sm:$0xff]  }
 0x266   :  { %v2093_v13 = vmax.f32 %v1768_v22, 0.0  ;;  %5753 = vmatpush1.bf16.msra.mxu0 %v9664_v57  ;;  %v2095_v48 = vmax.f32 %v1881_v59, 0.0 }
 0x267   :  { %6657 = vmatpush1.bf16.msra.mxu1 %v9667_v39  ;;  %v2094_v18 = vmax.f32 %v1770_v38, 0.0  ;;  %5835 = vmatprep.subr.bf16.mxu0 %v9672_v2  ;;  %v2096_v36 = vmax.f32 %v1883_v34, 0.0  ;;  %v9676_v38 = vld [vmem:[#allocation9 + $0x820] ss:$16 sps:$4 sm:$0xff]  }
 0x268   :  { %v11245_v3 = vpack.c.bf16 %v2093_v13, %v2077_v12  ;;  %6739 = vmatprep.subr.bf16.mxu1 %v9675_v17  ;;  %v11247_v56 = vpack.c.bf16 %v2095_v48, %v2079_v23 }
 0x269   :  { %v11249_v58 = vpack.c.bf16 %v2094_v18, %v2078_v55  ;;  %5755 = vmatmul.mubr.bf16.vlgmr.msra.gmra.mrb[128].mxu0 %v10793_v60  ;;  %v1773_v57 = vpop.f32.mrb[120].mxu0  ;;  %v11252_v4 = vpack.c.bf16 %v2096_v36, %v2080_v30  ;;  %v1886_v2 = vpop.f32.mrb[120].mxu1  ;;  %v9684_v55 = vld [vmem:[#allocation9 + $0x844] ss:$16 sps:$4 sm:$0xff]   ;;  %v9687_v36 = vld [vmem:[#allocation9 + $0x84c] ss:$16 sps:$4 sm:$0xff]  }
 0x26a   :  { %11695 = vst [vmem:[#allocation57_spill] sm:$0xff] %v11245_v3  ;;  %11696 = vst [vmem:[#allocation58_spill] sm:$0xff] %v11247_v56  ;;  %6659 = vmatmul.mubr.bf16.vlgmr.msra.gmra.mrb[128].mxu1 %v10793_v60  ;;  %5764 = vmatprep.mubr.bf16.mxu0 %v10817_v14  ;;  %v1774_v39 = vadd.f32 %v1773_v57, %v11105_v47  ;;  %v1775_v22 = vpop.f32.mrb[121].mxu0  ;;  %v1887_v17 = vadd.f32 %v1886_v2, %v11112_v6  ;;  %v1888_v59 = vpop.f32.mrb[121].mxu1  ;;  %v9679_v60 = vld [vmem:[#allocation9 + $0x828] ss:$16 sps:$4 sm:$0xff]  }
 0x26b   :  { %11697 = vst [vmem:[#allocation59_spill] sm:$0xff] %v11252_v4  ;;  %5836 = vmatpush1.bf16.msra.mxu0 %v9670_v54  ;;  %6668 = vmatprep.mubr.bf16.mxu1 %v10817_v14  ;;  %v1776_v23 = vadd.f32 %v1775_v22, %v11118_v50  ;;  %v1777_v44 = vpop.f32.mrb[122].mxu0  ;;  %v1889_v12 = vadd.f32 %v1888_v59, %v11126_v7  ;;  %v1890_v13 = vpop.f32.mrb[122].mxu1  ;;  %v9682_v56 = vld [vmem:[#allocation9 + $0x840] ss:$16 sps:$4 sm:$0xff]  }
 0x26c   :  { %6740 = vmatpush1.bf16.msra.mxu1 %v9673_v1  ;;  %5837 = vmatprep.subr.bf16.mxu0 %v9678_v43  ;;  %v1778_v30 = vadd.f32 %v1777_v44, %v11105_v47  ;;  %v1779_v34 = vpop.f32.mrb[123].mxu0  ;;  %v2111_v48 = vmax.f32 %v1887_v17, 0.0  ;;  %v1891_v14 = vadd.f32 %v1890_v13, %v11112_v6  ;;  %v1892_v54 = vpop.f32.mrb[123].mxu1  ;;  %v2109_v57 = vmax.f32 %v1774_v39, 0.0  ;;  %v9685_v17 = vld [vmem:[#allocation9 + $0x848] ss:$16 sps:$4 sm:$0xff]  }
 0x26d   :  { %6741 = vmatprep.subr.bf16.mxu1 %v9681_v45  ;;  %v1780_v18 = vadd.f32 %v1779_v34, %v11118_v50  ;;  %v2112_v2 = vmax.f32 %v1889_v12, 0.0  ;;  %v1893_v22 = vadd.f32 %v1892_v54, %v11126_v7  ;;  %v2110_v43 = vmax.f32 %v1776_v23, 0.0  ;;  %v9690_v13 = vld [vmem:[#allocation9 + $0x864] ss:$16 sps:$4 sm:$0xff]   ;;  %v9693_v23 = vld [vmem:[#allocation9 + $0x86c] ss:$16 sps:$4 sm:$0xff]  }
 0x26e   :  { %v2125_v1 = vmax.f32 %v1778_v30, 0.0  ;;  %v2127_v59 = vmax.f32 %v1891_v14, 0.0  ;;  %v9688_v54 = vld [vmem:[#allocation9 + $0x860] ss:$16 sps:$4 sm:$0xff]  }
 0x26f   :  { %5838 = vmatpush1.bf16.msra.mxu0 %v9676_v38  ;;  %v2126_v44 = vmax.f32 %v1780_v18, 0.0  ;;  %v2128_v45 = vmax.f32 %v1893_v22, 0.0  ;;  %v11699_v38 = vld [vmem:[#allocation26_spill] sm:$0xff] }
 0x270   :  { %v11265_v4 = vpack.c.bf16 %v2125_v1, %v2109_v57  ;;  %6742 = vmatpush1.bf16.msra.mxu1 %v9679_v60  ;;  %5839 = vmatprep.subr.bf16.mxu0 %v9684_v55  ;;  %v11267_v34 = vpack.c.bf16 %v2127_v59, %v2111_v48 }
 0x271   :  { %v11269_v3 = vpack.c.bf16 %v2126_v44, %v2110_v43  ;;  %5765 = vmatmul.mubr.bf16.gmra.mrb[132].mxu0 %v10813_v42  ;;  %6743 = vmatprep.subr.bf16.mxu1 %v9687_v36  ;;  %v1783_v39 = vpop.f32.mrb[124].mxu0  ;;  %v11272_v12 = vpack.c.bf16 %v2128_v45, %v2112_v2  ;;  %v1896_v30 = vpop.f32.mrb[124].mxu1  ;;  %v9696_v43 = vld [vmem:[#allocation9 + $0x884] ss:$16 sps:$4 sm:$0xff]  }
 0x272   :  { %11698 = vst [vmem:[#allocation60_spill] sm:$0xff] %v11267_v34  ;;  %6669 = vmatmul.mubr.bf16.gmra.mrb[132].mxu1 %v10813_v42  ;;  %5774 = vmatprep.mubr.bf16.mxu0 %v11699_v38  ;;  %v1784_v60 = vadd.f32 %v1783_v39, %v11105_v47  ;;  %v1785_v55 = vpop.f32.mrb[125].mxu0  ;;  %v1897_v48 = vadd.f32 %v1896_v30, %v11112_v6  ;;  %v1898_v18 = vpop.f32.mrb[125].mxu1  ;;  %v9691_v42 = vld [vmem:[#allocation9 + $0x868] ss:$16 sps:$4 sm:$0xff]  }
 0x273   :  { %5840 = vmatpush1.bf16.msra.mxu0 %v9682_v56  ;;  %6678 = vmatprep.mubr.bf16.mxu1 %v11699_v38  ;;  %v1786_v14 = vadd.f32 %v1785_v55, %v11118_v50  ;;  %v1787_v36 = vpop.f32.mrb[126].mxu0  ;;  %v1899_v57 = vadd.f32 %v1898_v18, %v11126_v7  ;;  %v1900_v1 = vpop.f32.mrb[126].mxu1  ;;  %v9699_v39 = vld [vmem:[#allocation9 + $0x88c] ss:$16 sps:$4 sm:$0xff]  }
 0x274   :  { %6744 = vmatpush1.bf16.msra.mxu1 %v9685_v17  ;;  %5841 = vmatprep.subr.bf16.mxu0 %v9690_v13  ;;  %v1788_v2 = vadd.f32 %v1787_v36, %v11105_v47  ;;  %v1789_v22 = vpop.f32.mrb[127].mxu0  ;;  %v2143_v56 = vmax.f32 %v1897_v48, 0.0  ;;  %v1901_v59 = vadd.f32 %v1900_v1, %v11112_v6  ;;  %v1902_v45 = vpop.f32.mrb[127].mxu1  ;;  %v2141_v38 = vmax.f32 %v1784_v60, 0.0  ;;  %v9694_v36 = vld [vmem:[#allocation9 + $0x880] ss:$16 sps:$4 sm:$0xff]  }
 0x275   :  { %6745 = vmatprep.subr.bf16.mxu1 %v9693_v23  ;;  %v1790_v44 = vadd.f32 %v1789_v22, %v11118_v50  ;;  %v2144_v30 = vmax.f32 %v1899_v57, 0.0  ;;  %v1903_v55 = vadd.f32 %v1902_v45, %v11126_v7  ;;  %v2142_v13 = vmax.f32 %v1786_v14, 0.0  ;;  %v9697_v6 = vld [vmem:[#allocation9 + $0x888] ss:$16 sps:$4 sm:$0xff]   ;;  %v9702_v48 = vld [vmem:[#allocation9 + $0x8a4] ss:$16 sps:$4 sm:$0xff]  }
 0x276   :  { %v2157_v17 = vmax.f32 %v1788_v2, 0.0  ;;  %v2159_v18 = vmax.f32 %v1901_v59, 0.0  ;;  %v11700_v60 = vld [vmem:[#allocation25_spill] sm:$0xff]  ;;  %v9700_v57 = vld [vmem:[#allocation9 + $0x8a0] ss:$16 sps:$4 sm:$0xff]  }
 0x277   :  { %5842 = vmatpush1.bf16.msra.mxu0 %v9688_v54  ;;  %v2158_v47 = vmax.f32 %v1790_v44, 0.0  ;;  %v2160_v23 = vmax.f32 %v1903_v55, 0.0  ;;  %v9705_v7 = vld [vmem:[#allocation9 + $0x8ac] ss:$16 sps:$4 sm:$0xff]   ;;  %v11701_v54 = vld [vmem:[#allocation28_spill] sm:$0xff] }
 0x278   :  { %v11285_v34 = vpack.c.bf16 %v2157_v17, %v2141_v38  ;;  %6746 = vmatpush1.bf16.msra.mxu1 %v9691_v42  ;;  %5843 = vmatprep.subr.bf16.mxu0 %v9696_v43  ;;  %v11287_v50 = vpack.c.bf16 %v2159_v18, %v2143_v56  ;;  %v9703_v42 = vld [vmem:[#allocation9 + $0x8a8] ss:$16 sps:$4 sm:$0xff]   ;;  %v9708_v2 = vld [vmem:[#allocation9 + $0x8c4] ss:$16 sps:$4 sm:$0xff]   ;;  %v9711_v22 = vld [vmem:[#allocation9 + $0x8cc] ss:$16 sps:$4 sm:$0xff]  }
 0x279   :  { %v11289_v1 = vpack.c.bf16 %v2158_v47, %v2142_v13  ;;  %5775 = vmatmul.mubr.bf16.gmra.mrb[136].mxu0 %v11700_v60  ;;  %6747 = vmatprep.subr.bf16.mxu1 %v9699_v39  ;;  %v11292_v14 = vpack.c.bf16 %v2160_v23, %v2144_v30  ;;  %v9706_v43 = vld [vmem:[#allocation9 + $0x8c0] ss:$16 sps:$4 sm:$0xff]   ;;  %v9709_v56 = vld [vmem:[#allocation9 + $0x8c8] ss:$16 sps:$4 sm:$0xff]   ;;  %v9714_v59 = vld [vmem:[#allocation9 + $0x8e4] ss:$16 sps:$4 sm:$0xff]  }
 0x27a   :  { %6679 = vmatmul.mubr.bf16.gmra.mrb[136].mxu1 %v11700_v60  ;;  %5784 = vmatprep.mubr.bf16.mxu0 %v11701_v54  ;;  %v11702_v44 = vld [vmem:[#allocation27_spill] sm:$0xff]  ;;  %v11703_v39 = vld [vmem:[#allocation30_spill] sm:$0xff] }
 0x27b   :  { %5844 = vmatpush1.bf16.msra.mxu0 %v9694_v36  ;;  %6688 = vmatprep.mubr.bf16.mxu1 %v11701_v54  ;;  %v9717_v45 = vld [vmem:[#allocation9 + $0x8ec] ss:$16 sps:$4 sm:$0xff]   ;;  %v9712_v38 = vld [vmem:[#allocation9 + $0x8e0] ss:$16 sps:$4 sm:$0xff]   ;;  %v9715_v30 = vld [vmem:[#allocation9 + $0x8e8] ss:$16 sps:$4 sm:$0xff]  }
 0x27c   :  { %6748 = vmatpush1.bf16.msra.mxu1 %v9697_v6  ;;  %5845 = vmatprep.subr.bf16.mxu0 %v9702_v48  ;;  %v9720_v17 = vld [vmem:[#allocation9 + $0x904] ss:$16 sps:$4 sm:$0xff]   ;;  %v9723_v55 = vld [vmem:[#allocation9 + $0x90c] ss:$16 sps:$4 sm:$0xff]   ;;  %v9718_v13 = vld [vmem:[#allocation9 + $0x900] ss:$16 sps:$4 sm:$0xff]  }
 0x27d   :  { %6749 = vmatprep.subr.bf16.mxu1 %v9705_v7  ;;  %v9721_v18 = vld [vmem:[#allocation9 + $0x908] ss:$16 sps:$4 sm:$0xff]   ;;  %v9726_v47 = vld [vmem:[#allocation9 + $0x924] ss:$16 sps:$4 sm:$0xff]   ;;  %v9729_v23 = vld [vmem:[#allocation9 + $0x92c] ss:$16 sps:$4 sm:$0xff]  }
 0x27e   :  { %v11704_v36 = vld [vmem:[#allocation29_spill] sm:$0xff]  ;;  %v11705_v6 = vld [vmem:[#allocation32_spill] sm:$0xff] }
 0x27f   :  { %5846 = vmatpush1.bf16.msra.mxu0 %v9700_v57  ;;  %v9724_v48 = vld [vmem:[#allocation9 + $0x920] ss:$16 sps:$4 sm:$0xff]   ;;  %v9727_v60 = vld [vmem:[#allocation9 + $0x928] ss:$16 sps:$4 sm:$0xff]   ;;  %v9732_v7 = vld [vmem:[#allocation9 + $0x944] ss:$16 sps:$4 sm:$0xff]  }
 0x280   :  { %6750 = vmatpush1.bf16.msra.mxu1 %v9703_v42  ;;  %5847 = vmatprep.subr.bf16.mxu0 %v9708_v2  ;;  %v9735_v54 = vld [vmem:[#allocation9 + $0x94c] ss:$16 sps:$4 sm:$0xff]   ;;  %v9730_v57 = vld [vmem:[#allocation9 + $0x940] ss:$16 sps:$4 sm:$0xff]   ;;  %v9733_v42 = vld [vmem:[#allocation9 + $0x948] ss:$16 sps:$4 sm:$0xff]  }
 0x281   :  { %5785 = vmatmul.mubr.bf16.gmra.mrb[140].mxu0 %v11702_v44  ;;  %6751 = vmatprep.subr.bf16.mxu1 %v9711_v22  ;;  %v9738_v2 = vld [vmem:[#allocation9 + $0x964] ss:$16 sps:$4 sm:$0xff]   ;;  %v11706_v22 = vld [vmem:[#allocation31_spill] sm:$0xff] }
 0x282   :  { %6689 = vmatmul.mubr.bf16.gmra.mrb[140].mxu1 %v11702_v44  ;;  %5794 = vmatprep.mubr.bf16.mxu0 %v11703_v39  ;;  %v9744_v44 = vld [vmem:[#allocation9 + $0x984] ss:$16 sps:$4 sm:$0xff]  }
 0x283   :  { %5848 = vmatpush1.bf16.msra.mxu0 %v9706_v43  ;;  %6698 = vmatprep.mubr.bf16.mxu1 %v11703_v39  ;;  %v9741_v43 = vld [vmem:[#allocation9 + $0x96c] ss:$16 sps:$4 sm:$0xff]   ;;  %v9742_v39 = vld [vmem:[#allocation9 + $0x980] ss:$16 sps:$4 sm:$0xff]  }
 0x284   :  { %6752 = vmatpush1.bf16.msra.mxu1 %v9709_v56  ;;  %5849 = vmatprep.subr.bf16.mxu0 %v9714_v59  ;;  %v9736_v56 = vld [vmem:[#allocation9 + $0x960] ss:$16 sps:$4 sm:$0xff]   ;;  %v9739_v59 = vld [vmem:[#allocation9 + $0x968] ss:$16 sps:$4 sm:$0xff]  }
 0x285   :  { %6753 = vmatprep.subr.bf16.mxu1 %v9717_v45  ;;  %v9747_v45 = vld [vmem:[#allocation9 + $0x98c] ss:$16 sps:$4 sm:$0xff]  }
 0x287   :  { %5850 = vmatpush1.bf16.msra.mxu0 %v9712_v38  ;;  %v9745_v38 = vld [vmem:[#allocation9 + $0x988] ss:$16 sps:$4 sm:$0xff]  }
 0x288   :  { %6754 = vmatpush1.bf16.msra.mxu1 %v9715_v30  ;;  %5851 = vmatprep.subr.bf16.mxu0 %v9720_v17  ;;  %v9750_v30 = vld [vmem:[#allocation9 + $0x9a4] ss:$16 sps:$4 sm:$0xff]   ;;  %v9753_v17 = vld [vmem:[#allocation9 + $0x9ac] ss:$16 sps:$4 sm:$0xff]  }
 0x289   :  { %5795 = vmatmul.mubr.bf16.gmra.mrb[144].mxu0 %v11704_v36  ;;  %6755 = vmatprep.subr.bf16.mxu1 %v9723_v55  ;;  %v9751_v55 = vld [vmem:[#allocation9 + $0x9a8] ss:$16 sps:$4 sm:$0xff]  }
 0x28a   :  { %6699 = vmatmul.mubr.bf16.gmra.mrb[144].mxu1 %v11704_v36  ;;  %5804 = vmatprep.mubr.bf16.mxu0 %v11705_v6  ;;  %v9757_v36 = vld [vmem:[#allocation9 + $0x9c8] ss:$16 sps:$4 sm:$0xff]  }
 0x28b   :  { %5852 = vmatpush1.bf16.msra.mxu0 %v9718_v13  ;;  %6708 = vmatprep.mubr.bf16.mxu1 %v11705_v6  ;;  %v9756_v13 = vld [vmem:[#allocation9 + $0x9c4] ss:$16 sps:$4 sm:$0xff]   ;;  %v9763_v6 = vld [vmem:[#allocation9 + $0x9e8] ss:$16 sps:$4 sm:$0xff]  }
 0x28c   :  { %6756 = vmatpush1.bf16.msra.mxu1 %v9721_v18  ;;  %5853 = vmatprep.subr.bf16.mxu0 %v9726_v47  ;;  %v9759_v18 = vld [vmem:[#allocation9 + $0x9cc] ss:$16 sps:$4 sm:$0xff]   ;;  %v9754_v47 = vld [vmem:[#allocation9 + $0x9c0] ss:$16 sps:$4 sm:$0xff]  }
 0x28d   :  { %6757 = vmatprep.subr.bf16.mxu1 %v9729_v23  ;;  %v9762_v23 = vld [vmem:[#allocation9 + $0x9e4] ss:$16 sps:$4 sm:$0xff]  }
 0x28f   :  { %5854 = vmatpush1.bf16.msra.mxu0 %v9724_v48  ;;  %v9768_v48 = vld [vmem:[#allocation9 + $0xa04] ss:$16 sps:$4 sm:$0xff]  }
 0x290   :  { %6758 = vmatpush1.bf16.msra.mxu1 %v9727_v60  ;;  %5855 = vmatprep.subr.bf16.mxu0 %v9732_v7  ;;  %v9771_v60 = vld [vmem:[#allocation9 + $0xa0c] ss:$16 sps:$4 sm:$0xff]   ;;  %v9766_v7 = vld [vmem:[#allocation9 + $0xa00] ss:$16 sps:$4 sm:$0xff]  }
 0x291   :  { %5805 = vmatmul.mubr.bf16.gmra.mrb[148].mxu0 %v11706_v22  ;;  %6759 = vmatprep.subr.bf16.mxu1 %v9735_v54  ;;  %v9769_v54 = vld [vmem:[#allocation9 + $0xa08] ss:$16 sps:$4 sm:$0xff]  }
 0x292   :  { %6709 = vmatmul.mubr.bf16.gmra.mrb[148].mxu1 %v11706_v22  ;;  %5814 = vmatprep.mubr.bf16.mxu0 %v10919_v25  ;;  %v9783_v22 = vld [vmem:[#allocation9 + $0xa4c] ss:$16 sps:$4 sm:$0xff]  }
 0x293   :  { %5856 = vmatpush1.bf16.msra.mxu0 %v9730_v57  ;;  %6718 = vmatprep.mubr.bf16.mxu1 %v10919_v25  ;;  %v9748_v25 = vld [vmem:[#allocation9 + $0x9a0] ss:$16 sps:$4 sm:$0xff]   ;;  %v9774_v57 = vld [vmem:[#allocation9 + $0xa24] ss:$16 sps:$4 sm:$0xff]  }
 0x294   :  { %6760 = vmatpush1.bf16.msra.mxu1 %v9733_v42  ;;  %5857 = vmatprep.subr.bf16.mxu0 %v9738_v2  ;;  %v9775_v42 = vld [vmem:[#allocation9 + $0xa28] ss:$16 sps:$4 sm:$0xff]   ;;  %v9780_v2 = vld [vmem:[#allocation9 + $0xa44] ss:$16 sps:$4 sm:$0xff]  }
 0x295   :  { %6761 = vmatprep.subr.bf16.mxu1 %v9741_v43  ;;  %v9778_v43 = vld [vmem:[#allocation9 + $0xa40] ss:$16 sps:$4 sm:$0xff]  }
 0x297   :  { %5858 = vmatpush1.bf16.msra.mxu0 %v9736_v56  ;;  %v9781_v56 = vld [vmem:[#allocation9 + $0xa48] ss:$16 sps:$4 sm:$0xff]  }
 0x298   :  { %6762 = vmatpush1.bf16.msra.mxu1 %v9739_v59  ;;  %5859 = vmatprep.subr.bf16.mxu0 %v9744_v44  ;;  %v9786_v59 = vld [vmem:[#allocation9 + $0xa64] ss:$16 sps:$4 sm:$0xff]   ;;  %v9787_v44 = vld [vmem:[#allocation9 + $0xa68] ss:$16 sps:$4 sm:$0xff]  }
 0x299   :  { %5815 = vmatmul.mubr.bf16.gmra.mrb[152].mxu0 %v10912_v53  ;;  %6763 = vmatprep.subr.bf16.mxu1 %v9747_v45  ;;  %v9792_v45 = vld [vmem:[#allocation9 + $0xa84] ss:$16 sps:$4 sm:$0xff]  }
 0x29a   :  { %6719 = vmatmul.mubr.bf16.gmra.mrb[152].mxu1 %v10912_v53  ;;  %5824 = vmatprep.mubr.bf16.mxu0 %v10955_v5  ;;  %v9765_v53 = vld [vmem:[#allocation9 + $0x9ec] ss:$16 sps:$4 sm:$0xff]  }
 0x29b   :  { %5860 = vmatpush1.bf16.msra.mxu0 %v9742_v39  ;;  %6728 = vmatprep.mubr.bf16.mxu1 %v10955_v5  ;;  %v9760_v5 = vld [vmem:[#allocation9 + $0x9e0] ss:$16 sps:$4 sm:$0xff]   ;;  %v9795_v39 = vld [vmem:[#allocation9 + $0xa8c] ss:$16 sps:$4 sm:$0xff]  }
 0x29c   :  { %6764 = vmatpush1.bf16.msra.mxu1 %v9745_v38  ;;  %5861 = vmatprep.subr.bf16.mxu0 %v9750_v30  ;;  %v9790_v38 = vld [vmem:[#allocation9 + $0xa80] ss:$16 sps:$4 sm:$0xff]   ;;  %v9793_v30 = vld [vmem:[#allocation9 + $0xa88] ss:$16 sps:$4 sm:$0xff]  }
 0x29d   :  { %6765 = vmatprep.subr.bf16.mxu1 %v9753_v17  ;;  %v9798_v17 = vld [vmem:[#allocation9 + $0xaa4] ss:$16 sps:$4 sm:$0xff]  }
 0x29f   :  { %5862 = vmatpush1.bf16.msra.mxu0 %v9748_v25  ;;  %v9799_v25 = vld [vmem:[#allocation9 + $0xaa8] ss:$16 sps:$4 sm:$0xff]  }
 0x2a0   :  { %6766 = vmatpush1.bf16.msra.mxu1 %v9751_v55  ;;  %5863 = vmatprep.subr.bf16.mxu0 %v9756_v13  ;;  %v9804_v55 = vld [vmem:[#allocation9 + $0xac4] ss:$16 sps:$4 sm:$0xff]   ;;  %v9807_v13 = vld [vmem:[#allocation9 + $0xacc] ss:$16 sps:$4 sm:$0xff]  }
 0x2a1   :  { %5825 = vmatmul.mubr.bf16.gmra.mrb[156].mxu0 %v10950_v51  ;;  %6767 = vmatprep.subr.bf16.mxu1 %v9759_v18  ;;  %v9802_v18 = vld [vmem:[#allocation9 + $0xac0] ss:$16 sps:$4 sm:$0xff]  }
 0x2a2   :  { %6729 = vmatmul.mubr.bf16.gmra.mrb[156].mxu1 %v10950_v51  ;;  %5867 = vmatprep.mubr.bf16.mxu0 %v10972_v27  ;;  %v9777_v51 = vld [vmem:[#allocation9 + $0xa2c] ss:$16 sps:$4 sm:$0xff]  }
 0x2a3   :  { %5864 = vmatpush1.bf16.msra.mxu0 %v9754_v47  ;;  %6771 = vmatprep.mubr.bf16.mxu1 %v10972_v27  ;;  %v9772_v27 = vld [vmem:[#allocation9 + $0xa20] ss:$16 sps:$4 sm:$0xff]   ;;  %v9805_v47 = vld [vmem:[#allocation9 + $0xac8] ss:$16 sps:$4 sm:$0xff]  }
 0x2a4   :  { %6768 = vmatpush1.bf16.msra.mxu1 %v9757_v36  ;;  %5865 = vmatprep.subr.bf16.mxu0 %v9762_v23  ;;  %v9810_v36 = vld [vmem:[#allocation9 + $0xae4] ss:$16 sps:$4 sm:$0xff]   ;;  %v9811_v23 = vld [vmem:[#allocation9 + $0xae8] ss:$16 sps:$4 sm:$0xff]  }
 0x2a5   :  { %6769 = vmatprep.subr.bf16.mxu1 %v9765_v53  ;;  %v9816_v53 = vld [vmem:[#allocation9 + $0xb04] ss:$16 sps:$4 sm:$0xff]  }
 0x2a7   :  { %5866 = vmatpush1.bf16.msra.mxu0 %v9760_v5  ;;  %v9819_v5 = vld [vmem:[#allocation9 + $0xb0c] ss:$16 sps:$4 sm:$0xff]  }
 0x2a8   :  { %6770 = vmatpush1.bf16.msra.mxu1 %v9763_v6  ;;  %5948 = vmatprep.subr.bf16.mxu0 %v9768_v48  ;;  %v9814_v6 = vld [vmem:[#allocation9 + $0xb00] ss:$16 sps:$4 sm:$0xff]   ;;  %v9817_v48 = vld [vmem:[#allocation9 + $0xb08] ss:$16 sps:$4 sm:$0xff]  }
 0x2a9   :  { %6852 = vmatprep.subr.bf16.mxu1 %v9771_v60  ;;  %v9822_v60 = vld [vmem:[#allocation9 + $0xb24] ss:$16 sps:$4 sm:$0xff]  }
 0x2aa   :  { %5868 = vmatmul.mubr.bf16.vlgmr.msra.gmra.mrb[128].mxu0 %v10966_v49 }
 0x2ab   :  { %6772 = vmatmul.mubr.bf16.vlgmr.msra.gmra.mrb[128].mxu1 %v10966_v49  ;;  %5877 = vmatprep.mubr.bf16.mxu0 %v10992_v26  ;;  %v9789_v49 = vld [vmem:[#allocation9 + $0xa6c] ss:$16 sps:$4 sm:$0xff]  }
 0x2ac   :  { %5949 = vmatpush1.bf16.msra.mxu0 %v9766_v7  ;;  %6781 = vmatprep.mubr.bf16.mxu1 %v10992_v26  ;;  %v9784_v26 = vld [vmem:[#allocation9 + $0xa60] ss:$16 sps:$4 sm:$0xff]   ;;  %v9823_v7 = vld [vmem:[#allocation9 + $0xb28] ss:$16 sps:$4 sm:$0xff]  }
 0x2ad   :  { %6853 = vmatpush1.bf16.msra.mxu1 %v9769_v54  ;;  %5950 = vmatprep.subr.bf16.mxu0 %v9774_v57  ;;  %v9828_v54 = vld [vmem:[#allocation9 + $0xb44] ss:$16 sps:$4 sm:$0xff]   ;;  %v9831_v57 = vld [vmem:[#allocation9 + $0xb4c] ss:$16 sps:$4 sm:$0xff]  }
 0x2ae   :  { %6854 = vmatprep.subr.bf16.mxu1 %v9777_v51  ;;  %v9826_v51 = vld [vmem:[#allocation9 + $0xb40] ss:$16 sps:$4 sm:$0xff]  }
 0x2b0   :  { %5951 = vmatpush1.bf16.msra.mxu0 %v9772_v27  ;;  %v9829_v27 = vld [vmem:[#allocation9 + $0xb48] ss:$16 sps:$4 sm:$0xff]  }
 0x2b1   :  { %6855 = vmatpush1.bf16.msra.mxu1 %v9775_v42  ;;  %5952 = vmatprep.subr.bf16.mxu0 %v9780_v2  ;;  %v9834_v42 = vld [vmem:[#allocation9 + $0xb64] ss:$16 sps:$4 sm:$0xff]   ;;  %v9835_v2 = vld [vmem:[#allocation9 + $0xb68] ss:$16 sps:$4 sm:$0xff]  }
 0x2b2   :  { %5878 = vmatmul.mubr.bf16.gmra.mrb[132].mxu0 %v10986_v10  ;;  %6856 = vmatprep.subr.bf16.mxu1 %v9783_v22  ;;  %v9840_v22 = vld [vmem:[#allocation9 + $0xb84] ss:$16 sps:$4 sm:$0xff]  }
 0x2b3   :  { %6782 = vmatmul.mubr.bf16.gmra.mrb[132].mxu1 %v10986_v10  ;;  %5887 = vmatprep.mubr.bf16.mxu0 %v11012_v52  ;;  %v9801_v10 = vld [vmem:[#allocation9 + $0xaac] ss:$16 sps:$4 sm:$0xff]  }
 0x2b4   :  { %5953 = vmatpush1.bf16.msra.mxu0 %v9778_v43  ;;  %6791 = vmatprep.mubr.bf16.mxu1 %v11012_v52  ;;  %v9796_v52 = vld [vmem:[#allocation9 + $0xaa0] ss:$16 sps:$4 sm:$0xff]   ;;  %v9843_v43 = vld [vmem:[#allocation9 + $0xb8c] ss:$16 sps:$4 sm:$0xff]  }
 0x2b5   :  { %6857 = vmatpush1.bf16.msra.mxu1 %v9781_v56  ;;  %5954 = vmatprep.subr.bf16.mxu0 %v9786_v59  ;;  %v9838_v56 = vld [vmem:[#allocation9 + $0xb80] ss:$16 sps:$4 sm:$0xff]   ;;  %v9841_v59 = vld [vmem:[#allocation9 + $0xb88] ss:$16 sps:$4 sm:$0xff]  }
 0x2b6   :  { %6858 = vmatprep.subr.bf16.mxu1 %v9789_v49  ;;  %v9846_v49 = vld [vmem:[#allocation9 + $0xba4] ss:$16 sps:$4 sm:$0xff]  }
 0x2b8   :  { %5955 = vmatpush1.bf16.msra.mxu0 %v9784_v26  ;;  %v9847_v26 = vld [vmem:[#allocation9 + $0xba8] ss:$16 sps:$4 sm:$0xff]  }
 0x2b9   :  { %6859 = vmatpush1.bf16.msra.mxu1 %v9787_v44  ;;  %5956 = vmatprep.subr.bf16.mxu0 %v9792_v45  ;;  %v9852_v44 = vld [vmem:[#allocation9 + $0xbc4] ss:$16 sps:$4 sm:$0xff]   ;;  %v9855_v45 = vld [vmem:[#allocation9 + $0xbcc] ss:$16 sps:$4 sm:$0xff]  }
 0x2ba   :  { %5888 = vmatmul.mubr.bf16.gmra.mrb[136].mxu0 %v11006_v37  ;;  %6860 = vmatprep.subr.bf16.mxu1 %v9795_v39  ;;  %v9850_v39 = vld [vmem:[#allocation9 + $0xbc0] ss:$16 sps:$4 sm:$0xff]  }
 0x2bb   :  { %6792 = vmatmul.mubr.bf16.gmra.mrb[136].mxu1 %v11006_v37  ;;  %5897 = vmatprep.mubr.bf16.mxu0 %v11032_v21  ;;  %v9813_v37 = vld [vmem:[#allocation9 + $0xaec] ss:$16 sps:$4 sm:$0xff]  }
 0x2bc   :  { %5957 = vmatpush1.bf16.msra.mxu0 %v9790_v38  ;;  %6801 = vmatprep.mubr.bf16.mxu1 %v11032_v21  ;;  %v9808_v21 = vld [vmem:[#allocation9 + $0xae0] ss:$16 sps:$4 sm:$0xff]   ;;  %v9853_v38 = vld [vmem:[#allocation9 + $0xbc8] ss:$16 sps:$4 sm:$0xff]  }
 0x2bd   :  { %6861 = vmatpush1.bf16.msra.mxu1 %v9793_v30  ;;  %5958 = vmatprep.subr.bf16.mxu0 %v9798_v17  ;;  %v9858_v30 = vld [vmem:[#allocation9 + $0xbe4] ss:$16 sps:$4 sm:$0xff]   ;;  %v9856_v17 = vld [vmem:[#allocation9 + $0xbe0] ss:$16 sps:$4 sm:$0xff]  }
 0x2be   :  { %6862 = vmatprep.subr.bf16.mxu1 %v9801_v10  ;;  %v9859_v10 = vld [vmem:[#allocation9 + $0xbe8] ss:$16 sps:$4 sm:$0xff]  }
 0x2c0   :  { %5959 = vmatpush1.bf16.msra.mxu0 %v9796_v52  ;;  %v9864_v52 = vld [vmem:[#allocation9 + $0xc04] ss:$16 sps:$4 sm:$0xff]  }
 0x2c1   :  { %6863 = vmatpush1.bf16.msra.mxu1 %v9799_v25  ;;  %5960 = vmatprep.subr.bf16.mxu0 %v9804_v55  ;;  %v9867_v25 = vld [vmem:[#allocation9 + $0xc0c] ss:$16 sps:$4 sm:$0xff]   ;;  %v9862_v55 = vld [vmem:[#allocation9 + $0xc00] ss:$16 sps:$4 sm:$0xff]  }
 0x2c2   :  { %5898 = vmatmul.mubr.bf16.gmra.mrb[140].mxu0 %v11026_v33  ;;  %6864 = vmatprep.subr.bf16.mxu1 %v9807_v13  ;;  %v9865_v13 = vld [vmem:[#allocation9 + $0xc08] ss:$16 sps:$4 sm:$0xff]  }
 0x2c3   :  { %6802 = vmatmul.mubr.bf16.gmra.mrb[140].mxu1 %v11026_v33  ;;  %5907 = vmatprep.mubr.bf16.mxu0 %v11052_v31  ;;  %v9825_v33 = vld [vmem:[#allocation9 + $0xb2c] ss:$16 sps:$4 sm:$0xff]  }
 0x2c4   :  { %5961 = vmatpush1.bf16.msra.mxu0 %v9802_v18  ;;  %6811 = vmatprep.mubr.bf16.mxu1 %v11052_v31  ;;  %v9820_v31 = vld [vmem:[#allocation9 + $0xb20] ss:$16 sps:$4 sm:$0xff]   ;;  %v9870_v18 = vld [vmem:[#allocation9 + $0xc24] ss:$16 sps:$4 sm:$0xff]  }
 0x2c5   :  { %6865 = vmatpush1.bf16.msra.mxu1 %v9805_v47  ;;  %5962 = vmatprep.subr.bf16.mxu0 %v9810_v36  ;;  %v9873_v47 = vld [vmem:[#allocation9 + $0xc2c] ss:$16 sps:$4 sm:$0xff]   ;;  %v11709_v36 = vld [vmem:[#allocation36_spill] sm:$0xff] }
 0x2c6   :  { %6866 = vmatprep.subr.bf16.mxu1 %v9813_v37  ;;  %v9868_v37 = vld [vmem:[#allocation9 + $0xc20] ss:$16 sps:$4 sm:$0xff]  }
 0x2c8   :  { %5963 = vmatpush1.bf16.msra.mxu0 %v9808_v21  ;;  %v9871_v21 = vld [vmem:[#allocation9 + $0xc28] ss:$16 sps:$4 sm:$0xff]  }
 0x2c9   :  { %6867 = vmatpush1.bf16.msra.mxu1 %v9811_v23  ;;  %5964 = vmatprep.subr.bf16.mxu0 %v9816_v53  ;;  %v9876_v23 = vld [vmem:[#allocation9 + $0xc44] ss:$16 sps:$4 sm:$0xff]   ;;  %v9879_v53 = vld [vmem:[#allocation9 + $0xc4c] ss:$16 sps:$4 sm:$0xff]  }
 0x2ca   :  { %5908 = vmatmul.mubr.bf16.gmra.mrb[144].mxu0 %v11046_v29  ;;  %6868 = vmatprep.subr.bf16.mxu1 %v9819_v5  ;;  %v9874_v5 = vld [vmem:[#allocation9 + $0xc40] ss:$16 sps:$4 sm:$0xff]  }
 0x2cb   :  { %6812 = vmatmul.mubr.bf16.gmra.mrb[144].mxu1 %v11046_v29  ;;  %5917 = vmatprep.mubr.bf16.mxu0 %v11070_v24  ;;  %v9837_v29 = vld [vmem:[#allocation9 + $0xb6c] ss:$16 sps:$4 sm:$0xff]  }
 0x2cc   :  { %5965 = vmatpush1.bf16.msra.mxu0 %v9814_v6  ;;  %6821 = vmatprep.mubr.bf16.mxu1 %v11070_v24  ;;  %v9832_v24 = vld [vmem:[#allocation9 + $0xb60] ss:$16 sps:$4 sm:$0xff]   ;;  %v9877_v6 = vld [vmem:[#allocation9 + $0xc48] ss:$16 sps:$4 sm:$0xff]  }
 0x2cd   :  { %6869 = vmatpush1.bf16.msra.mxu1 %v9817_v48  ;;  %5966 = vmatprep.subr.bf16.mxu0 %v9822_v60  ;;  %v9882_v48 = vld [vmem:[#allocation9 + $0xc64] ss:$16 sps:$4 sm:$0xff]   ;;  %v11710_v60 = vld [vmem:[#allocation35_spill] sm:$0xff] }
 0x2ce   :  { %6870 = vmatprep.subr.bf16.mxu1 %v9825_v33  ;;  %v9885_v33 = vld [vmem:[#allocation9 + $0xc6c] ss:$16 sps:$4 sm:$0xff]  }
 0x2d0   :  { %5967 = vmatpush1.bf16.msra.mxu0 %v9820_v31  ;;  %v11711_v31 = vld [vmem:[#allocation38_spill] sm:$0xff] }
 0x2d1   :  { %6871 = vmatpush1.bf16.msra.mxu1 %v9823_v7  ;;  %5968 = vmatprep.subr.bf16.mxu0 %v9828_v54  ;;  %v9880_v7 = vld [vmem:[#allocation9 + $0xc60] ss:$16 sps:$4 sm:$0xff]   ;;  %v9883_v54 = vld [vmem:[#allocation9 + $0xc68] ss:$16 sps:$4 sm:$0xff]  }
 0x2d2   :  { %5918 = vmatmul.mubr.bf16.gmra.mrb[148].mxu0 %v11065_v19  ;;  %6872 = vmatprep.subr.bf16.mxu1 %v9831_v57  ;;  %v9888_v57 = vld [vmem:[#allocation9 + $0xc84] ss:$16 sps:$4 sm:$0xff]  }
 0x2d3   :  { %6822 = vmatmul.mubr.bf16.gmra.mrb[148].mxu1 %v11065_v19  ;;  %5927 = vmatprep.mubr.bf16.mxu0 %v11090_v8  ;;  %v9849_v19 = vld [vmem:[#allocation9 + $0xbac] ss:$16 sps:$4 sm:$0xff]  }
 0x2d4   :  { %5969 = vmatpush1.bf16.msra.mxu0 %v9826_v51  ;;  %6831 = vmatprep.mubr.bf16.mxu1 %v11090_v8  ;;  %v9844_v8 = vld [vmem:[#allocation9 + $0xba0] ss:$16 sps:$4 sm:$0xff]   ;;  %v9891_v51 = vld [vmem:[#allocation9 + $0xc8c] ss:$16 sps:$4 sm:$0xff]  }
 0x2d5   :  { %6873 = vmatpush1.bf16.msra.mxu1 %v9829_v27  ;;  %5970 = vmatprep.subr.bf16.mxu0 %v9834_v42  ;;  %v9886_v27 = vld [vmem:[#allocation9 + $0xc80] ss:$16 sps:$4 sm:$0xff]   ;;  %v9889_v42 = vld [vmem:[#allocation9 + $0xc88] ss:$16 sps:$4 sm:$0xff]  }
 0x2d6   :  { %6874 = vmatprep.subr.bf16.mxu1 %v9837_v29  ;;  %v9894_v29 = vld [vmem:[#allocation9 + $0xca4] ss:$16 sps:$4 sm:$0xff]  }
 0x2d8   :  { %5971 = vmatpush1.bf16.msra.mxu0 %v9832_v24  ;;  %v11712_v24 = vld [vmem:[#allocation37_spill] sm:$0xff] }
 0x2d9   :  { %6875 = vmatpush1.bf16.msra.mxu1 %v9835_v2  ;;  %5972 = vmatprep.subr.bf16.mxu0 %v9840_v22  ;;  %v9897_v2 = vld [vmem:[#allocation9 + $0xcac] ss:$16 sps:$4 sm:$0xff]   ;;  %v11713_v22 = vld [vmem:[#allocation40_spill] sm:$0xff] }
 0x2da   :  { %5928 = vmatmul.mubr.bf16.gmra.mrb[152].mxu0 %v11085_v16  ;;  %6876 = vmatprep.subr.bf16.mxu1 %v9843_v43  ;;  %v9892_v43 = vld [vmem:[#allocation9 + $0xca0] ss:$16 sps:$4 sm:$0xff]  }
 0x2db   :  { %6832 = vmatmul.mubr.bf16.gmra.mrb[152].mxu1 %v11085_v16  ;;  %5937 = vmatprep.mubr.bf16.mxu0 %v11130_v9  ;;  %v9861_v16 = vld [vmem:[#allocation9 + $0xbec] ss:$16 sps:$4 sm:$0xff]  }
 0x2dc   :  { %5973 = vmatpush1.bf16.msra.mxu0 %v9838_v56  ;;  %6841 = vmatprep.mubr.bf16.mxu1 %v11130_v9  ;;  %v11707_v9 = vld [vmem:[#allocation34_spill] sm:$0xff]  ;;  %v9895_v56 = vld [vmem:[#allocation9 + $0xca8] ss:$16 sps:$4 sm:$0xff]  }
 0x2dd   :  { %6877 = vmatpush1.bf16.msra.mxu1 %v9841_v59  ;;  %5974 = vmatprep.subr.bf16.mxu0 %v9846_v49  ;;  %v9900_v59 = vld [vmem:[#allocation9 + $0xcc4] ss:$16 sps:$4 sm:$0xff]   ;;  %v9903_v49 = vld [vmem:[#allocation9 + $0xccc] ss:$16 sps:$4 sm:$0xff]  }
 0x2de   :  { %6878 = vmatprep.subr.bf16.mxu1 %v9849_v19  ;;  %v9898_v19 = vld [vmem:[#allocation9 + $0xcc0] ss:$16 sps:$4 sm:$0xff]  }
 0x2e0   :  { %5975 = vmatpush1.bf16.msra.mxu0 %v9844_v8  ;;  %v9901_v8 = vld [vmem:[#allocation9 + $0xcc8] ss:$16 sps:$4 sm:$0xff]  }
 0x2e1   :  { %6879 = vmatpush1.bf16.msra.mxu1 %v9847_v26  ;;  %5976 = vmatprep.subr.bf16.mxu0 %v9852_v44  ;;  %v9906_v26 = vld [vmem:[#allocation9 + $0xce4] ss:$16 sps:$4 sm:$0xff]   ;;  %v11714_v44 = vld [vmem:[#allocation39_spill] sm:$0xff] }
 0x2e2   :  { %5938 = vmatmul.mubr.bf16.gmra.mrb[156].mxu0 %v11120_v20  ;;  %6880 = vmatprep.subr.bf16.mxu1 %v9855_v45  ;;  %v9909_v45 = vld [vmem:[#allocation9 + $0xcec] ss:$16 sps:$4 sm:$0xff]  }
 0x2e3   :  { %6842 = vmatmul.mubr.bf16.gmra.mrb[156].mxu1 %v11120_v20  ;;  %5980 = vmatprep.mubr.bf16.mxu0 %v11707_v9  ;;  %v11708_v20 = vld [vmem:[#allocation33_spill] sm:$0xff] }
 0x2e4   :  { %5977 = vmatpush1.bf16.msra.mxu0 %v9850_v39  ;;  %6884 = vmatprep.mubr.bf16.mxu1 %v11707_v9  ;;  %v11715_v39 = vld [vmem:[#allocation42_spill] sm:$0xff]  ;;  %v9915_v9 = vld [vmem:[#allocation9 + $0xd0c] ss:$16 sps:$4 sm:$0xff]  }
 0x2e5   :  { %6881 = vmatpush1.bf16.msra.mxu1 %v9853_v38  ;;  %5978 = vmatprep.subr.bf16.mxu0 %v9858_v30  ;;  %v9904_v38 = vld [vmem:[#allocation9 + $0xce0] ss:$16 sps:$4 sm:$0xff]   ;;  %v9907_v30 = vld [vmem:[#allocation9 + $0xce8] ss:$16 sps:$4 sm:$0xff]  }
 0x2e6   :  { %6882 = vmatprep.subr.bf16.mxu1 %v9861_v16  ;;  %v9912_v16 = vld [vmem:[#allocation9 + $0xd04] ss:$16 sps:$4 sm:$0xff]  }
 0x2e8   :  { %5979 = vmatpush1.bf16.msra.mxu0 %v9856_v17  ;;  %v9910_v17 = vld [vmem:[#allocation9 + $0xd00] ss:$16 sps:$4 sm:$0xff]  }
 0x2e9   :  { %6883 = vmatpush1.bf16.msra.mxu1 %v9859_v10  ;;  %6061 = vmatprep.subr.bf16.mxu0 %v9864_v52  ;;  %v9913_v10 = vld [vmem:[#allocation9 + $0xd08] ss:$16 sps:$4 sm:$0xff]   ;;  %v9918_v52 = vld [vmem:[#allocation9 + $0xd24] ss:$16 sps:$4 sm:$0xff]  }
 0x2ea   :  { %6965 = vmatprep.subr.bf16.mxu1 %v9867_v25  ;;  %v11716_v25 = vld [vmem:[#allocation41_spill] sm:$0xff] }
 0x2eb   :  { %5981 = vmatmul.mubr.bf16.vlgmr.msra.gmra.mrb[128].mxu0 %v11708_v20 }
 0x2ec   :  { %6885 = vmatmul.mubr.bf16.vlgmr.msra.gmra.mrb[128].mxu1 %v11708_v20  ;;  %5990 = vmatprep.mubr.bf16.mxu0 %v11709_v36  ;;  %v9919_v20 = vld [vmem:[#allocation9 + $0xd28] ss:$16 sps:$4 sm:$0xff]  }
 0x2ed   :  { %6062 = vmatpush1.bf16.msra.mxu0 %v9862_v55  ;;  %6894 = vmatprep.mubr.bf16.mxu1 %v11709_v36  ;;  %v9921_v55 = vld [vmem:[#allocation9 + $0xd2c] ss:$16 sps:$4 sm:$0xff]  }
 0x2ee   :  { %6966 = vmatpush1.bf16.msra.mxu1 %v9865_v13  ;;  %6063 = vmatprep.subr.bf16.mxu0 %v9870_v18  ;;  %v11717_v13 = vld [vmem:[#allocation44_spill] sm:$0xff]  ;;  %v9927_v36 = vld [vmem:[#allocation9 + $0xd4c] ss:$16 sps:$4 sm:$0xff]  }
 0x2ef   :  { %6967 = vmatprep.subr.bf16.mxu1 %v9873_v47  ;;  %v9916_v18 = vld [vmem:[#allocation9 + $0xd20] ss:$16 sps:$4 sm:$0xff]   ;;  %v9924_v47 = vld [vmem:[#allocation9 + $0xd44] ss:$16 sps:$4 sm:$0xff]  }
 0x2f1   :  { %6064 = vmatpush1.bf16.msra.mxu0 %v9868_v37  ;;  %v9922_v37 = vld [vmem:[#allocation9 + $0xd40] ss:$16 sps:$4 sm:$0xff]  }
 0x2f2   :  { %6968 = vmatpush1.bf16.msra.mxu1 %v9871_v21  ;;  %6065 = vmatprep.subr.bf16.mxu0 %v9876_v23  ;;  %v9925_v21 = vld [vmem:[#allocation9 + $0xd48] ss:$16 sps:$4 sm:$0xff]   ;;  %v9930_v23 = vld [vmem:[#allocation9 + $0xd64] ss:$16 sps:$4 sm:$0xff]  }
 0x2f3   :  { %5991 = vmatmul.mubr.bf16.gmra.mrb[132].mxu0 %v11710_v60  ;;  %6969 = vmatprep.subr.bf16.mxu1 %v9879_v53  ;;  %v11718_v53 = vld [vmem:[#allocation43_spill] sm:$0xff] }
 0x2f4   :  { %6895 = vmatmul.mubr.bf16.gmra.mrb[132].mxu1 %v11710_v60  ;;  %6000 = vmatprep.mubr.bf16.mxu0 %v11711_v31  ;;  %v9936_v60 = vld [vmem:[#allocation9 + $0xd84] ss:$16 sps:$4 sm:$0xff]  }
 0x2f5   :  { %6066 = vmatpush1.bf16.msra.mxu0 %v9874_v5  ;;  %6904 = vmatprep.mubr.bf16.mxu1 %v11711_v31  ;;  %v9933_v5 = vld [vmem:[#allocation9 + $0xd6c] ss:$16 sps:$4 sm:$0xff]   ;;  %v9934_v31 = vld [vmem:[#allocation9 + $0xd80] ss:$16 sps:$4 sm:$0xff]  }
 0x2f6   :  { %6970 = vmatpush1.bf16.msra.mxu1 %v9877_v6  ;;  %6067 = vmatprep.subr.bf16.mxu0 %v9882_v48  ;;  %v9928_v6 = vld [vmem:[#allocation9 + $0xd60] ss:$16 sps:$4 sm:$0xff]   ;;  %v9931_v48 = vld [vmem:[#allocation9 + $0xd68] ss:$16 sps:$4 sm:$0xff]  }
 0x2f7   :  { %6971 = vmatprep.subr.bf16.mxu1 %v9885_v33  ;;  %v9939_v33 = vld [vmem:[#allocation9 + $0xd8c] ss:$16 sps:$4 sm:$0xff]  }
 0x2f9   :  { %6068 = vmatpush1.bf16.msra.mxu0 %v9880_v7  ;;  %v9937_v7 = vld [vmem:[#allocation9 + $0xd88] ss:$16 sps:$4 sm:$0xff]  }
 0x2fa   :  { %6972 = vmatpush1.bf16.msra.mxu1 %v9883_v54  ;;  %6069 = vmatprep.subr.bf16.mxu0 %v9888_v57  ;;  %v9942_v54 = vld [vmem:[#allocation9 + $0xda4] ss:$16 sps:$4 sm:$0xff]   ;;  %v11719_v57 = vld [vmem:[#allocation45_spill] sm:$0xff] }
 0x2fb   :  { %6001 = vmatmul.mubr.bf16.gmra.mrb[136].mxu0 %v11712_v24  ;;  %6973 = vmatprep.subr.bf16.mxu1 %v9891_v51  ;;  %v9945_v51 = vld [vmem:[#allocation9 + $0xdac] ss:$16 sps:$4 sm:$0xff]  }
 0x2fc   :  { %6905 = vmatmul.mubr.bf16.gmra.mrb[136].mxu1 %v11712_v24  ;;  %6010 = vmatprep.mubr.bf16.mxu0 %v11713_v22  ;;  %v9946_v24 = vld [vmem:[#allocation9 + $0xdc0] ss:$16 sps:$4 sm:$0xff]  }
 0x2fd   :  { %6070 = vmatpush1.bf16.msra.mxu0 %v9886_v27  ;;  %6914 = vmatprep.mubr.bf16.mxu1 %v11713_v22  ;;  %v9943_v27 = vld [vmem:[#allocation9 + $0xda8] ss:$16 sps:$4 sm:$0xff]   ;;  %v9954_v22 = vld [vmem:[#allocation9 + $0xde4] ss:$16 sps:$4 sm:$0xff]  }
 0x2fe   :  { %6974 = vmatpush1.bf16.msra.mxu1 %v9889_v42  ;;  %6071 = vmatprep.subr.bf16.mxu0 %v9894_v29  ;;  %v9948_v42 = vld [vmem:[#allocation9 + $0xdc4] ss:$16 sps:$4 sm:$0xff]   ;;  %v9951_v29 = vld [vmem:[#allocation9 + $0xdcc] ss:$16 sps:$4 sm:$0xff]  }
 0x2ff   :  { %6975 = vmatprep.subr.bf16.mxu1 %v9897_v2  ;;  %v9949_v2 = vld [vmem:[#allocation9 + $0xdc8] ss:$16 sps:$4 sm:$0xff]  }
 0x301   :  { %6072 = vmatpush1.bf16.msra.mxu0 %v9892_v43  ;;  %v11720_v43 = vld [vmem:[#allocation46_spill] sm:$0xff] }
 0x302   :  { %6976 = vmatpush1.bf16.msra.mxu1 %v9895_v56  ;;  %6073 = vmatprep.subr.bf16.mxu0 %v9900_v59  ;;  %v9957_v56 = vld [vmem:[#allocation9 + $0xdec] ss:$16 sps:$4 sm:$0xff]   ;;  %v9955_v59 = vld [vmem:[#allocation9 + $0xde8] ss:$16 sps:$4 sm:$0xff]  }
 0x303   :  { %6011 = vmatmul.mubr.bf16.gmra.mrb[140].mxu0 %v11714_v44  ;;  %6977 = vmatprep.subr.bf16.mxu1 %v9903_v49  ;;  %v9960_v49 = vld [vmem:[#allocation9 + $0xe04] ss:$16 sps:$4 sm:$0xff]  }
 0x304   :  { %6915 = vmatmul.mubr.bf16.gmra.mrb[140].mxu1 %v11714_v44  ;;  %6020 = vmatprep.mubr.bf16.mxu0 %v11715_v39  ;;  %v9966_v44 = vld [vmem:[#allocation9 + $0xe24] ss:$16 sps:$4 sm:$0xff]  }
 0x305   :  { %6074 = vmatpush1.bf16.msra.mxu0 %v9898_v19  ;;  %6924 = vmatprep.mubr.bf16.mxu1 %v11715_v39  ;;  %v9963_v19 = vld [vmem:[#allocation9 + $0xe0c] ss:$16 sps:$4 sm:$0xff]   ;;  %v9967_v39 = vld [vmem:[#allocation9 + $0xe28] ss:$16 sps:$4 sm:$0xff]  }
 0x306   :  { %6978 = vmatpush1.bf16.msra.mxu1 %v9901_v8  ;;  %6075 = vmatprep.subr.bf16.mxu0 %v9906_v26  ;;  %v9958_v8 = vld [vmem:[#allocation9 + $0xe00] ss:$16 sps:$4 sm:$0xff]   ;;  %v9961_v26 = vld [vmem:[#allocation9 + $0xe08] ss:$16 sps:$4 sm:$0xff]  }
 0x307   :  { %6979 = vmatprep.subr.bf16.mxu1 %v9909_v45  ;;  %v9969_v45 = vld [vmem:[#allocation9 + $0xe2c] ss:$16 sps:$4 sm:$0xff]  }
 0x309   :  { %6076 = vmatpush1.bf16.msra.mxu0 %v9904_v38  ;;  %v9972_v38 = vld [vmem:[#allocation9 + $0xe44] ss:$16 sps:$4 sm:$0xff]  }
 0x30a   :  { %6980 = vmatpush1.bf16.msra.mxu1 %v9907_v30  ;;  %6077 = vmatprep.subr.bf16.mxu0 %v9912_v16  ;;  %v9975_v30 = vld [vmem:[#allocation9 + $0xe4c] ss:$16 sps:$4 sm:$0xff]   ;;  %v9970_v16 = vld [vmem:[#allocation9 + $0xe40] ss:$16 sps:$4 sm:$0xff]  }
 0x30b   :  { %6021 = vmatmul.mubr.bf16.gmra.mrb[144].mxu0 %v11716_v25  ;;  %6981 = vmatprep.subr.bf16.mxu1 %v9915_v9  ;;  %v9973_v9 = vld [vmem:[#allocation9 + $0xe48] ss:$16 sps:$4 sm:$0xff]  }
 0x30c   :  { %6925 = vmatmul.mubr.bf16.gmra.mrb[144].mxu1 %v11716_v25  ;;  %6030 = vmatprep.mubr.bf16.mxu0 %v11717_v13  ;;  %v9987_v25 = vld [vmem:[#allocation9 + $0xe8c] ss:$16 sps:$4 sm:$0xff]  }
 0x30d   :  { %6078 = vmatpush1.bf16.msra.mxu0 %v9910_v17  ;;  %6934 = vmatprep.mubr.bf16.mxu1 %v11717_v13  ;;  %v9978_v17 = vld [vmem:[#allocation9 + $0xe64] ss:$16 sps:$4 sm:$0xff]   ;;  %v9985_v13 = vld [vmem:[#allocation9 + $0xe88] ss:$16 sps:$4 sm:$0xff]  }
 0x30e   :  { %6982 = vmatpush1.bf16.msra.mxu1 %v9913_v10  ;;  %6079 = vmatprep.subr.bf16.mxu0 %v9918_v52  ;;  %v9979_v10 = vld [vmem:[#allocation9 + $0xe68] ss:$16 sps:$4 sm:$0xff]   ;;  %v9984_v52 = vld [vmem:[#allocation9 + $0xe84] ss:$16 sps:$4 sm:$0xff]  }
 0x30f   :  { %6983 = vmatprep.subr.bf16.mxu1 %v9921_v55  ;;  %v9982_v55 = vld [vmem:[#allocation9 + $0xe80] ss:$16 sps:$4 sm:$0xff]  }
 0x311   :  { %6080 = vmatpush1.bf16.msra.mxu0 %v9916_v18  ;;  %v9990_v18 = vld [vmem:[#allocation9 + $0xea4] ss:$16 sps:$4 sm:$0xff]  }
 0x312   :  { %6984 = vmatpush1.bf16.msra.mxu1 %v9919_v20  ;;  %6081 = vmatprep.subr.bf16.mxu0 %v9924_v47  ;;  %v9991_v20 = vld [vmem:[#allocation9 + $0xea8] ss:$16 sps:$4 sm:$0xff]   ;;  %v9996_v47 = vld [vmem:[#allocation9 + $0xec4] ss:$16 sps:$4 sm:$0xff]  }
 0x313   :  { %6031 = vmatmul.mubr.bf16.gmra.mrb[148].mxu0 %v11718_v53  ;;  %6985 = vmatprep.subr.bf16.mxu1 %v9927_v36  ;;  %v9999_v36 = vld [vmem:[#allocation9 + $0xecc] ss:$16 sps:$4 sm:$0xff]  }
 0x314   :  { %6935 = vmatmul.mubr.bf16.gmra.mrb[148].mxu1 %v11718_v53  ;;  %6040 = vmatprep.mubr.bf16.mxu0 %v11094_v28  ;;  %v10003_v53 = vld [vmem:[#allocation9 + $0xee8] ss:$16 sps:$4 sm:$0xff]  }
 0x315   :  { %6082 = vmatpush1.bf16.msra.mxu0 %v9922_v37  ;;  %6944 = vmatprep.mubr.bf16.mxu1 %v11094_v28  ;;  %v9940_v28 = vld [vmem:[#allocation9 + $0xda0] ss:$16 sps:$4 sm:$0xff]  }
 0x316   :  { %6986 = vmatpush1.bf16.msra.mxu1 %v9925_v21  ;;  %6083 = vmatprep.subr.bf16.mxu0 %v9930_v23  ;;  %v9994_v37 = vld [vmem:[#allocation9 + $0xec0] ss:$16 sps:$4 sm:$0xff]   ;;  %v9997_v21 = vld [vmem:[#allocation9 + $0xec8] ss:$16 sps:$4 sm:$0xff]   ;;  %v10002_v23 = vld [vmem:[#allocation9 + $0xee4] ss:$16 sps:$4 sm:$0xff]  }
 0x317   :  { %6987 = vmatprep.subr.bf16.mxu1 %v9933_v5  ;;  %v10008_v5 = vld [vmem:[#allocation9 + $0xf04] ss:$16 sps:$4 sm:$0xff]  }
 0x319   :  { %6084 = vmatpush1.bf16.msra.mxu0 %v9928_v6  ;;  %v10011_v6 = vld [vmem:[#allocation9 + $0xf0c] ss:$16 sps:$4 sm:$0xff]  }
 0x31a   :  { %6988 = vmatpush1.bf16.msra.mxu1 %v9931_v48  ;;  %6085 = vmatprep.subr.bf16.mxu0 %v9936_v60  ;;  %v10006_v48 = vld [vmem:[#allocation9 + $0xf00] ss:$16 sps:$4 sm:$0xff]   ;;  %v10009_v60 = vld [vmem:[#allocation9 + $0xf08] ss:$16 sps:$4 sm:$0xff]  }
 0x31b   :  { %6041 = vmatmul.mubr.bf16.gmra.mrb[152].mxu0 %v11719_v57  ;;  %6989 = vmatprep.subr.bf16.mxu1 %v9939_v33  ;;  %v10014_v33 = vld [vmem:[#allocation9 + $0xf24] ss:$16 sps:$4 sm:$0xff]  }
 0x31c   :  { %6945 = vmatmul.mubr.bf16.gmra.mrb[152].mxu1 %v11719_v57  ;;  %6050 = vmatprep.mubr.bf16.mxu0 %v11134_v62  ;;  %v10018_v57 = vld [vmem:[#allocation9 + $0xf40] ss:$16 sps:$4 sm:$0xff]  }
 0x31d   :  { %6086 = vmatpush1.bf16.msra.mxu0 %v9934_v31  ;;  %6954 = vmatprep.mubr.bf16.mxu1 %v11134_v62  ;;  %v9952_v62 = vld [vmem:[#allocation9 + $0xde0] ss:$16 sps:$4 sm:$0xff]   ;;  %v10015_v31 = vld [vmem:[#allocation9 + $0xf28] ss:$16 sps:$4 sm:$0xff]  }
 0x31e   :  { %6990 = vmatpush1.bf16.msra.mxu1 %v9937_v7  ;;  %6087 = vmatprep.subr.bf16.mxu0 %v9942_v54  ;;  %v10020_v7 = vld [vmem:[#allocation9 + $0xf44] ss:$16 sps:$4 sm:$0xff]   ;;  %v10023_v54 = vld [vmem:[#allocation9 + $0xf4c] ss:$16 sps:$4 sm:$0xff]  }
 0x31f   :  { %6991 = vmatprep.subr.bf16.mxu1 %v9945_v51  ;;  %v10021_v51 = vld [vmem:[#allocation9 + $0xf48] ss:$16 sps:$4 sm:$0xff]  }
 0x321   :  { %6088 = vmatpush1.bf16.msra.mxu0 %v9940_v28  ;;  %v10026_v28 = vld [vmem:[#allocation9 + $0xf64] ss:$16 sps:$4 sm:$0xff]  }
 0x322   :  { %6992 = vmatpush1.bf16.msra.mxu1 %v9943_v27  ;;  %6089 = vmatprep.subr.bf16.mxu0 %v9948_v42  ;;  %v11721_v27 = vld [vmem:[#allocation57_spill] sm:$0xff] }
 0x323   :  { %6051 = vmatmul.mubr.bf16.gmra.mrb[156].mxu0 %v11720_v43  ;;  %6993 = vmatprep.subr.bf16.mxu1 %v9951_v29  ;;  %v10027_v42 = vld [vmem:[#allocation9 + $0xf68] ss:$16 sps:$4 sm:$0xff]   ;;  %v10032_v29 = vld [vmem:[#allocation9 + $0xf84] ss:$16 sps:$4 sm:$0xff]  }
 0x324   :  { %6955 = vmatmul.mubr.bf16.gmra.mrb[156].mxu1 %v11720_v43  ;;  %6093 = vmatprep.mubr.bf16.mxu0 %v11150_v0  ;;  %v10038_v43 = vld [vmem:[#allocation9 + $0xfa4] ss:$16 sps:$4 sm:$0xff]  }
 0x325   :  { %6090 = vmatpush1.bf16.msra.mxu0 %v9946_v24  ;;  %6997 = vmatprep.mubr.bf16.mxu1 %v11150_v0  ;;  %v9964_v0 = vld [vmem:[#allocation9 + $0xe20] ss:$16 sps:$4 sm:$0xff]   ;;  %v10035_v24 = vld [vmem:[#allocation9 + $0xf8c] ss:$16 sps:$4 sm:$0xff]  }
 0x326   :  { %6994 = vmatpush1.bf16.msra.mxu1 %v9949_v2  ;;  %6091 = vmatprep.subr.bf16.mxu0 %v9954_v22  ;;  %v10030_v2 = vld [vmem:[#allocation9 + $0xf80] ss:$16 sps:$4 sm:$0xff]   ;;  %v10033_v22 = vld [vmem:[#allocation9 + $0xf88] ss:$16 sps:$4 sm:$0xff]  }
 0x327   :  { %6995 = vmatprep.subr.bf16.mxu1 %v9957_v56  ;;  %v10041_v56 = vld [vmem:[#allocation9 + $0xfac] ss:$16 sps:$4 sm:$0xff]  }
 0x329   :  { %6092 = vmatpush1.bf16.msra.mxu0 %v9952_v62  ;;  %v10039_v62 = vld [vmem:[#allocation9 + $0xfa8] ss:$16 sps:$4 sm:$0xff]  }
 0x32a   :  { %6996 = vmatpush1.bf16.msra.mxu1 %v9955_v59  ;;  %6174 = vmatprep.subr.bf16.mxu0 %v9960_v49  ;;  %v10044_v59 = vld [vmem:[#allocation9 + $0xfc4] ss:$16 sps:$4 sm:$0xff]   ;;  %v10047_v49 = vld [vmem:[#allocation9 + $0xfcc] ss:$16 sps:$4 sm:$0xff]  }
 0x32b   :  { %7078 = vmatprep.subr.bf16.mxu1 %v9963_v19  ;;  %v10042_v19 = vld [vmem:[#allocation9 + $0xfc0] ss:$16 sps:$4 sm:$0xff]  }
 0x32c   :  { %6094 = vmatmul.mubr.bf16.vlgmr.msra.gmra.mrb[128].mxu0 %v11145_v35 }
 0x32d   :  { %6998 = vmatmul.mubr.bf16.vlgmr.msra.gmra.mrb[128].mxu1 %v11145_v35  ;;  %6103 = vmatprep.mubr.bf16.mxu0 %v11170_v32  ;;  %v9981_v35 = vld [vmem:[#allocation9 + $0xe6c] ss:$16 sps:$4 sm:$0xff]  }
 0x32e   :  { %6175 = vmatpush1.bf16.msra.mxu0 %v9958_v8  ;;  %7007 = vmatprep.mubr.bf16.mxu1 %v11170_v32  ;;  %v9976_v32 = vld [vmem:[#allocation9 + $0xe60] ss:$16 sps:$4 sm:$0xff]   ;;  %v10045_v8 = vld [vmem:[#allocation9 + $0xfc8] ss:$16 sps:$4 sm:$0xff]  }
 0x32f   :  { %7079 = vmatpush1.bf16.msra.mxu1 %v9961_v26  ;;  %6176 = vmatprep.subr.bf16.mxu0 %v9966_v44  ;;  %v10050_v26 = vld [vmem:[#allocation9 + $0xfe4] ss:$16 sps:$4 sm:$0xff]   ;;  %v10048_v44 = vld [vmem:[#allocation9 + $0xfe0] ss:$16 sps:$4 sm:$0xff]  }
 0x330   :  { %7080 = vmatprep.subr.bf16.mxu1 %v9969_v45  ;;  %v10051_v45 = vld [vmem:[#allocation9 + $0xfe8] ss:$16 sps:$4 sm:$0xff]  }
 0x332   :  { %6177 = vmatpush1.bf16.msra.mxu0 %v9964_v0  ;;  %v10054_v0 = vld [vmem:[#allocation12 + $0x40] sm:$0xff]  }
 0x333   :  { %7081 = vmatpush1.bf16.msra.mxu1 %v9967_v39  ;;  %6178 = vmatprep.subr.bf16.mxu0 %v9972_v38  ;;  %v10056_v39 = vld [vmem:[#allocation12 + $0xc0] sm:$0xff]  }
 0x334   :  { %6104 = vmatmul.mubr.bf16.gmra.mrb[132].mxu0 %v11165_v40  ;;  %7082 = vmatprep.subr.bf16.mxu1 %v9975_v30  ;;  %v10055_v38 = vld [vmem:[#allocation12] sm:$0xff]  }
 0x335   :  { %7008 = vmatmul.mubr.bf16.gmra.mrb[132].mxu1 %v11165_v40  ;;  %6113 = vmatprep.mubr.bf16.mxu0 %v11190_v41  ;;  %v9993_v40 = vld [vmem:[#allocation9 + $0xeac] ss:$16 sps:$4 sm:$0xff]   ;;  %v10057_v30 = vld [vmem:[#allocation12 + $0x80] sm:$0xff]  }
 0x336   :  { %6179 = vmatpush1.bf16.msra.mxu0 %v9970_v16  ;;  %7017 = vmatprep.mubr.bf16.mxu1 %v11190_v41  ;;  %v9988_v41 = vld [vmem:[#allocation9 + $0xea0] ss:$16 sps:$4 sm:$0xff]  }
 0x337   :  { %7083 = vmatpush1.bf16.msra.mxu1 %v9973_v9  ;;  %6180 = vmatprep.subr.bf16.mxu0 %v9978_v17  ;;  %v10058_v16 = vld [vmem:[#allocation12 + $0x48] sm:$0xff]  }
 0x338   :  { %7084 = vmatprep.subr.bf16.mxu1 %v9981_v35  ;;  %v10060_v9 = vld [vmem:[#allocation12 + $0xc8] sm:$0xff]  }
 0x339   :  { %v11724_v17 = vld [vmem:[#allocation50_spill] sm:$0xff] }
 0x33a   :  { %6181 = vmatpush1.bf16.msra.mxu0 %v9976_v32  ;;  %v10059_v35 = vld [vmem:[#allocation12 + $0x8] sm:$0xff]  }
 0x33b   :  { %7085 = vmatpush1.bf16.msra.mxu1 %v9979_v10  ;;  %6182 = vmatprep.subr.bf16.mxu0 %v9984_v52  ;;  %v10061_v32 = vld [vmem:[#allocation12 + $0x88] sm:$0xff]   ;;  %v10062_v10 = vld [vmem:[#allocation12 + $0x50] sm:$0xff]  }
 0x33c   :  { %6114 = vmatmul.mubr.bf16.gmra.mrb[136].mxu0 %v11185_v11  ;;  %7086 = vmatprep.subr.bf16.mxu1 %v9987_v25  ;;  %v10064_v52 = vld [vmem:[#allocation12 + $0xd0] sm:$0xff]  }
 0x33d   :  { %7018 = vmatmul.mubr.bf16.gmra.mrb[136].mxu1 %v11185_v11  ;;  %6123 = vmatprep.mubr.bf16.mxu0 %v11210_v61  ;;  %v10005_v11 = vld [vmem:[#allocation9 + $0xeec] ss:$16 sps:$4 sm:$0xff]   ;;  %v10063_v25 = vld [vmem:[#allocation12 + $0x10] sm:$0xff]  }
 0x33e   :  { %6183 = vmatpush1.bf16.msra.mxu0 %v9982_v55  ;;  %7027 = vmatprep.mubr.bf16.mxu1 %v11210_v61  ;;  %v10000_v61 = vld [vmem:[#allocation9 + $0xee0] ss:$16 sps:$4 sm:$0xff]   ;;  %v10065_v55 = vld [vmem:[#allocation12 + $0x90] sm:$0xff]  }
 0x33f   :  { %7087 = vmatpush1.bf16.msra.mxu1 %v9985_v13  ;;  %6184 = vmatprep.subr.bf16.mxu0 %v9990_v18  ;;  %v10066_v13 = vld [vmem:[#allocation12 + $0x58] sm:$0xff]   ;;  %v11725_v18 = vld [vmem:[#allocation49_spill] sm:$0xff] }
 0x340   :  { %7088 = vmatprep.subr.bf16.mxu1 %v9993_v40  ;;  %v10068_v40 = vld [vmem:[#allocation12 + $0xd8] sm:$0xff]  }
 0x342   :  { %6185 = vmatpush1.bf16.msra.mxu0 %v9988_v41  ;;  %v11726_v41 = vld [vmem:[#allocation52_spill] sm:$0xff] }
 0x343   :  { %7089 = vmatpush1.bf16.msra.mxu1 %v9991_v20  ;;  %6186 = vmatprep.subr.bf16.mxu0 %v9996_v47  ;;  %v10067_v20 = vld [vmem:[#allocation12 + $0x18] sm:$0xff]  }
 0x344   :  { %6124 = vmatmul.mubr.bf16.gmra.mrb[140].mxu0 %v11205_v15  ;;  %7090 = vmatprep.subr.bf16.mxu1 %v9999_v36  ;;  %v10069_v47 = vld [vmem:[#allocation12 + $0x98] sm:$0xff]   ;;  %v10070_v36 = vld [vmem:[#allocation12 + $0x60] sm:$0xff]  }
 0x345   :  { %7028 = vmatmul.mubr.bf16.gmra.mrb[140].mxu1 %v11205_v15  ;;  %6133 = vmatprep.mubr.bf16.mxu0 %v11230_v63  ;;  %v10017_v15 = vld [vmem:[#allocation9 + $0xf2c] ss:$16 sps:$4 sm:$0xff]  }
 0x346   :  { %6187 = vmatpush1.bf16.msra.mxu0 %v9994_v37  ;;  %7037 = vmatprep.mubr.bf16.mxu1 %v11230_v63  ;;  %v10012_v63 = vld [vmem:[#allocation9 + $0xf20] ss:$16 sps:$4 sm:$0xff]   ;;  %v10072_v37 = vld [vmem:[#allocation12 + $0xe0] sm:$0xff]  }
 0x347   :  { %7091 = vmatpush1.bf16.msra.mxu1 %v9997_v21  ;;  %6188 = vmatprep.subr.bf16.mxu0 %v10002_v23  ;;  %v10071_v21 = vld [vmem:[#allocation12 + $0x20] sm:$0xff]  }
 0x348   :  { %7092 = vmatprep.subr.bf16.mxu1 %v10005_v11  ;;  %v10073_v23 = vld [vmem:[#allocation12 + $0xa0] sm:$0xff]   ;;  %v10074_v11 = vld [vmem:[#allocation12 + $0x68] sm:$0xff]  }
 0x34a   :  { %6189 = vmatpush1.bf16.msra.mxu0 %v10000_v61  ;;  %v11727_v61 = vld [vmem:[#allocation51_spill] sm:$0xff] }
 0x34b   :  { %7093 = vmatpush1.bf16.msra.mxu1 %v10003_v53  ;;  %6190 = vmatprep.subr.bf16.mxu0 %v10008_v5  ;;  %v10076_v53 = vld [vmem:[#allocation12 + $0xe8] sm:$0xff]  }
 0x34c   :  { %6134 = vmatmul.mubr.bf16.gmra.mrb[144].mxu0 %v11225_v46  ;;  %7094 = vmatprep.subr.bf16.mxu1 %v10011_v6  ;;  %v11728_v5 = vld [vmem:[#allocation54_spill] sm:$0xff] }
 0x34d   :  { %7038 = vmatmul.mubr.bf16.gmra.mrb[144].mxu1 %v11225_v46  ;;  %6143 = vmatprep.mubr.bf16.mxu0 %v11249_v58  ;;  %v10029_v46 = vld [vmem:[#allocation9 + $0xf6c] ss:$16 sps:$4 sm:$0xff]  }
 0x34e   :  { %6191 = vmatpush1.bf16.msra.mxu0 %v10006_v48  ;;  %7047 = vmatprep.mubr.bf16.mxu1 %v11249_v58  ;;  %v10024_v58 = vld [vmem:[#allocation9 + $0xf60] ss:$16 sps:$4 sm:$0xff]  }
 0x34f   :  { %7095 = vmatpush1.bf16.msra.mxu1 %v10009_v60  ;;  %6192 = vmatprep.subr.bf16.mxu0 %v10014_v33  ;;  %v10075_v6 = vld [vmem:[#allocation12 + $0x28] sm:$0xff]   ;;  %v10078_v60 = vld [vmem:[#allocation12 + $0x70] sm:$0xff]  }
 0x350   :  { %7096 = vmatprep.subr.bf16.mxu1 %v10017_v15  ;;  %v10077_v48 = vld [vmem:[#allocation12 + $0xa8] sm:$0xff]   ;;  %v10080_v33 = vld [vmem:[#allocation12 + $0xf0] sm:$0xff]  }
 0x351   :  { %v10079_v15 = vld [vmem:[#allocation12 + $0x30] sm:$0xff]  }
 0x352   :  { %6193 = vmatpush1.bf16.msra.mxu0 %v10012_v63  ;;  %v10081_v63 = vld [vmem:[#allocation12 + $0xb0] sm:$0xff]  }
 0x353   :  { %7097 = vmatpush1.bf16.msra.mxu1 %v10015_v31  ;;  %6194 = vmatprep.subr.bf16.mxu0 %v10020_v7  ;;  %v11729_v31 = vld [vmem:[#allocation53_spill] sm:$0xff]  ;;  %v11730_v7 = vld [vmem:[#allocation56_spill] sm:$0xff] }
 0x354   :  { %6144 = vmatmul.mubr.bf16.gmra.mrb[148].mxu0 %v11721_v27  ;;  %7098 = vmatprep.subr.bf16.mxu1 %v10023_v54  ;;  %v11731_v54 = vld [vmem:[#allocation55_spill] sm:$0xff] }
 0x355   :  { %7048 = vmatmul.mubr.bf16.gmra.mrb[148].mxu1 %v11721_v27  ;;  %6153 = vmatprep.mubr.bf16.mxu0 %v11269_v3  ;;  %v10082_v27 = vld [vmem:[#allocation12 + $0x78] sm:$0xff]  }
 0x356   :  { %6195 = vmatpush1.bf16.msra.mxu0 %v10018_v57  ;;  %7057 = vmatprep.mubr.bf16.mxu1 %v11269_v3  ;;  %v10036_v3 = vld [vmem:[#allocation9 + $0xfa0] ss:$16 sps:$4 sm:$0xff]   ;;  %v11732_v57 = vld [vmem:[#allocation59_spill] sm:$0xff] }
 0x357   :  { %7099 = vmatpush1.bf16.msra.mxu1 %v10021_v51  ;;  %6196 = vmatprep.subr.bf16.mxu0 %v10026_v28  ;;  %v11733_v51 = vld [vmem:[#allocation58_spill] sm:$0xff]  ;;  %v11734_v28 = vld [vmem:[#allocation60_spill] sm:$0xff] }
 0x358   :  { %7100 = vmatprep.subr.bf16.mxu1 %v10029_v46  ;;  %v10084_v46 = vld [vmem:[#allocation12 + $0xf8] sm:$0xff]  }
 0x35a   :  { %6197 = vmatpush1.bf16.msra.mxu0 %v10024_v58  ;;  %v10083_v58 = vld [vmem:[#allocation12 + $0x38] sm:$0xff]  }
 0x35b   :  { %7101 = vmatpush1.bf16.msra.mxu1 %v10027_v42  ;;  %6198 = vmatprep.subr.bf16.mxu0 %v10032_v29  ;;  %v10085_v42 = vld [vmem:[#allocation12 + $0xb8] sm:$0xff]   ;;  %v7795_v29 = vld [vmem:[%s11606_s7 + $0x18] sm:$0xff] }
 0x35c   :  { %6154 = vmatmul.mubr.bf16.gmra.mrb[152].mxu0 %v11265_v4  ;;  %7102 = vmatprep.subr.bf16.mxu1 %v10035_v24  ;;  %v7796_v24 = vld [vmem:[%s11606_s7 + $0x20] sm:$0xff] }
 0x35d   :  { %7058 = vmatmul.mubr.bf16.gmra.mrb[152].mxu1 %v11265_v4  ;;  %6163 = vmatprep.mubr.bf16.mxu0 %v11289_v1  ;;  %v10053_v4 = vld [vmem:[#allocation9 + $0xfec] ss:$16 sps:$4 sm:$0xff]  }
 0x35e   :  { %6199 = vmatpush1.bf16.msra.mxu0 %v10030_v2  ;;  %7067 = vmatprep.mubr.bf16.mxu1 %v11289_v1  ;;  %v11722_v1 = vld [vmem:[#allocation48_spill] sm:$0xff]  ;;  %v7797_v2 = vld [vmem:[%s11606_s7 + $0x28] sm:$0xff] }
 0x35f   :  { %7103 = vmatpush1.bf16.msra.mxu1 %v10033_v22  ;;  %6200 = vmatprep.subr.bf16.mxu0 %v10038_v43  ;;  %v2801_v22 = vld [vmem:[#allocation11] sm:$0xf]  ;;  %v11735_v43 = vld [vmem:[#allocation21_spill] sm:$0xff] }
 0x360   :  { %7104 = vmatprep.subr.bf16.mxu1 %v10041_v56  ;;  %v11462_v56 = vrot.slane %v2801_v22, %v11735_v43 }
 0x362   :  { %6201 = vmatpush1.bf16.msra.mxu0 %v10036_v3  ;;  %v11736_v3 = vld [vmem:[#allocation22_spill] sm:$0xff] }
 0x363   :  { %7105 = vmatpush1.bf16.msra.mxu1 %v10039_v62  ;;  %6202 = vmatprep.subr.bf16.mxu0 %v10044_v59  ;;  %v11465_v62 = vrot.slane %v2801_v22, %v11736_v3  ;;  %v11737_v59 = vld [vmem:[#allocation23_spill] sm:$0xff] }
 0x364   :  { %6164 = vmatmul.mubr.bf16.gmra.mrb[156].mxu0 %v11285_v34  ;;  %7106 = vmatprep.subr.bf16.mxu1 %v10047_v49  ;;  %v11468_v49 = vrot.slane %v2801_v22, %v11737_v59 }
 0x365   :  { %7068 = vmatmul.mubr.bf16.gmra.mrb[156].mxu1 %v11285_v34  ;;  %6206 = vmatprep.mubr.bf16.mxu0 %v11722_v1  ;;  %v11723_v34 = vld [vmem:[#allocation47_spill] sm:$0xff] }
 0x366   :  { %6203 = vmatpush1.bf16.msra.mxu0 %v10042_v19  ;;  %7110 = vmatprep.mubr.bf16.mxu1 %v11722_v1  ;;  %v11738_v19 = vld [vmem:[#allocation24_spill] sm:$0xff] }
 0x367   :  { %7107 = vmatpush1.bf16.msra.mxu1 %v10045_v8  ;;  %6204 = vmatprep.subr.bf16.mxu0 %v10050_v26  ;;  %v11471_v8 = vrot.slane %v2801_v22, %v11738_v19 }
 0x368   :  { %7108 = vmatprep.subr.bf16.mxu1 %v10053_v4 }
 0x36a   :  { %6205 = vmatpush1.bf16.msra.mxu0 %v10048_v44 }
 0x36b   :  { %7109 = vmatpush1.bf16.msra.mxu1 %v10051_v45  ;;  %8628 = vmatprep.subr.bf16.mxu0 %v10054_v0 }
 0x36c   :  { %8692 = vmatprep.subr.bf16.mxu1 %v10056_v39 }
 0x36d   :  { %6207 = vmatmul.mubr.bf16.vlgmr.msra.gmra.mrb[128].mxu0 %v11723_v34 }
 0x36e   :  { %7111 = vmatmul.mubr.bf16.vlgmr.msra.gmra.mrb[128].mxu1 %v11723_v34  ;;  %6216 = vmatprep.mubr.bf16.mxu0 %v11724_v17 }
 0x36f   :  { %7120 = vmatprep.mubr.bf16.mxu1 %v11724_v17  ;;  %8629 = vmatpush3.bf16.msra.mxu0 %v10055_v38 }
 0x370   :  { %8693 = vmatpush3.bf16.msra.mxu1 %v10057_v30  ;;  %8630 = vmatprep.subr.bf16.mxu0 %v10058_v16 }
 0x371   :  { %8694 = vmatprep.subr.bf16.mxu1 %v10060_v9 }
 0x373   :  { %8631 = vmatpush3.bf16.msra.mxu0 %v10059_v35 }
 0x374   :  { %8695 = vmatpush3.bf16.msra.mxu1 %v10061_v32  ;;  %8632 = vmatprep.subr.bf16.mxu0 %v10062_v10 }
 0x375   :  { %6217 = vmatmul.mubr.bf16.gmra.mrb[132].mxu0 %v11725_v18  ;;  %8696 = vmatprep.subr.bf16.mxu1 %v10064_v52 }
 0x376   :  { %7121 = vmatmul.mubr.bf16.gmra.mrb[132].mxu1 %v11725_v18  ;;  %6226 = vmatprep.mubr.bf16.mxu0 %v11726_v41 }
 0x377   :  { %7130 = vmatprep.mubr.bf16.mxu1 %v11726_v41  ;;  %8633 = vmatpush3.bf16.msra.mxu0 %v10063_v25 }
 0x378   :  { %8697 = vmatpush3.bf16.msra.mxu1 %v10065_v55  ;;  %8634 = vmatprep.subr.bf16.mxu0 %v10066_v13 }
 0x379   :  { %8698 = vmatprep.subr.bf16.mxu1 %v10068_v40 }
 0x37b   :  { %8635 = vmatpush3.bf16.msra.mxu0 %v10067_v20 }
 0x37c   :  { %8699 = vmatpush3.bf16.msra.mxu1 %v10069_v47  ;;  %8636 = vmatprep.subr.bf16.mxu0 %v10070_v36 }
 0x37d   :  { %6227 = vmatmul.mubr.bf16.gmra.mrb[136].mxu0 %v11727_v61  ;;  %8700 = vmatprep.subr.bf16.mxu1 %v10072_v37 }
 0x37e   :  { %7131 = vmatmul.mubr.bf16.gmra.mrb[136].mxu1 %v11727_v61  ;;  %6236 = vmatprep.mubr.bf16.mxu0 %v11728_v5 }
 0x37f   :  { %7140 = vmatprep.mubr.bf16.mxu1 %v11728_v5  ;;  %8637 = vmatpush3.bf16.msra.mxu0 %v10071_v21 }
 0x380   :  { %8701 = vmatpush3.bf16.msra.mxu1 %v10073_v23  ;;  %8638 = vmatprep.subr.bf16.mxu0 %v10074_v11 }
 0x381   :  { %8702 = vmatprep.subr.bf16.mxu1 %v10076_v53 }
 0x383   :  { %8639 = vmatpush3.bf16.msra.mxu0 %v10075_v6 }
 0x384   :  { %8703 = vmatpush3.bf16.msra.mxu1 %v10077_v48  ;;  %8640 = vmatprep.subr.bf16.mxu0 %v10078_v60 }
 0x385   :  { %6237 = vmatmul.mubr.bf16.gmra.mrb[140].mxu0 %v11729_v31  ;;  %8704 = vmatprep.subr.bf16.mxu1 %v10080_v33 }
 0x386   :  { %7141 = vmatmul.mubr.bf16.gmra.mrb[140].mxu1 %v11729_v31  ;;  %6246 = vmatprep.mubr.bf16.mxu0 %v11730_v7 }
 0x387   :  { %7150 = vmatprep.mubr.bf16.mxu1 %v11730_v7  ;;  %8641 = vmatpush3.bf16.msra.mxu0 %v10079_v15 }
 0x388   :  { %8705 = vmatpush3.bf16.msra.mxu1 %v10081_v63  ;;  %8642 = vmatprep.subr.bf16.mxu0 %v10082_v27 }
 0x389   :  { %8706 = vmatprep.subr.bf16.mxu1 %v10084_v46 }
 0x38b   :  { %8643 = vmatpush3.bf16.msra.mxu0 %v10083_v58 }
 0x38c   :  { %8707 = vmatpush3.bf16.msra.mxu1 %v10085_v42 }
 0x38d   :  { %6247 = vmatmul.mubr.bf16.gmra.mrb[144].mxu0 %v11731_v54 }
 0x38e   :  { %7151 = vmatmul.mubr.bf16.gmra.mrb[144].mxu1 %v11731_v54  ;;  %6256 = vmatprep.mubr.bf16.mxu0 %v11732_v57 }
 0x38f   :  { %7160 = vmatprep.mubr.bf16.mxu1 %v11732_v57 }
 0x395   :  { %6257 = vmatmul.mubr.bf16.gmra.mrb[148].mxu0 %v11733_v51 }
 0x396   :  { %7161 = vmatmul.mubr.bf16.gmra.mrb[148].mxu1 %v11733_v51  ;;  %6266 = vmatprep.mubr.bf16.mxu0 %v11272_v12 }
 0x397   :  { %7170 = vmatprep.mubr.bf16.mxu1 %v11272_v12  ;;  %v7792_v12 = vld [vmem:[%s11606_s7] sm:$0xff] }
 0x398   :  { %7810 = vperm.xlu1 %9284, %v7792_v12  }
 0x39d   :  { %6267 = vmatmul.mubr.bf16.gmra.mrb[152].mxu0 %v11734_v28 }
 0x39e   :  { %7171 = vmatmul.mubr.bf16.gmra.mrb[152].mxu1 %v11734_v28  ;;  %6276 = vmatprep.mubr.bf16.mxu0 %v11292_v14 }
 0x39f   :  { %7180 = vmatprep.mubr.bf16.mxu1 %v11292_v14  ;;  %v7793_v14 = vld [vmem:[%s11606_s7 + $0x8] sm:$0xff] }
 0x3a0   :  { %7815 = vperm.xlu1 %9284, %v7793_v14  }
 0x3a5   :  { %6277 = vmatmul.mubr.bf16.gmra.mrb[156].mxu0 %v11287_v50 }
 0x3a6   :  { %7181 = vmatmul.mubr.bf16.gmra.mrb[156].mxu1 %v11287_v50  ;;  %v7794_v50 = vld [vmem:[%s11606_s7 + $0x10] sm:$0xff] }
 0x3a7   :  { %7820 = vperm.xlu1 %9284, %v7794_v50  }
 0x3ab   :  { %7825 = vperm.xlu1 %9284, %v7795_v29  }
 0x3af   :  { %7830 = vperm.xlu1 %9284, %v7796_v24  }
 0x3b3   :  { %7835 = vperm.xlu1 %9284, %v7797_v2  }
 0x440   :  { %v6208_v26 = vpop.f32.mrb[128].mxu0 }
 0x441   :  { %v8756_v4 = vadd.f32 %v6208_v26, %v11462_v56  ;;  %v7112_v1 = vpop.f32.mrb[128].mxu1  ;;  %v6210_v44 = vpop.f32.mrb[129].mxu0 }
 0x442   :  { %v8788_v45 = vadd.f32 %v7112_v1, %v11465_v62  ;;  %v8757_v0 = vadd.f32 %v6210_v44, %v11468_v49  ;;  %v7114_v39 = vpop.f32.mrb[129].mxu1  ;;  %v6212_v38 = vpop.f32.mrb[130].mxu0 }
 0x443   :  { %v8789_v30 = vadd.f32 %v7114_v39, %v11471_v8  ;;  %v8758_v16 = vadd.f32 %v6212_v38, %v11462_v56  ;;  %v7116_v34 = vpop.f32.mrb[130].mxu1  ;;  %v6214_v9 = vpop.f32.mrb[131].mxu0  ;;  %v7191_v10 = vmax.f32 %v8756_v4, 0.0 }
 0x444   :  { %v8790_v17 = vadd.f32 %v7116_v34, %v11465_v62  ;;  %v8759_v35 = vadd.f32 %v6214_v9, %v11468_v49  ;;  %v7118_v32 = vpop.f32.mrb[131].mxu1  ;;  %v7193_v55 = vmax.f32 %v8788_v45, 0.0  ;;  %v7192_v13 = vmax.f32 %v8757_v0, 0.0 }
 0x445   :  { %v7195_v52 = vmax.f32 %v8758_v16, 0.0  ;;  %v8791_v25 = vadd.f32 %v7118_v32, %v11471_v8  ;;  %v7194_v41 = vmax.f32 %v8789_v30, 0.0 }
 0x446   :  { %v7197_v18 = vmax.f32 %v8790_v17, 0.0  ;;  %v7196_v40 = vmax.f32 %v8759_v35, 0.0 }
 0x447   :  { %v7255_v20 = vpack.c.bf16 %v7195_v52, %v7191_v10  ;;  %v7198_v47 = vmax.f32 %v8791_v25, 0.0 }
 0x448   :  { %v7257_v36 = vpack.c.bf16 %v7197_v18, %v7193_v55  ;;  %v7256_v37 = vpack.c.bf16 %v7196_v40, %v7192_v13  ;;  %v6218_v21 = vpop.f32.mrb[132].mxu0 }
 0x449   :  { %v7258_v23 = vpack.c.bf16 %v7198_v47, %v7194_v41  ;;  %v8760_v11 = vadd.f32 %v6218_v21, %v11462_v56  ;;  %v7122_v61 = vpop.f32.mrb[132].mxu1  ;;  %v6220_v53 = vpop.f32.mrb[133].mxu0 }
 0x44a   :  { %v8792_v5 = vadd.f32 %v7122_v61, %v11465_v62  ;;  %v8761_v6 = vadd.f32 %v6220_v53, %v11468_v49  ;;  %v7124_v48 = vpop.f32.mrb[133].mxu1  ;;  %v6222_v60 = vpop.f32.mrb[134].mxu0  ;;  %7582 = vmatprep.mubr.bf16.mxu0 %v7256_v37 }
 0x44b   :  { %v8793_v33 = vadd.f32 %v7124_v48, %v11471_v8  ;;  %v8762_v15 = vadd.f32 %v6222_v60, %v11462_v56  ;;  %v7126_v63 = vpop.f32.mrb[134].mxu1  ;;  %7679 = vmatprep.mubr.bf16.mxu1 %v7258_v23  ;;  %v6224_v31 = vpop.f32.mrb[135].mxu0  ;;  %7583 = vmatmul.mubr.bf16.vlgmr.msra.gmra.mrb[160].mxu0 %v7255_v20  ;;  %v7199_v51 = vmax.f32 %v8760_v11, 0.0 }
 0x44c   :  { %v8794_v7 = vadd.f32 %v7126_v63, %v11465_v62  ;;  %v8763_v54 = vadd.f32 %v6224_v31, %v11468_v49  ;;  %v7128_v57 = vpop.f32.mrb[135].mxu1  ;;  %7680 = vmatmul.mubr.bf16.vlgmr.msra.gmra.mrb[160].mxu1 %v7257_v36  ;;  %v7201_v46 = vmax.f32 %v8792_v5, 0.0  ;;  %v7200_v58 = vmax.f32 %v8761_v6, 0.0 }
 0x44d   :  { %v7203_v28 = vmax.f32 %v8762_v15, 0.0  ;;  %v8795_v27 = vadd.f32 %v7128_v57, %v11471_v8  ;;  %v7202_v14 = vmax.f32 %v8793_v33, 0.0 }
 0x44e   :  { %v7205_v42 = vmax.f32 %v8794_v7, 0.0  ;;  %v7204_v12 = vmax.f32 %v8763_v54, 0.0 }
 0x44f   :  { %v7259_v50 = vpack.c.bf16 %v7203_v28, %v7199_v51  ;;  %v7206_v29 = vmax.f32 %v8795_v27, 0.0 }
 0x450   :  { %v7261_v24 = vpack.c.bf16 %v7205_v42, %v7201_v46  ;;  %v7260_v2 = vpack.c.bf16 %v7204_v12, %v7200_v58  ;;  %v6228_v22 = vpop.f32.mrb[136].mxu0 }
 0x451   :  { %v7262_v3 = vpack.c.bf16 %v7206_v29, %v7202_v14  ;;  %v8764_v59 = vadd.f32 %v6228_v22, %v11462_v56  ;;  %v7132_v19 = vpop.f32.mrb[136].mxu1  ;;  %v6230_v26 = vpop.f32.mrb[137].mxu0 }
 0x452   :  { %v8796_v4 = vadd.f32 %v7132_v19, %v11465_v62  ;;  %v8765_v1 = vadd.f32 %v6230_v26, %v11468_v49  ;;  %v7134_v44 = vpop.f32.mrb[137].mxu1  ;;  %v6232_v45 = vpop.f32.mrb[138].mxu0  ;;  %7590 = vmatprep.mubr.bf16.mxu0 %v7260_v2 }
 0x453   :  { %v8797_v0 = vadd.f32 %v7134_v44, %v11471_v8  ;;  %v8766_v39 = vadd.f32 %v6232_v45, %v11462_v56  ;;  %v7136_v38 = vpop.f32.mrb[138].mxu1  ;;  %7687 = vmatprep.mubr.bf16.mxu1 %v7262_v3  ;;  %v6234_v30 = vpop.f32.mrb[139].mxu0  ;;  %7591 = vmatmul.mubr.bf16.gmra.mrb[164].mxu0 %v7259_v50  ;;  %v7207_v17 = vmax.f32 %v8764_v59, 0.0 }
 0x454   :  { %v8798_v16 = vadd.f32 %v7136_v38, %v11465_v62  ;;  %v8767_v34 = vadd.f32 %v6234_v30, %v11468_v49  ;;  %v7138_v9 = vpop.f32.mrb[139].mxu1  ;;  %7688 = vmatmul.mubr.bf16.gmra.mrb[164].mxu1 %v7261_v24  ;;  %v7209_v10 = vmax.f32 %v8796_v4, 0.0  ;;  %v7208_v52 = vmax.f32 %v8765_v1, 0.0 }
 0x455   :  { %v7211_v35 = vmax.f32 %v8766_v39, 0.0  ;;  %v8799_v32 = vadd.f32 %v7138_v9, %v11471_v8  ;;  %v7210_v13 = vmax.f32 %v8797_v0, 0.0 }
 0x456   :  { %v7213_v25 = vmax.f32 %v8798_v16, 0.0  ;;  %v7212_v55 = vmax.f32 %v8767_v34, 0.0 }
 0x457   :  { %v7263_v18 = vpack.c.bf16 %v7211_v35, %v7207_v17  ;;  %v7214_v40 = vmax.f32 %v8799_v32, 0.0 }
 0x458   :  { %v7265_v41 = vpack.c.bf16 %v7213_v25, %v7209_v10  ;;  %v7264_v20 = vpack.c.bf16 %v7212_v55, %v7208_v52  ;;  %v6238_v47 = vpop.f32.mrb[140].mxu0 }
 0x459   :  { %v7266_v36 = vpack.c.bf16 %v7214_v40, %v7210_v13  ;;  %v8768_v37 = vadd.f32 %v6238_v47, %v11462_v56  ;;  %v7142_v21 = vpop.f32.mrb[140].mxu1  ;;  %v6240_v23 = vpop.f32.mrb[141].mxu0 }
 0x45a   :  { %v8800_v11 = vadd.f32 %v7142_v21, %v11465_v62  ;;  %v8769_v61 = vadd.f32 %v6240_v23, %v11468_v49  ;;  %v7144_v53 = vpop.f32.mrb[141].mxu1  ;;  %v6242_v5 = vpop.f32.mrb[142].mxu0  ;;  %7598 = vmatprep.mubr.bf16.mxu0 %v7264_v20 }
 0x45b   :  { %v8801_v6 = vadd.f32 %v7144_v53, %v11471_v8  ;;  %v8770_v48 = vadd.f32 %v6242_v5, %v11462_v56  ;;  %v7146_v60 = vpop.f32.mrb[142].mxu1  ;;  %7695 = vmatprep.mubr.bf16.mxu1 %v7266_v36  ;;  %v6244_v33 = vpop.f32.mrb[143].mxu0  ;;  %7599 = vmatmul.mubr.bf16.gmra.mrb[168].mxu0 %v7263_v18  ;;  %v7215_v7 = vmax.f32 %v8768_v37, 0.0 }
 0x45c   :  { %v8802_v15 = vadd.f32 %v7146_v60, %v11465_v62  ;;  %v8771_v63 = vadd.f32 %v6244_v33, %v11468_v49  ;;  %v7148_v31 = vpop.f32.mrb[143].mxu1  ;;  %7696 = vmatmul.mubr.bf16.gmra.mrb[168].mxu1 %v7265_v41  ;;  %v7217_v51 = vmax.f32 %v8800_v11, 0.0  ;;  %v7216_v28 = vmax.f32 %v8769_v61, 0.0 }
 0x45d   :  { %v7219_v54 = vmax.f32 %v8770_v48, 0.0  ;;  %v8803_v57 = vadd.f32 %v7148_v31, %v11471_v8  ;;  %v7218_v58 = vmax.f32 %v8801_v6, 0.0 }
 0x45e   :  { %v7221_v27 = vmax.f32 %v8802_v15, 0.0  ;;  %v7220_v46 = vmax.f32 %v8771_v63, 0.0 }
 0x45f   :  { %v7267_v42 = vpack.c.bf16 %v7219_v54, %v7215_v7  ;;  %v7222_v12 = vmax.f32 %v8803_v57, 0.0 }
 0x460   :  { %v7269_v14 = vpack.c.bf16 %v7221_v27, %v7217_v51  ;;  %v7268_v50 = vpack.c.bf16 %v7220_v46, %v7216_v28  ;;  %v6248_v29 = vpop.f32.mrb[144].mxu0 }
 0x461   :  { %v7270_v24 = vpack.c.bf16 %v7222_v12, %v7218_v58  ;;  %v8772_v2 = vadd.f32 %v6248_v29, %v11462_v56  ;;  %v7152_v22 = vpop.f32.mrb[144].mxu1  ;;  %v6250_v3 = vpop.f32.mrb[145].mxu0 }
 0x462   :  { %v8804_v59 = vadd.f32 %v7152_v22, %v11465_v62  ;;  %v8773_v19 = vadd.f32 %v6250_v3, %v11468_v49  ;;  %v7154_v26 = vpop.f32.mrb[145].mxu1  ;;  %v6252_v4 = vpop.f32.mrb[146].mxu0  ;;  %7606 = vmatprep.mubr.bf16.mxu0 %v7268_v50 }
 0x463   :  { %v8805_v1 = vadd.f32 %v7154_v26, %v11471_v8  ;;  %v8774_v44 = vadd.f32 %v6252_v4, %v11462_v56  ;;  %v7156_v45 = vpop.f32.mrb[146].mxu1  ;;  %7703 = vmatprep.mubr.bf16.mxu1 %v7270_v24  ;;  %v6254_v0 = vpop.f32.mrb[147].mxu0  ;;  %7607 = vmatmul.mubr.bf16.gmra.mrb[172].mxu0 %v7267_v42  ;;  %v7223_v16 = vmax.f32 %v8772_v2, 0.0 }
 0x464   :  { %v8806_v39 = vadd.f32 %v7156_v45, %v11465_v62  ;;  %v8775_v38 = vadd.f32 %v6254_v0, %v11468_v49  ;;  %v7158_v30 = vpop.f32.mrb[147].mxu1  ;;  %7704 = vmatmul.mubr.bf16.gmra.mrb[172].mxu1 %v7269_v14  ;;  %v7225_v17 = vmax.f32 %v8804_v59, 0.0  ;;  %v7224_v35 = vmax.f32 %v8773_v19, 0.0 }
 0x465   :  { %v7227_v34 = vmax.f32 %v8774_v44, 0.0  ;;  %v8807_v9 = vadd.f32 %v7158_v30, %v11471_v8  ;;  %v7226_v52 = vmax.f32 %v8805_v1, 0.0 }
 0x466   :  { %v7229_v32 = vmax.f32 %v8806_v39, 0.0  ;;  %v7228_v10 = vmax.f32 %v8775_v38, 0.0 }
 0x467   :  { %v7271_v25 = vpack.c.bf16 %v7227_v34, %v7223_v16  ;;  %v7230_v55 = vmax.f32 %v8807_v9, 0.0 }
 0x468   :  { %v7273_v13 = vpack.c.bf16 %v7229_v32, %v7225_v17  ;;  %v7272_v18 = vpack.c.bf16 %v7228_v10, %v7224_v35  ;;  %v6258_v40 = vpop.f32.mrb[148].mxu0 }
 0x469   :  { %v7274_v41 = vpack.c.bf16 %v7230_v55, %v7226_v52  ;;  %v8776_v20 = vadd.f32 %v6258_v40, %v11462_v56  ;;  %v7162_v47 = vpop.f32.mrb[148].mxu1  ;;  %v6260_v36 = vpop.f32.mrb[149].mxu0 }
 0x46a   :  { %v8808_v37 = vadd.f32 %v7162_v47, %v11465_v62  ;;  %v8777_v21 = vadd.f32 %v6260_v36, %v11468_v49  ;;  %v7164_v23 = vpop.f32.mrb[149].mxu1  ;;  %v6262_v11 = vpop.f32.mrb[150].mxu0  ;;  %7614 = vmatprep.mubr.bf16.mxu0 %v7272_v18 }
 0x46b   :  { %v8809_v61 = vadd.f32 %v7164_v23, %v11471_v8  ;;  %v8778_v53 = vadd.f32 %v6262_v11, %v11462_v56  ;;  %v7166_v5 = vpop.f32.mrb[150].mxu1  ;;  %7711 = vmatprep.mubr.bf16.mxu1 %v7274_v41  ;;  %v6264_v6 = vpop.f32.mrb[151].mxu0  ;;  %7615 = vmatmul.mubr.bf16.gmra.mrb[176].mxu0 %v7271_v25  ;;  %v7231_v15 = vmax.f32 %v8776_v20, 0.0 }
 0x46c   :  { %v8810_v48 = vadd.f32 %v7166_v5, %v11465_v62  ;;  %v8779_v60 = vadd.f32 %v6264_v6, %v11468_v49  ;;  %v7168_v33 = vpop.f32.mrb[151].mxu1  ;;  %7712 = vmatmul.mubr.bf16.gmra.mrb[176].mxu1 %v7273_v13  ;;  %v7233_v7 = vmax.f32 %v8808_v37, 0.0  ;;  %v7232_v54 = vmax.f32 %v8777_v21, 0.0 }
 0x46d   :  { %v7235_v63 = vmax.f32 %v8778_v53, 0.0  ;;  %v8811_v31 = vadd.f32 %v7168_v33, %v11471_v8  ;;  %v7234_v28 = vmax.f32 %v8809_v61, 0.0 }
 0x46e   :  { %v7237_v57 = vmax.f32 %v8810_v48, 0.0  ;;  %v7236_v51 = vmax.f32 %v8779_v60, 0.0 }
 0x46f   :  { %v7275_v27 = vpack.c.bf16 %v7235_v63, %v7231_v15  ;;  %v7238_v46 = vmax.f32 %v8811_v31, 0.0 }
 0x470   :  { %v7277_v58 = vpack.c.bf16 %v7237_v57, %v7233_v7  ;;  %v7276_v42 = vpack.c.bf16 %v7236_v51, %v7232_v54  ;;  %v6268_v12 = vpop.f32.mrb[152].mxu0 }
 0x471   :  { %v7278_v14 = vpack.c.bf16 %v7238_v46, %v7234_v28  ;;  %v8780_v50 = vadd.f32 %v6268_v12, %v11462_v56  ;;  %v7172_v29 = vpop.f32.mrb[152].mxu1  ;;  %v6270_v24 = vpop.f32.mrb[153].mxu0  ;;  %v7801_v46 = vld [vmem:[%s11606_s7 + $0x48] sm:$0xff]  ;;  %v7804_v12 = vld [vmem:[%s11606_s7 + $0x60] sm:$0xff] }
 0x472   :  { %v8812_v2 = vadd.f32 %v7172_v29, %v11465_v62  ;;  %v8781_v22 = vadd.f32 %v6270_v24, %v11468_v49  ;;  %v7174_v3 = vpop.f32.mrb[153].mxu1  ;;  %v6272_v59 = vpop.f32.mrb[154].mxu0  ;;  %7622 = vmatprep.mubr.bf16.mxu0 %v7276_v42  ;;  %v7803_v42 = vld [vmem:[%s11606_s7 + $0x58] sm:$0xff] }
 0x473   :  { %v8813_v19 = vadd.f32 %v7174_v3, %v11471_v8  ;;  %v8782_v26 = vadd.f32 %v6272_v59, %v11462_v56  ;;  %v7176_v4 = vpop.f32.mrb[154].mxu1  ;;  %7719 = vmatprep.mubr.bf16.mxu1 %v7278_v14  ;;  %v6274_v1 = vpop.f32.mrb[155].mxu0  ;;  %7623 = vmatmul.mubr.bf16.gmra.mrb[180].mxu0 %v7275_v27  ;;  %v7239_v39 = vmax.f32 %v8780_v50, 0.0  ;;  %v7805_v14 = vld [vmem:[%s11606_s7 + $0x68] sm:$0xff]  ;;  %v7806_v50 = vld [vmem:[%s11606_s7 + $0x70] sm:$0xff]  ;;  %v7807_v29 = vld [vmem:[%s11606_s7 + $0x78] sm:$0xff] }
 0x474   :  { %v8814_v44 = vadd.f32 %v7176_v4, %v11465_v62  ;;  %v8783_v45 = vadd.f32 %v6274_v1, %v11468_v49  ;;  %v7178_v0 = vpop.f32.mrb[155].mxu1  ;;  %7720 = vmatmul.mubr.bf16.gmra.mrb[180].mxu1 %v7277_v58  ;;  %v7241_v16 = vmax.f32 %v8812_v2, 0.0  ;;  %v7240_v34 = vmax.f32 %v8781_v22, 0.0  ;;  %v7802_v58 = vld [vmem:[%s11606_s7 + $0x50] sm:$0xff] }
 0x475   :  { %v7243_v38 = vmax.f32 %v8782_v26, 0.0  ;;  %v8815_v30 = vadd.f32 %v7178_v0, %v11471_v8  ;;  %v7242_v35 = vmax.f32 %v8813_v19, 0.0  ;;  %v11567_v3 = vld [vmem:[#allocation14] ss:$0 sm:$0xff] }
 0x476   :  { %v7245_v9 = vmax.f32 %v8814_v44, 0.0  ;;  %v7244_v17 = vmax.f32 %v8783_v45, 0.0 }
 0x477   :  { %v7279_v32 = vpack.c.bf16 %v7243_v38, %v7239_v39  ;;  %v7246_v10 = vmax.f32 %v8815_v30, 0.0 }
 0x478   :  { %v7281_v52 = vpack.c.bf16 %v7245_v9, %v7241_v16  ;;  %v7280_v25 = vpack.c.bf16 %v7244_v17, %v7240_v34  ;;  %v6278_v55 = vpop.f32.mrb[156].mxu0 }
 0x479   :  { %v7282_v13 = vpack.c.bf16 %v7246_v10, %v7242_v35  ;;  %v8784_v18 = vadd.f32 %v6278_v55, %v11462_v56  ;;  %v7182_v40 = vpop.f32.mrb[156].mxu1  ;;  %v6280_v41 = vpop.f32.mrb[157].mxu0 }
 0x47a   :  { %v8816_v20 = vadd.f32 %v7182_v40, %v11465_v62  ;;  %v8785_v47 = vadd.f32 %v6280_v41, %v11468_v49  ;;  %v7184_v36 = vpop.f32.mrb[157].mxu1  ;;  %v6282_v37 = vpop.f32.mrb[158].mxu0  ;;  %7630 = vmatprep.mubr.bf16.mxu0 %v7280_v25 }
 0x47b   :  { %v8817_v21 = vadd.f32 %v7184_v36, %v11471_v8  ;;  %v8786_v23 = vadd.f32 %v6282_v37, %v11462_v56  ;;  %v7186_v11 = vpop.f32.mrb[158].mxu1  ;;  %7727 = vmatprep.mubr.bf16.mxu1 %v7282_v13  ;;  %v6284_v61 = vpop.f32.mrb[159].mxu0  ;;  %7631 = vmatmul.mubr.bf16.gmra.mrb[184].mxu0 %v7279_v32  ;;  %v7247_v48 = vmax.f32 %v8784_v18, 0.0 }
 0x47c   :  { %v8818_v53 = vadd.f32 %v7186_v11, %v11465_v62  ;;  %v8787_v5 = vadd.f32 %v6284_v61, %v11468_v49  ;;  %v7188_v6 = vpop.f32.mrb[159].mxu1  ;;  %7728 = vmatmul.mubr.bf16.gmra.mrb[184].mxu1 %v7281_v52  ;;  %v7249_v15 = vmax.f32 %v8816_v20, 0.0  ;;  %v7248_v63 = vmax.f32 %v8785_v47, 0.0  ;;  %v7798_v62 = vld [vmem:[%s11606_s7 + $0x30] sm:$0xff]  ;;  %v7799_v49 = vld [vmem:[%s11606_s7 + $0x38] sm:$0xff] }
 0x47d   :  { %v7251_v60 = vmax.f32 %v8786_v23, 0.0  ;;  %v8819_v33 = vadd.f32 %v7188_v6, %v11471_v8  ;;  %v7250_v54 = vmax.f32 %v8817_v21, 0.0  ;;  %7840 = vperm.xlu1 %9284, %v7798_v62   ;;  %v7800_v8 = vld [vmem:[%s11606_s7 + $0x40] sm:$0xff]  ;;  %s10287_s7 = smov [#allocation15]  }
 0x47e   :  { %v7253_v31 = vmax.f32 %v8818_v53, 0.0  ;;  %v7252_v7 = vmax.f32 %v8787_v5, 0.0  ;;  %s7943_s0 = sshll.u32 %s10287_s7, 4  ;;  %s7944_s0 = int_to_ptr.vmem [resolvable:$true] %s7943_s0 }
 0x47f   :  { %v7283_v56 = vpack.c.bf16 %v7251_v60, %v7247_v48  ;;  %v7254_v57 = vmax.f32 %v8819_v33, 0.0  ;;  %s10240_s19 = scalar_lea.vmem %s7944_s0, 16  ;;  %s10244_s29 = scalar_lea.vmem %s7944_s0, 32 }
 0x480   :  { %v7285_v51 = vpack.c.bf16 %v7253_v31, %v7249_v15  ;;  %v7284_v28 = vpack.c.bf16 %v7252_v7, %v7248_v63  ;;  %p10241_p0 = scmp.ne.s32.totalorder %s7944_s0, %s10240_s19  ;;  %p10245_p1 = scmp.lt.s32.totalorder %s7944_s0, %s7944_s0 }
 0x481   :  { %v7286_v27 = vpack.c.bf16 %v7254_v57, %v7250_v54  ;;  %7845 = vperm.xlu1 %9284, %v7799_v49   ;;  %p10246_p2 = scmp.lt.s32.totalorder %s10244_s29, %s10240_s19 }
 0x482   :  { %7638 = vmatprep.mubr.bf16.mxu0 %v7284_v28 }
 0x483   :  { %7735 = vmatprep.mubr.bf16.mxu1 %v7286_v27  ;;  %7639 = vmatmul.mubr.bf16.gmra.mrb[188].mxu0 %v7283_v56  ;;  %p10247_p3 = por %p10246_p2, %p10245_p1 }
 0x484   :  { %7736 = vmatmul.mubr.bf16.gmra.mrb[188].mxu1 %v7285_v51 }
 0x485   :  { %7850 = vperm.xlu1 %9284, %v7800_v8   ;;  %p10248_p4 = pnand %p10247_p3, %p10241_p0 }
 0x489   :  { %7855 = vperm.xlu1 %9284, %v7801_v46  }
 0x48d   :  { %7860 = vperm.xlu1 %9284, %v7802_v58  }
 0x491   :  { %7865 = vperm.xlu1 %9284, %v7803_v42  }
 0x495   :  { %7870 = vperm.xlu1 %9284, %v7804_v12  }
 0x499   :  { %7875 = vperm.xlu1 %9284, %v7805_v14  }
 0x49d   :  { %7880 = vperm.xlu1 %9284, %v7806_v50  }
 0x4a1   :  { %7885 = vperm.xlu1 %9284, %v7807_v29  }
 0x51e   :  { %v8644_v24 = vpop.f32.mrb[160].mxu0 }
 0x51f   :  { %v8708_v2 = vpop.f32.mrb[160].mxu1  ;;  %v8645_v22 = vpop.f32.mrb[161].mxu0 }
 0x520   :  { %v8646_v59 = vadd.f32 %v8645_v22, %v8644_v24  ;;  %v8709_v19 = vpop.f32.mrb[161].mxu1  ;;  %v8647_v26 = vpop.f32.mrb[162].mxu0 }
 0x521   :  { %v8710_v4 = vadd.f32 %v8709_v19, %v8708_v2  ;;  %v8711_v1 = vpop.f32.mrb[162].mxu1  ;;  %v8648_v44 = vpop.f32.mrb[163].mxu0 }
 0x522   :  { %v8649_v45 = vadd.f32 %v8648_v44, %v8647_v26  ;;  %v8712_v0 = vpop.f32.mrb[163].mxu1  ;;  %v7585_v39 = vadd.f32 %v8646_v59, %v11567_v3 }
 0x523   :  { %v8713_v38 = vadd.f32 %v8712_v0, %v8711_v1 }
 0x524   :  { %v7588_v30 = vadd.f32 %v8649_v45, %v11567_v3  ;;  %v7682_v16 = vadd.f32 %v8710_v4, %v7585_v39 }
 0x526   :  { %v8650_v34 = vpop.f32.mrb[164].mxu0  ;;  %v7744_v9 = vmax.f32 %v7682_v16, 0.0  ;;  %v7685_v17 = vadd.f32 %v8713_v38, %v7588_v30 }
 0x527   :  { %v8714_v35 = vpop.f32.mrb[164].mxu1  ;;  %v8651_v32 = vpop.f32.mrb[165].mxu0 }
 0x528   :  { %v8652_v10 = vadd.f32 %v8651_v32, %v8650_v34  ;;  %v8715_v52 = vpop.f32.mrb[165].mxu1  ;;  %v8653_v25 = vpop.f32.mrb[166].mxu0  ;;  %7760 = vxpose.xlu0.b32.start [1/16] %v7744_v9, 128  ;;  %v7745_v47 = vmax.f32 %v7685_v17, 0.0 }
 0x529   :  { %v8716_v55 = vadd.f32 %v8715_v52, %v8714_v35  ;;  %v8717_v13 = vpop.f32.mrb[166].mxu1  ;;  %v8654_v18 = vpop.f32.mrb[167].mxu0 }
 0x52a   :  { %v7593_v40 = vadd.f32 %v8652_v10, %v11567_v3  ;;  %v8655_v41 = vadd.f32 %v8654_v18, %v8653_v25  ;;  %v8718_v20 = vpop.f32.mrb[167].mxu1 }
 0x52b   :  { %v8719_v36 = vadd.f32 %v8718_v20, %v8717_v13 }
 0x52c   :  { %v7596_v37 = vadd.f32 %v8655_v41, %v11567_v3  ;;  %7761 = vxpose.xlu0.b32.cont [2/16] %v7745_v47, 128  ;;  %v7690_v21 = vadd.f32 %v8716_v55, %v7593_v40 }
 0x52e   :  { %v8656_v23 = vpop.f32.mrb[168].mxu0  ;;  %v7746_v11 = vmax.f32 %v7690_v21, 0.0  ;;  %v7693_v61 = vadd.f32 %v8719_v36, %v7596_v37 }
 0x52f   :  { %v8720_v53 = vpop.f32.mrb[168].mxu1  ;;  %v8657_v5 = vpop.f32.mrb[169].mxu0 }
 0x530   :  { %v8658_v6 = vadd.f32 %v8657_v5, %v8656_v23  ;;  %v8721_v48 = vpop.f32.mrb[169].mxu1  ;;  %v8659_v60 = vpop.f32.mrb[170].mxu0  ;;  %7762 = vxpose.xlu0.b32.cont [3/16] %v7746_v11, 128  ;;  %v7747_v56 = vmax.f32 %v7693_v61, 0.0 }
 0x531   :  { %v8722_v33 = vadd.f32 %v8721_v48, %v8720_v53  ;;  %v8723_v15 = vpop.f32.mrb[170].mxu1  ;;  %v8660_v63 = vpop.f32.mrb[171].mxu0 }
 0x532   :  { %v7601_v31 = vadd.f32 %v8658_v6, %v11567_v3  ;;  %v8661_v7 = vadd.f32 %v8660_v63, %v8659_v60  ;;  %v8724_v54 = vpop.f32.mrb[171].mxu1 }
 0x533   :  { %v8725_v57 = vadd.f32 %v8724_v54, %v8723_v15 }
 0x534   :  { %v7604_v51 = vadd.f32 %v8661_v7, %v11567_v3  ;;  %7763 = vxpose.xlu0.b32.cont [4/16] %v7747_v56, 128  ;;  %v7698_v28 = vadd.f32 %v8722_v33, %v7601_v31 }
 0x536   :  { %v8662_v27 = vpop.f32.mrb[172].mxu0  ;;  %v7748_v62 = vmax.f32 %v7698_v28, 0.0  ;;  %v7701_v49 = vadd.f32 %v8725_v57, %v7604_v51 }
 0x537   :  { %v8726_v8 = vpop.f32.mrb[172].mxu1  ;;  %v8663_v46 = vpop.f32.mrb[173].mxu0 }
 0x538   :  { %v8664_v58 = vadd.f32 %v8663_v46, %v8662_v27  ;;  %v8727_v42 = vpop.f32.mrb[173].mxu1  ;;  %v8665_v12 = vpop.f32.mrb[174].mxu0  ;;  %7764 = vxpose.xlu0.b32.cont [5/16] %v7748_v62, 128  ;;  %v7749_v59 = vmax.f32 %v7701_v49, 0.0 }
 0x539   :  { %v8728_v14 = vadd.f32 %v8727_v42, %v8726_v8  ;;  %v8729_v50 = vpop.f32.mrb[174].mxu1  ;;  %v8666_v29 = vpop.f32.mrb[175].mxu0 }
 0x53a   :  { %v7609_v24 = vadd.f32 %v8664_v58, %v11567_v3  ;;  %v8667_v2 = vadd.f32 %v8666_v29, %v8665_v12  ;;  %v8730_v22 = vpop.f32.mrb[175].mxu1 }
 0x53b   :  { %v8731_v19 = vadd.f32 %v8730_v22, %v8729_v50 }
 0x53c   :  { %v7612_v26 = vadd.f32 %v8667_v2, %v11567_v3  ;;  %7765 = vxpose.xlu0.b32.cont [6/16] %v7749_v59, 128  ;;  %v7706_v4 = vadd.f32 %v8728_v14, %v7609_v24 }
 0x53e   :  { %v8668_v1 = vpop.f32.mrb[176].mxu0  ;;  %v7750_v44 = vmax.f32 %v7706_v4, 0.0  ;;  %v7709_v45 = vadd.f32 %v8731_v19, %v7612_v26 }
 0x53f   :  { %v8732_v0 = vpop.f32.mrb[176].mxu1  ;;  %v8669_v39 = vpop.f32.mrb[177].mxu0 }
 0x540   :  { %v8670_v38 = vadd.f32 %v8669_v39, %v8668_v1  ;;  %v8733_v30 = vpop.f32.mrb[177].mxu1  ;;  %v8671_v16 = vpop.f32.mrb[178].mxu0  ;;  %7766 = vxpose.xlu0.b32.cont [7/16] %v7750_v44, 128  ;;  %v7751_v52 = vmax.f32 %v7709_v45, 0.0 }
 0x541   :  { %v8734_v34 = vadd.f32 %v8733_v30, %v8732_v0  ;;  %v8735_v9 = vpop.f32.mrb[178].mxu1  ;;  %v8672_v17 = vpop.f32.mrb[179].mxu0 }
 0x542   :  { %v7617_v35 = vadd.f32 %v8670_v38, %v11567_v3  ;;  %v8673_v32 = vadd.f32 %v8672_v17, %v8671_v16  ;;  %v8736_v10 = vpop.f32.mrb[179].mxu1 }
 0x543   :  { %v8737_v25 = vadd.f32 %v8736_v10, %v8735_v9  ;;  %v7925_v10 = vld [vmem:[#allocation2] sm:$0x1] }
 0x544   :  { %v7620_v55 = vadd.f32 %v8673_v32, %v11567_v3  ;;  %7767 = vxpose.xlu0.b32.cont [8/16] %v7751_v52, 128  ;;  %v7714_v13 = vadd.f32 %v8734_v34, %v7617_v35  ;;  %v11739_v52 = vmov 0  }
 0x546   :  { %v8674_v18 = vpop.f32.mrb[180].mxu0  ;;  %v7752_v40 = vmax.f32 %v7714_v13, 0.0  ;;  %v7717_v41 = vadd.f32 %v8737_v25, %v7620_v55  ;;  %v7811_v25 = vpop.permute.xlu1 %7810 }
 0x547   :  { %v8738_v20 = vpop.f32.mrb[180].mxu1  ;;  %v8675_v47 = vpop.f32.mrb[181].mxu0 }
 0x548   :  { %v8676_v36 = vadd.f32 %v8675_v47, %v8674_v18  ;;  %v8739_v37 = vpop.f32.mrb[181].mxu1  ;;  %v8677_v21 = vpop.f32.mrb[182].mxu0  ;;  %7768 = vxpose.xlu0.b32.cont [9/16] %v7752_v40, 128  ;;  %v7753_v48 = vmax.f32 %v7717_v41, 0.0 }
 0x549   :  { %v8740_v23 = vadd.f32 %v8739_v37, %v8738_v20  ;;  %v8741_v11 = vpop.f32.mrb[182].mxu1  ;;  %v8678_v61 = vpop.f32.mrb[183].mxu0 }
 0x54a   :  { %v7625_v53 = vadd.f32 %v8676_v36, %v11567_v3  ;;  %v8679_v5 = vadd.f32 %v8678_v61, %v8677_v21  ;;  %v8742_v6 = vpop.f32.mrb[183].mxu1  ;;  %v7816_v55 = vpop.permute.xlu1 %7815 }
 0x54b   :  { %v8743_v60 = vadd.f32 %v8742_v6, %v8741_v11 }
 0x54c   :  { %v7628_v33 = vadd.f32 %v8679_v5, %v11567_v3  ;;  %7769 = vxpose.xlu0.b32.cont [10/16] %v7753_v48, 128  ;;  %v7722_v15 = vadd.f32 %v8740_v23, %v7625_v53 }
 0x54e   :  { %v8680_v63 = vpop.f32.mrb[184].mxu0  ;;  %v7754_v31 = vmax.f32 %v7722_v15, 0.0  ;;  %v7725_v7 = vadd.f32 %v8743_v60, %v7628_v33  ;;  %v7821_v13 = vpop.permute.xlu1 %7820 }
 0x54f   :  { %v8744_v54 = vpop.f32.mrb[184].mxu1  ;;  %v8681_v56 = vpop.f32.mrb[185].mxu0 }
 0x550   :  { %v8682_v57 = vadd.f32 %v8681_v56, %v8680_v63  ;;  %v8745_v51 = vpop.f32.mrb[185].mxu1  ;;  %v8683_v28 = vpop.f32.mrb[186].mxu0  ;;  %7770 = vxpose.xlu0.b32.cont [11/16] %v7754_v31, 128  ;;  %v7755_v42 = vmax.f32 %v7725_v7, 0.0 }
 0x551   :  { %v8746_v27 = vadd.f32 %v8745_v51, %v8744_v54  ;;  %v8747_v62 = vpop.f32.mrb[186].mxu1  ;;  %v8684_v49 = vpop.f32.mrb[187].mxu0 }
 0x552   :  { %v7633_v8 = vadd.f32 %v8682_v57, %v11567_v3  ;;  %v8685_v46 = vadd.f32 %v8684_v49, %v8683_v28  ;;  %v8748_v58 = vpop.f32.mrb[187].mxu1  ;;  %v7826_v40 = vpop.permute.xlu1 %7825 }
 0x553   :  { %v8749_v12 = vadd.f32 %v8748_v58, %v8747_v62 }
 0x554   :  { %v7636_v14 = vadd.f32 %v8685_v46, %v11567_v3  ;;  %7771 = vxpose.xlu0.b32.cont [12/16] %v7755_v42, 128  ;;  %v7730_v50 = vadd.f32 %v8746_v27, %v7633_v8 }
 0x556   :  { %v8686_v29 = vpop.f32.mrb[188].mxu0  ;;  %v7756_v24 = vmax.f32 %v7730_v50, 0.0  ;;  %v7733_v2 = vadd.f32 %v8749_v12, %v7636_v14  ;;  %v7831_v20 = vpop.permute.xlu1 %7830 }
 0x557   :  { %v8750_v22 = vpop.f32.mrb[188].mxu1  ;;  %v8687_v59 = vpop.f32.mrb[189].mxu0 }
 0x558   :  { %v8688_v19 = vadd.f32 %v8687_v59, %v8686_v29  ;;  %v8751_v26 = vpop.f32.mrb[189].mxu1  ;;  %v8689_v4 = vpop.f32.mrb[190].mxu0  ;;  %7772 = vxpose.xlu0.b32.cont [13/16] %v7756_v24, 128  ;;  %v7757_v30 = vmax.f32 %v7733_v2, 0.0 }
 0x559   :  { %v8752_v1 = vadd.f32 %v8751_v26, %v8750_v22  ;;  %v8753_v44 = vpop.f32.mrb[190].mxu1  ;;  %v8690_v45 = vpop.f32.mrb[191].mxu0 }
 0x55a   :  { %v7641_v0 = vadd.f32 %v8688_v19, %v11567_v3  ;;  %v8691_v39 = vadd.f32 %v8690_v45, %v8689_v4  ;;  %v8754_v38 = vpop.f32.mrb[191].mxu1  ;;  %v7836_v36 = vpop.permute.xlu1 %7835 }
 0x55b   :  { %v8755_v16 = vadd.f32 %v8754_v38, %v8753_v44 }
 0x55c   :  { %v7644_v34 = vadd.f32 %v8691_v39, %v11567_v3  ;;  %7773 = vxpose.xlu0.b32.cont [14/16] %v7757_v30, 128  ;;  %v7738_v9 = vadd.f32 %v8752_v1, %v7641_v0 }
 0x55e   :  { %v7758_v17 = vmax.f32 %v7738_v9, 0.0  ;;  %v7741_v35 = vadd.f32 %v8755_v16, %v7644_v34  ;;  %v7841_v21 = vpop.permute.xlu1 %7840 }
 0x560   :  { %7774 = vxpose.xlu0.b32.cont [15/16] %v7758_v17, 128  ;;  %v7759_v32 = vmax.f32 %v7741_v35, 0.0 }
 0x562   :  { %v7846_v61 = vpop.permute.xlu1 %7845 }
 0x564   :  { %7775 = vxpose.xlu0.b32.end [16/16] %v7759_v32, 128 }
 0x566   :  { %v7851_v5 = vpop.permute.xlu1 %7850 }
 0x56a   :  { %v7856_v15 = vpop.permute.xlu1 %7855 }
 0x56e   :  { %v7861_v57 = vpop.permute.xlu1 %7860 }
 0x572   :  { %v7866_v62 = vpop.permute.xlu1 %7865 }
 0x576   :  { %v7871_v12 = vpop.permute.xlu1 %7870 }
 0x57a   :  { %v7876_v2 = vpop.permute.xlu1 %7875 }
 0x57e   :  { %v7881_v45 = vpop.permute.xlu1 %7880 }
 0x582   :  { %v7886_v17 = vpop.permute.xlu1 %7885 }
 0x58d   :  { %9285 = vset.pattern.permute.xlu0 %v11739_v52 }
 0x58e   :  { %7928 = vperm.xlu0 %9285, %v7925_v10  }
 0x5a8   :  { %v7776_v18 = vpop.trf.xlu0 }
 0x5a9   :  { %v7888_v48 = vmul.f32 %v7811_v25, %v7776_v18 }
 0x5ac   :  { %v7777_v41 = vpop.trf.xlu0 }
 0x5ad   :  { %v7889_v60 = vmul.f32 %v7816_v55, %v7777_v41 }
 0x5af   :  { %v7904_v63 = vadd.f32 %v7889_v60, %v7888_v48 }
 0x5b0   :  { %v7778_v47 = vpop.trf.xlu0 }
 0x5b1   :  { %v7890_v31 = vmul.f32 %v7821_v13, %v7778_v47 }
 0x5b3   :  { %v7905_v54 = vadd.f32 %v7904_v63, %v7890_v31 }
 0x5b4   :  { %v7779_v3 = vpop.trf.xlu0 }
 0x5b5   :  { %v7891_v56 = vmul.f32 %v7826_v40, %v7779_v3 }
 0x5b7   :  { %v7906_v51 = vadd.f32 %v7905_v54, %v7891_v56 }
 0x5b8   :  { %v7780_v37 = vpop.trf.xlu0 }
 0x5b9   :  { %v7892_v28 = vmul.f32 %v7831_v20, %v7780_v37 }
 0x5bb   :  { %v7907_v49 = vadd.f32 %v7906_v51, %v7892_v28 }
 0x5bc   :  { %v7781_v23 = vpop.trf.xlu0 }
 0x5bd   :  { %v7893_v8 = vmul.f32 %v7836_v36, %v7781_v23 }
 0x5bf   :  { %v7908_v58 = vadd.f32 %v7907_v49, %v7893_v8 }
 0x5c0   :  { %v7782_v11 = vpop.trf.xlu0 }
 0x5c1   :  { %v7894_v42 = vmul.f32 %v7841_v21, %v7782_v11 }
 0x5c3   :  { %v7909_v14 = vadd.f32 %v7908_v58, %v7894_v42 }
 0x5c4   :  { %v7783_v53 = vpop.trf.xlu0 }
 0x5c5   :  { %v7895_v50 = vmul.f32 %v7846_v61, %v7783_v53 }
 0x5c7   :  { %v7910_v22 = vadd.f32 %v7909_v14, %v7895_v50 }
 0x5c8   :  { %v7784_v6 = vpop.trf.xlu0 }
 0x5c9   :  { %v7896_v24 = vmul.f32 %v7851_v5, %v7784_v6 }
 0x5cb   :  { %v7911_v19 = vadd.f32 %v7910_v22, %v7896_v24 }
 0x5cc   :  { %v7785_v33 = vpop.trf.xlu0 }
 0x5cd   :  { %v7897_v59 = vmul.f32 %v7856_v15, %v7785_v33 }
 0x5cf   :  { %v7912_v1 = vadd.f32 %v7911_v19, %v7897_v59 }
 0x5d0   :  { %v7786_v7 = vpop.trf.xlu0 }
 0x5d1   :  { %v7898_v26 = vmul.f32 %v7861_v57, %v7786_v7 }
 0x5d3   :  { %v7913_v0 = vadd.f32 %v7912_v1, %v7898_v26 }
 0x5d4   :  { %v7787_v27 = vpop.trf.xlu0 }
 0x5d5   :  { %v7899_v44 = vmul.f32 %v7866_v62, %v7787_v27 }
 0x5d7   :  { %v7914_v38 = vadd.f32 %v7913_v0, %v7899_v44 }
 0x5d8   :  { %v7788_v46 = vpop.trf.xlu0 }
 0x5d9   :  { %v7900_v39 = vmul.f32 %v7871_v12, %v7788_v46 }
 0x5db   :  { %v7915_v34 = vadd.f32 %v7914_v38, %v7900_v39 }
 0x5dc   :  { %v7789_v29 = vpop.trf.xlu0 }
 0x5dd   :  { %v7901_v30 = vmul.f32 %v7876_v2, %v7789_v29 }
 0x5df   :  { %v7916_v35 = vadd.f32 %v7915_v34, %v7901_v30 }
 0x5e0   :  { %v7790_v4 = vpop.trf.xlu0 }
 0x5e1   :  { %v7902_v9 = vmul.f32 %v7881_v45, %v7790_v4 }
 0x5e3   :  { %v7917_v10 = vadd.f32 %v7916_v35, %v7902_v9 }
 0x5e4   :  { %v7791_v16 = vpop.trf.xlu0 }
 0x5e5   :  { %v7903_v32 = vmul.f32 %v7886_v17, %v7791_v16 }
 0x5e7   :  { %v7918_v52 = vadd.f32 %v7917_v10, %v7903_v32 }
 0x5e9   :  { %v7919_v25 = vrot.slane %v7918_v52, 4 }
 0x5eb   :  { %v7920_v55 = vadd.f32 %v7919_v25, %v7918_v52 }
 0x5ed   :  { %v7921_v13 = vrot.slane %v7920_v55, 2 }
 0x5ef   :  { %v7922_v18 = vadd.f32 %v7921_v13, %v7920_v55 }
 0x5f1   :  { %v7923_v40 = vrot.slane %v7922_v18, 1 }
 0x5f3   :  { %v7924_v20 = vadd.f32 %v7923_v40, %v7922_v18 }
 0x60d   :  { %v7929_v41 = vpop.permute.xlu0 %7928 }
 0x60e   :  { %v7934_v47 = vrot.slane %v7929_v41, %v11735_v43 }
 0x610   :  { %v7935_v3 = vadd.f32 %v7934_v47, %v7924_v20 }
 0x612   :  { %7936 = vst [vmem:[#allocation15] sm:$0x1] %v7935_v3 }
 0x613   :  { %10251 = shalt.err (!%p10248_p4)
}
 0x614   :  { %s10252_s11 = scalar_lea.hbm %s11608_s9, 16 }
 0x615   :  { %p10253_p5 = scmp.ne.s32.totalorder %s11608_s9, %s10252_s11  ;;  %p10256_p6 = scmp.lt.u32.totalorder %s10252_s11, %s11608_s9 }
 0x617   :  { %p10258_p7 = pnand %p10256_p6, %p10253_p5 }
 0x619   :  { %10261 = shalt.err (!%p10258_p7)
}
 0x61a   :  { %7946 = dma.vmem_to_hbm [thread:$0]  %s7944_s0, 16, %s11608_s9, [#allocation5]  }
 0x61b   :  { %10270 = dma.done.wait [#allocation5], 16  }
 0x61c   :  { %10271 = vsyncadd [#allocation5], 4294967280 }
 0x61d   :  { %7950 = vsyncpa [#allocation4], 1 }
 0x61e   :  { %7951 = vsyncpa [#allocation7], 1 }
 0x61f   :  { %7952 = vsyncpa [#allocation10], 1 }
 0x620   :  { %7953 = vsyncpa [#allocation13], 1 }
 0x621   :  { %7954 = vsyncpa [#allocation5], 1 }

// kernel: tpu_custom_call.1
= control target key start
LH: loop header
LB: loop body
LE: loop exit
PB: predicated region body
PF: predicated region fallthrough
CT: control target
= control target key end

     0   :  { %s11599_s0 = inlined_call_operand.hbm [shape: f32[128,128], index: 0, kind: input, shape index: {}]   ;;  %s11600_s1 = inlined_call_operand.hbm [shape: bf16[128,2048], index: 1, kind: input, shape index: {}]   ;;  %s11601_s2 = inlined_call_operand.hbm [shape: f32[1,2048], index: 2, kind: input, shape index: {}]   ;;  %s11602_s3 = inlined_call_operand.hbm [shape: bf16[2048,512], index: 3, kind: input, shape index: {}]   ;;  %s11603_s4 = inlined_call_operand.hbm [shape: f32[1,512], index: 4, kind: input, shape index: {}]   ;;  %s11604_s5 = inlined_call_operand.hbm [shape: bf16[512,128], index: 5, kind: input, shape index: {}]   ;;  %s11605_s6 = inlined_call_operand.hbm [shape: f32[1,128], index: 6, kind: input, shape index: {}]   ;;  %s11606_s7 = inlined_call_operand.vmem [shape: f32[128,1], index: 7, kind: input, shape index: {}]   ;;  %s11607_s8 = inlined_call_operand.<no memory space> [shape: f32[1,1], index: 8, kind: input, shape index: {}]   ;;  %s11608_s9 = inlined_call_operand.hbm [shape: f32[1,1,128], index: 9, kind: output, shape index: {}]  }
   0x1   :  { %v14_v0 = vstv %s11607_s8 }
   0x2   :  { %15 = vst [vmem:[#allocation2] sm:$0x1] %v14_v0 }
   0x3   :  { %16 = vsyncpa [#allocation4], 0 }
   0x4   :  { %17 = vsyncpa [#allocation7], 0 }
   0x5   :  { %18 = vsyncpa [#allocation10], 0 }
   0x6   :  { %19 = vsyncpa [#allocation13], 0 }
   0x7   :  { %20 = vsyncpa [#allocation5], 0  ;;  %s10272_s11 = smov [#allocation6]   ;;  %s10086_s15 = scalar_lea.hbm %s11600_s1, 16384 }
   0x8   :  { %s38_s12 = sshll.u32 %s10272_s11, 4  ;;  %p10087_p0 = scmp.ne.s32.totalorder %s11600_s1, %s10086_s15  ;;  %s39_s12 = int_to_ptr.vmem [resolvable:$true] %s38_s12 }
   0x9   :  { %p10090_p1 = scmp.lt.u32.totalorder %s10086_s15, %s11600_s1 }
   0xb   :  { %p10092_p2 = pnand %p10090_p1, %p10087_p0 }
   0xd   :  { %10095 = shalt.err (!%p10092_p2)
}
   0xe   :  { %s10096_s8 = scalar_lea.vmem %s39_s12, 16384  ;;  %p10101_p4 = scmp.lt.s32.totalorder %s39_s12, %s39_s12 }
   0xf   :  { %p10097_p3 = scmp.ne.s32.totalorder %s39_s12, %s10096_s8  ;;  %p10102_p5 = scmp.lt.s32.totalorder %s10096_s8, %s10096_s8 }
  0x11   :  { %p10103_p6 = por %p10102_p5, %p10101_p4 }
  0x13   :  { %p10104_p7 = pnand %p10103_p6, %p10097_p3 }
  0x15   :  { %10107 = shalt.err (!%p10104_p7)
}
  0x16   :  { %s10273_s20 = smov 1024   ;;  %s10274_s21 = smov 64  }
  0x17   :  { %44 = dma.hbm_to_vmem [thread:$0]  %s11600_s1, 16384, %s39_s12, [#allocation7], %s10273_s20, %s10273_s20, %s10274_s21  }
  0x18   :  { %s10275_s24 = smov [#allocation9]   ;;  %s10108_s28 = scalar_lea.hbm %s11602_s3, 65536 }
  0x19   :  { %s60_s25 = sshll.u32 %s10275_s24, 4  ;;  %p10109_p8 = scmp.ne.s32.totalorder %s11602_s3, %s10108_s28  ;;  %s61_s25 = int_to_ptr.vmem [resolvable:$true] %s60_s25 }
  0x1a   :  { %p10112_p9 = scmp.lt.u32.totalorder %s10108_s28, %s11602_s3 }
  0x1c   :  { %p10114_p10 = pnand %p10112_p9, %p10109_p8 }
  0x1e   :  { %10117 = shalt.err (!%p10114_p10)
}
  0x1f   :  { %s10118_s13 = scalar_lea.vmem %s61_s25, 65536  ;;  %p10123_p12 = scmp.lt.s32.totalorder %s61_s25, %s61_s25 }
  0x20   :  { %p10119_p11 = scmp.ne.s32.totalorder %s61_s25, %s10118_s13  ;;  %p10124_p13 = scmp.lt.s32.totalorder %s10118_s13, %s10118_s13 }
  0x22   :  { %p10125_p0 = por %p10124_p13, %p10123_p12 }
  0x24   :  { %p10126_p1 = pnand %p10125_p0, %p10119_p11 }
  0x26   :  { %10129 = shalt.err (!%p10126_p1)
}
  0x27   :  { %s10276_s1 = smov 256   ;;  %s10277_s12 = smov 16  }
  0x28   :  { %66 = dma.hbm_to_vmem [thread:$0]  %s11602_s3, 65536, %s61_s25, [#allocation10], %s10276_s1, %s10276_s1, %s10277_s12  }
  0x29   :  { %s10278_s16 = smov [#allocation12]   ;;  %s10279_s18 = smov [#allocation3]  }
  0x2a   :  { %s82_s17 = sshll.u32 %s10278_s16, 4  ;;  %s26_s19 = sshll.u32 %s10279_s18, 4  ;;  %s83_s17 = int_to_ptr.vmem [resolvable:$true] %s82_s17  ;;  %s27_s19 = int_to_ptr.vmem [resolvable:$true] %s26_s19 }
  0x2b   :  { %s10130_s22 = scalar_lea.hbm %s11604_s5, 4096 }
  0x2c   :  { %p10131_p2 = scmp.ne.s32.totalorder %s11604_s5, %s10130_s22  ;;  %p10134_p3 = scmp.lt.u32.totalorder %s10130_s22, %s11604_s5 }
  0x2e   :  { %p10136_p4 = pnand %p10134_p3, %p10131_p2 }
  0x30   :  { %10139 = shalt.err (!%p10136_p4)
}
  0x31   :  { %s10140_s3 = scalar_lea.vmem %s83_s17, 4096  ;;  %p10145_p6 = scmp.lt.s32.totalorder %s83_s17, %s83_s17 }
  0x32   :  { %p10141_p5 = scmp.ne.s32.totalorder %s83_s17, %s10140_s3  ;;  %p10146_p7 = scmp.lt.s32.totalorder %s10140_s3, %s10140_s3 }
  0x34   :  { %p10147_p8 = por %p10146_p7, %p10145_p6 }
  0x36   :  { %p10148_p9 = pnand %p10147_p8, %p10141_p5 }
  0x38   :  { %10151 = shalt.err (!%p10148_p9)
}
  0x39   :  { %s10280_s25 = smov 4   ;;  %s10152_s11 = scalar_lea.hbm %s11599_s0, 2048 }
  0x3a   :  { %88 = dma.hbm_to_vmem [thread:$0]  %s11604_s5, 4096, %s83_s17, [#allocation13], %s10274_s21, %s10274_s21, %s10280_s25  }
  0x3b   :  { %p10153_p10 = scmp.ne.s32.totalorder %s11599_s0, %s10152_s11  ;;  %p10156_p11 = scmp.lt.u32.totalorder %s10152_s11, %s11599_s0 }
  0x3d   :  { %p10158_p12 = pnand %p10156_p11, %p10153_p10 }
  0x3f   :  { %10161 = shalt.err (!%p10158_p12)
}
  0x40   :  { %s10162_s15 = scalar_lea.vmem %s27_s19, 2048  ;;  %p10167_p0 = scmp.lt.s32.totalorder %s27_s19, %s27_s19 }
  0x41   :  { %p10163_p13 = scmp.ne.s32.totalorder %s27_s19, %s10162_s15  ;;  %p10168_p1 = scmp.lt.s32.totalorder %s10162_s15, %s10162_s15 }
  0x43   :  { %p10169_p2 = por %p10168_p1, %p10167_p0 }
  0x45   :  { %p10170_p3 = pnand %p10169_p2, %p10163_p13 }
  0x47   :  { %10173 = shalt.err (!%p10170_p3)
}
  0x48   :  { %s10281_s5 = smov 128   ;;  %s10282_s21 = smov 8  }
  0x49   :  { %32 = dma.hbm_to_vmem [thread:$0]  %s11599_s0, 2048, %s27_s19, [#allocation4], %s10281_s5, %s10281_s5, %s10282_s21  }
  0x4a   :  { %s10283_s18 = smov [#allocation8]   ;;  %s10284_s20 = smov [#allocation11]  }
  0x4b   :  { %s51_s8 = sshll.u32 %s10283_s18, 4  ;;  %s73_s22 = sshll.u32 %s10284_s20, 4  ;;  %s52_s8 = int_to_ptr.vmem [resolvable:$true] %s51_s8  ;;  %s74_s22 = int_to_ptr.vmem [resolvable:$true] %s73_s22 }
  0x4c   :  { %s10174_s26 = scalar_lea.hbm %s11601_s2, 256 }
  0x4d   :  { %p10175_p4 = scmp.ne.s32.totalorder %s11601_s2, %s10174_s26  ;;  %p10178_p5 = scmp.lt.u32.totalorder %s10174_s26, %s11601_s2 }
  0x4f   :  { %p10180_p6 = pnand %p10178_p5, %p10175_p4 }
  0x51   :  { %10183 = shalt.err (!%p10180_p6)
}
  0x52   :  { %s10184_s0 = scalar_lea.vmem %s52_s8, 256  ;;  %p10189_p8 = scmp.lt.s32.totalorder %s52_s8, %s52_s8 }
  0x53   :  { %p10185_p7 = scmp.ne.s32.totalorder %s52_s8, %s10184_s0  ;;  %p10190_p9 = scmp.lt.s32.totalorder %s10184_s0, %s10184_s0 }
  0x55   :  { %p10191_p10 = por %p10190_p9, %p10189_p8 }
  0x57   :  { %p10192_p11 = pnand %p10191_p10, %p10185_p7 }
  0x59   :  { %10195 = shalt.err (!%p10192_p11)
}
  0x5a   :  { %54 = dma.hbm_to_vmem [thread:$0]  %s11601_s2, 256, %s52_s8, [#allocation7]  }
  0x5b   :  { %s10196_s11 = scalar_lea.hbm %s11603_s4, 64 }
  0x5c   :  { %p10197_p12 = scmp.ne.s32.totalorder %s11603_s4, %s10196_s11  ;;  %p10200_p13 = scmp.lt.u32.totalorder %s10196_s11, %s11603_s4 }
  0x5e   :  { %p10202_p0 = pnand %p10200_p13, %p10197_p12 }
  0x60   :  { %10205 = shalt.err (!%p10202_p0)
}
  0x61   :  { %s10206_s15 = scalar_lea.vmem %s74_s22, 64  ;;  %p10211_p2 = scmp.lt.s32.totalorder %s74_s22, %s74_s22 }
  0x62   :  { %p10207_p1 = scmp.ne.s32.totalorder %s74_s22, %s10206_s15  ;;  %p10212_p3 = scmp.lt.s32.totalorder %s10206_s15, %s10206_s15 }
  0x64   :  { %p10213_p4 = por %p10212_p3, %p10211_p2 }
  0x66   :  { %p10214_p5 = pnand %p10213_p4, %p10207_p1 }
  0x68   :  { %10217 = shalt.err (!%p10214_p5)
}
  0x69   :  { %76 = dma.hbm_to_vmem [thread:$0]  %s11603_s4, 64, %s74_s22, [#allocation10]  }
  0x6a   :  { %s10285_s21 = smov [#allocation14]   ;;  %s10218_s8 = scalar_lea.hbm %s11605_s6, 16 }
  0x6b   :  { %s95_s16 = sshll.u32 %s10285_s21, 4  ;;  %p10219_p6 = scmp.ne.s32.totalorder %s11605_s6, %s10218_s8  ;;  %s96_s16 = int_to_ptr.vmem [resolvable:$true] %s95_s16 }
  0x6c   :  { %p10222_p7 = scmp.lt.u32.totalorder %s10218_s8, %s11605_s6 }
  0x6e   :  { %p10224_p8 = pnand %p10222_p7, %p10219_p6 }
  0x70   :  { %10227 = shalt.err (!%p10224_p8)
}
  0x71   :  { %s10228_s27 = scalar_lea.vmem %s96_s16, 16  ;;  %s10232_s4 = scalar_lea.vmem %s96_s16, 32 }
  0x72   :  { %p10229_p9 = scmp.ne.s32.totalorder %s96_s16, %s10228_s27  ;;  %p10233_p10 = scmp.lt.s32.totalorder %s96_s16, %s96_s16 }
  0x73   :  { %p10234_p11 = scmp.lt.s32.totalorder %s10232_s4, %s10228_s27 }
  0x75   :  { %p10235_p12 = por %p10234_p11, %p10233_p10 }
  0x77   :  { %p10236_p13 = pnand %p10235_p12, %p10229_p9 }
  0x79   :  { %10239 = shalt.err (!%p10236_p13)
}
  0x7a   :  { %98 = dma.hbm_to_vmem [thread:$0]  %s11605_s6, 16, %s96_s16, [#allocation13]  }
  0x7b   :  { %10262 = dma.done.wait [#allocation4], 2048  }
  0x7c   :  { %10263 = vsyncadd [#allocation4], 4294965248 }
  0x7d   :  { %10264 = dma.done.wait [#allocation7], 16640  }
  0x7e   :  { %10265 = vsyncadd [#allocation7], 4294950656 }
  0x7f   :  { %10266 = dma.done.wait [#allocation10], 65600  }
  0x80   :  { %10267 = vsyncadd [#allocation10], 4294901696 }
  0x81   :  { %10268 = dma.done.wait [#allocation13], 4112  }
  0x82   :  { %10269 = vsyncadd [#allocation13], 4294963184  ;;  %v11609_v1 = vmov 0   ;;  %v149_v2 = vld [vmem:[#allocation6] sm:$0xff]  ;;  %v150_v4 = vld [vmem:[#allocation6 + $0x8] sm:$0xff] }
  0x83   :  { %1033 = vmatprep.mubr.bf16.mxu0 %v11609_v1  ;;  %1146 = vmatprep.mubr.bf16.mxu1 %v11609_v1  ;;  %v157_v3 = vld [vmem:[#allocation6 + $0x40] sm:$0xff]  ;;  %v158_v6 = vld [vmem:[#allocation6 + $0x48] sm:$0xff]  ;;  %v151_v0 = vld [vmem:[#allocation6 + $0x10] sm:$0xff] }
  0x84   :  { %9284 = vset.pattern.permute.xlu1 %v11609_v1  ;;  %v7956_v5 = vcombine.high %v149_v2, %v157_v3  ;;  %v7955_v7 = vcombine.low %v149_v2, %v157_v3  ;;  %v165_v8 = vld [vmem:[#allocation6 + $0x80] sm:$0xff]  ;;  %v7958_v10 = vcombine.high %v150_v4, %v158_v6  ;;  %v7957_v11 = vcombine.low %v150_v4, %v158_v6  ;;  %v166_v13 = vld [vmem:[#allocation6 + $0x88] sm:$0xff]  ;;  %v159_v2 = vld [vmem:[#allocation6 + $0x50] sm:$0xff] }
  0x85   :  { %v173_v9 = vld [vmem:[#allocation6 + $0xc0] sm:$0xff]  ;;  %v174_v14 = vld [vmem:[#allocation6 + $0xc8] sm:$0xff]  ;;  %v152_v3 = vld [vmem:[#allocation6 + $0x18] sm:$0xff] }
  0x86   :  { %v7972_v12 = vcombine.high %v165_v8, %v173_v9  ;;  %v181_v15 = vld [vmem:[#allocation6 + $0x100] sm:$0xff]  ;;  %1001 = vmatprep.subr.bf16.mxu0 %v7956_v5  ;;  %v7974_v16 = vcombine.high %v166_v13, %v174_v14  ;;  %v182_v18 = vld [vmem:[#allocation6 + $0x108] sm:$0xff]  ;;  %1114 = vmatprep.subr.bf16.mxu1 %v7958_v10  ;;  %v7971_v20 = vcombine.low %v165_v8, %v173_v9  ;;  %v160_v4 = vld [vmem:[#allocation6 + $0x58] sm:$0xff] }
  0x87   :  { %v189_v17 = vld [vmem:[#allocation6 + $0x140] sm:$0xff]  ;;  %v190_v19 = vld [vmem:[#allocation6 + $0x148] sm:$0xff]  ;;  %1002 = vmatpush1.bf16.msra.mxu0 %v7955_v7  ;;  %1115 = vmatpush1.bf16.msra.mxu1 %v7957_v11  ;;  %v7973_v21 = vcombine.low %v166_v13, %v174_v14  ;;  %v7960_v9 = vcombine.high %v151_v0, %v159_v2  ;;  %v7962_v10 = vcombine.high %v152_v3, %v160_v4  ;;  %v175_v13 = vld [vmem:[#allocation6 + $0xd0] sm:$0xff] }
  0x88   :  { %1003 = vmatprep.subr.bf16.mxu0 %v7972_v12  ;;  %v7988_v22 = vcombine.high %v181_v15, %v189_v17  ;;  %1116 = vmatprep.subr.bf16.mxu1 %v7974_v16  ;;  %v7990_v23 = vcombine.high %v182_v18, %v190_v19  ;;  %v197_v24 = vld [vmem:[#allocation6 + $0x180] sm:$0xff]  ;;  %v198_v26 = vld [vmem:[#allocation6 + $0x188] sm:$0xff]  ;;  %v7987_v28 = vcombine.low %v181_v15, %v189_v17  ;;  %v167_v12 = vld [vmem:[#allocation6 + $0x90] sm:$0xff] }
  0x89   :  { %v205_v25 = vld [vmem:[#allocation6 + $0x1c0] sm:$0xff]  ;;  %v206_v27 = vld [vmem:[#allocation6 + $0x1c8] sm:$0xff]  ;;  %v7989_v29 = vcombine.low %v182_v18, %v190_v19  ;;  %v7959_v14 = vcombine.low %v151_v0, %v159_v2  ;;  %v168_v15 = vld [vmem:[#allocation6 + $0x98] sm:$0xff]  ;;  %v7961_v17 = vcombine.low %v152_v3, %v160_v4  ;;  %v7976_v18 = vcombine.high %v167_v12, %v175_v13 }
  0x8a   :  { %v8004_v30 = vcombine.high %v197_v24, %v205_v25  ;;  %v8006_v31 = vcombine.high %v198_v26, %v206_v27  ;;  %v213_v32 = vld [vmem:[#allocation6 + $0x200] sm:$0xff]  ;;  %v214_v34 = vld [vmem:[#allocation6 + $0x208] sm:$0xff]  ;;  %v8003_v36 = vcombine.low %v197_v24, %v205_v25  ;;  %v8005_v37 = vcombine.low %v198_v26, %v206_v27  ;;  %v176_v16 = vld [vmem:[#allocation6 + $0xd8] sm:$0xff] }
  0x8b   :  { %1004 = vmatpush1.bf16.msra.mxu0 %v7971_v20  ;;  %1117 = vmatpush1.bf16.msra.mxu1 %v7973_v21  ;;  %v221_v33 = vld [vmem:[#allocation6 + $0x240] sm:$0xff]  ;;  %v222_v35 = vld [vmem:[#allocation6 + $0x248] sm:$0xff]  ;;  %v183_v19 = vld [vmem:[#allocation6 + $0x110] sm:$0xff]  ;;  %v7978_v21 = vcombine.high %v168_v15, %v176_v16  ;;  %v7975_v26 = vcombine.low %v167_v12, %v175_v13  ;;  %v7977_v27 = vcombine.low %v168_v15, %v176_v16 }
  0x8c   :  { %1005 = vmatprep.subr.bf16.mxu0 %v7988_v22  ;;  %1118 = vmatprep.subr.bf16.mxu1 %v7990_v23  ;;  %v8020_v38 = vcombine.high %v213_v32, %v221_v33  ;;  %v8022_v39 = vcombine.high %v214_v34, %v222_v35  ;;  %v229_v40 = vld [vmem:[#allocation6 + $0x280] sm:$0xff]  ;;  %v230_v42 = vld [vmem:[#allocation6 + $0x288] sm:$0xff]  ;;  %v8019_v44 = vcombine.low %v213_v32, %v221_v33  ;;  %v191_v20 = vld [vmem:[#allocation6 + $0x150] sm:$0xff] }
  0x8d   :  { %v237_v41 = vld [vmem:[#allocation6 + $0x2c0] sm:$0xff]  ;;  %v238_v43 = vld [vmem:[#allocation6 + $0x2c8] sm:$0xff]  ;;  %v8021_v45 = vcombine.low %v214_v34, %v222_v35  ;;  %v184_v22 = vld [vmem:[#allocation6 + $0x118] sm:$0xff]  ;;  %v7991_v35 = vcombine.low %v183_v19, %v191_v20 }
  0x8e   :  { %v8036_v46 = vcombine.high %v229_v40, %v237_v41  ;;  %v8038_v47 = vcombine.high %v230_v42, %v238_v43  ;;  %v245_v48 = vld [vmem:[#allocation6 + $0x300] sm:$0xff]  ;;  %v246_v50 = vld [vmem:[#allocation6 + $0x308] sm:$0xff]  ;;  %v8035_v52 = vcombine.low %v229_v40, %v237_v41  ;;  %v8037_v53 = vcombine.low %v230_v42, %v238_v43  ;;  %v192_v23 = vld [vmem:[#allocation6 + $0x158] sm:$0xff] }
  0x8f   :  { %1006 = vmatpush1.bf16.msra.mxu0 %v7987_v28  ;;  %1119 = vmatpush1.bf16.msra.mxu1 %v7989_v29  ;;  %v253_v49 = vld [vmem:[#allocation6 + $0x340] sm:$0xff]  ;;  %v254_v51 = vld [vmem:[#allocation6 + $0x348] sm:$0xff]  ;;  %v127_v24 = vld [vmem:[#allocation3 + $0x10] sm:$0xff]  ;;  %v7992_v28 = vcombine.high %v183_v19, %v191_v20 }
  0x90   :  { %1007 = vmatprep.subr.bf16.mxu0 %v8004_v30  ;;  %1120 = vmatprep.subr.bf16.mxu1 %v8006_v31  ;;  %v8052_v54 = vcombine.high %v245_v48, %v253_v49  ;;  %v8054_v55 = vcombine.high %v246_v50, %v254_v51  ;;  %v261_v56 = vld [vmem:[#allocation6 + $0x380] sm:$0xff]  ;;  %v262_v58 = vld [vmem:[#allocation6 + $0x388] sm:$0xff]  ;;  %v8051_v60 = vcombine.low %v245_v48, %v253_v49  ;;  %v128_v25 = vld [vmem:[#allocation3 + $0x18] sm:$0xff] }
  0x91   :  { %v269_v57 = vld [vmem:[#allocation6 + $0x3c0] sm:$0xff]  ;;  %v270_v59 = vld [vmem:[#allocation6 + $0x3c8] sm:$0xff]  ;;  %v8053_v61 = vcombine.low %v246_v50, %v254_v51  ;;  %v199_v29 = vld [vmem:[#allocation6 + $0x190] sm:$0xff]  ;;  %v7994_v31 = vcombine.high %v184_v22, %v192_v23  ;;  %v10437_v34 = vpack.c.bf16 %v128_v25, %v127_v24 }
  0x92   :  { %v8068_v62 = vcombine.high %v261_v56, %v269_v57  ;;  %v8070_v63 = vcombine.high %v262_v58, %v270_v59  ;;  %v8067_v5 = vcombine.low %v261_v56, %v269_v57  ;;  %v125_v6 = vld [vmem:[#allocation3] sm:$0xff]  ;;  %v126_v7 = vld [vmem:[#allocation3 + $0x8] sm:$0xff]  ;;  %v8069_v8 = vcombine.low %v262_v58, %v270_v59  ;;  %v207_v30 = vld [vmem:[#allocation6 + $0x1d0] sm:$0xff] }
  0x93   :  { %1008 = vmatpush1.bf16.msra.mxu0 %v8003_v36  ;;  %1121 = vmatpush1.bf16.msra.mxu1 %v8005_v37  ;;  %v10431_v11 = vpack.c.bf16 %v126_v7, %v125_v6  ;;  %v200_v32 = vld [vmem:[#allocation6 + $0x198] sm:$0xff]  ;;  %v215_v36 = vld [vmem:[#allocation6 + $0x210] sm:$0xff]  ;;  %v8008_v40 = vcombine.high %v199_v29, %v207_v30  ;;  %v130_v42 = vld [vmem:[#allocation3 + $0x28] sm:$0xff] }
  0x94   :  { %1009 = vmatprep.subr.bf16.mxu0 %v8020_v38  ;;  %1122 = vmatprep.subr.bf16.mxu1 %v8022_v39  ;;  %v208_v33 = vld [vmem:[#allocation6 + $0x1d8] sm:$0xff]  ;;  %v223_v37 = vld [vmem:[#allocation6 + $0x250] sm:$0xff]  ;;  %v129_v38 = vld [vmem:[#allocation3 + $0x20] sm:$0xff]  ;;  %v7993_v39 = vcombine.low %v184_v22, %v192_v23 }
  0x95   :  { %v8010_v41 = vcombine.high %v200_v32, %v208_v33  ;;  %v216_v43 = vld [vmem:[#allocation6 + $0x218] sm:$0xff]  ;;  %v8009_v48 = vcombine.low %v200_v32, %v208_v33  ;;  %v8024_v49 = vcombine.high %v215_v36, %v223_v37  ;;  %v255_v56 = vld [vmem:[#allocation6 + $0x350] sm:$0xff]  ;;  %v10451_v12 = vld [vmem:[#allocation6 + $0x20] sm:$0xff] }
  0x96   :  { %v232_v50 = vld [vmem:[#allocation6 + $0x298] sm:$0xff]  ;;  %v131_v57 = vld [vmem:[#allocation3 + $0x30] sm:$0xff]  ;;  %v10453_v13 = vld [vmem:[#allocation6 + $0x60] sm:$0xff] }
  0x97   :  { %1010 = vmatpush1.bf16.msra.mxu0 %v8019_v44  ;;  %1123 = vmatpush1.bf16.msra.mxu1 %v8021_v45  ;;  %v224_v44 = vld [vmem:[#allocation6 + $0x258] sm:$0xff]  ;;  %v8007_v45 = vcombine.low %v199_v29, %v207_v30  ;;  %v263_v2 = vld [vmem:[#allocation6 + $0x390] sm:$0xff]  ;;  %v154_v19 = vld [vmem:[#allocation6 + $0x28] sm:$0xff]  ;;  %v7964_v23 = vcombine.high %v10451_v12, %v10453_v13 }
  0x98   :  { %1011 = vmatprep.subr.bf16.mxu0 %v8036_v46  ;;  %1124 = vmatprep.subr.bf16.mxu1 %v8038_v47  ;;  %v231_v46 = vld [vmem:[#allocation6 + $0x290] sm:$0xff]  ;;  %v240_v51 = vld [vmem:[#allocation6 + $0x2d8] sm:$0xff]  ;;  %v8025_v58 = vcombine.low %v216_v43, %v224_v44  ;;  %v162_v20 = vld [vmem:[#allocation6 + $0x68] sm:$0xff] }
  0x99   :  { %v239_v47 = vld [vmem:[#allocation6 + $0x2d0] sm:$0xff]  ;;  %v8041_v4 = vcombine.low %v232_v50, %v240_v51  ;;  %v264_v6 = vld [vmem:[#allocation6 + $0x398] sm:$0xff]  ;;  %v7966_v25 = vcombine.high %v154_v19, %v162_v20  ;;  %v137_v29 = vld [vmem:[#allocation3 + $0x60] sm:$0xff] }
  0x9a   :  { %v8040_v59 = vcombine.high %v231_v46, %v239_v47  ;;  %v8039_v0 = vcombine.low %v231_v46, %v239_v47  ;;  %v271_v3 = vld [vmem:[#allocation6 + $0x3d0] sm:$0xff]  ;;  %v272_v7 = vld [vmem:[#allocation6 + $0x3d8] sm:$0xff]  ;;  %v138_v30 = vld [vmem:[#allocation3 + $0x68] sm:$0xff] }
  0x9b   :  { %1012 = vmatpush1.bf16.msra.mxu0 %v8035_v52  ;;  %1125 = vmatpush1.bf16.msra.mxu1 %v8037_v53  ;;  %v10443_v52 = vpack.c.bf16 %v130_v42, %v129_v38  ;;  %v8026_v53 = vcombine.high %v216_v43, %v224_v44  ;;  %v8072_v16 = vcombine.high %v263_v2, %v271_v3  ;;  %v139_v32 = vld [vmem:[#allocation3 + $0x70] sm:$0xff]  ;;  %v140_v33 = vld [vmem:[#allocation3 + $0x78] sm:$0xff]  ;;  %v170_v38 = vld [vmem:[#allocation6 + $0xa8] sm:$0xff] }
  0x9c   :  { %1013 = vmatprep.subr.bf16.mxu0 %v8052_v54  ;;  %1126 = vmatprep.subr.bf16.mxu1 %v8054_v55  ;;  %v8023_v54 = vcombine.low %v215_v36, %v223_v37  ;;  %v247_v55 = vld [vmem:[#allocation6 + $0x310] sm:$0xff]  ;;  %v8073_v22 = vcombine.low %v264_v6, %v272_v7  ;;  %v169_v36 = vld [vmem:[#allocation6 + $0xa0] sm:$0xff]  ;;  %v186_v46 = vld [vmem:[#allocation6 + $0x128] sm:$0xff] }
  0x9d   :  { %v177_v37 = vld [vmem:[#allocation6 + $0xe0] sm:$0xff]  ;;  %v194_v47 = vld [vmem:[#allocation6 + $0x168] sm:$0xff] }
  0x9e   :  { %v7980_v42 = vcombine.high %v169_v36, %v177_v37  ;;  %v185_v43 = vld [vmem:[#allocation6 + $0x120] sm:$0xff] }
  0x9f   :  { %1014 = vmatpush1.bf16.msra.mxu0 %v8051_v60  ;;  %1127 = vmatpush1.bf16.msra.mxu1 %v8053_v61  ;;  %v8042_v60 = vcombine.high %v232_v50, %v240_v51  ;;  %v132_v61 = vld [vmem:[#allocation3 + $0x38] sm:$0xff]  ;;  %v193_v44 = vld [vmem:[#allocation6 + $0x160] sm:$0xff] }
  0xa0   :  { %1015 = vmatprep.subr.bf16.mxu0 %v8068_v62  ;;  %1128 = vmatprep.subr.bf16.mxu1 %v8070_v63  ;;  %v248_v62 = vld [vmem:[#allocation6 + $0x318] sm:$0xff]  ;;  %v7996_v50 = vcombine.high %v185_v43, %v193_v44  ;;  %v201_v51 = vld [vmem:[#allocation6 + $0x1a0] sm:$0xff] }
  0xa1   :  { %v256_v63 = vld [vmem:[#allocation6 + $0x358] sm:$0xff] }
  0xa2   :  { %v8057_v15 = vcombine.low %v248_v62, %v256_v63 }
  0xa3   :  { %1016 = vmatpush1.bf16.msra.mxu0 %v8067_v5  ;;  %1129 = vmatpush1.bf16.msra.mxu1 %v8069_v8  ;;  %v8056_v5 = vcombine.high %v247_v55, %v255_v56  ;;  %v10449_v8 = vpack.c.bf16 %v132_v61, %v131_v57  ;;  %v7995_v57 = vcombine.low %v185_v43, %v193_v44  ;;  %v225_v61 = vld [vmem:[#allocation6 + $0x260] sm:$0xff] }
  0xa4   :  { %1227 = vmatprep.subr.bf16.mxu0 %v7960_v9  ;;  %1340 = vmatprep.subr.bf16.mxu1 %v7962_v10  ;;  %v8058_v9 = vcombine.high %v248_v62, %v256_v63  ;;  %v8055_v10 = vcombine.low %v247_v55, %v255_v56  ;;  %v202_v55 = vld [vmem:[#allocation6 + $0x1a8] sm:$0xff] }
  0xa5   :  { %v210_v56 = vld [vmem:[#allocation6 + $0x1e8] sm:$0xff] }
  0xa6   :  { %1034 = vmatmul.mubr.bf16.vlgmr.msra.gmra.mrb[0].mxu0 %v10431_v11  ;;  %1147 = vmatmul.mubr.bf16.vlgmr.msra.gmra.mrb[0].mxu1 %v10431_v11  ;;  %v8014_v62 = vcombine.high %v202_v55, %v210_v56  ;;  %v218_v63 = vld [vmem:[#allocation6 + $0x228] sm:$0xff] }
  0xa7   :  { %1228 = vmatpush1.bf16.msra.mxu0 %v7959_v14  ;;  %1341 = vmatpush1.bf16.msra.mxu1 %v7961_v17  ;;  %v133_v14 = vld [vmem:[#allocation3 + $0x40] sm:$0xff]  ;;  %v8074_v17 = vcombine.high %v264_v6, %v272_v7  ;;  %v234_v7 = vld [vmem:[#allocation6 + $0x2a8] sm:$0xff] }
  0xa8   :  { %1043 = vmatprep.mubr.bf16.mxu0 %v11609_v1  ;;  %1156 = vmatprep.mubr.bf16.mxu1 %v11609_v1 }
  0xa9   :  { %1229 = vmatprep.subr.bf16.mxu0 %v7976_v18  ;;  %1342 = vmatprep.subr.bf16.mxu1 %v7978_v21  ;;  %v134_v18 = vld [vmem:[#allocation3 + $0x48] sm:$0xff]  ;;  %v8071_v21 = vcombine.low %v263_v2, %v271_v3  ;;  %v233_v3 = vld [vmem:[#allocation6 + $0x2a0] sm:$0xff] }
  0xaa   :  { %v10461_v24 = vpack.c.bf16 %v134_v18, %v133_v14  ;;  %v250_v18 = vld [vmem:[#allocation6 + $0x328] sm:$0xff] }
  0xab   :  { %1230 = vmatpush1.bf16.msra.mxu0 %v7975_v26  ;;  %1343 = vmatpush1.bf16.msra.mxu1 %v7977_v27  ;;  %v135_v26 = vld [vmem:[#allocation3 + $0x50] sm:$0xff]  ;;  %v136_v27 = vld [vmem:[#allocation3 + $0x58] sm:$0xff] }
  0xac   :  { %1231 = vmatprep.subr.bf16.mxu0 %v7992_v28  ;;  %1344 = vmatprep.subr.bf16.mxu1 %v7994_v31  ;;  %v10467_v28 = vpack.c.bf16 %v136_v27, %v135_v26  ;;  %v10473_v31 = vpack.c.bf16 %v138_v30, %v137_v29  ;;  %v266_v27 = vld [vmem:[#allocation6 + $0x3a8] sm:$0xff] }
  0xad   :  { %v274_v29 = vld [vmem:[#allocation6 + $0x3e8] sm:$0xff] }
  0xae   :  { %1044 = vmatmul.mubr.bf16.gmra.mrb[4].mxu0 %v10437_v34  ;;  %1157 = vmatmul.mubr.bf16.gmra.mrb[4].mxu1 %v10437_v34 }
  0xaf   :  { %1053 = vmatprep.mubr.bf16.mxu0 %v11609_v1  ;;  %1166 = vmatprep.mubr.bf16.mxu1 %v11609_v1 }
  0xb0   :  { %1232 = vmatpush1.bf16.msra.mxu0 %v7991_v35  ;;  %1345 = vmatpush1.bf16.msra.mxu1 %v7993_v39  ;;  %v10479_v35 = vpack.c.bf16 %v140_v33, %v139_v32  ;;  %v178_v39 = vld [vmem:[#allocation6 + $0xe8] sm:$0xff] }
  0xb1   :  { %1233 = vmatprep.subr.bf16.mxu0 %v8008_v40  ;;  %1346 = vmatprep.subr.bf16.mxu1 %v8010_v41  ;;  %v7963_v40 = vcombine.low %v10451_v12, %v10453_v13  ;;  %v7965_v41 = vcombine.low %v154_v19, %v162_v20  ;;  %v258_v19 = vld [vmem:[#allocation6 + $0x368] sm:$0xff] }
  0xb2   :  { %v8062_v26 = vcombine.high %v250_v18, %v258_v19  ;;  %v8061_v32 = vcombine.low %v250_v18, %v258_v19  ;;  %v243_v18 = vld [vmem:[#allocation6 + $0x2f0] sm:$0xff]  ;;  %v236_v19 = vld [vmem:[#allocation6 + $0x2b8] sm:$0xff] }
  0xb4   :  { %1234 = vmatpush1.bf16.msra.mxu0 %v8007_v45  ;;  %1347 = vmatpush1.bf16.msra.mxu1 %v8009_v48  ;;  %v7982_v45 = vcombine.high %v170_v38, %v178_v39  ;;  %v7979_v48 = vcombine.low %v169_v36, %v177_v37  ;;  %v155_v36 = vld [vmem:[#allocation6 + $0x30] sm:$0xff] }
  0xb5   :  { %1235 = vmatprep.subr.bf16.mxu0 %v8024_v49  ;;  %1348 = vmatprep.subr.bf16.mxu1 %v8026_v53  ;;  %v7981_v49 = vcombine.low %v170_v38, %v178_v39  ;;  %v209_v53 = vld [vmem:[#allocation6 + $0x1e0] sm:$0xff]  ;;  %v163_v37 = vld [vmem:[#allocation6 + $0x70] sm:$0xff]  ;;  %v8078_v38 = vcombine.high %v266_v27, %v274_v29  ;;  %v156_v39 = vld [vmem:[#allocation6 + $0x38] sm:$0xff] }
  0xb6   :  { %1054 = vmatmul.mubr.bf16.gmra.mrb[8].mxu0 %v10443_v52  ;;  %1167 = vmatmul.mubr.bf16.gmra.mrb[8].mxu1 %v10443_v52  ;;  %v8011_v2 = vcombine.low %v201_v51, %v209_v53  ;;  %v7968_v43 = vcombine.high %v155_v36, %v163_v37 }
  0xb7   :  { %1063 = vmatprep.mubr.bf16.mxu0 %v11609_v1  ;;  %1176 = vmatprep.mubr.bf16.mxu1 %v11609_v1 }
  0xb8   :  { %1236 = vmatpush1.bf16.msra.mxu0 %v8023_v54  ;;  %1349 = vmatpush1.bf16.msra.mxu1 %v8025_v58  ;;  %v7998_v54 = vcombine.high %v186_v46, %v194_v47  ;;  %v7997_v58 = vcombine.low %v186_v46, %v194_v47  ;;  %v179_v46 = vld [vmem:[#allocation6 + $0xf0] sm:$0xff]  ;;  %v172_v47 = vld [vmem:[#allocation6 + $0xb8] sm:$0xff] }
  0xb9   :  { %1237 = vmatprep.subr.bf16.mxu0 %v8040_v59  ;;  %1350 = vmatprep.subr.bf16.mxu1 %v8042_v60  ;;  %v8012_v59 = vcombine.high %v201_v51, %v209_v53  ;;  %v217_v60 = vld [vmem:[#allocation6 + $0x220] sm:$0xff]  ;;  %v195_v51 = vld [vmem:[#allocation6 + $0x170] sm:$0xff] }
  0xba   :  { %v8028_v6 = vcombine.high %v217_v60, %v225_v61  ;;  %v8027_v12 = vcombine.low %v217_v60, %v225_v61 }
  0xbc   :  { %1238 = vmatpush1.bf16.msra.mxu0 %v8039_v0  ;;  %1351 = vmatpush1.bf16.msra.mxu1 %v8041_v4  ;;  %v226_v0 = vld [vmem:[#allocation6 + $0x268] sm:$0xff]  ;;  %v241_v4 = vld [vmem:[#allocation6 + $0x2e0] sm:$0xff] }
  0xbd   :  { %1239 = vmatprep.subr.bf16.mxu0 %v8056_v5  ;;  %1352 = vmatprep.subr.bf16.mxu1 %v8058_v9  ;;  %v8013_v5 = vcombine.low %v202_v55, %v210_v56  ;;  %v242_v9 = vld [vmem:[#allocation6 + $0x2e8] sm:$0xff]  ;;  %v8029_v13 = vcombine.low %v218_v63, %v226_v0  ;;  %v8044_v14 = vcombine.high %v233_v3, %v241_v4  ;;  %v188_v56 = vld [vmem:[#allocation6 + $0x138] sm:$0xff] }
  0xbe   :  { %1064 = vmatmul.mubr.bf16.gmra.mrb[12].mxu0 %v10449_v8  ;;  %1177 = vmatmul.mubr.bf16.gmra.mrb[12].mxu1 %v10449_v8  ;;  %v8043_v20 = vcombine.low %v233_v3, %v241_v4 }
  0xbf   :  { %1073 = vmatprep.mubr.bf16.mxu0 %v11609_v1  ;;  %1186 = vmatprep.mubr.bf16.mxu1 %v11609_v1 }
  0xc0   :  { %1240 = vmatpush1.bf16.msra.mxu0 %v8055_v10  ;;  %1353 = vmatpush1.bf16.msra.mxu1 %v8057_v15  ;;  %v8030_v10 = vcombine.high %v218_v63, %v226_v0  ;;  %v249_v15 = vld [vmem:[#allocation6 + $0x320] sm:$0xff]  ;;  %v211_v63 = vld [vmem:[#allocation6 + $0x1f0] sm:$0xff]  ;;  %v204_v0 = vld [vmem:[#allocation6 + $0x1b8] sm:$0xff] }
  0xc1   :  { %1241 = vmatprep.subr.bf16.mxu0 %v8072_v16  ;;  %1354 = vmatprep.subr.bf16.mxu1 %v8074_v17  ;;  %v257_v16 = vld [vmem:[#allocation6 + $0x360] sm:$0xff]  ;;  %v8046_v17 = vcombine.high %v234_v7, %v242_v9 }
  0xc2   :  { %v8059_v30 = vcombine.low %v249_v15, %v257_v16 }
  0xc4   :  { %1242 = vmatpush1.bf16.msra.mxu0 %v8071_v21  ;;  %1355 = vmatpush1.bf16.msra.mxu1 %v8073_v22  ;;  %v8045_v21 = vcombine.low %v234_v7, %v242_v9  ;;  %v8060_v22 = vcombine.high %v249_v15, %v257_v16  ;;  %v219_v7 = vld [vmem:[#allocation6 + $0x230] sm:$0xff] }
  0xc5   :  { %1453 = vmatprep.subr.bf16.mxu0 %v7964_v23  ;;  %1566 = vmatprep.subr.bf16.mxu1 %v7966_v25  ;;  %v265_v23 = vld [vmem:[#allocation6 + $0x3a0] sm:$0xff]  ;;  %v227_v9 = vld [vmem:[#allocation6 + $0x270] sm:$0xff] }
  0xc6   :  { %1074 = vmatmul.mubr.bf16.gmra.mrb[16].mxu0 %v10461_v24  ;;  %1187 = vmatmul.mubr.bf16.gmra.mrb[16].mxu1 %v10461_v24  ;;  %v273_v25 = vld [vmem:[#allocation6 + $0x3e0] sm:$0xff]  ;;  %v8032_v15 = vcombine.high %v219_v7, %v227_v9 }
  0xc7   :  { %1083 = vmatprep.mubr.bf16.mxu0 %v11609_v1  ;;  %1196 = vmatprep.mubr.bf16.mxu1 %v11609_v1  ;;  %v8076_v33 = vcombine.high %v265_v23, %v273_v25 }
  0xce   :  { %1084 = vmatmul.mubr.bf16.gmra.mrb[20].mxu0 %v10467_v28  ;;  %1197 = vmatmul.mubr.bf16.gmra.mrb[20].mxu1 %v10467_v28 }
  0xcf   :  { %1093 = vmatprep.mubr.bf16.mxu0 %v11609_v1  ;;  %1206 = vmatprep.mubr.bf16.mxu1 %v11609_v1 }
  0xd6   :  { %1094 = vmatmul.mubr.bf16.gmra.mrb[24].mxu0 %v10473_v31  ;;  %1207 = vmatmul.mubr.bf16.gmra.mrb[24].mxu1 %v10473_v31 }
  0xd7   :  { %1103 = vmatprep.mubr.bf16.mxu0 %v11609_v1  ;;  %1216 = vmatprep.mubr.bf16.mxu1 %v11609_v1 }
  0xde   :  { %1104 = vmatmul.mubr.bf16.gmra.mrb[28].mxu0 %v10479_v35  ;;  %1217 = vmatmul.mubr.bf16.gmra.mrb[28].mxu1 %v10479_v35 }
  0xdf   :  { %1259 = vmatprep.mubr.bf16.mxu0 %v11609_v1  ;;  %1372 = vmatprep.mubr.bf16.mxu1 %v11609_v1 }
  0xe6   :  { %1260 = vmatmul.mubr.bf16.vlgmr.msra.gmra.mrb[32].mxu0 %v10431_v11  ;;  %1373 = vmatmul.mubr.bf16.vlgmr.msra.gmra.mrb[32].mxu1 %v10431_v11 }
  0xe7   :  { %1454 = vmatpush1.bf16.msra.mxu0 %v7963_v40  ;;  %1567 = vmatpush1.bf16.msra.mxu1 %v7965_v41  ;;  %v164_v40 = vld [vmem:[#allocation6 + $0x78] sm:$0xff]  ;;  %v8075_v41 = vcombine.low %v265_v23, %v273_v25 }
  0xe8   :  { %1269 = vmatprep.mubr.bf16.mxu0 %v11609_v1  ;;  %1382 = vmatprep.mubr.bf16.mxu1 %v11609_v1  ;;  %v7970_v44 = vcombine.high %v156_v39, %v164_v40  ;;  %v7969_v53 = vcombine.low %v156_v39, %v164_v40  ;;  %v275_v39 = vld [vmem:[#allocation6 + $0x3f0] sm:$0xff]  ;;  %v268_v40 = vld [vmem:[#allocation6 + $0x3b8] sm:$0xff] }
  0xe9   :  { %1455 = vmatprep.subr.bf16.mxu0 %v7980_v42  ;;  %1568 = vmatprep.subr.bf16.mxu1 %v7982_v45  ;;  %v8077_v42 = vcombine.low %v266_v27, %v274_v29  ;;  %v171_v45 = vld [vmem:[#allocation6 + $0xb0] sm:$0xff]  ;;  %v252_v29 = vld [vmem:[#allocation6 + $0x338] sm:$0xff] }
  0xea   :  { %v259_v27 = vld [vmem:[#allocation6 + $0x370] sm:$0xff] }
  0xeb   :  { %1456 = vmatpush1.bf16.msra.mxu0 %v7979_v48  ;;  %1569 = vmatpush1.bf16.msra.mxu1 %v7981_v49  ;;  %v180_v48 = vld [vmem:[#allocation6 + $0xf8] sm:$0xff]  ;;  %v7967_v49 = vcombine.low %v155_v36, %v163_v37 }
  0xec   :  { %1457 = vmatprep.subr.bf16.mxu0 %v7996_v50  ;;  %1570 = vmatprep.subr.bf16.mxu1 %v7998_v54  ;;  %v187_v50 = vld [vmem:[#allocation6 + $0x130] sm:$0xff]  ;;  %v7984_v54 = vcombine.high %v171_v45, %v179_v46  ;;  %v7986_v55 = vcombine.high %v172_v47, %v180_v48 }
  0xed   :  { %v8000_v60 = vcombine.high %v187_v50, %v195_v51  ;;  %v7999_v3 = vcombine.low %v187_v50, %v195_v51  ;;  %v9286_v50 = vld [vmem:[#allocation9] ss:$16 sps:$4 sm:$0xff]   ;;  %v9289_v51 = vld [vmem:[#allocation9 + $0x8] ss:$16 sps:$4 sm:$0xff]  }
  0xee   :  { %1270 = vmatmul.mubr.bf16.gmra.mrb[36].mxu0 %v10437_v34  ;;  %1383 = vmatmul.mubr.bf16.gmra.mrb[36].mxu1 %v10437_v34 }
  0xef   :  { %1279 = vmatprep.mubr.bf16.mxu0 %v11609_v1  ;;  %1392 = vmatprep.mubr.bf16.mxu1 %v11609_v1 }
  0xf0   :  { %1458 = vmatpush1.bf16.msra.mxu0 %v7995_v57  ;;  %1571 = vmatpush1.bf16.msra.mxu1 %v7997_v58  ;;  %v196_v57 = vld [vmem:[#allocation6 + $0x178] sm:$0xff]  ;;  %v7983_v58 = vcombine.low %v171_v45, %v179_v46  ;;  %v9288_v46 = vld [vmem:[#allocation9 + $0x4] ss:$16 sps:$4 sm:$0xff]  }
  0xf1   :  { %1459 = vmatprep.subr.bf16.mxu0 %v8012_v59  ;;  %1572 = vmatprep.subr.bf16.mxu1 %v8014_v62  ;;  %v7985_v59 = vcombine.low %v172_v47, %v180_v48  ;;  %v8002_v61 = vcombine.high %v188_v56, %v196_v57  ;;  %v203_v62 = vld [vmem:[#allocation6 + $0x1b0] sm:$0xff]  ;;  %v8001_v4 = vcombine.low %v188_v56, %v196_v57  ;;  %v9295_v56 = vld [vmem:[#allocation9 + $0x28] ss:$16 sps:$4 sm:$0xff]  }
  0xf2   :  { %v9300_v57 = vld [vmem:[#allocation9 + $0x44] ss:$16 sps:$4 sm:$0xff]  }
  0xf4   :  { %1460 = vmatpush1.bf16.msra.mxu0 %v8011_v2  ;;  %1573 = vmatpush1.bf16.msra.mxu1 %v8013_v5  ;;  %v212_v2 = vld [vmem:[#allocation6 + $0x1f8] sm:$0xff]  ;;  %v8016_v5 = vcombine.high %v203_v62, %v211_v63 }
  0xf5   :  { %1461 = vmatprep.subr.bf16.mxu0 %v8028_v6  ;;  %1574 = vmatprep.subr.bf16.mxu1 %v8030_v10  ;;  %v8018_v6 = vcombine.high %v204_v0, %v212_v2  ;;  %v220_v10 = vld [vmem:[#allocation6 + $0x238] sm:$0xff] }
  0xf6   :  { %1280 = vmatmul.mubr.bf16.gmra.mrb[40].mxu0 %v10443_v52  ;;  %1393 = vmatmul.mubr.bf16.gmra.mrb[40].mxu1 %v10443_v52 }
  0xf7   :  { %1289 = vmatprep.mubr.bf16.mxu0 %v11609_v1  ;;  %1402 = vmatprep.mubr.bf16.mxu1 %v11609_v1 }
  0xf8   :  { %1462 = vmatpush1.bf16.msra.mxu0 %v8027_v12  ;;  %1575 = vmatpush1.bf16.msra.mxu1 %v8029_v13  ;;  %v228_v12 = vld [vmem:[#allocation6 + $0x278] sm:$0xff]  ;;  %v8015_v13 = vcombine.low %v203_v62, %v211_v63  ;;  %v9306_v62 = vld [vmem:[#allocation9 + $0x64] ss:$16 sps:$4 sm:$0xff]  }
  0xf9   :  { %1463 = vmatprep.subr.bf16.mxu0 %v8044_v14  ;;  %1576 = vmatprep.subr.bf16.mxu1 %v8046_v17  ;;  %v8017_v14 = vcombine.low %v204_v0, %v212_v2  ;;  %v8034_v16 = vcombine.high %v220_v10, %v228_v12  ;;  %v235_v17 = vld [vmem:[#allocation6 + $0x2b0] sm:$0xff]  ;;  %v9309_v63 = vld [vmem:[#allocation9 + $0x6c] ss:$16 sps:$4 sm:$0xff]   ;;  %v9307_v2 = vld [vmem:[#allocation9 + $0x68] ss:$16 sps:$4 sm:$0xff]  }
  0xfa   :  { %v8048_v23 = vcombine.high %v235_v17, %v243_v18  ;;  %v9304_v0 = vld [vmem:[#allocation9 + $0x60] ss:$16 sps:$4 sm:$0xff]  }
  0xfc   :  { %1464 = vmatpush1.bf16.msra.mxu0 %v8043_v20  ;;  %1577 = vmatpush1.bf16.msra.mxu1 %v8045_v21  ;;  %v244_v20 = vld [vmem:[#allocation6 + $0x2f8] sm:$0xff]  ;;  %v8031_v21 = vcombine.low %v219_v7, %v227_v9  ;;  %v10564_v9 = vld [vmem:[#allocation8] sm:$0xff] }
  0xfd   :  { %1465 = vmatprep.subr.bf16.mxu0 %v8060_v22  ;;  %1578 = vmatprep.subr.bf16.mxu1 %v8062_v26  ;;  %v8033_v22 = vcombine.low %v220_v10, %v228_v12  ;;  %v8050_v25 = vcombine.high %v236_v19, %v244_v20  ;;  %v251_v26 = vld [vmem:[#allocation6 + $0x330] sm:$0xff]  ;;  %v9313_v7 = vld [vmem:[#allocation9 + $0x88] ss:$16 sps:$4 sm:$0xff]  }
  0xfe   :  { %1290 = vmatmul.mubr.bf16.gmra.mrb[44].mxu0 %v10449_v8  ;;  %1403 = vmatmul.mubr.bf16.gmra.mrb[44].mxu1 %v10449_v8  ;;  %v8064_v36 = vcombine.high %v251_v26, %v259_v27 }
  0xff   :  { %1299 = vmatprep.mubr.bf16.mxu0 %v11609_v1  ;;  %1412 = vmatprep.mubr.bf16.mxu1 %v11609_v1 }
 0x100   :  { %1466 = vmatpush1.bf16.msra.mxu0 %v8059_v30  ;;  %1579 = vmatpush1.bf16.msra.mxu1 %v8061_v32  ;;  %v260_v30 = vld [vmem:[#allocation6 + $0x378] sm:$0xff]  ;;  %v8047_v32 = vcombine.low %v235_v17, %v243_v18  ;;  %v9316_v18 = vld [vmem:[#allocation9 + $0xa0] ss:$16 sps:$4 sm:$0xff]  }
 0x101   :  { %1467 = vmatprep.subr.bf16.mxu0 %v8076_v33  ;;  %1580 = vmatprep.subr.bf16.mxu1 %v8078_v38  ;;  %v8049_v33 = vcombine.low %v236_v19, %v244_v20  ;;  %v8066_v37 = vcombine.high %v252_v29, %v260_v30  ;;  %v267_v38 = vld [vmem:[#allocation6 + $0x3b0] sm:$0xff]  ;;  %v9319_v19 = vld [vmem:[#allocation9 + $0xa8] ss:$16 sps:$4 sm:$0xff]  }
 0x102   :  { %v8079_v47 = vcombine.low %v267_v38, %v275_v39 }
 0x104   :  { %1468 = vmatpush1.bf16.msra.mxu0 %v8075_v41  ;;  %1581 = vmatpush1.bf16.msra.mxu1 %v8077_v42  ;;  %v276_v41 = vld [vmem:[#allocation6 + $0x3f8] sm:$0xff]  ;;  %v8063_v42 = vcombine.low %v251_v26, %v259_v27  ;;  %v9322_v27 = vld [vmem:[#allocation9 + $0xc0] ss:$16 sps:$4 sm:$0xff]  }
 0x105   :  { %1679 = vmatprep.subr.bf16.mxu0 %v7968_v43  ;;  %1792 = vmatprep.subr.bf16.mxu1 %v7970_v44  ;;  %v8065_v43 = vcombine.low %v252_v29, %v260_v30  ;;  %v8080_v44 = vcombine.high %v267_v38, %v275_v39  ;;  %v8082_v45 = vcombine.high %v268_v40, %v276_v41 }
 0x106   :  { %1300 = vmatmul.mubr.bf16.gmra.mrb[48].mxu0 %v10461_v24  ;;  %1413 = vmatmul.mubr.bf16.gmra.mrb[48].mxu1 %v10461_v24  ;;  %v8081_v48 = vcombine.low %v268_v40, %v276_v41 }
 0x107   :  { %1309 = vmatprep.mubr.bf16.mxu0 %v11609_v1  ;;  %1422 = vmatprep.mubr.bf16.mxu1 %v11609_v1 }
 0x10e   :  { %1310 = vmatmul.mubr.bf16.gmra.mrb[52].mxu0 %v10467_v28  ;;  %1423 = vmatmul.mubr.bf16.gmra.mrb[52].mxu1 %v10467_v28 }
 0x10f   :  { %1319 = vmatprep.mubr.bf16.mxu0 %v11609_v1  ;;  %1432 = vmatprep.mubr.bf16.mxu1 %v11609_v1 }
 0x116   :  { %1320 = vmatmul.mubr.bf16.gmra.mrb[56].mxu0 %v10473_v31  ;;  %1433 = vmatmul.mubr.bf16.gmra.mrb[56].mxu1 %v10473_v31 }
 0x117   :  { %1329 = vmatprep.mubr.bf16.mxu0 %v11609_v1  ;;  %1442 = vmatprep.mubr.bf16.mxu1 %v11609_v1 }
 0x11e   :  { %1330 = vmatmul.mubr.bf16.gmra.mrb[60].mxu0 %v10479_v35  ;;  %1443 = vmatmul.mubr.bf16.gmra.mrb[60].mxu1 %v10479_v35 }
 0x11f   :  { %1485 = vmatprep.mubr.bf16.mxu0 %v11609_v1  ;;  %1598 = vmatprep.mubr.bf16.mxu1 %v11609_v1 }
 0x126   :  { %1486 = vmatmul.mubr.bf16.vlgmr.msra.gmra.mrb[64].mxu0 %v10431_v11  ;;  %1599 = vmatmul.mubr.bf16.vlgmr.msra.gmra.mrb[64].mxu1 %v10431_v11 }
 0x127   :  { %1680 = vmatpush1.bf16.msra.mxu0 %v7967_v49  ;;  %1793 = vmatpush1.bf16.msra.mxu1 %v7969_v53  ;;  %v9291_v49 = vld [vmem:[#allocation9 + $0xc] ss:$16 sps:$4 sm:$0xff]   ;;  %v9294_v53 = vld [vmem:[#allocation9 + $0x24] ss:$16 sps:$4 sm:$0xff]  }
 0x128   :  { %1495 = vmatprep.mubr.bf16.mxu0 %v11609_v1  ;;  %1608 = vmatprep.mubr.bf16.mxu1 %v11609_v1 }
 0x129   :  { %1681 = vmatprep.subr.bf16.mxu0 %v7984_v54  ;;  %1794 = vmatprep.subr.bf16.mxu1 %v7986_v55  ;;  %v9297_v54 = vld [vmem:[#allocation9 + $0x2c] ss:$16 sps:$4 sm:$0xff]   ;;  %v9292_v55 = vld [vmem:[#allocation9 + $0x20] ss:$16 sps:$4 sm:$0xff]  }
 0x12b   :  { %1682 = vmatpush1.bf16.msra.mxu0 %v7983_v58  ;;  %1795 = vmatpush1.bf16.msra.mxu1 %v7985_v59  ;;  %v9303_v58 = vld [vmem:[#allocation9 + $0x4c] ss:$16 sps:$4 sm:$0xff]   ;;  %v281_v59 = vlaneseq }
 0x12c   :  { %1683 = vmatprep.subr.bf16.mxu0 %v8000_v60  ;;  %1796 = vmatprep.subr.bf16.mxu1 %v8002_v61  ;;  %v9298_v60 = vld [vmem:[#allocation9 + $0x40] ss:$16 sps:$4 sm:$0xff]   ;;  %v9301_v61 = vld [vmem:[#allocation9 + $0x48] ss:$16 sps:$4 sm:$0xff]  }
 0x12e   :  { %1496 = vmatmul.mubr.bf16.gmra.mrb[68].mxu0 %v10437_v34  ;;  %1609 = vmatmul.mubr.bf16.gmra.mrb[68].mxu1 %v10437_v34 }
 0x12f   :  { %1505 = vmatprep.mubr.bf16.mxu0 %v11609_v1  ;;  %1618 = vmatprep.mubr.bf16.mxu1 %v11609_v1 }
 0x130   :  { %1684 = vmatpush1.bf16.msra.mxu0 %v7999_v3  ;;  %1797 = vmatpush1.bf16.msra.mxu1 %v8001_v4  ;;  %v9312_v3 = vld [vmem:[#allocation9 + $0x84] ss:$16 sps:$4 sm:$0xff]   ;;  %v9315_v4 = vld [vmem:[#allocation9 + $0x8c] ss:$16 sps:$4 sm:$0xff]  }
 0x131   :  { %1685 = vmatprep.subr.bf16.mxu0 %v8016_v5  ;;  %1798 = vmatprep.subr.bf16.mxu1 %v8018_v6  ;;  %v9310_v5 = vld [vmem:[#allocation9 + $0x80] ss:$16 sps:$4 sm:$0xff]  }
 0x134   :  { %1686 = vmatpush1.bf16.msra.mxu0 %v8015_v13  ;;  %1799 = vmatpush1.bf16.msra.mxu1 %v8017_v14  ;;  %v9318_v13 = vld [vmem:[#allocation9 + $0xa4] ss:$16 sps:$4 sm:$0xff]   ;;  %v9321_v14 = vld [vmem:[#allocation9 + $0xac] ss:$16 sps:$4 sm:$0xff]  }
 0x135   :  { %1687 = vmatprep.subr.bf16.mxu0 %v8032_v15  ;;  %1800 = vmatprep.subr.bf16.mxu1 %v8034_v16 }
 0x136   :  { %1506 = vmatmul.mubr.bf16.gmra.mrb[72].mxu0 %v10443_v52  ;;  %1619 = vmatmul.mubr.bf16.gmra.mrb[72].mxu1 %v10443_v52 }
 0x137   :  { %1515 = vmatprep.mubr.bf16.mxu0 %v11609_v1  ;;  %1628 = vmatprep.mubr.bf16.mxu1 %v11609_v1 }
 0x138   :  { %1688 = vmatpush1.bf16.msra.mxu0 %v8031_v21  ;;  %1801 = vmatpush1.bf16.msra.mxu1 %v8033_v22  ;;  %v9324_v21 = vld [vmem:[#allocation9 + $0xc4] ss:$16 sps:$4 sm:$0xff]   ;;  %v9327_v22 = vld [vmem:[#allocation9 + $0xcc] ss:$16 sps:$4 sm:$0xff]  }
 0x139   :  { %1689 = vmatprep.subr.bf16.mxu0 %v8048_v23  ;;  %1802 = vmatprep.subr.bf16.mxu1 %v8050_v25 }
 0x13c   :  { %1690 = vmatpush1.bf16.msra.mxu0 %v8047_v32  ;;  %1803 = vmatpush1.bf16.msra.mxu1 %v8049_v33 }
 0x13d   :  { %1691 = vmatprep.subr.bf16.mxu0 %v8064_v36  ;;  %1804 = vmatprep.subr.bf16.mxu1 %v8066_v37  ;;  %v9325_v36 = vld [vmem:[#allocation9 + $0xc8] ss:$16 sps:$4 sm:$0xff]   ;;  %v9330_v37 = vld [vmem:[#allocation9 + $0xe4] ss:$16 sps:$4 sm:$0xff]  }
 0x13e   :  { %1516 = vmatmul.mubr.bf16.gmra.mrb[76].mxu0 %v10449_v8  ;;  %1629 = vmatmul.mubr.bf16.gmra.mrb[76].mxu1 %v10449_v8 }
 0x13f   :  { %1525 = vmatprep.mubr.bf16.mxu0 %v11609_v1  ;;  %1638 = vmatprep.mubr.bf16.mxu1 %v11609_v1 }
 0x140   :  { %1692 = vmatpush1.bf16.msra.mxu0 %v8063_v42  ;;  %1805 = vmatpush1.bf16.msra.mxu1 %v8065_v43  ;;  %v9333_v42 = vld [vmem:[#allocation9 + $0xec] ss:$16 sps:$4 sm:$0xff]  }
 0x141   :  { %1693 = vmatprep.subr.bf16.mxu0 %v8080_v44  ;;  %1806 = vmatprep.subr.bf16.mxu1 %v8082_v45 }
 0x144   :  { %1694 = vmatpush1.bf16.msra.mxu0 %v8079_v47  ;;  %1807 = vmatpush1.bf16.msra.mxu1 %v8081_v48  ;;  %v9328_v47 = vld [vmem:[#allocation9 + $0xe0] ss:$16 sps:$4 sm:$0xff]  }
 0x145   :  { %5383 = vmatprep.subr.bf16.mxu0 %v9288_v46  ;;  %6287 = vmatprep.subr.bf16.mxu1 %v9291_v49 }
 0x146   :  { %1526 = vmatmul.mubr.bf16.gmra.mrb[80].mxu0 %v10461_v24  ;;  %1639 = vmatmul.mubr.bf16.gmra.mrb[80].mxu1 %v10461_v24 }
 0x147   :  { %1535 = vmatprep.mubr.bf16.mxu0 %v11609_v1  ;;  %1648 = vmatprep.mubr.bf16.mxu1 %v11609_v1 }
 0x14e   :  { %1536 = vmatmul.mubr.bf16.gmra.mrb[84].mxu0 %v10467_v28  ;;  %1649 = vmatmul.mubr.bf16.gmra.mrb[84].mxu1 %v10467_v28 }
 0x14f   :  { %1545 = vmatprep.mubr.bf16.mxu0 %v11609_v1  ;;  %1658 = vmatprep.mubr.bf16.mxu1 %v11609_v1 }
 0x156   :  { %1546 = vmatmul.mubr.bf16.gmra.mrb[88].mxu0 %v10473_v31  ;;  %1659 = vmatmul.mubr.bf16.gmra.mrb[88].mxu1 %v10473_v31 }
 0x157   :  { %1555 = vmatprep.mubr.bf16.mxu0 %v11609_v1  ;;  %1668 = vmatprep.mubr.bf16.mxu1 %v11609_v1 }
 0x15e   :  { %1556 = vmatmul.mubr.bf16.gmra.mrb[92].mxu0 %v10479_v35  ;;  %1669 = vmatmul.mubr.bf16.gmra.mrb[92].mxu1 %v10479_v35 }
 0x15f   :  { %1711 = vmatprep.mubr.bf16.mxu0 %v11609_v1  ;;  %1824 = vmatprep.mubr.bf16.mxu1 %v11609_v1 }
 0x166   :  { %1712 = vmatmul.mubr.bf16.vlgmr.msra.gmra.mrb[96].mxu0 %v10431_v11  ;;  %1825 = vmatmul.mubr.bf16.vlgmr.msra.gmra.mrb[96].mxu1 %v10431_v11  ;;  %v10556_v11 = vshrl.u32 %v281_v59, 7  ;;  %v9336_v59 = vld [vmem:[#allocation9 + $0x104] ss:$16 sps:$4 sm:$0xff]  }
 0x167   :  { %5384 = vmatpush1.bf16.msra.mxu0 %v9286_v50  ;;  %6288 = vmatpush1.bf16.msra.mxu1 %v9289_v51 }
 0x168   :  { %5385 = vmatprep.subr.bf16.mxu0 %v9294_v53  ;;  %6289 = vmatprep.subr.bf16.mxu1 %v9297_v54  ;;  %v10562_v6 = vsub.s32 0, %v10556_v11  ;;  %v10570_v10 = vsub.s32 1, %v10556_v11  ;;  %v10573_v12 = vsub.s32 3, %v10556_v11 }
 0x169   :  { %1721 = vmatprep.mubr.bf16.mxu0 %v11609_v1  ;;  %1834 = vmatprep.mubr.bf16.mxu1 %v11609_v1 }
 0x16a   :  { %11655 = vst [vmem:[#allocation21_spill] sm:$0xff] %v10562_v6  ;;  %11657 = vst [vmem:[#allocation23_spill] sm:$0xff] %v10570_v10  ;;  %v10578_v15 = vrot.slane %v10564_v9, %v10562_v6  ;;  %v10587_v17 = vrot.slane %v10564_v9, %v10570_v10  ;;  %v10591_v20 = vrot.slane %v10564_v9, %v10573_v12 }
 0x16b   :  { %5386 = vmatpush1.bf16.msra.mxu0 %v9292_v55  ;;  %6290 = vmatpush1.bf16.msra.mxu1 %v9295_v56  ;;  %11658 = vst [vmem:[#allocation24_spill] sm:$0xff] %v10573_v12  ;;  %v9331_v56 = vld [vmem:[#allocation9 + $0xe8] ss:$16 sps:$4 sm:$0xff]  }
 0x16c   :  { %5387 = vmatprep.subr.bf16.mxu0 %v9300_v57  ;;  %6291 = vmatprep.subr.bf16.mxu1 %v9303_v58 }
 0x16e   :  { %1722 = vmatmul.mubr.bf16.gmra.mrb[100].mxu0 %v10437_v34  ;;  %1835 = vmatmul.mubr.bf16.gmra.mrb[100].mxu1 %v10437_v34  ;;  %v10567_v34 = vsub.s32 2, %v10556_v11 }
 0x16f   :  { %5388 = vmatpush1.bf16.msra.mxu0 %v9298_v60  ;;  %6292 = vmatpush1.bf16.msra.mxu1 %v9301_v61  ;;  %v9339_v60 = vld [vmem:[#allocation9 + $0x10c] ss:$16 sps:$4 sm:$0xff]  }
 0x170   :  { %5389 = vmatprep.subr.bf16.mxu0 %v9306_v62  ;;  %6293 = vmatprep.subr.bf16.mxu1 %v9309_v63  ;;  %11656 = vst [vmem:[#allocation22_spill] sm:$0xff] %v10567_v34  ;;  %v10583_v16 = vrot.slane %v10564_v9, %v10567_v34 }
 0x171   :  { %1731 = vmatprep.mubr.bf16.mxu0 %v11609_v1  ;;  %1844 = vmatprep.mubr.bf16.mxu1 %v11609_v1 }
 0x173   :  { %5390 = vmatpush1.bf16.msra.mxu0 %v9304_v0  ;;  %6294 = vmatpush1.bf16.msra.mxu1 %v9307_v2  ;;  %v9334_v0 = vld [vmem:[#allocation9 + $0x100] ss:$16 sps:$4 sm:$0xff]  }
 0x174   :  { %5391 = vmatprep.subr.bf16.mxu0 %v9312_v3  ;;  %6295 = vmatprep.subr.bf16.mxu1 %v9315_v4 }
 0x176   :  { %1732 = vmatmul.mubr.bf16.gmra.mrb[104].mxu0 %v10443_v52  ;;  %1845 = vmatmul.mubr.bf16.gmra.mrb[104].mxu1 %v10443_v52 }
 0x177   :  { %5392 = vmatpush1.bf16.msra.mxu0 %v9310_v5  ;;  %6296 = vmatpush1.bf16.msra.mxu1 %v9313_v7 }
 0x178   :  { %5393 = vmatprep.subr.bf16.mxu0 %v9318_v13  ;;  %6297 = vmatprep.subr.bf16.mxu1 %v9321_v14 }
 0x179   :  { %v1035_v52 = vpop.f32.mrb[0].mxu0  ;;  %1741 = vmatprep.mubr.bf16.mxu0 %v11609_v1  ;;  %v1148_v25 = vpop.f32.mrb[0].mxu1  ;;  %1854 = vmatprep.mubr.bf16.mxu1 %v11609_v1 }
 0x17a   :  { %v1036_v23 = vadd.f32 %v1035_v52, %v10578_v15  ;;  %v1037_v26 = vpop.f32.mrb[1].mxu0  ;;  %v1149_v29 = vadd.f32 %v1148_v25, %v10583_v16  ;;  %v1150_v32 = vpop.f32.mrb[1].mxu1  ;;  %v9345_v25 = vld [vmem:[#allocation9 + $0x12c] ss:$16 sps:$4 sm:$0xff]  }
 0x17b   :  { %v1038_v30 = vadd.f32 %v1037_v26, %v10587_v17  ;;  %v1039_v33 = vpop.f32.mrb[2].mxu0  ;;  %5394 = vmatpush1.bf16.msra.mxu0 %v9316_v18  ;;  %v1151_v38 = vadd.f32 %v1150_v32, %v10591_v20  ;;  %v1152_v40 = vpop.f32.mrb[2].mxu1  ;;  %6298 = vmatpush1.bf16.msra.mxu1 %v9319_v19  ;;  %v9337_v18 = vld [vmem:[#allocation9 + $0x108] ss:$16 sps:$4 sm:$0xff]   ;;  %v9342_v19 = vld [vmem:[#allocation9 + $0x124] ss:$16 sps:$4 sm:$0xff]  }
 0x17c   :  { %v1040_v39 = vadd.f32 %v1039_v33, %v10578_v15  ;;  %v1041_v41 = vpop.f32.mrb[3].mxu0  ;;  %5395 = vmatprep.subr.bf16.mxu0 %v9324_v21  ;;  %v1907_v43 = vmax.f32 %v1149_v29, 0.0  ;;  %v1153_v44 = vadd.f32 %v1152_v40, %v10583_v16  ;;  %v1154_v46 = vpop.f32.mrb[3].mxu1  ;;  %6299 = vmatprep.subr.bf16.mxu1 %v9327_v22  ;;  %v1905_v48 = vmax.f32 %v1036_v23, 0.0  ;;  %v9340_v32 = vld [vmem:[#allocation9 + $0x120] ss:$16 sps:$4 sm:$0xff]  }
 0x17d   :  { %v1042_v45 = vadd.f32 %v1041_v41, %v10587_v17  ;;  %v1908_v49 = vmax.f32 %v1151_v38, 0.0  ;;  %v1155_v51 = vadd.f32 %v1154_v46, %v10591_v20  ;;  %v1906_v53 = vmax.f32 %v1038_v30, 0.0  ;;  %v9351_v46 = vld [vmem:[#allocation9 + $0x14c] ss:$16 sps:$4 sm:$0xff]  }
 0x17e   :  { %v1921_v50 = vmax.f32 %v1040_v39, 0.0  ;;  %1742 = vmatmul.mubr.bf16.gmra.mrb[108].mxu0 %v10449_v8  ;;  %v1923_v54 = vmax.f32 %v1153_v44, 0.0  ;;  %1855 = vmatmul.mubr.bf16.gmra.mrb[108].mxu1 %v10449_v8 }
 0x17f   :  { %v1922_v55 = vmax.f32 %v1042_v45, 0.0  ;;  %5396 = vmatpush1.bf16.msra.mxu0 %v9322_v27  ;;  %v1924_v58 = vmax.f32 %v1155_v51, 0.0  ;;  %6300 = vmatpush1.bf16.msra.mxu1 %v9325_v36  ;;  %v9348_v45 = vld [vmem:[#allocation9 + $0x144] ss:$16 sps:$4 sm:$0xff]  }
 0x180   :  { %v10605_v57 = vpack.c.bf16 %v1921_v50, %v1905_v48  ;;  %5397 = vmatprep.subr.bf16.mxu0 %v9330_v37  ;;  %v10607_v61 = vpack.c.bf16 %v1923_v54, %v1907_v43  ;;  %6301 = vmatprep.subr.bf16.mxu1 %v9333_v42  ;;  %v9343_v42 = vld [vmem:[#allocation9 + $0x128] ss:$16 sps:$4 sm:$0xff]   ;;  %v9346_v50 = vld [vmem:[#allocation9 + $0x140] ss:$16 sps:$4 sm:$0xff]  }
 0x181   :  { %v10609_v62 = vpack.c.bf16 %v1922_v55, %v1906_v53  ;;  %v1045_v63 = vpop.f32.mrb[4].mxu0  ;;  %1751 = vmatprep.mubr.bf16.mxu0 %v11609_v1  ;;  %v10612_v2 = vpack.c.bf16 %v1924_v58, %v1908_v49  ;;  %v1158_v3 = vpop.f32.mrb[4].mxu1  ;;  %1864 = vmatprep.mubr.bf16.mxu1 %v11609_v1 }
 0x182   :  { %v1046_v8 = vadd.f32 %v1045_v63, %v10578_v15  ;;  %v1047_v4 = vpop.f32.mrb[5].mxu0  ;;  %v1159_v5 = vadd.f32 %v1158_v3, %v10583_v16  ;;  %v1160_v13 = vpop.f32.mrb[5].mxu1  ;;  %v9354_v63 = vld [vmem:[#allocation9 + $0x164] ss:$16 sps:$4 sm:$0xff]  }
 0x183   :  { %v1048_v7 = vadd.f32 %v1047_v4, %v10587_v17  ;;  %v1049_v14 = vpop.f32.mrb[6].mxu0  ;;  %5398 = vmatpush1.bf16.msra.mxu0 %v9328_v47  ;;  %v1161_v21 = vadd.f32 %v1160_v13, %v10591_v20  ;;  %v1162_v52 = vpop.f32.mrb[6].mxu1  ;;  %6302 = vmatpush1.bf16.msra.mxu1 %v9331_v56 }
 0x184   :  { %v1050_v22 = vadd.f32 %v1049_v14, %v10578_v15  ;;  %v1051_v23 = vpop.f32.mrb[7].mxu0  ;;  %5399 = vmatprep.subr.bf16.mxu0 %v9336_v59  ;;  %v1939_v26 = vmax.f32 %v1159_v5, 0.0  ;;  %v1163_v27 = vadd.f32 %v1162_v52, %v10583_v16  ;;  %v1164_v30 = vpop.f32.mrb[7].mxu1  ;;  %6303 = vmatprep.subr.bf16.mxu1 %v9339_v60  ;;  %v1937_v33 = vmax.f32 %v1046_v8, 0.0  ;;  %v9349_v60 = vld [vmem:[#allocation9 + $0x148] ss:$16 sps:$4 sm:$0xff]  }
 0x185   :  { %v1052_v29 = vadd.f32 %v1051_v23, %v10587_v17  ;;  %v1940_v36 = vmax.f32 %v1161_v21, 0.0  ;;  %v1165_v38 = vadd.f32 %v1164_v30, %v10591_v20  ;;  %v1938_v39 = vmax.f32 %v1048_v7, 0.0  ;;  %v9357_v5 = vld [vmem:[#allocation9 + $0x16c] ss:$16 sps:$4 sm:$0xff]  }
 0x186   :  { %v1953_v37 = vmax.f32 %v1050_v22, 0.0  ;;  %1752 = vmatmul.mubr.bf16.gmra.mrb[112].mxu0 %v10461_v24  ;;  %v1955_v40 = vmax.f32 %v1163_v27, 0.0  ;;  %1865 = vmatmul.mubr.bf16.gmra.mrb[112].mxu1 %v10461_v24 }
 0x187   :  { %v1954_v41 = vmax.f32 %v1052_v29, 0.0  ;;  %5400 = vmatpush1.bf16.msra.mxu0 %v9334_v0  ;;  %v1956_v44 = vmax.f32 %v1165_v38, 0.0  ;;  %6304 = vmatpush1.bf16.msra.mxu1 %v9337_v18  ;;  %v9355_v29 = vld [vmem:[#allocation9 + $0x168] ss:$16 sps:$4 sm:$0xff]  }
 0x188   :  { %v10625_v43 = vpack.c.bf16 %v1953_v37, %v1937_v33  ;;  %5401 = vmatprep.subr.bf16.mxu0 %v9342_v19  ;;  %v10627_v47 = vpack.c.bf16 %v1955_v40, %v1939_v26  ;;  %6305 = vmatprep.subr.bf16.mxu1 %v9345_v25  ;;  %v9352_v19 = vld [vmem:[#allocation9 + $0x160] ss:$16 sps:$4 sm:$0xff]   ;;  %v9360_v33 = vld [vmem:[#allocation9 + $0x184] ss:$16 sps:$4 sm:$0xff]  }
 0x189   :  { %v10629_v48 = vpack.c.bf16 %v1954_v41, %v1938_v39  ;;  %v1055_v49 = vpop.f32.mrb[8].mxu0  ;;  %1761 = vmatprep.mubr.bf16.mxu0 %v11609_v1  ;;  %v10632_v51 = vpack.c.bf16 %v1956_v44, %v1940_v36  ;;  %v1168_v53 = vpop.f32.mrb[8].mxu1  ;;  %1874 = vmatprep.mubr.bf16.mxu1 %v11609_v1  ;;  %v9363_v36 = vld [vmem:[#allocation9 + $0x18c] ss:$16 sps:$4 sm:$0xff]   ;;  %v9358_v40 = vld [vmem:[#allocation9 + $0x180] ss:$16 sps:$4 sm:$0xff]  }
 0x18a   :  { %v1056_v24 = vadd.f32 %v1055_v49, %v10578_v15  ;;  %v1057_v54 = vpop.f32.mrb[9].mxu0  ;;  %v1169_v55 = vadd.f32 %v1168_v53, %v10583_v16  ;;  %v1170_v58 = vpop.f32.mrb[9].mxu1  ;;  %v9366_v53 = vld [vmem:[#allocation9 + $0x1a4] ss:$16 sps:$4 sm:$0xff]  }
 0x18b   :  { %v1058_v56 = vadd.f32 %v1057_v54, %v10587_v17  ;;  %v1059_v59 = vpop.f32.mrb[10].mxu0  ;;  %5402 = vmatpush1.bf16.msra.mxu0 %v9340_v32  ;;  %v1171_v0 = vadd.f32 %v1170_v58, %v10591_v20  ;;  %v1172_v3 = vpop.f32.mrb[10].mxu1  ;;  %6306 = vmatpush1.bf16.msra.mxu1 %v9343_v42 }
 0x18c   :  { %v1060_v8 = vadd.f32 %v1059_v59, %v10578_v15  ;;  %v1061_v4 = vpop.f32.mrb[11].mxu0  ;;  %5403 = vmatprep.subr.bf16.mxu0 %v9348_v45  ;;  %v1971_v7 = vmax.f32 %v1169_v55, 0.0  ;;  %v1173_v13 = vadd.f32 %v1172_v3, %v10583_v16  ;;  %v1174_v18 = vpop.f32.mrb[11].mxu1  ;;  %6307 = vmatprep.subr.bf16.mxu1 %v9351_v46  ;;  %v1969_v21 = vmax.f32 %v1056_v24, 0.0  ;;  %v9361_v24 = vld [vmem:[#allocation9 + $0x188] ss:$16 sps:$4 sm:$0xff]  }
 0x18d   :  { %v1062_v14 = vadd.f32 %v1061_v4, %v10587_v17  ;;  %v1972_v22 = vmax.f32 %v1171_v0, 0.0  ;;  %v1175_v23 = vadd.f32 %v1174_v18, %v10591_v20  ;;  %v1970_v25 = vmax.f32 %v1058_v56, 0.0  ;;  %v9369_v59 = vld [vmem:[#allocation9 + $0x1ac] ss:$16 sps:$4 sm:$0xff]   ;;  %v9364_v3 = vld [vmem:[#allocation9 + $0x1a0] ss:$16 sps:$4 sm:$0xff]  }
 0x18e   :  { %v1985_v52 = vmax.f32 %v1060_v8, 0.0  ;;  %1762 = vmatmul.mubr.bf16.gmra.mrb[116].mxu0 %v10467_v28  ;;  %v1987_v26 = vmax.f32 %v1173_v13, 0.0  ;;  %1875 = vmatmul.mubr.bf16.gmra.mrb[116].mxu1 %v10467_v28 }
 0x18f   :  { %v1986_v27 = vmax.f32 %v1062_v14, 0.0  ;;  %5404 = vmatpush1.bf16.msra.mxu0 %v9346_v50  ;;  %v1988_v32 = vmax.f32 %v1175_v23, 0.0  ;;  %6308 = vmatpush1.bf16.msra.mxu1 %v9349_v60  ;;  %v9372_v23 = vld [vmem:[#allocation9 + $0x1c4] ss:$16 sps:$4 sm:$0xff]  }
 0x190   :  { %v10645_v30 = vpack.c.bf16 %v1985_v52, %v1969_v21  ;;  %5405 = vmatprep.subr.bf16.mxu0 %v9354_v63  ;;  %v10647_v37 = vpack.c.bf16 %v1987_v26, %v1971_v7  ;;  %6309 = vmatprep.subr.bf16.mxu1 %v9357_v5  ;;  %v9367_v21 = vld [vmem:[#allocation9 + $0x1a8] ss:$16 sps:$4 sm:$0xff]  }
 0x191   :  { %v10649_v38 = vpack.c.bf16 %v1986_v27, %v1970_v25  ;;  %v1065_v39 = vpop.f32.mrb[12].mxu0  ;;  %1771 = vmatprep.mubr.bf16.mxu0 %v11609_v1  ;;  %v10652_v41 = vpack.c.bf16 %v1988_v32, %v1972_v22  ;;  %v1178_v42 = vpop.f32.mrb[12].mxu1  ;;  %1884 = vmatprep.mubr.bf16.mxu1 %v11609_v1  ;;  %v9375_v25 = vld [vmem:[#allocation9 + $0x1cc] ss:$16 sps:$4 sm:$0xff]   ;;  %v9370_v32 = vld [vmem:[#allocation9 + $0x1c0] ss:$16 sps:$4 sm:$0xff]  }
 0x192   :  { %v1066_v28 = vadd.f32 %v1065_v39, %v10578_v15  ;;  %v1067_v44 = vpop.f32.mrb[13].mxu0  ;;  %v1179_v45 = vadd.f32 %v1178_v42, %v10583_v16  ;;  %v1180_v49 = vpop.f32.mrb[13].mxu1 }
 0x193   :  { %v1068_v46 = vadd.f32 %v1067_v44, %v10587_v17  ;;  %v1069_v50 = vpop.f32.mrb[14].mxu0  ;;  %5406 = vmatpush1.bf16.msra.mxu0 %v9352_v19  ;;  %v1181_v54 = vadd.f32 %v1180_v49, %v10591_v20  ;;  %v1182_v56 = vpop.f32.mrb[14].mxu1  ;;  %6310 = vmatpush1.bf16.msra.mxu1 %v9355_v29 }
 0x194   :  { %v1070_v55 = vadd.f32 %v1069_v50, %v10578_v15  ;;  %v1071_v58 = vpop.f32.mrb[15].mxu0  ;;  %5407 = vmatprep.subr.bf16.mxu0 %v9360_v33  ;;  %v2003_v60 = vmax.f32 %v1179_v45, 0.0  ;;  %v1183_v63 = vadd.f32 %v1182_v56, %v10583_v16  ;;  %v1184_v8 = vpop.f32.mrb[15].mxu1  ;;  %6311 = vmatprep.subr.bf16.mxu1 %v9363_v36  ;;  %v2001_v4 = vmax.f32 %v1066_v28, 0.0  ;;  %v9373_v45 = vld [vmem:[#allocation9 + $0x1c8] ss:$16 sps:$4 sm:$0xff]  }
 0x195   :  { %v1072_v0 = vadd.f32 %v1071_v58, %v10587_v17  ;;  %v2004_v5 = vmax.f32 %v1181_v54, 0.0  ;;  %v1185_v13 = vadd.f32 %v1184_v8, %v10591_v20  ;;  %v2002_v14 = vmax.f32 %v1068_v46, 0.0  ;;  %v9378_v46 = vld [vmem:[#allocation9 + $0x1e4] ss:$16 sps:$4 sm:$0xff]   ;;  %v9381_v54 = vld [vmem:[#allocation9 + $0x1ec] ss:$16 sps:$4 sm:$0xff]  }
 0x196   :  { %v2017_v7 = vmax.f32 %v1070_v55, 0.0  ;;  %1772 = vmatmul.mubr.bf16.gmra.mrb[120].mxu0 %v10473_v31  ;;  %v2019_v18 = vmax.f32 %v1183_v63, 0.0  ;;  %1885 = vmatmul.mubr.bf16.gmra.mrb[120].mxu1 %v10473_v31 }
 0x197   :  { %v2018_v19 = vmax.f32 %v1072_v0, 0.0  ;;  %5408 = vmatpush1.bf16.msra.mxu0 %v9358_v40  ;;  %v2020_v52 = vmax.f32 %v1185_v13, 0.0  ;;  %6312 = vmatpush1.bf16.msra.mxu1 %v9361_v24  ;;  %v9379_v13 = vld [vmem:[#allocation9 + $0x1e8] ss:$16 sps:$4 sm:$0xff]  }
 0x198   :  { %v10665_v22 = vpack.c.bf16 %v2017_v7, %v2001_v4  ;;  %5409 = vmatprep.subr.bf16.mxu0 %v9366_v53  ;;  %v10667_v26 = vpack.c.bf16 %v2019_v18, %v2003_v60  ;;  %6313 = vmatprep.subr.bf16.mxu1 %v9369_v59  ;;  %v9376_v60 = vld [vmem:[#allocation9 + $0x1e0] ss:$16 sps:$4 sm:$0xff]  }
 0x199   :  { %v10669_v27 = vpack.c.bf16 %v2018_v19, %v2002_v14  ;;  %v1075_v29 = vpop.f32.mrb[16].mxu0  ;;  %1781 = vmatprep.mubr.bf16.mxu0 %v11609_v1  ;;  %v10672_v33 = vpack.c.bf16 %v2020_v52, %v2004_v5  ;;  %v1188_v36 = vpop.f32.mrb[16].mxu1  ;;  %1894 = vmatprep.mubr.bf16.mxu1 %v11609_v1  ;;  %v9384_v19 = vld [vmem:[#allocation9 + $0x204] ss:$16 sps:$4 sm:$0xff]  }
 0x19a   :  { %v1076_v31 = vadd.f32 %v1075_v29, %v10578_v15  ;;  %v1077_v39 = vpop.f32.mrb[17].mxu0  ;;  %v1189_v40 = vadd.f32 %v1188_v36, %v10583_v16  ;;  %v1190_v42 = vpop.f32.mrb[17].mxu1 }
 0x19b   :  { %v1078_v28 = vadd.f32 %v1077_v39, %v10587_v17  ;;  %v1079_v44 = vpop.f32.mrb[18].mxu0  ;;  %5410 = vmatpush1.bf16.msra.mxu0 %v9364_v3  ;;  %v1191_v49 = vadd.f32 %v1190_v42, %v10591_v20  ;;  %v1192_v24 = vpop.f32.mrb[18].mxu1  ;;  %6314 = vmatpush1.bf16.msra.mxu1 %v9367_v21  ;;  %v9387_v21 = vld [vmem:[#allocation9 + $0x20c] ss:$16 sps:$4 sm:$0xff]   ;;  %v9382_v42 = vld [vmem:[#allocation9 + $0x200] ss:$16 sps:$4 sm:$0xff]  }
 0x19c   :  { %v1080_v50 = vadd.f32 %v1079_v44, %v10578_v15  ;;  %v1081_v53 = vpop.f32.mrb[19].mxu0  ;;  %5411 = vmatprep.subr.bf16.mxu0 %v9372_v23  ;;  %v2035_v55 = vmax.f32 %v1189_v40, 0.0  ;;  %v1193_v56 = vadd.f32 %v1192_v24, %v10583_v16  ;;  %v1194_v59 = vpop.f32.mrb[19].mxu1  ;;  %6315 = vmatprep.subr.bf16.mxu1 %v9375_v25  ;;  %v2033_v63 = vmax.f32 %v1076_v31, 0.0  ;;  %v9385_v44 = vld [vmem:[#allocation9 + $0x208] ss:$16 sps:$4 sm:$0xff]  }
 0x19d   :  { %v1082_v58 = vadd.f32 %v1081_v53, %v10587_v17  ;;  %v2036_v0 = vmax.f32 %v1191_v49, 0.0  ;;  %v1195_v3 = vadd.f32 %v1194_v59, %v10591_v20  ;;  %v2034_v4 = vmax.f32 %v1078_v28, 0.0 }
 0x19e   :  { %v2049_v8 = vmax.f32 %v1080_v50, 0.0  ;;  %1782 = vmatmul.mubr.bf16.gmra.mrb[124].mxu0 %v10479_v35  ;;  %v2051_v5 = vmax.f32 %v1193_v56, 0.0  ;;  %1895 = vmatmul.mubr.bf16.gmra.mrb[124].mxu1 %v10479_v35  ;;  %v9390_v50 = vld [vmem:[#allocation9 + $0x224] ss:$16 sps:$4 sm:$0xff]  }
 0x19f   :  { %v2050_v7 = vmax.f32 %v1082_v58, 0.0  ;;  %5412 = vmatpush1.bf16.msra.mxu0 %v9370_v32  ;;  %v2052_v18 = vmax.f32 %v1195_v3, 0.0  ;;  %5415 = vmatprep.mubr.bf16.mxu0 %v10609_v62  ;;  %v9393_v58 = vld [vmem:[#allocation9 + $0x22c] ss:$16 sps:$4 sm:$0xff]  }
 0x1a0   :  { %v10685_v14 = vpack.c.bf16 %v2049_v8, %v2033_v63  ;;  %6316 = vmatpush1.bf16.msra.mxu1 %v9373_v45  ;;  %v10688_v52 = vpack.c.bf16 %v2051_v5, %v2035_v55  ;;  %6319 = vmatprep.mubr.bf16.mxu1 %v10609_v62  ;;  %v9391_v5 = vld [vmem:[#allocation9 + $0x228] ss:$16 sps:$4 sm:$0xff]  }
 0x1a1   :  { %v10690_v23 = vpack.c.bf16 %v2050_v7, %v2034_v4  ;;  %v1085_v25 = vpop.f32.mrb[20].mxu0  ;;  %5413 = vmatprep.subr.bf16.mxu0 %v9378_v46  ;;  %v10693_v29 = vpack.c.bf16 %v2052_v18, %v2036_v0  ;;  %v1198_v32 = vpop.f32.mrb[20].mxu1  ;;  %6317 = vmatprep.subr.bf16.mxu1 %v9381_v54  ;;  %v9388_v0 = vld [vmem:[#allocation9 + $0x220] ss:$16 sps:$4 sm:$0xff]   ;;  %v9396_v18 = vld [vmem:[#allocation9 + $0x244] ss:$16 sps:$4 sm:$0xff]  }
 0x1a2   :  { %v1086_v35 = vadd.f32 %v1085_v25, %v10578_v15  ;;  %v1087_v31 = vpop.f32.mrb[21].mxu0  ;;  %v1199_v36 = vadd.f32 %v1198_v32, %v10583_v16  ;;  %v1200_v40 = vpop.f32.mrb[21].mxu1 }
 0x1a3   :  { %v1088_v39 = vadd.f32 %v1087_v31, %v10587_v17  ;;  %v1089_v28 = vpop.f32.mrb[22].mxu0  ;;  %5414 = vmatpush1.bf16.msra.mxu0 %v9376_v60  ;;  %v1201_v62 = vadd.f32 %v1200_v40, %v10591_v20  ;;  %v1202_v46 = vpop.f32.mrb[22].mxu1 }
 0x1a4   :  { %v1090_v45 = vadd.f32 %v1089_v28, %v10578_v15  ;;  %6318 = vmatpush1.bf16.msra.mxu1 %v9379_v13  ;;  %v1091_v49 = vpop.f32.mrb[23].mxu0  ;;  %5496 = vmatprep.subr.bf16.mxu0 %v9384_v19  ;;  %v2065_v24 = vmax.f32 %v1086_v35, 0.0  ;;  %v2067_v53 = vmax.f32 %v1199_v36, 0.0  ;;  %v1203_v54 = vadd.f32 %v1202_v46, %v10583_v16  ;;  %v1204_v56 = vpop.f32.mrb[23].mxu1  ;;  %v9399_v19 = vld [vmem:[#allocation9 + $0x24c] ss:$16 sps:$4 sm:$0xff]  }
 0x1a5   :  { %v1092_v55 = vadd.f32 %v1091_v49, %v10587_v17  ;;  %6400 = vmatprep.subr.bf16.mxu1 %v9387_v21  ;;  %v2068_v59 = vmax.f32 %v1201_v62, 0.0  ;;  %v1205_v63 = vadd.f32 %v1204_v56, %v10591_v20  ;;  %v2066_v8 = vmax.f32 %v1088_v39, 0.0  ;;  %v9394_v39 = vld [vmem:[#allocation9 + $0x240] ss:$16 sps:$4 sm:$0xff]   ;;  %v9397_v49 = vld [vmem:[#allocation9 + $0x248] ss:$16 sps:$4 sm:$0xff]  }
 0x1a6   :  { %v2081_v60 = vmax.f32 %v1090_v45, 0.0  ;;  %5416 = vmatmul.mubr.bf16.vlgmr.msra.gmra.mrb[128].mxu0 %v10605_v57  ;;  %v2083_v3 = vmax.f32 %v1203_v54, 0.0 }
 0x1a7   :  { %v2082_v4 = vmax.f32 %v1092_v55, 0.0  ;;  %6320 = vmatmul.mubr.bf16.vlgmr.msra.gmra.mrb[128].mxu1 %v10605_v57  ;;  %5425 = vmatprep.mubr.bf16.mxu0 %v10629_v48  ;;  %v2084_v13 = vmax.f32 %v1205_v63, 0.0 }
 0x1a8   :  { %v10706_v7 = vpack.c.bf16 %v2081_v60, %v2065_v24  ;;  %5497 = vmatpush1.bf16.msra.mxu0 %v9382_v42  ;;  %6329 = vmatprep.mubr.bf16.mxu1 %v10629_v48  ;;  %v10709_v21 = vpack.c.bf16 %v2083_v3, %v2067_v53 }
 0x1a9   :  { %v10711_v25 = vpack.c.bf16 %v2082_v4, %v2066_v8  ;;  %6401 = vmatpush1.bf16.msra.mxu1 %v9385_v44  ;;  %v1095_v35 = vpop.f32.mrb[24].mxu0  ;;  %5498 = vmatprep.subr.bf16.mxu0 %v9390_v50  ;;  %v10713_v32 = vpack.c.bf16 %v2084_v13, %v2068_v59  ;;  %v1208_v31 = vpop.f32.mrb[24].mxu1  ;;  %v9402_v50 = vld [vmem:[#allocation9 + $0x264] ss:$16 sps:$4 sm:$0xff]  }
 0x1aa   :  { %v1096_v57 = vadd.f32 %v1095_v35, %v10578_v15  ;;  %v1097_v36 = vpop.f32.mrb[25].mxu0  ;;  %6402 = vmatprep.subr.bf16.mxu1 %v9393_v58  ;;  %v1209_v40 = vadd.f32 %v1208_v31, %v10583_v16  ;;  %v1210_v28 = vpop.f32.mrb[25].mxu1  ;;  %v9405_v58 = vld [vmem:[#allocation9 + $0x26c] ss:$16 sps:$4 sm:$0xff]   ;;  %v9408_v35 = vld [vmem:[#allocation9 + $0x284] ss:$16 sps:$4 sm:$0xff]  }
 0x1ab   :  { %v1098_v48 = vadd.f32 %v1097_v36, %v10587_v17  ;;  %v1099_v42 = vpop.f32.mrb[26].mxu0  ;;  %v1211_v62 = vadd.f32 %v1210_v28, %v10591_v20  ;;  %v1212_v45 = vpop.f32.mrb[26].mxu1 }
 0x1ac   :  { %v1100_v44 = vadd.f32 %v1099_v42, %v10578_v15  ;;  %5499 = vmatpush1.bf16.msra.mxu0 %v9388_v0  ;;  %v1101_v46 = vpop.f32.mrb[27].mxu0  ;;  %v2097_v24 = vmax.f32 %v1096_v57, 0.0  ;;  %v2099_v53 = vmax.f32 %v1209_v40, 0.0  ;;  %v1213_v54 = vadd.f32 %v1212_v45, %v10583_v16  ;;  %v1214_v56 = vpop.f32.mrb[27].mxu1  ;;  %v9400_v0 = vld [vmem:[#allocation9 + $0x260] ss:$16 sps:$4 sm:$0xff]  }
 0x1ad   :  { %6403 = vmatpush1.bf16.msra.mxu1 %v9391_v5  ;;  %v1102_v55 = vadd.f32 %v1101_v46, %v10587_v17  ;;  %5500 = vmatprep.subr.bf16.mxu0 %v9396_v18  ;;  %v2098_v59 = vmax.f32 %v1098_v48, 0.0  ;;  %v2100_v60 = vmax.f32 %v1211_v62, 0.0  ;;  %v1215_v8 = vadd.f32 %v1214_v56, %v10591_v20  ;;  %v9403_v18 = vld [vmem:[#allocation9 + $0x268] ss:$16 sps:$4 sm:$0xff]   ;;  %v9406_v62 = vld [vmem:[#allocation9 + $0x280] ss:$16 sps:$4 sm:$0xff]  }
 0x1ae   :  { %v2113_v63 = vmax.f32 %v1100_v44, 0.0  ;;  %5426 = vmatmul.mubr.bf16.gmra.mrb[132].mxu0 %v10625_v43  ;;  %6404 = vmatprep.subr.bf16.mxu1 %v9399_v19  ;;  %v2115_v3 = vmax.f32 %v1213_v54, 0.0  ;;  %v11613_v57 = vsub.s32 4, %v10556_v11  ;;  %v11612_v40 = vsub.s32 6, %v10556_v11 }
 0x1af   :  { %v2114_v4 = vmax.f32 %v1102_v55, 0.0  ;;  %6330 = vmatmul.mubr.bf16.gmra.mrb[132].mxu1 %v10625_v43  ;;  %5435 = vmatprep.mubr.bf16.mxu0 %v10649_v38  ;;  %v2116_v13 = vmax.f32 %v1215_v8, 0.0  ;;  %v9411_v43 = vld [vmem:[#allocation9 + $0x28c] ss:$16 sps:$4 sm:$0xff]   ;;  %v11611_v48 = vsub.s32 5, %v10556_v11 }
 0x1b0   :  { %v10726_v5 = vpack.c.bf16 %v2113_v63, %v2097_v24  ;;  %5501 = vmatpush1.bf16.msra.mxu0 %v9394_v39  ;;  %6339 = vmatprep.mubr.bf16.mxu1 %v10649_v38  ;;  %v10730_v31 = vpack.c.bf16 %v2115_v3, %v2099_v53  ;;  %v9409_v55 = vld [vmem:[#allocation9 + $0x288] ss:$16 sps:$4 sm:$0xff]   ;;  %v10746_v56 = vrot.slane %v10564_v9, %v11613_v57 }
 0x1b1   :  { %v10732_v19 = vpack.c.bf16 %v2114_v4, %v2098_v59  ;;  %6405 = vmatpush1.bf16.msra.mxu1 %v9397_v49  ;;  %v1105_v36 = vpop.f32.mrb[28].mxu0  ;;  %5502 = vmatprep.subr.bf16.mxu0 %v9402_v50  ;;  %v10736_v28 = vpack.c.bf16 %v2116_v13, %v2100_v60  ;;  %v1218_v39 = vpop.f32.mrb[28].mxu1 }
 0x1b2   :  { %v1106_v38 = vadd.f32 %v1105_v36, %v10578_v15  ;;  %v1107_v42 = vpop.f32.mrb[29].mxu0  ;;  %6406 = vmatprep.subr.bf16.mxu1 %v9405_v58  ;;  %v1219_v44 = vadd.f32 %v1218_v39, %v10583_v16  ;;  %v1220_v46 = vpop.f32.mrb[29].mxu1  ;;  %v11610_v58 = vsub.s32 7, %v10556_v11  ;;  %v9417_v39 = vld [vmem:[#allocation9 + $0x2ac] ss:$16 sps:$4 sm:$0xff]  }
 0x1b3   :  { %v1108_v45 = vadd.f32 %v1107_v42, %v10587_v17  ;;  %v1109_v49 = vpop.f32.mrb[30].mxu0  ;;  %v1221_v50 = vadd.f32 %v1220_v46, %v10591_v20  ;;  %v1222_v53 = vpop.f32.mrb[30].mxu1 }
 0x1b4   :  { %v1110_v24 = vadd.f32 %v1109_v49, %v10578_v15  ;;  %5503 = vmatpush1.bf16.msra.mxu0 %v9400_v0  ;;  %v1111_v54 = vpop.f32.mrb[31].mxu0  ;;  %v2129_v59 = vmax.f32 %v1106_v38, 0.0  ;;  %v2131_v60 = vmax.f32 %v1219_v44, 0.0  ;;  %v1223_v63 = vadd.f32 %v1222_v53, %v10583_v16  ;;  %v1224_v3 = vpop.f32.mrb[31].mxu1  ;;  %v9414_v15 = vld [vmem:[#allocation9 + $0x2a4] ss:$16 sps:$4 sm:$0xff]  }
 0x1b5   :  { %6407 = vmatpush1.bf16.msra.mxu1 %v9403_v18  ;;  %v1112_v8 = vadd.f32 %v1111_v54, %v10587_v17  ;;  %5504 = vmatprep.subr.bf16.mxu0 %v9408_v35  ;;  %v2130_v0 = vmax.f32 %v1108_v45, 0.0  ;;  %v2132_v4 = vmax.f32 %v1221_v50, 0.0  ;;  %v1225_v36 = vadd.f32 %v1224_v3, %v10591_v20  ;;  %v9412_v35 = vld [vmem:[#allocation9 + $0x2a0] ss:$16 sps:$4 sm:$0xff]   ;;  %v9420_v49 = vld [vmem:[#allocation9 + $0x2c4] ss:$16 sps:$4 sm:$0xff]  }
 0x1b6   :  { %v2145_v13 = vmax.f32 %v1110_v24, 0.0  ;;  %5436 = vmatmul.mubr.bf16.gmra.mrb[136].mxu0 %v10645_v30  ;;  %6408 = vmatprep.subr.bf16.mxu1 %v9411_v43  ;;  %v2147_v42 = vmax.f32 %v1223_v63, 0.0  ;;  %v10758_v16 = vrot.slane %v10564_v9, %v11612_v40  ;;  %v10763_v17 = vrot.slane %v10564_v9, %v11611_v48  ;;  %v9415_v43 = vld [vmem:[#allocation9 + $0x2a8] ss:$16 sps:$4 sm:$0xff]   ;;  %v9423_v50 = vld [vmem:[#allocation9 + $0x2cc] ss:$16 sps:$4 sm:$0xff]  }
 0x1b7   :  { %v2146_v38 = vmax.f32 %v1112_v8, 0.0  ;;  %6340 = vmatmul.mubr.bf16.gmra.mrb[136].mxu1 %v10645_v30  ;;  %5445 = vmatprep.mubr.bf16.mxu0 %v10669_v27  ;;  %v2148_v18 = vmax.f32 %v1225_v36, 0.0  ;;  %v10771_v30 = vrot.slane %v10564_v9, %v11610_v58 }
 0x1b8   :  { %v10765_v20 = vpack.c.bf16 %v2145_v13, %v2129_v59  ;;  %5505 = vmatpush1.bf16.msra.mxu0 %v9406_v62  ;;  %6349 = vmatprep.mubr.bf16.mxu1 %v10669_v27  ;;  %v10773_v44 = vpack.c.bf16 %v2147_v42, %v2131_v60 }
 0x1b9   :  { %v10775_v45 = vpack.c.bf16 %v2146_v38, %v2130_v0  ;;  %6409 = vmatpush1.bf16.msra.mxu1 %v9409_v55  ;;  %v1261_v46 = vpop.f32.mrb[32].mxu0  ;;  %5506 = vmatprep.subr.bf16.mxu0 %v9414_v15  ;;  %v10777_v24 = vpack.c.bf16 %v2148_v18, %v2132_v4  ;;  %v1374_v62 = vpop.f32.mrb[32].mxu1  ;;  %v9418_v15 = vld [vmem:[#allocation9 + $0x2c0] ss:$16 sps:$4 sm:$0xff]   ;;  %v9421_v0 = vld [vmem:[#allocation9 + $0x2c8] ss:$16 sps:$4 sm:$0xff]  }
 0x1ba   :  { %v1262_v27 = vadd.f32 %v1261_v46, %v10746_v56  ;;  %v1263_v53 = vpop.f32.mrb[33].mxu0  ;;  %6410 = vmatprep.subr.bf16.mxu1 %v9417_v39  ;;  %v1375_v9 = vadd.f32 %v1374_v62, %v10758_v16  ;;  %v1376_v59 = vpop.f32.mrb[33].mxu1  ;;  %v9426_v38 = vld [vmem:[#allocation9 + $0x2e4] ss:$16 sps:$4 sm:$0xff]  }
 0x1bb   :  { %v1264_v54 = vadd.f32 %v1263_v53, %v10763_v17  ;;  %v1265_v60 = vpop.f32.mrb[34].mxu0  ;;  %v1377_v63 = vadd.f32 %v1376_v59, %v10771_v30  ;;  %v1378_v8 = vpop.f32.mrb[34].mxu1 }
 0x1bc   :  { %v1266_v55 = vadd.f32 %v1265_v60, %v10746_v56  ;;  %5507 = vmatpush1.bf16.msra.mxu0 %v9412_v35  ;;  %v1267_v3 = vpop.f32.mrb[35].mxu0  ;;  %v1909_v4 = vmax.f32 %v1262_v27, 0.0  ;;  %v1911_v13 = vmax.f32 %v1375_v9, 0.0  ;;  %v1379_v36 = vadd.f32 %v1378_v8, %v10758_v16  ;;  %v1380_v42 = vpop.f32.mrb[35].mxu1  ;;  %v9429_v35 = vld [vmem:[#allocation9 + $0x2ec] ss:$16 sps:$4 sm:$0xff]  }
 0x1bd   :  { %6411 = vmatpush1.bf16.msra.mxu1 %v9415_v43  ;;  %v1268_v39 = vadd.f32 %v1267_v3, %v10763_v17  ;;  %5508 = vmatprep.subr.bf16.mxu0 %v9420_v49  ;;  %v1910_v18 = vmax.f32 %v1264_v54, 0.0  ;;  %v1912_v46 = vmax.f32 %v1377_v63, 0.0  ;;  %v1381_v53 = vadd.f32 %v1380_v42, %v10771_v30  ;;  %v9424_v49 = vld [vmem:[#allocation9 + $0x2e0] ss:$16 sps:$4 sm:$0xff]   ;;  %v9427_v54 = vld [vmem:[#allocation9 + $0x2e8] ss:$16 sps:$4 sm:$0xff]  }
 0x1be   :  { %v1925_v62 = vmax.f32 %v1266_v55, 0.0  ;;  %5446 = vmatmul.mubr.bf16.gmra.mrb[140].mxu0 %v10665_v22  ;;  %6412 = vmatprep.subr.bf16.mxu1 %v9423_v50  ;;  %v1927_v59 = vmax.f32 %v1379_v36, 0.0  ;;  %v9432_v55 = vld [vmem:[#allocation9 + $0x304] ss:$16 sps:$4 sm:$0xff]   ;;  %v9435_v8 = vld [vmem:[#allocation9 + $0x30c] ss:$16 sps:$4 sm:$0xff]  }
 0x1bf   :  { %v1926_v27 = vmax.f32 %v1268_v39, 0.0  ;;  %6350 = vmatmul.mubr.bf16.gmra.mrb[140].mxu1 %v10665_v22  ;;  %5455 = vmatprep.mubr.bf16.mxu0 %v10690_v23  ;;  %v1928_v9 = vmax.f32 %v1381_v53, 0.0 }
 0x1c0   :  { %v10790_v43 = vpack.c.bf16 %v1925_v62, %v1909_v4  ;;  %5509 = vmatpush1.bf16.msra.mxu0 %v9418_v15  ;;  %6359 = vmatprep.mubr.bf16.mxu1 %v10690_v23  ;;  %v10793_v60 = vpack.c.bf16 %v1927_v59, %v1911_v13  ;;  %v9433_v62 = vld [vmem:[#allocation9 + $0x308] ss:$16 sps:$4 sm:$0xff]  }
 0x1c1   :  { %v10795_v63 = vpack.c.bf16 %v1926_v27, %v1910_v18  ;;  %6413 = vmatpush1.bf16.msra.mxu1 %v9421_v0  ;;  %v1271_v50 = vpop.f32.mrb[36].mxu0  ;;  %5510 = vmatprep.subr.bf16.mxu0 %v9426_v38  ;;  %v10797_v22 = vpack.c.bf16 %v1928_v9, %v1912_v46  ;;  %v1384_v4 = vpop.f32.mrb[36].mxu1  ;;  %v9430_v46 = vld [vmem:[#allocation9 + $0x300] ss:$16 sps:$4 sm:$0xff]  }
 0x1c2   :  { %v1272_v3 = vadd.f32 %v1271_v50, %v10746_v56  ;;  %v1273_v36 = vpop.f32.mrb[37].mxu0  ;;  %6414 = vmatprep.subr.bf16.mxu1 %v9429_v35  ;;  %v1385_v23 = vadd.f32 %v1384_v4, %v10758_v16  ;;  %v1386_v13 = vpop.f32.mrb[37].mxu1  ;;  %v9438_v50 = vld [vmem:[#allocation9 + $0x324] ss:$16 sps:$4 sm:$0xff]  }
 0x1c3   :  { %v1274_v15 = vadd.f32 %v1273_v36, %v10763_v17  ;;  %v1275_v39 = vpop.f32.mrb[38].mxu0  ;;  %v1387_v42 = vadd.f32 %v1386_v13, %v10771_v30  ;;  %v1388_v38 = vpop.f32.mrb[38].mxu1 }
 0x1c4   :  { %v1276_v0 = vadd.f32 %v1275_v39, %v10746_v56  ;;  %5511 = vmatpush1.bf16.msra.mxu0 %v9424_v49  ;;  %v1277_v18 = vpop.f32.mrb[39].mxu0  ;;  %v1941_v53 = vmax.f32 %v1272_v3, 0.0  ;;  %v1943_v59 = vmax.f32 %v1385_v23, 0.0  ;;  %v1389_v27 = vadd.f32 %v1388_v38, %v10758_v16  ;;  %v1390_v9 = vpop.f32.mrb[39].mxu1  ;;  %v9441_v49 = vld [vmem:[#allocation9 + $0x32c] ss:$16 sps:$4 sm:$0xff]  }
 0x1c5   :  { %6415 = vmatpush1.bf16.msra.mxu1 %v9427_v54  ;;  %v1278_v35 = vadd.f32 %v1277_v18, %v10763_v17  ;;  %5512 = vmatprep.subr.bf16.mxu0 %v9432_v55  ;;  %v1942_v4 = vmax.f32 %v1274_v15, 0.0  ;;  %v1944_v36 = vmax.f32 %v1387_v42, 0.0  ;;  %v1391_v39 = vadd.f32 %v1390_v9, %v10771_v30  ;;  %v9436_v55 = vld [vmem:[#allocation9 + $0x320] ss:$16 sps:$4 sm:$0xff]   ;;  %v9439_v15 = vld [vmem:[#allocation9 + $0x328] ss:$16 sps:$4 sm:$0xff]  }
 0x1c6   :  { %v1957_v13 = vmax.f32 %v1276_v0, 0.0  ;;  %5456 = vmatmul.mubr.bf16.gmra.mrb[144].mxu0 %v10685_v14  ;;  %6416 = vmatprep.subr.bf16.mxu1 %v9435_v8  ;;  %v1959_v1 = vmax.f32 %v1389_v27, 0.0  ;;  %v9444_v38 = vld [vmem:[#allocation9 + $0x344] ss:$16 sps:$4 sm:$0xff]   ;;  %v9447_v18 = vld [vmem:[#allocation9 + $0x34c] ss:$16 sps:$4 sm:$0xff]  }
 0x1c7   :  { %v1958_v3 = vmax.f32 %v1278_v35, 0.0  ;;  %6360 = vmatmul.mubr.bf16.gmra.mrb[144].mxu1 %v10685_v14  ;;  %5465 = vmatprep.mubr.bf16.mxu0 %v10711_v25  ;;  %v1960_v23 = vmax.f32 %v1391_v39, 0.0 }
 0x1c8   :  { %v10810_v54 = vpack.c.bf16 %v1957_v13, %v1941_v53  ;;  %5513 = vmatpush1.bf16.msra.mxu0 %v9430_v46  ;;  %6369 = vmatprep.mubr.bf16.mxu1 %v10711_v25  ;;  %v10813_v42 = vpack.c.bf16 %v1959_v1, %v1943_v59  ;;  %v9445_v13 = vld [vmem:[#allocation9 + $0x348] ss:$16 sps:$4 sm:$0xff]  }
 0x1c9   :  { %v10815_v0 = vpack.c.bf16 %v1958_v3, %v1942_v4  ;;  %6417 = vmatpush1.bf16.msra.mxu1 %v9433_v62  ;;  %v1281_v8 = vpop.f32.mrb[40].mxu0  ;;  %5514 = vmatprep.subr.bf16.mxu0 %v9438_v50  ;;  %v10817_v14 = vpack.c.bf16 %v1960_v23, %v1944_v36  ;;  %v1394_v27 = vpop.f32.mrb[40].mxu1  ;;  %v9442_v36 = vld [vmem:[#allocation9 + $0x340] ss:$16 sps:$4 sm:$0xff]  }
 0x1ca   :  { %v1282_v53 = vadd.f32 %v1281_v8, %v10746_v56  ;;  %v1283_v35 = vpop.f32.mrb[41].mxu0  ;;  %6418 = vmatprep.subr.bf16.mxu1 %v9441_v49  ;;  %v1395_v25 = vadd.f32 %v1394_v27, %v10758_v16  ;;  %v1396_v1 = vpop.f32.mrb[41].mxu1  ;;  %v9450_v27 = vld [vmem:[#allocation9 + $0x364] ss:$16 sps:$4 sm:$0xff]  }
 0x1cb   :  { %v1284_v46 = vadd.f32 %v1283_v35, %v10763_v17  ;;  %v1285_v59 = vpop.f32.mrb[42].mxu0  ;;  %v1397_v9 = vadd.f32 %v1396_v1, %v10771_v30  ;;  %v1398_v50 = vpop.f32.mrb[42].mxu1 }
 0x1cc   :  { %v1286_v62 = vadd.f32 %v1285_v59, %v10746_v56  ;;  %5515 = vmatpush1.bf16.msra.mxu0 %v9436_v55  ;;  %v1287_v4 = vpop.f32.mrb[43].mxu0  ;;  %v1973_v39 = vmax.f32 %v1282_v53, 0.0  ;;  %v1975_v3 = vmax.f32 %v1395_v25, 0.0  ;;  %v1399_v23 = vadd.f32 %v1398_v50, %v10758_v16  ;;  %v1400_v8 = vpop.f32.mrb[43].mxu1  ;;  %v9453_v55 = vld [vmem:[#allocation9 + $0x36c] ss:$16 sps:$4 sm:$0xff]  }
 0x1cd   :  { %6419 = vmatpush1.bf16.msra.mxu1 %v9439_v15  ;;  %v1288_v49 = vadd.f32 %v1287_v4, %v10763_v17  ;;  %5516 = vmatprep.subr.bf16.mxu0 %v9444_v38  ;;  %v1974_v35 = vmax.f32 %v1284_v46, 0.0  ;;  %v1976_v58 = vmax.f32 %v1397_v9, 0.0  ;;  %v1401_v59 = vadd.f32 %v1400_v8, %v10771_v30  ;;  %v9448_v38 = vld [vmem:[#allocation9 + $0x360] ss:$16 sps:$4 sm:$0xff]   ;;  %v9451_v46 = vld [vmem:[#allocation9 + $0x368] ss:$16 sps:$4 sm:$0xff]  }
 0x1ce   :  { %v1989_v1 = vmax.f32 %v1286_v62, 0.0  ;;  %5466 = vmatmul.mubr.bf16.gmra.mrb[148].mxu0 %v10706_v7  ;;  %6420 = vmatprep.subr.bf16.mxu1 %v9447_v18  ;;  %v1991_v48 = vmax.f32 %v1399_v23, 0.0  ;;  %v9456_v50 = vld [vmem:[#allocation9 + $0x384] ss:$16 sps:$4 sm:$0xff]   ;;  %v9459_v4 = vld [vmem:[#allocation9 + $0x38c] ss:$16 sps:$4 sm:$0xff]  }
 0x1cf   :  { %v1990_v53 = vmax.f32 %v1288_v49, 0.0  ;;  %6370 = vmatmul.mubr.bf16.gmra.mrb[148].mxu1 %v10706_v7  ;;  %5475 = vmatprep.mubr.bf16.mxu0 %v10732_v19  ;;  %v1992_v25 = vmax.f32 %v1401_v59, 0.0 }
 0x1d0   :  { %v10830_v15 = vpack.c.bf16 %v1989_v1, %v1973_v39  ;;  %5517 = vmatpush1.bf16.msra.mxu0 %v9442_v36  ;;  %6379 = vmatprep.mubr.bf16.mxu1 %v10732_v19  ;;  %v10833_v9 = vpack.c.bf16 %v1991_v48, %v1975_v3  ;;  %v9457_v1 = vld [vmem:[#allocation9 + $0x388] ss:$16 sps:$4 sm:$0xff]  }
 0x1d1   :  { %v10835_v62 = vpack.c.bf16 %v1990_v53, %v1974_v35  ;;  %6421 = vmatpush1.bf16.msra.mxu1 %v9445_v13  ;;  %v1291_v18 = vpop.f32.mrb[44].mxu0  ;;  %5518 = vmatprep.subr.bf16.mxu0 %v9450_v27  ;;  %v10837_v7 = vpack.c.bf16 %v1992_v25, %v1976_v58  ;;  %v1404_v23 = vpop.f32.mrb[44].mxu1  ;;  %v9454_v58 = vld [vmem:[#allocation9 + $0x380] ss:$16 sps:$4 sm:$0xff]  }
 0x1d2   :  { %11659 = vst [vmem:[#allocation25_spill] sm:$0xff] %v10833_v9  ;;  %v1292_v39 = vadd.f32 %v1291_v18, %v10746_v56  ;;  %v1293_v49 = vpop.f32.mrb[45].mxu0  ;;  %6422 = vmatprep.subr.bf16.mxu1 %v9453_v55  ;;  %v1405_v19 = vadd.f32 %v1404_v23, %v10758_v16  ;;  %v1406_v48 = vpop.f32.mrb[45].mxu1  ;;  %v9462_v23 = vld [vmem:[#allocation9 + $0x3a4] ss:$16 sps:$4 sm:$0xff]  }
 0x1d3   :  { %11660 = vst [vmem:[#allocation26_spill] sm:$0xff] %v10837_v7  ;;  %v1294_v36 = vadd.f32 %v1293_v49, %v10763_v17  ;;  %v1295_v3 = vpop.f32.mrb[46].mxu0  ;;  %v1407_v8 = vadd.f32 %v1406_v48, %v10771_v30  ;;  %v1408_v27 = vpop.f32.mrb[46].mxu1 }
 0x1d4   :  { %v1296_v13 = vadd.f32 %v1295_v3, %v10746_v56  ;;  %5519 = vmatpush1.bf16.msra.mxu0 %v9448_v38  ;;  %v1297_v35 = vpop.f32.mrb[47].mxu0  ;;  %v2005_v59 = vmax.f32 %v1292_v39, 0.0  ;;  %v2007_v53 = vmax.f32 %v1405_v19, 0.0  ;;  %v1409_v25 = vadd.f32 %v1408_v27, %v10758_v16  ;;  %v1410_v18 = vpop.f32.mrb[47].mxu1  ;;  %v9465_v38 = vld [vmem:[#allocation9 + $0x3ac] ss:$16 sps:$4 sm:$0xff]  }
 0x1d5   :  { %6423 = vmatpush1.bf16.msra.mxu1 %v9451_v46  ;;  %v1298_v55 = vadd.f32 %v1297_v35, %v10763_v17  ;;  %5520 = vmatprep.subr.bf16.mxu0 %v9456_v50  ;;  %v2006_v49 = vmax.f32 %v1294_v36, 0.0  ;;  %v2008_v40 = vmax.f32 %v1407_v8, 0.0  ;;  %v1411_v3 = vadd.f32 %v1410_v18, %v10771_v30  ;;  %v9460_v50 = vld [vmem:[#allocation9 + $0x3a0] ss:$16 sps:$4 sm:$0xff]   ;;  %v9463_v36 = vld [vmem:[#allocation9 + $0x3a8] ss:$16 sps:$4 sm:$0xff]  }
 0x1d6   :  { %v2021_v48 = vmax.f32 %v1296_v13, 0.0  ;;  %5476 = vmatmul.mubr.bf16.gmra.mrb[152].mxu0 %v10726_v5  ;;  %6424 = vmatprep.subr.bf16.mxu1 %v9459_v4  ;;  %v2023_v57 = vmax.f32 %v1409_v25, 0.0  ;;  %v9468_v27 = vld [vmem:[#allocation9 + $0x3c4] ss:$16 sps:$4 sm:$0xff]   ;;  %v9471_v35 = vld [vmem:[#allocation9 + $0x3cc] ss:$16 sps:$4 sm:$0xff]  }
 0x1d7   :  { %v2022_v39 = vmax.f32 %v1298_v55, 0.0  ;;  %6380 = vmatmul.mubr.bf16.gmra.mrb[152].mxu1 %v10726_v5  ;;  %5485 = vmatprep.mubr.bf16.mxu0 %v10775_v45  ;;  %v2024_v19 = vmax.f32 %v1411_v3, 0.0 }
 0x1d8   :  { %v10850_v46 = vpack.c.bf16 %v2021_v48, %v2005_v59  ;;  %5521 = vmatpush1.bf16.msra.mxu0 %v9454_v58  ;;  %6389 = vmatprep.mubr.bf16.mxu1 %v10775_v45  ;;  %v10853_v8 = vpack.c.bf16 %v2023_v57, %v2007_v53  ;;  %v9469_v48 = vld [vmem:[#allocation9 + $0x3c8] ss:$16 sps:$4 sm:$0xff]  }
 0x1d9   :  { %v10855_v13 = vpack.c.bf16 %v2022_v39, %v2006_v49  ;;  %6425 = vmatpush1.bf16.msra.mxu1 %v9457_v1  ;;  %v1301_v4 = vpop.f32.mrb[48].mxu0  ;;  %5522 = vmatprep.subr.bf16.mxu0 %v9462_v23  ;;  %v10857_v5 = vpack.c.bf16 %v2024_v19, %v2008_v40  ;;  %v1414_v25 = vpop.f32.mrb[48].mxu1  ;;  %v9466_v40 = vld [vmem:[#allocation9 + $0x3c0] ss:$16 sps:$4 sm:$0xff]  }
 0x1da   :  { %11661 = vst [vmem:[#allocation27_spill] sm:$0xff] %v10853_v8  ;;  %v1302_v59 = vadd.f32 %v1301_v4, %v10746_v56  ;;  %v1303_v55 = vpop.f32.mrb[49].mxu0  ;;  %6426 = vmatprep.subr.bf16.mxu1 %v9465_v38  ;;  %v1415_v45 = vadd.f32 %v1414_v25, %v10758_v16  ;;  %v1416_v57 = vpop.f32.mrb[49].mxu1  ;;  %v9474_v25 = vld [vmem:[#allocation9 + $0x3e4] ss:$16 sps:$4 sm:$0xff]  }
 0x1db   :  { %11662 = vst [vmem:[#allocation28_spill] sm:$0xff] %v10857_v5  ;;  %v1304_v58 = vadd.f32 %v1303_v55, %v10763_v17  ;;  %v1305_v53 = vpop.f32.mrb[50].mxu0  ;;  %v1417_v18 = vadd.f32 %v1416_v57, %v10771_v30  ;;  %v1418_v23 = vpop.f32.mrb[50].mxu1 }
 0x1dc   :  { %v1306_v1 = vadd.f32 %v1305_v53, %v10746_v56  ;;  %5523 = vmatpush1.bf16.msra.mxu0 %v9460_v50  ;;  %v1307_v49 = vpop.f32.mrb[51].mxu0  ;;  %v2037_v3 = vmax.f32 %v1302_v59, 0.0  ;;  %v2039_v39 = vmax.f32 %v1415_v45, 0.0  ;;  %v1419_v19 = vadd.f32 %v1418_v23, %v10758_v16  ;;  %v1420_v4 = vpop.f32.mrb[51].mxu1  ;;  %v9477_v50 = vld [vmem:[#allocation9 + $0x3ec] ss:$16 sps:$4 sm:$0xff]  }
 0x1dd   :  { %6427 = vmatpush1.bf16.msra.mxu1 %v9463_v36  ;;  %v1308_v38 = vadd.f32 %v1307_v49, %v10763_v17  ;;  %5524 = vmatprep.subr.bf16.mxu0 %v9468_v27  ;;  %v2038_v55 = vmax.f32 %v1304_v58, 0.0  ;;  %v2040_v8 = vmax.f32 %v1417_v18, 0.0  ;;  %v1421_v53 = vadd.f32 %v1420_v4, %v10771_v30  ;;  %v9472_v27 = vld [vmem:[#allocation9 + $0x3e0] ss:$16 sps:$4 sm:$0xff]   ;;  %v9475_v58 = vld [vmem:[#allocation9 + $0x3e8] ss:$16 sps:$4 sm:$0xff]  }
 0x1de   :  { %v2053_v57 = vmax.f32 %v1306_v1, 0.0  ;;  %5486 = vmatmul.mubr.bf16.gmra.mrb[156].mxu0 %v10765_v20  ;;  %6428 = vmatprep.subr.bf16.mxu1 %v9471_v35  ;;  %v2055_v5 = vmax.f32 %v1419_v19, 0.0  ;;  %v9480_v23 = vld [vmem:[#allocation9 + $0x404] ss:$16 sps:$4 sm:$0xff]   ;;  %v9483_v49 = vld [vmem:[#allocation9 + $0x40c] ss:$16 sps:$4 sm:$0xff]  }
 0x1df   :  { %v2054_v59 = vmax.f32 %v1308_v38, 0.0  ;;  %6390 = vmatmul.mubr.bf16.gmra.mrb[156].mxu1 %v10765_v20  ;;  %5528 = vmatprep.mubr.bf16.mxu0 %v10612_v2  ;;  %v2056_v45 = vmax.f32 %v1421_v53, 0.0 }
 0x1e0   :  { %v10870_v36 = vpack.c.bf16 %v2053_v57, %v2037_v3  ;;  %5525 = vmatpush1.bf16.msra.mxu0 %v9466_v40  ;;  %6432 = vmatprep.mubr.bf16.mxu1 %v10612_v2  ;;  %v10873_v18 = vpack.c.bf16 %v2055_v5, %v2039_v39  ;;  %v9481_v57 = vld [vmem:[#allocation9 + $0x408] ss:$16 sps:$4 sm:$0xff]  }
 0x1e1   :  { %v10875_v1 = vpack.c.bf16 %v2054_v59, %v2038_v55  ;;  %6429 = vmatpush1.bf16.msra.mxu1 %v9469_v48  ;;  %v1311_v35 = vpop.f32.mrb[52].mxu0  ;;  %5526 = vmatprep.subr.bf16.mxu0 %v9474_v25  ;;  %v10877_v20 = vpack.c.bf16 %v2056_v45, %v2040_v8  ;;  %v1424_v19 = vpop.f32.mrb[52].mxu1  ;;  %v9478_v8 = vld [vmem:[#allocation9 + $0x400] ss:$16 sps:$4 sm:$0xff]  }
 0x1e2   :  { %11663 = vst [vmem:[#allocation29_spill] sm:$0xff] %v10873_v18  ;;  %v1312_v3 = vadd.f32 %v1311_v35, %v10746_v56  ;;  %v1313_v38 = vpop.f32.mrb[53].mxu0  ;;  %6430 = vmatprep.subr.bf16.mxu1 %v9477_v50  ;;  %v1425_v2 = vadd.f32 %v1424_v19, %v10758_v16  ;;  %v1426_v5 = vpop.f32.mrb[53].mxu1  ;;  %v9486_v19 = vld [vmem:[#allocation9 + $0x424] ss:$16 sps:$4 sm:$0xff]  }
 0x1e3   :  { %11664 = vst [vmem:[#allocation30_spill] sm:$0xff] %v10877_v20  ;;  %v1314_v40 = vadd.f32 %v1313_v38, %v10763_v17  ;;  %v1315_v39 = vpop.f32.mrb[54].mxu0  ;;  %v1427_v4 = vadd.f32 %v1426_v5, %v10771_v30  ;;  %v1428_v25 = vpop.f32.mrb[54].mxu1 }
 0x1e4   :  { %v1316_v48 = vadd.f32 %v1315_v39, %v10746_v56  ;;  %5527 = vmatpush1.bf16.msra.mxu0 %v9472_v27  ;;  %v1317_v55 = vpop.f32.mrb[55].mxu0  ;;  %v2069_v53 = vmax.f32 %v1312_v3, 0.0  ;;  %v2071_v59 = vmax.f32 %v1425_v2, 0.0  ;;  %v1429_v45 = vadd.f32 %v1428_v25, %v10758_v16  ;;  %v1430_v35 = vpop.f32.mrb[55].mxu1  ;;  %v9489_v27 = vld [vmem:[#allocation9 + $0x42c] ss:$16 sps:$4 sm:$0xff]  }
 0x1e5   :  { %6431 = vmatpush1.bf16.msra.mxu1 %v9475_v58  ;;  %v1318_v50 = vadd.f32 %v1317_v55, %v10763_v17  ;;  %5609 = vmatprep.subr.bf16.mxu0 %v9480_v23  ;;  %v2070_v38 = vmax.f32 %v1314_v40, 0.0  ;;  %v2072_v18 = vmax.f32 %v1427_v4, 0.0  ;;  %v1431_v39 = vadd.f32 %v1430_v35, %v10771_v30  ;;  %v9484_v58 = vld [vmem:[#allocation9 + $0x420] ss:$16 sps:$4 sm:$0xff]   ;;  %v9487_v23 = vld [vmem:[#allocation9 + $0x428] ss:$16 sps:$4 sm:$0xff]  }
 0x1e6   :  { %v2085_v5 = vmax.f32 %v1316_v48, 0.0  ;;  %6513 = vmatprep.subr.bf16.mxu1 %v9483_v49  ;;  %v2087_v20 = vmax.f32 %v1429_v45, 0.0  ;;  %v9492_v48 = vld [vmem:[#allocation9 + $0x444] ss:$16 sps:$4 sm:$0xff]   ;;  %v9495_v25 = vld [vmem:[#allocation9 + $0x44c] ss:$16 sps:$4 sm:$0xff]  }
 0x1e7   :  { %v2086_v9 = vmax.f32 %v1318_v50, 0.0  ;;  %5529 = vmatmul.mubr.bf16.vlgmr.msra.gmra.mrb[128].mxu0 %v10607_v61  ;;  %v2088_v2 = vmax.f32 %v1431_v39, 0.0 }
 0x1e8   :  { %v10888_v3 = vpack.c.bf16 %v2085_v5, %v2069_v53  ;;  %6433 = vmatmul.mubr.bf16.vlgmr.msra.gmra.mrb[128].mxu1 %v10607_v61  ;;  %5538 = vmatprep.mubr.bf16.mxu0 %v10632_v51  ;;  %v10892_v40 = vpack.c.bf16 %v2087_v20, %v2071_v59 }
 0x1e9   :  { %v10894_v4 = vpack.c.bf16 %v2086_v9, %v2070_v38  ;;  %5610 = vmatpush1.bf16.msra.mxu0 %v9478_v8  ;;  %6442 = vmatprep.mubr.bf16.mxu1 %v10632_v51  ;;  %v1321_v49 = vpop.f32.mrb[56].mxu0  ;;  %v10897_v55 = vpack.c.bf16 %v2088_v2, %v2072_v18  ;;  %v1434_v61 = vpop.f32.mrb[56].mxu1  ;;  %v9490_v38 = vld [vmem:[#allocation9 + $0x440] ss:$16 sps:$4 sm:$0xff]   ;;  %v9493_v2 = vld [vmem:[#allocation9 + $0x448] ss:$16 sps:$4 sm:$0xff]  }
 0x1ea   :  { %11665 = vst [vmem:[#allocation31_spill] sm:$0xff] %v10892_v40  ;;  %6514 = vmatpush1.bf16.msra.mxu1 %v9481_v57  ;;  %v1322_v53 = vadd.f32 %v1321_v49, %v10746_v56  ;;  %v1323_v45 = vpop.f32.mrb[57].mxu0  ;;  %5611 = vmatprep.subr.bf16.mxu0 %v9486_v19  ;;  %v1435_v50 = vadd.f32 %v1434_v61, %v10758_v16  ;;  %v1436_v9 = vpop.f32.mrb[57].mxu1  ;;  %v9498_v49 = vld [vmem:[#allocation9 + $0x464] ss:$16 sps:$4 sm:$0xff]  }
 0x1eb   :  { %11666 = vst [vmem:[#allocation32_spill] sm:$0xff] %v10897_v55  ;;  %v1324_v20 = vadd.f32 %v1323_v45, %v10763_v17  ;;  %6515 = vmatprep.subr.bf16.mxu1 %v9489_v27  ;;  %v1325_v8 = vpop.f32.mrb[58].mxu0  ;;  %v1437_v51 = vadd.f32 %v1436_v9, %v10771_v30  ;;  %v1438_v35 = vpop.f32.mrb[58].mxu1 }
 0x1ec   :  { %v1326_v59 = vadd.f32 %v1325_v8, %v10746_v56  ;;  %v1327_v18 = vpop.f32.mrb[59].mxu0  ;;  %v2103_v57 = vmax.f32 %v1435_v50, 0.0  ;;  %v1439_v5 = vadd.f32 %v1438_v35, %v10758_v16  ;;  %v1440_v39 = vpop.f32.mrb[59].mxu1  ;;  %v2101_v61 = vmax.f32 %v1322_v53, 0.0  ;;  %v9501_v8 = vld [vmem:[#allocation9 + $0x46c] ss:$16 sps:$4 sm:$0xff]  }
 0x1ed   :  { %5612 = vmatpush1.bf16.msra.mxu0 %v9484_v58  ;;  %v1328_v19 = vadd.f32 %v1327_v18, %v10763_v17  ;;  %v2104_v45 = vmax.f32 %v1437_v51, 0.0  ;;  %v1441_v9 = vadd.f32 %v1440_v39, %v10771_v30  ;;  %v2102_v40 = vmax.f32 %v1324_v20, 0.0  ;;  %v9496_v20 = vld [vmem:[#allocation9 + $0x460] ss:$16 sps:$4 sm:$0xff]   ;;  %v9499_v51 = vld [vmem:[#allocation9 + $0x468] ss:$16 sps:$4 sm:$0xff]  }
 0x1ee   :  { %v2117_v27 = vmax.f32 %v1326_v59, 0.0  ;;  %6516 = vmatpush1.bf16.msra.mxu1 %v9487_v23  ;;  %5613 = vmatprep.subr.bf16.mxu0 %v9492_v48  ;;  %v2119_v55 = vmax.f32 %v1439_v5, 0.0  ;;  %v10917_v59 = vld [vmem:[#allocation8 + $0x8] sm:$0xff] }
 0x1ef   :  { %v2118_v7 = vmax.f32 %v1328_v19, 0.0  ;;  %5539 = vmatmul.mubr.bf16.gmra.mrb[132].mxu0 %v10627_v47  ;;  %6517 = vmatprep.subr.bf16.mxu1 %v9495_v25  ;;  %v2120_v50 = vmax.f32 %v1441_v9, 0.0 }
 0x1f0   :  { %v10908_v58 = vpack.c.bf16 %v2117_v27, %v2101_v61  ;;  %6443 = vmatmul.mubr.bf16.gmra.mrb[132].mxu1 %v10627_v47  ;;  %5548 = vmatprep.mubr.bf16.mxu0 %v10652_v41  ;;  %v10912_v53 = vpack.c.bf16 %v2119_v55, %v2103_v57  ;;  %v9504_v55 = vld [vmem:[#allocation9 + $0x484] ss:$16 sps:$4 sm:$0xff]   ;;  %v9507_v57 = vld [vmem:[#allocation9 + $0x48c] ss:$16 sps:$4 sm:$0xff]   ;;  %v9502_v61 = vld [vmem:[#allocation9 + $0x480] ss:$16 sps:$4 sm:$0xff]  }
 0x1f1   :  { %v10914_v23 = vpack.c.bf16 %v2118_v7, %v2102_v40  ;;  %5614 = vmatpush1.bf16.msra.mxu0 %v9490_v38  ;;  %6452 = vmatprep.mubr.bf16.mxu1 %v10652_v41  ;;  %v1331_v48 = vpop.f32.mrb[60].mxu0  ;;  %v10919_v25 = vpack.c.bf16 %v2120_v50, %v2104_v45  ;;  %v1444_v47 = vpop.f32.mrb[60].mxu1  ;;  %v10928_v45 = vrot.slane %v10917_v59, %v10562_v6 }
 0x1f2   :  { %6518 = vmatpush1.bf16.msra.mxu1 %v9493_v2  ;;  %v1332_v35 = vadd.f32 %v1331_v48, %v10746_v56  ;;  %v1333_v18 = vpop.f32.mrb[61].mxu0  ;;  %5615 = vmatprep.subr.bf16.mxu0 %v9498_v49  ;;  %v1445_v7 = vadd.f32 %v1444_v47, %v10758_v16  ;;  %v1446_v41 = vpop.f32.mrb[61].mxu1  ;;  %v10934_v48 = vrot.slane %v10917_v59, %v10567_v34 }
 0x1f3   :  { %v1334_v40 = vadd.f32 %v1333_v18, %v10763_v17  ;;  %6519 = vmatprep.subr.bf16.mxu1 %v9501_v8  ;;  %v1335_v38 = vpop.f32.mrb[62].mxu0  ;;  %v1447_v5 = vadd.f32 %v1446_v41, %v10771_v30  ;;  %v1448_v39 = vpop.f32.mrb[62].mxu1  ;;  %v9505_v8 = vld [vmem:[#allocation9 + $0x488] ss:$16 sps:$4 sm:$0xff]  }
 0x1f4   :  { %v1336_v19 = vadd.f32 %v1335_v38, %v10746_v56  ;;  %v1337_v2 = vpop.f32.mrb[63].mxu0  ;;  %v2135_v49 = vmax.f32 %v1445_v7, 0.0  ;;  %v1449_v27 = vadd.f32 %v1448_v39, %v10758_v16  ;;  %v1450_v50 = vpop.f32.mrb[63].mxu1  ;;  %v9510_v56 = vld [vmem:[#allocation9 + $0x4a4] ss:$16 sps:$4 sm:$0xff]   ;;  %v2133_v47 = vmax.f32 %v1332_v35, 0.0 }
 0x1f5   :  { %5616 = vmatpush1.bf16.msra.mxu0 %v9496_v20  ;;  %v1338_v9 = vadd.f32 %v1337_v2, %v10763_v17  ;;  %v2136_v18 = vmax.f32 %v1447_v5, 0.0  ;;  %v1451_v38 = vadd.f32 %v1450_v50, %v10771_v30  ;;  %v9513_v7 = vld [vmem:[#allocation9 + $0x4ac] ss:$16 sps:$4 sm:$0xff]   ;;  %v2134_v6 = vmax.f32 %v1334_v40, 0.0  ;;  %v9508_v40 = vld [vmem:[#allocation9 + $0x4a0] ss:$16 sps:$4 sm:$0xff]  }
 0x1f6   :  { %v2149_v41 = vmax.f32 %v1336_v19, 0.0  ;;  %6520 = vmatpush1.bf16.msra.mxu1 %v9499_v51  ;;  %5617 = vmatprep.subr.bf16.mxu0 %v9504_v55  ;;  %v2151_v16 = vmax.f32 %v1449_v27, 0.0  ;;  %v10940_v17 = vrot.slane %v10917_v59, %v10570_v10  ;;  %v10948_v30 = vrot.slane %v10917_v59, %v10573_v12  ;;  %v9511_v27 = vld [vmem:[#allocation9 + $0x4a8] ss:$16 sps:$4 sm:$0xff]  }
 0x1f7   :  { %v2150_v20 = vmax.f32 %v1338_v9, 0.0  ;;  %5549 = vmatmul.mubr.bf16.gmra.mrb[136].mxu0 %v10647_v37  ;;  %6521 = vmatprep.subr.bf16.mxu1 %v9507_v57  ;;  %v2152_v35 = vmax.f32 %v1451_v38, 0.0  ;;  %v9516_v9 = vld [vmem:[#allocation9 + $0x4c4] ss:$16 sps:$4 sm:$0xff]  }
 0x1f8   :  { %v10942_v39 = vpack.c.bf16 %v2149_v41, %v2133_v47  ;;  %6453 = vmatmul.mubr.bf16.gmra.mrb[136].mxu1 %v10647_v37  ;;  %5558 = vmatprep.mubr.bf16.mxu0 %v10672_v33  ;;  %v10950_v51 = vpack.c.bf16 %v2151_v16, %v2135_v49 }
 0x1f9   :  { %v10952_v55 = vpack.c.bf16 %v2150_v20, %v2134_v6  ;;  %5618 = vmatpush1.bf16.msra.mxu0 %v9502_v61  ;;  %6462 = vmatprep.mubr.bf16.mxu1 %v10672_v33  ;;  %v1487_v57 = vpop.f32.mrb[64].mxu0  ;;  %v10955_v5 = vpack.c.bf16 %v2152_v35, %v2136_v18  ;;  %v1600_v19 = vpop.f32.mrb[64].mxu1  ;;  %v9519_v33 = vld [vmem:[#allocation9 + $0x4cc] ss:$16 sps:$4 sm:$0xff]   ;;  %v9514_v35 = vld [vmem:[#allocation9 + $0x4c0] ss:$16 sps:$4 sm:$0xff]  }
 0x1fa   :  { %6522 = vmatpush1.bf16.msra.mxu1 %v9505_v8  ;;  %v1488_v37 = vadd.f32 %v1487_v57, %v10928_v45  ;;  %v1489_v2 = vpop.f32.mrb[65].mxu0  ;;  %5619 = vmatprep.subr.bf16.mxu0 %v9510_v56  ;;  %v1601_v49 = vadd.f32 %v1600_v19, %v10934_v48  ;;  %v1602_v50 = vpop.f32.mrb[65].mxu1  ;;  %v9517_v57 = vld [vmem:[#allocation9 + $0x4c8] ss:$16 sps:$4 sm:$0xff]  }
 0x1fb   :  { %v1490_v6 = vadd.f32 %v1489_v2, %v10940_v17  ;;  %6523 = vmatprep.subr.bf16.mxu1 %v9513_v7  ;;  %v1491_v61 = vpop.f32.mrb[66].mxu0  ;;  %v1603_v47 = vadd.f32 %v1602_v50, %v10948_v30  ;;  %v1604_v8 = vpop.f32.mrb[66].mxu1  ;;  %v9522_v50 = vld [vmem:[#allocation9 + $0x4e4] ss:$16 sps:$4 sm:$0xff]  }
 0x1fc   :  { %v1492_v18 = vadd.f32 %v1491_v61, %v10928_v45  ;;  %v1493_v41 = vpop.f32.mrb[67].mxu0  ;;  %v1915_v38 = vmax.f32 %v1601_v49, 0.0  ;;  %v1605_v16 = vadd.f32 %v1604_v8, %v10934_v48  ;;  %v1606_v20 = vpop.f32.mrb[67].mxu1  ;;  %v1913_v19 = vmax.f32 %v1488_v37, 0.0 }
 0x1fd   :  { %5620 = vmatpush1.bf16.msra.mxu0 %v9508_v40  ;;  %v1494_v56 = vadd.f32 %v1493_v41, %v10940_v17  ;;  %v1916_v2 = vmax.f32 %v1603_v47, 0.0  ;;  %v1607_v12 = vadd.f32 %v1606_v20, %v10948_v30  ;;  %v1914_v61 = vmax.f32 %v1490_v6, 0.0  ;;  %v9525_v40 = vld [vmem:[#allocation9 + $0x4ec] ss:$16 sps:$4 sm:$0xff]   ;;  %v9520_v6 = vld [vmem:[#allocation9 + $0x4e0] ss:$16 sps:$4 sm:$0xff]  }
 0x1fe   :  { %v1929_v7 = vmax.f32 %v1492_v18, 0.0  ;;  %6524 = vmatpush1.bf16.msra.mxu1 %v9511_v27  ;;  %5621 = vmatprep.subr.bf16.mxu0 %v9516_v9  ;;  %v1931_v10 = vmax.f32 %v1605_v16, 0.0  ;;  %v9528_v41 = vld [vmem:[#allocation9 + $0x504] ss:$16 sps:$4 sm:$0xff]  }
 0x1ff   :  { %v1930_v34 = vmax.f32 %v1494_v56, 0.0  ;;  %5559 = vmatmul.mubr.bf16.gmra.mrb[140].mxu0 %v10667_v26  ;;  %6525 = vmatprep.subr.bf16.mxu1 %v9519_v33  ;;  %v1932_v8 = vmax.f32 %v1607_v12, 0.0 }
 0x200   :  { %v10966_v49 = vpack.c.bf16 %v1929_v7, %v1913_v19  ;;  %6463 = vmatmul.mubr.bf16.gmra.mrb[140].mxu1 %v10667_v26  ;;  %5568 = vmatprep.mubr.bf16.mxu0 %v10693_v29  ;;  %v10970_v37 = vpack.c.bf16 %v1931_v10, %v1915_v38  ;;  %v9523_v26 = vld [vmem:[#allocation9 + $0x4e8] ss:$16 sps:$4 sm:$0xff]  }
 0x201   :  { %v10972_v27 = vpack.c.bf16 %v1930_v34, %v1914_v61  ;;  %5622 = vmatpush1.bf16.msra.mxu0 %v9514_v35  ;;  %6472 = vmatprep.mubr.bf16.mxu1 %v10693_v29  ;;  %v1497_v9 = vpop.f32.mrb[68].mxu0  ;;  %v10975_v47 = vpack.c.bf16 %v1932_v8, %v1916_v2  ;;  %v1610_v18 = vpop.f32.mrb[68].mxu1  ;;  %v9531_v29 = vld [vmem:[#allocation9 + $0x50c] ss:$16 sps:$4 sm:$0xff]   ;;  %v9526_v61 = vld [vmem:[#allocation9 + $0x500] ss:$16 sps:$4 sm:$0xff]  }
 0x202   :  { %11667 = vst [vmem:[#allocation33_spill] sm:$0xff] %v10970_v37  ;;  %6526 = vmatpush1.bf16.msra.mxu1 %v9517_v57  ;;  %v1498_v33 = vadd.f32 %v1497_v9, %v10928_v45  ;;  %v1499_v12 = vpop.f32.mrb[69].mxu0  ;;  %5623 = vmatprep.subr.bf16.mxu0 %v9522_v50  ;;  %v1611_v10 = vadd.f32 %v1610_v18, %v10934_v48  ;;  %v1612_v38 = vpop.f32.mrb[69].mxu1  ;;  %v9529_v8 = vld [vmem:[#allocation9 + $0x508] ss:$16 sps:$4 sm:$0xff]  }
 0x203   :  { %11668 = vst [vmem:[#allocation34_spill] sm:$0xff] %v10975_v47  ;;  %v1500_v34 = vadd.f32 %v1499_v12, %v10940_v17  ;;  %6527 = vmatprep.subr.bf16.mxu1 %v9525_v40  ;;  %v1501_v16 = vpop.f32.mrb[70].mxu0  ;;  %v1613_v56 = vadd.f32 %v1612_v38, %v10948_v30  ;;  %v1614_v35 = vpop.f32.mrb[70].mxu1  ;;  %v9534_v38 = vld [vmem:[#allocation9 + $0x524] ss:$16 sps:$4 sm:$0xff]  }
 0x204   :  { %v1502_v20 = vadd.f32 %v1501_v16, %v10928_v45  ;;  %v1503_v57 = vpop.f32.mrb[71].mxu0  ;;  %v1947_v19 = vmax.f32 %v1611_v10, 0.0  ;;  %v1615_v2 = vadd.f32 %v1614_v35, %v10934_v48  ;;  %v1616_v50 = vpop.f32.mrb[71].mxu1  ;;  %v1945_v9 = vmax.f32 %v1498_v33, 0.0 }
 0x205   :  { %5624 = vmatpush1.bf16.msra.mxu0 %v9520_v6  ;;  %v1504_v7 = vadd.f32 %v1503_v57, %v10940_v17  ;;  %v1948_v18 = vmax.f32 %v1613_v56, 0.0  ;;  %v1617_v12 = vadd.f32 %v1616_v50, %v10948_v30  ;;  %v1946_v16 = vmax.f32 %v1500_v34, 0.0  ;;  %v9537_v6 = vld [vmem:[#allocation9 + $0x52c] ss:$16 sps:$4 sm:$0xff]   ;;  %v9532_v34 = vld [vmem:[#allocation9 + $0x520] ss:$16 sps:$4 sm:$0xff]  }
 0x206   :  { %v1961_v40 = vmax.f32 %v1502_v20, 0.0  ;;  %6528 = vmatpush1.bf16.msra.mxu1 %v9523_v26  ;;  %5625 = vmatprep.subr.bf16.mxu0 %v9528_v41  ;;  %v1963_v37 = vmax.f32 %v1615_v2, 0.0  ;;  %v9540_v2 = vld [vmem:[#allocation9 + $0x544] ss:$16 sps:$4 sm:$0xff]  }
 0x207   :  { %v1962_v47 = vmax.f32 %v1504_v7, 0.0  ;;  %5569 = vmatmul.mubr.bf16.gmra.mrb[144].mxu0 %v10688_v52  ;;  %6529 = vmatprep.subr.bf16.mxu1 %v9531_v29  ;;  %v1964_v35 = vmax.f32 %v1617_v12, 0.0 }
 0x208   :  { %v10986_v10 = vpack.c.bf16 %v1961_v40, %v1945_v9  ;;  %6473 = vmatmul.mubr.bf16.gmra.mrb[144].mxu1 %v10688_v52  ;;  %5578 = vmatprep.mubr.bf16.mxu0 %v10713_v32  ;;  %v10990_v33 = vpack.c.bf16 %v1963_v37, %v1947_v19  ;;  %v9535_v52 = vld [vmem:[#allocation9 + $0x528] ss:$16 sps:$4 sm:$0xff]  }
 0x209   :  { %v10992_v26 = vpack.c.bf16 %v1962_v47, %v1946_v16  ;;  %5626 = vmatpush1.bf16.msra.mxu0 %v9526_v61  ;;  %6482 = vmatprep.mubr.bf16.mxu1 %v10713_v32  ;;  %v1507_v41 = vpop.f32.mrb[72].mxu0  ;;  %v10995_v56 = vpack.c.bf16 %v1964_v35, %v1948_v18  ;;  %v1620_v20 = vpop.f32.mrb[72].mxu1  ;;  %v9543_v32 = vld [vmem:[#allocation9 + $0x54c] ss:$16 sps:$4 sm:$0xff]   ;;  %v9538_v16 = vld [vmem:[#allocation9 + $0x540] ss:$16 sps:$4 sm:$0xff]  }
 0x20a   :  { %11669 = vst [vmem:[#allocation35_spill] sm:$0xff] %v10990_v33  ;;  %6530 = vmatpush1.bf16.msra.mxu1 %v9529_v8  ;;  %v1508_v29 = vadd.f32 %v1507_v41, %v10928_v45  ;;  %v1509_v57 = vpop.f32.mrb[73].mxu0  ;;  %5627 = vmatprep.subr.bf16.mxu0 %v9534_v38  ;;  %v1621_v37 = vadd.f32 %v1620_v20, %v10934_v48  ;;  %v1622_v19 = vpop.f32.mrb[73].mxu1  ;;  %v9541_v35 = vld [vmem:[#allocation9 + $0x548] ss:$16 sps:$4 sm:$0xff]  }
 0x20b   :  { %11670 = vst [vmem:[#allocation36_spill] sm:$0xff] %v10995_v56  ;;  %v1510_v47 = vadd.f32 %v1509_v57, %v10940_v17  ;;  %6531 = vmatprep.subr.bf16.mxu1 %v9537_v6  ;;  %v1511_v7 = vpop.f32.mrb[74].mxu0  ;;  %v1623_v50 = vadd.f32 %v1622_v19, %v10948_v30  ;;  %v1624_v8 = vpop.f32.mrb[74].mxu1  ;;  %v9546_v19 = vld [vmem:[#allocation9 + $0x564] ss:$16 sps:$4 sm:$0xff]  }
 0x20c   :  { %v1512_v61 = vadd.f32 %v1511_v7, %v10928_v45  ;;  %v1513_v9 = vpop.f32.mrb[75].mxu0  ;;  %v1979_v18 = vmax.f32 %v1621_v37, 0.0  ;;  %v1625_v40 = vadd.f32 %v1624_v8, %v10934_v48  ;;  %v1626_v38 = vpop.f32.mrb[75].mxu1  ;;  %v1977_v41 = vmax.f32 %v1508_v29, 0.0 }
 0x20d   :  { %5628 = vmatpush1.bf16.msra.mxu0 %v9532_v34  ;;  %v1514_v12 = vadd.f32 %v1513_v9, %v10940_v17  ;;  %v1980_v20 = vmax.f32 %v1623_v50, 0.0  ;;  %v1627_v57 = vadd.f32 %v1626_v38, %v10948_v30  ;;  %v1978_v7 = vmax.f32 %v1510_v47, 0.0  ;;  %v9549_v34 = vld [vmem:[#allocation9 + $0x56c] ss:$16 sps:$4 sm:$0xff]   ;;  %v9544_v47 = vld [vmem:[#allocation9 + $0x560] ss:$16 sps:$4 sm:$0xff]  }
 0x20e   :  { %v1993_v6 = vmax.f32 %v1512_v61, 0.0  ;;  %6532 = vmatpush1.bf16.msra.mxu1 %v9535_v52  ;;  %5629 = vmatprep.subr.bf16.mxu0 %v9540_v2  ;;  %v1995_v33 = vmax.f32 %v1625_v40, 0.0  ;;  %v9552_v40 = vld [vmem:[#allocation9 + $0x584] ss:$16 sps:$4 sm:$0xff]  }
 0x20f   :  { %v1994_v56 = vmax.f32 %v1514_v12, 0.0  ;;  %5579 = vmatmul.mubr.bf16.gmra.mrb[148].mxu0 %v10709_v21  ;;  %6533 = vmatprep.subr.bf16.mxu1 %v9543_v32  ;;  %v1996_v8 = vmax.f32 %v1627_v57, 0.0 }
 0x210   :  { %v11006_v37 = vpack.c.bf16 %v1993_v6, %v1977_v41  ;;  %6483 = vmatmul.mubr.bf16.gmra.mrb[148].mxu1 %v10709_v21  ;;  %5588 = vmatprep.mubr.bf16.mxu0 %v10736_v28  ;;  %v11010_v29 = vpack.c.bf16 %v1995_v33, %v1979_v18  ;;  %v9547_v21 = vld [vmem:[#allocation9 + $0x568] ss:$16 sps:$4 sm:$0xff]  }
 0x211   :  { %v11012_v52 = vpack.c.bf16 %v1994_v56, %v1978_v7  ;;  %5630 = vmatpush1.bf16.msra.mxu0 %v9538_v16  ;;  %6492 = vmatprep.mubr.bf16.mxu1 %v10736_v28  ;;  %v1517_v2 = vpop.f32.mrb[76].mxu0  ;;  %v11015_v50 = vpack.c.bf16 %v1996_v8, %v1980_v20  ;;  %v1630_v61 = vpop.f32.mrb[76].mxu1  ;;  %v9555_v28 = vld [vmem:[#allocation9 + $0x58c] ss:$16 sps:$4 sm:$0xff]   ;;  %v9550_v7 = vld [vmem:[#allocation9 + $0x580] ss:$16 sps:$4 sm:$0xff]  }
 0x212   :  { %11671 = vst [vmem:[#allocation37_spill] sm:$0xff] %v11010_v29  ;;  %6534 = vmatpush1.bf16.msra.mxu1 %v9541_v35  ;;  %v1518_v32 = vadd.f32 %v1517_v2, %v10928_v45  ;;  %v1519_v9 = vpop.f32.mrb[77].mxu0  ;;  %5631 = vmatprep.subr.bf16.mxu0 %v9546_v19  ;;  %v1631_v33 = vadd.f32 %v1630_v61, %v10934_v48  ;;  %v1632_v18 = vpop.f32.mrb[77].mxu1  ;;  %v9553_v8 = vld [vmem:[#allocation9 + $0x588] ss:$16 sps:$4 sm:$0xff]  }
 0x213   :  { %11672 = vst [vmem:[#allocation38_spill] sm:$0xff] %v11015_v50  ;;  %v1520_v56 = vadd.f32 %v1519_v9, %v10940_v17  ;;  %6535 = vmatprep.subr.bf16.mxu1 %v9549_v34  ;;  %v1521_v12 = vpop.f32.mrb[78].mxu0  ;;  %v1633_v38 = vadd.f32 %v1632_v18, %v10948_v30  ;;  %v1634_v35 = vpop.f32.mrb[78].mxu1  ;;  %v9558_v18 = vld [vmem:[#allocation9 + $0x5a4] ss:$16 sps:$4 sm:$0xff]  }
 0x214   :  { %v1522_v16 = vadd.f32 %v1521_v12, %v10928_v45  ;;  %v1523_v41 = vpop.f32.mrb[79].mxu0  ;;  %v2011_v20 = vmax.f32 %v1631_v33, 0.0  ;;  %v1635_v6 = vadd.f32 %v1634_v35, %v10934_v48  ;;  %v1636_v19 = vpop.f32.mrb[79].mxu1  ;;  %v2009_v2 = vmax.f32 %v1518_v32, 0.0 }
 0x215   :  { %5632 = vmatpush1.bf16.msra.mxu0 %v9544_v47  ;;  %v1524_v57 = vadd.f32 %v1523_v41, %v10940_v17  ;;  %v2012_v61 = vmax.f32 %v1633_v38, 0.0  ;;  %v1637_v9 = vadd.f32 %v1636_v19, %v10948_v30  ;;  %v2010_v12 = vmax.f32 %v1520_v56, 0.0  ;;  %v9561_v47 = vld [vmem:[#allocation9 + $0x5ac] ss:$16 sps:$4 sm:$0xff]   ;;  %v9556_v56 = vld [vmem:[#allocation9 + $0x5a0] ss:$16 sps:$4 sm:$0xff]  }
 0x216   :  { %v2025_v34 = vmax.f32 %v1522_v16, 0.0  ;;  %6536 = vmatpush1.bf16.msra.mxu1 %v9547_v21  ;;  %5633 = vmatprep.subr.bf16.mxu0 %v9552_v40  ;;  %v2027_v29 = vmax.f32 %v1635_v6, 0.0  ;;  %v9564_v6 = vld [vmem:[#allocation9 + $0x5c4] ss:$16 sps:$4 sm:$0xff]  }
 0x217   :  { %v2026_v50 = vmax.f32 %v1524_v57, 0.0  ;;  %5589 = vmatmul.mubr.bf16.gmra.mrb[152].mxu0 %v10730_v31  ;;  %6537 = vmatprep.subr.bf16.mxu1 %v9555_v28  ;;  %v2028_v35 = vmax.f32 %v1637_v9, 0.0 }
 0x218   :  { %v11026_v33 = vpack.c.bf16 %v2025_v34, %v2009_v2  ;;  %6493 = vmatmul.mubr.bf16.gmra.mrb[152].mxu1 %v10730_v31  ;;  %5598 = vmatprep.mubr.bf16.mxu0 %v10777_v24  ;;  %v11030_v32 = vpack.c.bf16 %v2027_v29, %v2011_v20  ;;  %v9559_v31 = vld [vmem:[#allocation9 + $0x5a8] ss:$16 sps:$4 sm:$0xff]  }
 0x219   :  { %v11032_v21 = vpack.c.bf16 %v2026_v50, %v2010_v12  ;;  %5634 = vmatpush1.bf16.msra.mxu0 %v9550_v7  ;;  %6502 = vmatprep.mubr.bf16.mxu1 %v10777_v24  ;;  %v1527_v40 = vpop.f32.mrb[80].mxu0  ;;  %v11035_v38 = vpack.c.bf16 %v2028_v35, %v2012_v61  ;;  %v1640_v16 = vpop.f32.mrb[80].mxu1  ;;  %v9567_v24 = vld [vmem:[#allocation9 + $0x5cc] ss:$16 sps:$4 sm:$0xff]   ;;  %v9562_v12 = vld [vmem:[#allocation9 + $0x5c0] ss:$16 sps:$4 sm:$0xff]  }
 0x21a   :  { %11673 = vst [vmem:[#allocation39_spill] sm:$0xff] %v11030_v32  ;;  %6538 = vmatpush1.bf16.msra.mxu1 %v9553_v8  ;;  %v1528_v28 = vadd.f32 %v1527_v40, %v10928_v45  ;;  %v1529_v41 = vpop.f32.mrb[81].mxu0  ;;  %5635 = vmatprep.subr.bf16.mxu0 %v9558_v18  ;;  %v1641_v29 = vadd.f32 %v1640_v16, %v10934_v48  ;;  %v1642_v20 = vpop.f32.mrb[81].mxu1  ;;  %v9565_v35 = vld [vmem:[#allocation9 + $0x5c8] ss:$16 sps:$4 sm:$0xff]  }
 0x21b   :  { %11674 = vst [vmem:[#allocation40_spill] sm:$0xff] %v11035_v38  ;;  %v1530_v50 = vadd.f32 %v1529_v41, %v10940_v17  ;;  %6539 = vmatprep.subr.bf16.mxu1 %v9561_v47  ;;  %v1531_v57 = vpop.f32.mrb[82].mxu0  ;;  %v1643_v19 = vadd.f32 %v1642_v20, %v10948_v30  ;;  %v1644_v8 = vpop.f32.mrb[82].mxu1  ;;  %v9570_v20 = vld [vmem:[#allocation9 + $0x5e4] ss:$16 sps:$4 sm:$0xff]  }
 0x21c   :  { %v1532_v7 = vadd.f32 %v1531_v57, %v10928_v45  ;;  %v1533_v2 = vpop.f32.mrb[83].mxu0  ;;  %v2043_v61 = vmax.f32 %v1641_v29, 0.0  ;;  %v1645_v34 = vadd.f32 %v1644_v8, %v10934_v48  ;;  %v1646_v18 = vpop.f32.mrb[83].mxu1  ;;  %v2041_v40 = vmax.f32 %v1528_v28, 0.0 }
 0x21d   :  { %5636 = vmatpush1.bf16.msra.mxu0 %v9556_v56  ;;  %v1534_v9 = vadd.f32 %v1533_v2, %v10940_v17  ;;  %v2044_v16 = vmax.f32 %v1643_v19, 0.0  ;;  %v1647_v41 = vadd.f32 %v1646_v18, %v10948_v30  ;;  %v2042_v57 = vmax.f32 %v1530_v50, 0.0  ;;  %v9573_v56 = vld [vmem:[#allocation9 + $0x5ec] ss:$16 sps:$4 sm:$0xff]   ;;  %v9568_v50 = vld [vmem:[#allocation9 + $0x5e0] ss:$16 sps:$4 sm:$0xff]  }
 0x21e   :  { %v2057_v47 = vmax.f32 %v1532_v7, 0.0  ;;  %6540 = vmatpush1.bf16.msra.mxu1 %v9559_v31  ;;  %5637 = vmatprep.subr.bf16.mxu0 %v9564_v6  ;;  %v2059_v32 = vmax.f32 %v1645_v34, 0.0  ;;  %v9576_v34 = vld [vmem:[#allocation9 + $0x604] ss:$16 sps:$4 sm:$0xff]  }
 0x21f   :  { %v2058_v38 = vmax.f32 %v1534_v9, 0.0  ;;  %5599 = vmatmul.mubr.bf16.gmra.mrb[156].mxu0 %v10773_v44  ;;  %6541 = vmatprep.subr.bf16.mxu1 %v9567_v24  ;;  %v2060_v8 = vmax.f32 %v1647_v41, 0.0 }
 0x220   :  { %v11046_v29 = vpack.c.bf16 %v2057_v47, %v2041_v40  ;;  %6503 = vmatmul.mubr.bf16.gmra.mrb[156].mxu1 %v10773_v44  ;;  %5641 = vmatprep.mubr.bf16.mxu0 %v10795_v63  ;;  %v11050_v28 = vpack.c.bf16 %v2059_v32, %v2043_v61  ;;  %v9571_v44 = vld [vmem:[#allocation9 + $0x5e8] ss:$16 sps:$4 sm:$0xff]  }
 0x221   :  { %v11052_v31 = vpack.c.bf16 %v2058_v38, %v2042_v57  ;;  %5638 = vmatpush1.bf16.msra.mxu0 %v9562_v12  ;;  %6545 = vmatprep.mubr.bf16.mxu1 %v10795_v63  ;;  %v1537_v6 = vpop.f32.mrb[84].mxu0  ;;  %v11055_v19 = vpack.c.bf16 %v2060_v8, %v2044_v16  ;;  %v1650_v7 = vpop.f32.mrb[84].mxu1  ;;  %v9579_v63 = vld [vmem:[#allocation9 + $0x60c] ss:$16 sps:$4 sm:$0xff]   ;;  %v9574_v57 = vld [vmem:[#allocation9 + $0x600] ss:$16 sps:$4 sm:$0xff]  }
 0x222   :  { %11675 = vst [vmem:[#allocation41_spill] sm:$0xff] %v11050_v28  ;;  %6542 = vmatpush1.bf16.msra.mxu1 %v9565_v35  ;;  %v1538_v24 = vadd.f32 %v1537_v6, %v10928_v45  ;;  %v1539_v2 = vpop.f32.mrb[85].mxu0  ;;  %5639 = vmatprep.subr.bf16.mxu0 %v9570_v20  ;;  %v1651_v32 = vadd.f32 %v1650_v7, %v10934_v48  ;;  %v1652_v61 = vpop.f32.mrb[85].mxu1 }
 0x223   :  { %11676 = vst [vmem:[#allocation42_spill] sm:$0xff] %v11055_v19  ;;  %v1540_v38 = vadd.f32 %v1539_v2, %v10940_v17  ;;  %6543 = vmatprep.subr.bf16.mxu1 %v9573_v56  ;;  %v1541_v9 = vpop.f32.mrb[86].mxu0  ;;  %v1653_v18 = vadd.f32 %v1652_v61, %v10948_v30  ;;  %v1654_v35 = vpop.f32.mrb[86].mxu1  ;;  %v9577_v2 = vld [vmem:[#allocation9 + $0x608] ss:$16 sps:$4 sm:$0xff]  }
 0x224   :  { %v1542_v12 = vadd.f32 %v1541_v9, %v10928_v45  ;;  %v1543_v40 = vpop.f32.mrb[87].mxu0  ;;  %v2075_v16 = vmax.f32 %v1651_v32, 0.0  ;;  %v1655_v47 = vadd.f32 %v1654_v35, %v10934_v48  ;;  %v1656_v20 = vpop.f32.mrb[87].mxu1  ;;  %v2073_v8 = vmax.f32 %v1538_v24, 0.0  ;;  %v9582_v32 = vld [vmem:[#allocation9 + $0x624] ss:$16 sps:$4 sm:$0xff]  }
 0x225   :  { %5640 = vmatpush1.bf16.msra.mxu0 %v9568_v50  ;;  %v1544_v41 = vadd.f32 %v1543_v40, %v10940_v17  ;;  %v2076_v6 = vmax.f32 %v1653_v18, 0.0  ;;  %v1657_v56 = vadd.f32 %v1656_v20, %v10948_v30  ;;  %v2074_v61 = vmax.f32 %v1540_v38, 0.0  ;;  %v9585_v35 = vld [vmem:[#allocation9 + $0x62c] ss:$16 sps:$4 sm:$0xff]   ;;  %v9588_v20 = vld [vmem:[#allocation9 + $0x644] ss:$16 sps:$4 sm:$0xff]  }
 0x226   :  { %v2089_v7 = vmax.f32 %v1542_v12, 0.0  ;;  %6544 = vmatpush1.bf16.msra.mxu1 %v9571_v44  ;;  %5722 = vmatprep.subr.bf16.mxu0 %v9576_v34  ;;  %v2091_v9 = vmax.f32 %v1655_v47, 0.0  ;;  %v9580_v12 = vld [vmem:[#allocation9 + $0x620] ss:$16 sps:$4 sm:$0xff]  }
 0x227   :  { %v2090_v28 = vmax.f32 %v1544_v41, 0.0  ;;  %6626 = vmatprep.subr.bf16.mxu1 %v9579_v63  ;;  %v2092_v50 = vmax.f32 %v1657_v56, 0.0 }
 0x228   :  { %v11065_v19 = vpack.c.bf16 %v2089_v7, %v2073_v8  ;;  %5642 = vmatmul.mubr.bf16.vlgmr.msra.gmra.mrb[128].mxu0 %v10790_v43  ;;  %v11068_v40 = vpack.c.bf16 %v2091_v9, %v2075_v16  ;;  %v9591_v7 = vld [vmem:[#allocation9 + $0x64c] ss:$16 sps:$4 sm:$0xff]  }
 0x229   :  { %v11070_v24 = vpack.c.bf16 %v2090_v28, %v2074_v61  ;;  %6546 = vmatmul.mubr.bf16.vlgmr.msra.gmra.mrb[128].mxu1 %v10790_v43  ;;  %5651 = vmatprep.mubr.bf16.mxu0 %v10815_v0  ;;  %v1547_v44 = vpop.f32.mrb[88].mxu0  ;;  %v11074_v34 = vpack.c.bf16 %v2092_v50, %v2076_v6  ;;  %v1660_v63 = vpop.f32.mrb[88].mxu1  ;;  %v9583_v43 = vld [vmem:[#allocation9 + $0x628] ss:$16 sps:$4 sm:$0xff]   ;;  %v9586_v50 = vld [vmem:[#allocation9 + $0x640] ss:$16 sps:$4 sm:$0xff]  }
 0x22a   :  { %11677 = vst [vmem:[#allocation43_spill] sm:$0xff] %v11068_v40  ;;  %5723 = vmatpush1.bf16.msra.mxu0 %v9574_v57  ;;  %6555 = vmatprep.mubr.bf16.mxu1 %v10815_v0  ;;  %v1548_v38 = vadd.f32 %v1547_v44, %v10928_v45  ;;  %v1549_v18 = vpop.f32.mrb[89].mxu0  ;;  %v1661_v16 = vadd.f32 %v1660_v63, %v10934_v48  ;;  %v1662_v47 = vpop.f32.mrb[89].mxu1 }
 0x22b   :  { %11678 = vst [vmem:[#allocation44_spill] sm:$0xff] %v11074_v34  ;;  %6627 = vmatpush1.bf16.msra.mxu1 %v9577_v2  ;;  %v1550_v28 = vadd.f32 %v1549_v18, %v10940_v17  ;;  %5724 = vmatprep.subr.bf16.mxu0 %v9582_v32  ;;  %v1551_v41 = vpop.f32.mrb[90].mxu0  ;;  %v1663_v8 = vadd.f32 %v1662_v47, %v10948_v30  ;;  %v1664_v57 = vpop.f32.mrb[90].mxu1  ;;  %v9589_v47 = vld [vmem:[#allocation9 + $0x648] ss:$16 sps:$4 sm:$0xff]  }
 0x22c   :  { %6628 = vmatprep.subr.bf16.mxu1 %v9585_v35  ;;  %v1552_v0 = vadd.f32 %v1551_v41, %v10928_v45  ;;  %v1553_v6 = vpop.f32.mrb[91].mxu0  ;;  %v2107_v56 = vmax.f32 %v1661_v16, 0.0  ;;  %v1665_v2 = vadd.f32 %v1664_v57, %v10934_v48  ;;  %v1666_v9 = vpop.f32.mrb[91].mxu1  ;;  %v2105_v44 = vmax.f32 %v1548_v38, 0.0  ;;  %v9594_v34 = vld [vmem:[#allocation9 + $0x664] ss:$16 sps:$4 sm:$0xff]  }
 0x22d   :  { %v1554_v61 = vadd.f32 %v1553_v6, %v10940_v17  ;;  %v2108_v32 = vmax.f32 %v1663_v8, 0.0  ;;  %v1667_v18 = vadd.f32 %v1666_v9, %v10948_v30  ;;  %v2106_v35 = vmax.f32 %v1550_v28, 0.0  ;;  %v9597_v6 = vld [vmem:[#allocation9 + $0x66c] ss:$16 sps:$4 sm:$0xff]   ;;  %v9600_v9 = vld [vmem:[#allocation9 + $0x684] ss:$16 sps:$4 sm:$0xff]  }
 0x22e   :  { %v2121_v63 = vmax.f32 %v1552_v0, 0.0  ;;  %5725 = vmatpush1.bf16.msra.mxu0 %v9580_v12  ;;  %v2123_v40 = vmax.f32 %v1665_v2, 0.0 }
 0x22f   :  { %6629 = vmatpush1.bf16.msra.mxu1 %v9583_v43  ;;  %v2122_v41 = vmax.f32 %v1554_v61, 0.0  ;;  %5726 = vmatprep.subr.bf16.mxu0 %v9588_v20  ;;  %v2124_v57 = vmax.f32 %v1667_v18, 0.0  ;;  %v11680_v18 = vsub.s32 4, %v10556_v11 }
 0x230   :  { %v11085_v16 = vpack.c.bf16 %v2121_v63, %v2105_v44  ;;  %5652 = vmatmul.mubr.bf16.gmra.mrb[132].mxu0 %v10810_v54  ;;  %6630 = vmatprep.subr.bf16.mxu1 %v9591_v7  ;;  %v11088_v38 = vpack.c.bf16 %v2123_v40, %v2107_v56  ;;  %v9592_v7 = vld [vmem:[#allocation9 + $0x660] ss:$16 sps:$4 sm:$0xff]   ;;  %v9603_v63 = vld [vmem:[#allocation9 + $0x68c] ss:$16 sps:$4 sm:$0xff]  }
 0x231   :  { %v11090_v8 = vpack.c.bf16 %v2122_v41, %v2106_v35  ;;  %6556 = vmatmul.mubr.bf16.gmra.mrb[132].mxu1 %v10810_v54  ;;  %5661 = vmatprep.mubr.bf16.mxu0 %v10835_v62  ;;  %v1557_v12 = vpop.f32.mrb[92].mxu0  ;;  %v11094_v28 = vpack.c.bf16 %v2124_v57, %v2108_v32  ;;  %v1670_v20 = vpop.f32.mrb[92].mxu1  ;;  %v9595_v54 = vld [vmem:[#allocation9 + $0x668] ss:$16 sps:$4 sm:$0xff]  }
 0x232   :  { %11679 = vst [vmem:[#allocation45_spill] sm:$0xff] %v11088_v38  ;;  %5727 = vmatpush1.bf16.msra.mxu0 %v9586_v50  ;;  %6565 = vmatprep.mubr.bf16.mxu1 %v10835_v62  ;;  %v1558_v43 = vadd.f32 %v1557_v12, %v10928_v45  ;;  %v1559_v0 = vpop.f32.mrb[93].mxu0  ;;  %v1671_v40 = vadd.f32 %v1670_v20, %v10934_v48  ;;  %v1672_v2 = vpop.f32.mrb[93].mxu1  ;;  %v9598_v12 = vld [vmem:[#allocation9 + $0x680] ss:$16 sps:$4 sm:$0xff]   ;;  %v11681_v20 = vsub.s32 6, %v10556_v11 }
 0x233   :  { %6631 = vmatpush1.bf16.msra.mxu1 %v9589_v47  ;;  %v1560_v56 = vadd.f32 %v1559_v0, %v10940_v17  ;;  %5728 = vmatprep.subr.bf16.mxu0 %v9594_v34  ;;  %v1561_v61 = vpop.f32.mrb[94].mxu0  ;;  %v1673_v44 = vadd.f32 %v1672_v2, %v10948_v30  ;;  %v1674_v50 = vpop.f32.mrb[94].mxu1  ;;  %v11105_v47 = vrot.slane %v10917_v59, %v11680_v18  ;;  %v9601_v18 = vld [vmem:[#allocation9 + $0x688] ss:$16 sps:$4 sm:$0xff]  }
 0x234   :  { %6632 = vmatprep.subr.bf16.mxu1 %v9597_v6  ;;  %v1562_v62 = vadd.f32 %v1561_v61, %v10928_v45  ;;  %v1563_v32 = vpop.f32.mrb[95].mxu0  ;;  %v2139_v35 = vmax.f32 %v1671_v40, 0.0  ;;  %v1675_v41 = vadd.f32 %v1674_v50, %v10934_v48  ;;  %v1676_v57 = vpop.f32.mrb[95].mxu1  ;;  %v11112_v6 = vrot.slane %v10917_v59, %v11681_v20 }
 0x235   :  { %v1564_v34 = vadd.f32 %v1563_v32, %v10940_v17  ;;  %v2137_v45 = vmax.f32 %v1558_v43, 0.0  ;;  %v2140_v0 = vmax.f32 %v1673_v44, 0.0  ;;  %v1677_v61 = vadd.f32 %v1676_v57, %v10948_v30  ;;  %v9606_v32 = vld [vmem:[#allocation9 + $0x6a4] ss:$16 sps:$4 sm:$0xff]  }
 0x236   :  { %v2153_v2 = vmax.f32 %v1562_v62, 0.0  ;;  %5729 = vmatpush1.bf16.msra.mxu0 %v9592_v7  ;;  %v2138_v38 = vmax.f32 %v1560_v56, 0.0  ;;  %v2155_v40 = vmax.f32 %v1675_v41, 0.0  ;;  %v11682_v17 = vsub.s32 5, %v10556_v11  ;;  %v9609_v56 = vld [vmem:[#allocation9 + $0x6ac] ss:$16 sps:$4 sm:$0xff]  }
 0x237   :  { %6633 = vmatpush1.bf16.msra.mxu1 %v9595_v54  ;;  %v2154_v48 = vmax.f32 %v1564_v34, 0.0  ;;  %5730 = vmatprep.subr.bf16.mxu0 %v9600_v9  ;;  %v2156_v43 = vmax.f32 %v1677_v61, 0.0  ;;  %v11683_v30 = vsub.s32 7, %v10556_v11  ;;  %v9604_v41 = vld [vmem:[#allocation9 + $0x6a0] ss:$16 sps:$4 sm:$0xff]  }
 0x238   :  { %v11118_v50 = vrot.slane %v10917_v59, %v11682_v17  ;;  %v11120_v20 = vpack.c.bf16 %v2153_v2, %v2137_v45  ;;  %5662 = vmatmul.mubr.bf16.gmra.mrb[136].mxu0 %v10830_v15  ;;  %6634 = vmatprep.subr.bf16.mxu1 %v9603_v63  ;;  %v11128_v54 = vpack.c.bf16 %v2155_v40, %v2139_v35  ;;  %v9612_v45 = vld [vmem:[#allocation9 + $0x6c4] ss:$16 sps:$4 sm:$0xff]   ;;  %v9615_v61 = vld [vmem:[#allocation9 + $0x6cc] ss:$16 sps:$4 sm:$0xff]  }
 0x239   :  { %v11126_v7 = vrot.slane %v10917_v59, %v11683_v30  ;;  %v11130_v9 = vpack.c.bf16 %v2154_v48, %v2138_v38  ;;  %6566 = vmatmul.mubr.bf16.gmra.mrb[136].mxu1 %v10830_v15  ;;  %5671 = vmatprep.mubr.bf16.mxu0 %v10855_v13  ;;  %v1713_v44 = vpop.f32.mrb[96].mxu0  ;;  %v11134_v62 = vpack.c.bf16 %v2156_v43, %v2140_v0  ;;  %v1826_v63 = vpop.f32.mrb[96].mxu1  ;;  %v9607_v15 = vld [vmem:[#allocation9 + $0x6a8] ss:$16 sps:$4 sm:$0xff]   ;;  %v9610_v43 = vld [vmem:[#allocation9 + $0x6c0] ss:$16 sps:$4 sm:$0xff]  }
 0x23a   :  { %11684 = vst [vmem:[#allocation46_spill] sm:$0xff] %v11128_v54  ;;  %5731 = vmatpush1.bf16.msra.mxu0 %v9598_v12  ;;  %6575 = vmatprep.mubr.bf16.mxu1 %v10855_v13  ;;  %v1714_v11 = vadd.f32 %v1713_v44, %v11105_v47  ;;  %v1715_v59 = vpop.f32.mrb[97].mxu0  ;;  %v1827_v35 = vadd.f32 %v1826_v63, %v11112_v6  ;;  %v1828_v34 = vpop.f32.mrb[97].mxu1  ;;  %v9618_v54 = vld [vmem:[#allocation9 + $0x6e4] ss:$16 sps:$4 sm:$0xff]  }
 0x23b   :  { %6635 = vmatpush1.bf16.msra.mxu1 %v9601_v18  ;;  %v1716_v38 = vadd.f32 %v1715_v59, %v11118_v50  ;;  %5732 = vmatprep.subr.bf16.mxu0 %v9606_v32  ;;  %v1717_v57 = vpop.f32.mrb[98].mxu0  ;;  %v1829_v0 = vadd.f32 %v1828_v34, %v11126_v7  ;;  %v1830_v12 = vpop.f32.mrb[98].mxu1  ;;  %v9613_v59 = vld [vmem:[#allocation9 + $0x6c8] ss:$16 sps:$4 sm:$0xff]  }
 0x23c   :  { %6636 = vmatprep.subr.bf16.mxu1 %v9609_v56  ;;  %v1718_v13 = vadd.f32 %v1717_v57, %v11105_v47  ;;  %v1719_v2 = vpop.f32.mrb[99].mxu0  ;;  %v1919_v40 = vmax.f32 %v1827_v35, 0.0  ;;  %v1831_v18 = vadd.f32 %v1830_v12, %v11112_v6  ;;  %v1832_v17 = vpop.f32.mrb[99].mxu1  ;;  %v1917_v30 = vmax.f32 %v1714_v11, 0.0 }
 0x23d   :  { %v1720_v48 = vadd.f32 %v1719_v2, %v11118_v50  ;;  %v1920_v32 = vmax.f32 %v1829_v0, 0.0  ;;  %v1833_v63 = vadd.f32 %v1832_v17, %v11126_v7  ;;  %v1918_v56 = vmax.f32 %v1716_v38, 0.0  ;;  %v9621_v2 = vld [vmem:[#allocation9 + $0x6ec] ss:$16 sps:$4 sm:$0xff]  }
 0x23e   :  { %v1933_v44 = vmax.f32 %v1718_v13, 0.0  ;;  %5733 = vmatpush1.bf16.msra.mxu0 %v9604_v41  ;;  %v1935_v34 = vmax.f32 %v1831_v18, 0.0 }
 0x23f   :  { %6637 = vmatpush1.bf16.msra.mxu1 %v9607_v15  ;;  %v1934_v57 = vmax.f32 %v1720_v48, 0.0  ;;  %5734 = vmatprep.subr.bf16.mxu0 %v9612_v45  ;;  %v1936_v12 = vmax.f32 %v1833_v63, 0.0  ;;  %v9627_v63 = vld [vmem:[#allocation9 + $0x70c] ss:$16 sps:$4 sm:$0xff]  }
 0x240   :  { %v11145_v35 = vpack.c.bf16 %v1933_v44, %v1917_v30  ;;  %5672 = vmatmul.mubr.bf16.gmra.mrb[140].mxu0 %v10850_v46  ;;  %6638 = vmatprep.subr.bf16.mxu1 %v9615_v61  ;;  %v11148_v11 = vpack.c.bf16 %v1935_v34, %v1919_v40  ;;  %v9616_v61 = vld [vmem:[#allocation9 + $0x6e0] ss:$16 sps:$4 sm:$0xff]   ;;  %v9624_v30 = vld [vmem:[#allocation9 + $0x704] ss:$16 sps:$4 sm:$0xff]  }
 0x241   :  { %v11150_v0 = vpack.c.bf16 %v1934_v57, %v1918_v56  ;;  %6576 = vmatmul.mubr.bf16.gmra.mrb[140].mxu1 %v10850_v46  ;;  %5681 = vmatprep.mubr.bf16.mxu0 %v10875_v1  ;;  %v1723_v41 = vpop.f32.mrb[100].mxu0  ;;  %v11154_v38 = vpack.c.bf16 %v1936_v12, %v1920_v32  ;;  %v1836_v45 = vpop.f32.mrb[100].mxu1  ;;  %v9619_v46 = vld [vmem:[#allocation9 + $0x6e8] ss:$16 sps:$4 sm:$0xff]   ;;  %v9622_v12 = vld [vmem:[#allocation9 + $0x700] ss:$16 sps:$4 sm:$0xff]  }
 0x242   :  { %11685 = vst [vmem:[#allocation47_spill] sm:$0xff] %v11148_v11  ;;  %5735 = vmatpush1.bf16.msra.mxu0 %v9610_v43  ;;  %6585 = vmatprep.mubr.bf16.mxu1 %v10875_v1  ;;  %v1724_v15 = vadd.f32 %v1723_v41, %v11105_v47  ;;  %v1725_v13 = vpop.f32.mrb[101].mxu0  ;;  %v1837_v40 = vadd.f32 %v1836_v45, %v11112_v6  ;;  %v1838_v48 = vpop.f32.mrb[101].mxu1 }
 0x243   :  { %11686 = vst [vmem:[#allocation48_spill] sm:$0xff] %v11154_v38  ;;  %6639 = vmatpush1.bf16.msra.mxu1 %v9613_v59  ;;  %v1726_v18 = vadd.f32 %v1725_v13, %v11118_v50  ;;  %5736 = vmatprep.subr.bf16.mxu0 %v9618_v54  ;;  %v1727_v17 = vpop.f32.mrb[102].mxu0  ;;  %v1839_v32 = vadd.f32 %v1838_v48, %v11126_v7  ;;  %v1840_v43 = vpop.f32.mrb[102].mxu1  ;;  %v9625_v48 = vld [vmem:[#allocation9 + $0x708] ss:$16 sps:$4 sm:$0xff]  }
 0x244   :  { %6640 = vmatprep.subr.bf16.mxu1 %v9621_v2  ;;  %v1728_v1 = vadd.f32 %v1727_v17, %v11105_v47  ;;  %v1729_v44 = vpop.f32.mrb[103].mxu0  ;;  %v1951_v56 = vmax.f32 %v1837_v40, 0.0  ;;  %v1841_v59 = vadd.f32 %v1840_v43, %v11112_v6  ;;  %v1842_v57 = vpop.f32.mrb[103].mxu1  ;;  %v1949_v41 = vmax.f32 %v1724_v15, 0.0  ;;  %v9630_v38 = vld [vmem:[#allocation9 + $0x724] ss:$16 sps:$4 sm:$0xff]  }
 0x245   :  { %v1730_v34 = vadd.f32 %v1729_v44, %v11118_v50  ;;  %v1952_v54 = vmax.f32 %v1839_v32, 0.0  ;;  %v1843_v13 = vadd.f32 %v1842_v57, %v11126_v7  ;;  %v1950_v2 = vmax.f32 %v1726_v18, 0.0  ;;  %v9633_v44 = vld [vmem:[#allocation9 + $0x72c] ss:$16 sps:$4 sm:$0xff]   ;;  %v9636_v57 = vld [vmem:[#allocation9 + $0x744] ss:$16 sps:$4 sm:$0xff]  }
 0x246   :  { %v1965_v45 = vmax.f32 %v1728_v1, 0.0  ;;  %5737 = vmatpush1.bf16.msra.mxu0 %v9616_v61  ;;  %v1967_v11 = vmax.f32 %v1841_v59, 0.0 }
 0x247   :  { %6641 = vmatpush1.bf16.msra.mxu1 %v9619_v46  ;;  %v1966_v17 = vmax.f32 %v1730_v34, 0.0  ;;  %5738 = vmatprep.subr.bf16.mxu0 %v9624_v30  ;;  %v1968_v43 = vmax.f32 %v1843_v13, 0.0 }
 0x248   :  { %v11165_v40 = vpack.c.bf16 %v1965_v45, %v1949_v41  ;;  %5682 = vmatmul.mubr.bf16.gmra.mrb[144].mxu0 %v10870_v36  ;;  %6642 = vmatprep.subr.bf16.mxu1 %v9627_v63  ;;  %v11168_v15 = vpack.c.bf16 %v1967_v11, %v1951_v56  ;;  %v9628_v63 = vld [vmem:[#allocation9 + $0x720] ss:$16 sps:$4 sm:$0xff]   ;;  %v9639_v45 = vld [vmem:[#allocation9 + $0x74c] ss:$16 sps:$4 sm:$0xff]  }
 0x249   :  { %v11170_v32 = vpack.c.bf16 %v1966_v17, %v1950_v2  ;;  %6586 = vmatmul.mubr.bf16.gmra.mrb[144].mxu1 %v10870_v36  ;;  %5691 = vmatprep.mubr.bf16.mxu0 %v10894_v4  ;;  %v1733_v61 = vpop.f32.mrb[104].mxu0  ;;  %v11174_v18 = vpack.c.bf16 %v1968_v43, %v1952_v54  ;;  %v1846_v30 = vpop.f32.mrb[104].mxu1  ;;  %v9631_v36 = vld [vmem:[#allocation9 + $0x728] ss:$16 sps:$4 sm:$0xff]   ;;  %v9634_v43 = vld [vmem:[#allocation9 + $0x740] ss:$16 sps:$4 sm:$0xff]  }
 0x24a   :  { %11687 = vst [vmem:[#allocation49_spill] sm:$0xff] %v11168_v15  ;;  %5739 = vmatpush1.bf16.msra.mxu0 %v9622_v12  ;;  %6595 = vmatprep.mubr.bf16.mxu1 %v10894_v4  ;;  %v1734_v46 = vadd.f32 %v1733_v61, %v11105_v47  ;;  %v1735_v1 = vpop.f32.mrb[105].mxu0  ;;  %v1847_v11 = vadd.f32 %v1846_v30, %v11112_v6  ;;  %v1848_v59 = vpop.f32.mrb[105].mxu1 }
 0x24b   :  { %11688 = vst [vmem:[#allocation50_spill] sm:$0xff] %v11174_v18  ;;  %6643 = vmatpush1.bf16.msra.mxu1 %v9625_v48  ;;  %v1736_v56 = vadd.f32 %v1735_v1, %v11118_v50  ;;  %5740 = vmatprep.subr.bf16.mxu0 %v9630_v38  ;;  %v1737_v34 = vpop.f32.mrb[106].mxu0  ;;  %v1849_v41 = vadd.f32 %v1848_v59, %v11126_v7  ;;  %v1850_v12 = vpop.f32.mrb[106].mxu1  ;;  %v9637_v59 = vld [vmem:[#allocation9 + $0x748] ss:$16 sps:$4 sm:$0xff]  }
 0x24c   :  { %6644 = vmatprep.subr.bf16.mxu1 %v9633_v44  ;;  %v1738_v4 = vadd.f32 %v1737_v34, %v11105_v47  ;;  %v1739_v54 = vpop.f32.mrb[107].mxu0  ;;  %v1983_v13 = vmax.f32 %v1847_v11, 0.0  ;;  %v1851_v48 = vadd.f32 %v1850_v12, %v11112_v6  ;;  %v1852_v17 = vpop.f32.mrb[107].mxu1  ;;  %v1981_v61 = vmax.f32 %v1734_v46, 0.0  ;;  %v9642_v18 = vld [vmem:[#allocation9 + $0x764] ss:$16 sps:$4 sm:$0xff]  }
 0x24d   :  { %v1740_v2 = vadd.f32 %v1739_v54, %v11118_v50  ;;  %v1984_v38 = vmax.f32 %v1849_v41, 0.0  ;;  %v1853_v1 = vadd.f32 %v1852_v17, %v11126_v7  ;;  %v1982_v44 = vmax.f32 %v1736_v56, 0.0  ;;  %v9645_v54 = vld [vmem:[#allocation9 + $0x76c] ss:$16 sps:$4 sm:$0xff]   ;;  %v9648_v17 = vld [vmem:[#allocation9 + $0x784] ss:$16 sps:$4 sm:$0xff]  }
 0x24e   :  { %v1997_v30 = vmax.f32 %v1738_v4, 0.0  ;;  %5741 = vmatpush1.bf16.msra.mxu0 %v9628_v63  ;;  %v1999_v15 = vmax.f32 %v1851_v48, 0.0 }
 0x24f   :  { %6645 = vmatpush1.bf16.msra.mxu1 %v9631_v36  ;;  %v1998_v34 = vmax.f32 %v1740_v2, 0.0  ;;  %5742 = vmatprep.subr.bf16.mxu0 %v9636_v57  ;;  %v2000_v12 = vmax.f32 %v1853_v1, 0.0 }
 0x250   :  { %v11185_v11 = vpack.c.bf16 %v1997_v30, %v1981_v61  ;;  %5692 = vmatmul.mubr.bf16.gmra.mrb[148].mxu0 %v10888_v3  ;;  %6646 = vmatprep.subr.bf16.mxu1 %v9639_v45  ;;  %v11188_v46 = vpack.c.bf16 %v1999_v15, %v1983_v13  ;;  %v9640_v45 = vld [vmem:[#allocation9 + $0x760] ss:$16 sps:$4 sm:$0xff]   ;;  %v9651_v30 = vld [vmem:[#allocation9 + $0x78c] ss:$16 sps:$4 sm:$0xff]  }
 0x251   :  { %v11190_v41 = vpack.c.bf16 %v1998_v34, %v1982_v44  ;;  %6596 = vmatmul.mubr.bf16.gmra.mrb[148].mxu1 %v10888_v3  ;;  %5701 = vmatprep.mubr.bf16.mxu0 %v10914_v23  ;;  %v1743_v63 = vpop.f32.mrb[108].mxu0  ;;  %v11194_v56 = vpack.c.bf16 %v2000_v12, %v1984_v38  ;;  %v1856_v57 = vpop.f32.mrb[108].mxu1  ;;  %v9643_v3 = vld [vmem:[#allocation9 + $0x768] ss:$16 sps:$4 sm:$0xff]   ;;  %v9646_v12 = vld [vmem:[#allocation9 + $0x780] ss:$16 sps:$4 sm:$0xff]  }
 0x252   :  { %11689 = vst [vmem:[#allocation51_spill] sm:$0xff] %v11188_v46  ;;  %5743 = vmatpush1.bf16.msra.mxu0 %v9634_v43  ;;  %6605 = vmatprep.mubr.bf16.mxu1 %v10914_v23  ;;  %v1744_v36 = vadd.f32 %v1743_v63, %v11105_v47  ;;  %v1745_v4 = vpop.f32.mrb[109].mxu0  ;;  %v1857_v15 = vadd.f32 %v1856_v57, %v11112_v6  ;;  %v1858_v48 = vpop.f32.mrb[109].mxu1 }
 0x253   :  { %11690 = vst [vmem:[#allocation52_spill] sm:$0xff] %v11194_v56  ;;  %6647 = vmatpush1.bf16.msra.mxu1 %v9637_v59  ;;  %v1746_v13 = vadd.f32 %v1745_v4, %v11118_v50  ;;  %5744 = vmatprep.subr.bf16.mxu0 %v9642_v18  ;;  %v1747_v2 = vpop.f32.mrb[110].mxu0  ;;  %v1859_v61 = vadd.f32 %v1858_v48, %v11126_v7  ;;  %v1860_v43 = vpop.f32.mrb[110].mxu1  ;;  %v9649_v48 = vld [vmem:[#allocation9 + $0x788] ss:$16 sps:$4 sm:$0xff]  }
 0x254   :  { %6648 = vmatprep.subr.bf16.mxu1 %v9645_v54  ;;  %v1748_v23 = vadd.f32 %v1747_v2, %v11105_v47  ;;  %v1749_v38 = vpop.f32.mrb[111].mxu0  ;;  %v2015_v1 = vmax.f32 %v1857_v15, 0.0  ;;  %v1861_v59 = vadd.f32 %v1860_v43, %v11112_v6  ;;  %v1862_v34 = vpop.f32.mrb[111].mxu1  ;;  %v2013_v63 = vmax.f32 %v1744_v36, 0.0  ;;  %v9654_v56 = vld [vmem:[#allocation9 + $0x7a4] ss:$16 sps:$4 sm:$0xff]  }
 0x255   :  { %v1750_v44 = vadd.f32 %v1749_v38, %v11118_v50  ;;  %v2016_v18 = vmax.f32 %v1859_v61, 0.0  ;;  %v1863_v4 = vadd.f32 %v1862_v34, %v11126_v7  ;;  %v2014_v54 = vmax.f32 %v1746_v13, 0.0  ;;  %v9657_v38 = vld [vmem:[#allocation9 + $0x7ac] ss:$16 sps:$4 sm:$0xff]   ;;  %v9660_v34 = vld [vmem:[#allocation9 + $0x7c4] ss:$16 sps:$4 sm:$0xff]  }
 0x256   :  { %v2029_v57 = vmax.f32 %v1748_v23, 0.0  ;;  %5745 = vmatpush1.bf16.msra.mxu0 %v9640_v45  ;;  %v2031_v46 = vmax.f32 %v1861_v59, 0.0 }
 0x257   :  { %6649 = vmatpush1.bf16.msra.mxu1 %v9643_v3  ;;  %v2030_v2 = vmax.f32 %v1750_v44, 0.0  ;;  %5746 = vmatprep.subr.bf16.mxu0 %v9648_v17  ;;  %v2032_v43 = vmax.f32 %v1863_v4, 0.0 }
 0x258   :  { %v11205_v15 = vpack.c.bf16 %v2029_v57, %v2013_v63  ;;  %5702 = vmatmul.mubr.bf16.gmra.mrb[152].mxu0 %v10908_v58  ;;  %6650 = vmatprep.subr.bf16.mxu1 %v9651_v30  ;;  %v11208_v36 = vpack.c.bf16 %v2031_v46, %v2015_v1  ;;  %v9652_v30 = vld [vmem:[#allocation9 + $0x7a0] ss:$16 sps:$4 sm:$0xff]   ;;  %v9663_v57 = vld [vmem:[#allocation9 + $0x7cc] ss:$16 sps:$4 sm:$0xff]  }
 0x259   :  { %v11210_v61 = vpack.c.bf16 %v2030_v2, %v2014_v54  ;;  %6606 = vmatmul.mubr.bf16.gmra.mrb[152].mxu1 %v10908_v58  ;;  %5711 = vmatprep.mubr.bf16.mxu0 %v10952_v55  ;;  %v1753_v45 = vpop.f32.mrb[112].mxu0  ;;  %v11214_v13 = vpack.c.bf16 %v2032_v43, %v2016_v18  ;;  %v1866_v17 = vpop.f32.mrb[112].mxu1  ;;  %v9655_v58 = vld [vmem:[#allocation9 + $0x7a8] ss:$16 sps:$4 sm:$0xff]   ;;  %v9658_v43 = vld [vmem:[#allocation9 + $0x7c0] ss:$16 sps:$4 sm:$0xff]  }
 0x25a   :  { %11691 = vst [vmem:[#allocation53_spill] sm:$0xff] %v11208_v36  ;;  %5747 = vmatpush1.bf16.msra.mxu0 %v9646_v12  ;;  %6615 = vmatprep.mubr.bf16.mxu1 %v10952_v55  ;;  %v1754_v3 = vadd.f32 %v1753_v45, %v11105_v47  ;;  %v1755_v23 = vpop.f32.mrb[113].mxu0  ;;  %v1867_v46 = vadd.f32 %v1866_v17, %v11112_v6  ;;  %v1868_v59 = vpop.f32.mrb[113].mxu1 }
 0x25b   :  { %11692 = vst [vmem:[#allocation54_spill] sm:$0xff] %v11214_v13  ;;  %6651 = vmatpush1.bf16.msra.mxu1 %v9649_v48  ;;  %v1756_v1 = vadd.f32 %v1755_v23, %v11118_v50  ;;  %5748 = vmatprep.subr.bf16.mxu0 %v9654_v56  ;;  %v1757_v44 = vpop.f32.mrb[114].mxu0  ;;  %v1869_v63 = vadd.f32 %v1868_v59, %v11126_v7  ;;  %v1870_v12 = vpop.f32.mrb[114].mxu1  ;;  %v9661_v59 = vld [vmem:[#allocation9 + $0x7c8] ss:$16 sps:$4 sm:$0xff]  }
 0x25c   :  { %6652 = vmatprep.subr.bf16.mxu1 %v9657_v38  ;;  %v1758_v55 = vadd.f32 %v1757_v44, %v11105_v47  ;;  %v1759_v18 = vpop.f32.mrb[115].mxu0  ;;  %v2047_v4 = vmax.f32 %v1867_v46, 0.0  ;;  %v1871_v48 = vadd.f32 %v1870_v12, %v11112_v6  ;;  %v1872_v2 = vpop.f32.mrb[115].mxu1  ;;  %v2045_v45 = vmax.f32 %v1754_v3, 0.0  ;;  %v9666_v13 = vld [vmem:[#allocation9 + $0x7e4] ss:$16 sps:$4 sm:$0xff]  }
 0x25d   :  { %v1760_v54 = vadd.f32 %v1759_v18, %v11118_v50  ;;  %v2048_v56 = vmax.f32 %v1869_v63, 0.0  ;;  %v1873_v23 = vadd.f32 %v1872_v2, %v11126_v7  ;;  %v2046_v38 = vmax.f32 %v1756_v1, 0.0  ;;  %v9669_v18 = vld [vmem:[#allocation9 + $0x7ec] ss:$16 sps:$4 sm:$0xff]   ;;  %v9672_v2 = vld [vmem:[#allocation9 + $0x804] ss:$16 sps:$4 sm:$0xff]  }
 0x25e   :  { %v2061_v17 = vmax.f32 %v1758_v55, 0.0  ;;  %5749 = vmatpush1.bf16.msra.mxu0 %v9652_v30  ;;  %v2063_v36 = vmax.f32 %v1871_v48, 0.0 }
 0x25f   :  { %6653 = vmatpush1.bf16.msra.mxu1 %v9655_v58  ;;  %v2062_v44 = vmax.f32 %v1760_v54, 0.0  ;;  %5750 = vmatprep.subr.bf16.mxu0 %v9660_v34  ;;  %v2064_v12 = vmax.f32 %v1873_v23, 0.0 }
 0x260   :  { %v11225_v46 = vpack.c.bf16 %v2061_v17, %v2045_v45  ;;  %5712 = vmatmul.mubr.bf16.gmra.mrb[156].mxu0 %v10942_v39  ;;  %6654 = vmatprep.subr.bf16.mxu1 %v9663_v57  ;;  %v11228_v3 = vpack.c.bf16 %v2063_v36, %v2047_v4  ;;  %v9664_v57 = vld [vmem:[#allocation9 + $0x7e0] ss:$16 sps:$4 sm:$0xff]   ;;  %v9675_v17 = vld [vmem:[#allocation9 + $0x80c] ss:$16 sps:$4 sm:$0xff]  }
 0x261   :  { %v11230_v63 = vpack.c.bf16 %v2062_v44, %v2046_v38  ;;  %6616 = vmatmul.mubr.bf16.gmra.mrb[156].mxu1 %v10942_v39  ;;  %5754 = vmatprep.mubr.bf16.mxu0 %v10797_v22  ;;  %v1763_v30 = vpop.f32.mrb[116].mxu0  ;;  %v11234_v1 = vpack.c.bf16 %v2064_v12, %v2048_v56  ;;  %v1876_v34 = vpop.f32.mrb[116].mxu1  ;;  %v9667_v39 = vld [vmem:[#allocation9 + $0x7e8] ss:$16 sps:$4 sm:$0xff]  }
 0x262   :  { %11693 = vst [vmem:[#allocation55_spill] sm:$0xff] %v11228_v3  ;;  %5751 = vmatpush1.bf16.msra.mxu0 %v9658_v43  ;;  %6658 = vmatprep.mubr.bf16.mxu1 %v10797_v22  ;;  %v1764_v58 = vadd.f32 %v1763_v30, %v11105_v47  ;;  %v1765_v55 = vpop.f32.mrb[117].mxu0  ;;  %v1877_v36 = vadd.f32 %v1876_v34, %v11112_v6  ;;  %v1878_v48 = vpop.f32.mrb[117].mxu1 }
 0x263   :  { %11694 = vst [vmem:[#allocation56_spill] sm:$0xff] %v11234_v1  ;;  %6655 = vmatpush1.bf16.msra.mxu1 %v9661_v59  ;;  %v1766_v4 = vadd.f32 %v1765_v55, %v11118_v50  ;;  %5752 = vmatprep.subr.bf16.mxu0 %v9666_v13  ;;  %v1767_v54 = vpop.f32.mrb[118].mxu0  ;;  %v1879_v45 = vadd.f32 %v1878_v48, %v11126_v7  ;;  %v1880_v43 = vpop.f32.mrb[118].mxu1  ;;  %v9673_v1 = vld [vmem:[#allocation9 + $0x808] ss:$16 sps:$4 sm:$0xff]  }
 0x264   :  { %6656 = vmatprep.subr.bf16.mxu1 %v9669_v18  ;;  %v1768_v22 = vadd.f32 %v1767_v54, %v11105_v47  ;;  %v1769_v56 = vpop.f32.mrb[119].mxu0  ;;  %v2079_v23 = vmax.f32 %v1877_v36, 0.0  ;;  %v1881_v59 = vadd.f32 %v1880_v43, %v11112_v6  ;;  %v1882_v44 = vpop.f32.mrb[119].mxu1  ;;  %v2077_v12 = vmax.f32 %v1764_v58, 0.0  ;;  %v9670_v54 = vld [vmem:[#allocation9 + $0x800] ss:$16 sps:$4 sm:$0xff]  }
 0x265   :  { %v1770_v38 = vadd.f32 %v1769_v56, %v11118_v50  ;;  %v2080_v30 = vmax.f32 %v1879_v45, 0.0  ;;  %v1883_v34 = vadd.f32 %v1882_v44, %v11126_v7  ;;  %v2078_v55 = vmax.f32 %v1766_v4, 0.0  ;;  %v9678_v43 = vld [vmem:[#allocation9 + $0x824] ss:$16 sps:$4 sm:$0xff]   ;;  %v9681_v45 = vld [vmem:[#allocation9 + $0x82c] ss:$16 sps:$4 sm:$0xff]  }
 0x266   :  { %v2093_v13 = vmax.f32 %v1768_v22, 0.0  ;;  %5753 = vmatpush1.bf16.msra.mxu0 %v9664_v57  ;;  %v2095_v48 = vmax.f32 %v1881_v59, 0.0 }
 0x267   :  { %6657 = vmatpush1.bf16.msra.mxu1 %v9667_v39  ;;  %v2094_v18 = vmax.f32 %v1770_v38, 0.0  ;;  %5835 = vmatprep.subr.bf16.mxu0 %v9672_v2  ;;  %v2096_v36 = vmax.f32 %v1883_v34, 0.0  ;;  %v9676_v38 = vld [vmem:[#allocation9 + $0x820] ss:$16 sps:$4 sm:$0xff]  }
 0x268   :  { %v11245_v3 = vpack.c.bf16 %v2093_v13, %v2077_v12  ;;  %6739 = vmatprep.subr.bf16.mxu1 %v9675_v17  ;;  %v11247_v56 = vpack.c.bf16 %v2095_v48, %v2079_v23 }
 0x269   :  { %v11249_v58 = vpack.c.bf16 %v2094_v18, %v2078_v55  ;;  %5755 = vmatmul.mubr.bf16.vlgmr.msra.gmra.mrb[128].mxu0 %v10793_v60  ;;  %v1773_v57 = vpop.f32.mrb[120].mxu0  ;;  %v11252_v4 = vpack.c.bf16 %v2096_v36, %v2080_v30  ;;  %v1886_v2 = vpop.f32.mrb[120].mxu1  ;;  %v9684_v55 = vld [vmem:[#allocation9 + $0x844] ss:$16 sps:$4 sm:$0xff]   ;;  %v9687_v36 = vld [vmem:[#allocation9 + $0x84c] ss:$16 sps:$4 sm:$0xff]  }
 0x26a   :  { %11695 = vst [vmem:[#allocation57_spill] sm:$0xff] %v11245_v3  ;;  %11696 = vst [vmem:[#allocation58_spill] sm:$0xff] %v11247_v56  ;;  %6659 = vmatmul.mubr.bf16.vlgmr.msra.gmra.mrb[128].mxu1 %v10793_v60  ;;  %5764 = vmatprep.mubr.bf16.mxu0 %v10817_v14  ;;  %v1774_v39 = vadd.f32 %v1773_v57, %v11105_v47  ;;  %v1775_v22 = vpop.f32.mrb[121].mxu0  ;;  %v1887_v17 = vadd.f32 %v1886_v2, %v11112_v6  ;;  %v1888_v59 = vpop.f32.mrb[121].mxu1  ;;  %v9679_v60 = vld [vmem:[#allocation9 + $0x828] ss:$16 sps:$4 sm:$0xff]  }
 0x26b   :  { %11697 = vst [vmem:[#allocation59_spill] sm:$0xff] %v11252_v4  ;;  %5836 = vmatpush1.bf16.msra.mxu0 %v9670_v54  ;;  %6668 = vmatprep.mubr.bf16.mxu1 %v10817_v14  ;;  %v1776_v23 = vadd.f32 %v1775_v22, %v11118_v50  ;;  %v1777_v44 = vpop.f32.mrb[122].mxu0  ;;  %v1889_v12 = vadd.f32 %v1888_v59, %v11126_v7  ;;  %v1890_v13 = vpop.f32.mrb[122].mxu1  ;;  %v9682_v56 = vld [vmem:[#allocation9 + $0x840] ss:$16 sps:$4 sm:$0xff]  }
 0x26c   :  { %6740 = vmatpush1.bf16.msra.mxu1 %v9673_v1  ;;  %5837 = vmatprep.subr.bf16.mxu0 %v9678_v43  ;;  %v1778_v30 = vadd.f32 %v1777_v44, %v11105_v47  ;;  %v1779_v34 = vpop.f32.mrb[123].mxu0  ;;  %v2111_v48 = vmax.f32 %v1887_v17, 0.0  ;;  %v1891_v14 = vadd.f32 %v1890_v13, %v11112_v6  ;;  %v1892_v54 = vpop.f32.mrb[123].mxu1  ;;  %v2109_v57 = vmax.f32 %v1774_v39, 0.0  ;;  %v9685_v17 = vld [vmem:[#allocation9 + $0x848] ss:$16 sps:$4 sm:$0xff]  }
 0x26d   :  { %6741 = vmatprep.subr.bf16.mxu1 %v9681_v45  ;;  %v1780_v18 = vadd.f32 %v1779_v34, %v11118_v50  ;;  %v2112_v2 = vmax.f32 %v1889_v12, 0.0  ;;  %v1893_v22 = vadd.f32 %v1892_v54, %v11126_v7  ;;  %v2110_v43 = vmax.f32 %v1776_v23, 0.0  ;;  %v9690_v13 = vld [vmem:[#allocation9 + $0x864] ss:$16 sps:$4 sm:$0xff]   ;;  %v9693_v23 = vld [vmem:[#allocation9 + $0x86c] ss:$16 sps:$4 sm:$0xff]  }
 0x26e   :  { %v2125_v1 = vmax.f32 %v1778_v30, 0.0  ;;  %v2127_v59 = vmax.f32 %v1891_v14, 0.0  ;;  %v9688_v54 = vld [vmem:[#allocation9 + $0x860] ss:$16 sps:$4 sm:$0xff]  }
 0x26f   :  { %5838 = vmatpush1.bf16.msra.mxu0 %v9676_v38  ;;  %v2126_v44 = vmax.f32 %v1780_v18, 0.0  ;;  %v2128_v45 = vmax.f32 %v1893_v22, 0.0  ;;  %v11699_v38 = vld [vmem:[#allocation26_spill] sm:$0xff] }
 0x270   :  { %v11265_v4 = vpack.c.bf16 %v2125_v1, %v2109_v57  ;;  %6742 = vmatpush1.bf16.msra.mxu1 %v9679_v60  ;;  %5839 = vmatprep.subr.bf16.mxu0 %v9684_v55  ;;  %v11267_v34 = vpack.c.bf16 %v2127_v59, %v2111_v48 }
 0x271   :  { %v11269_v3 = vpack.c.bf16 %v2126_v44, %v2110_v43  ;;  %5765 = vmatmul.mubr.bf16.gmra.mrb[132].mxu0 %v10813_v42  ;;  %6743 = vmatprep.subr.bf16.mxu1 %v9687_v36  ;;  %v1783_v39 = vpop.f32.mrb[124].mxu0  ;;  %v11272_v12 = vpack.c.bf16 %v2128_v45, %v2112_v2  ;;  %v1896_v30 = vpop.f32.mrb[124].mxu1  ;;  %v9696_v43 = vld [vmem:[#allocation9 + $0x884] ss:$16 sps:$4 sm:$0xff]  }
 0x272   :  { %11698 = vst [vmem:[#allocation60_spill] sm:$0xff] %v11267_v34  ;;  %6669 = vmatmul.mubr.bf16.gmra.mrb[132].mxu1 %v10813_v42  ;;  %5774 = vmatprep.mubr.bf16.mxu0 %v11699_v38  ;;  %v1784_v60 = vadd.f32 %v1783_v39, %v11105_v47  ;;  %v1785_v55 = vpop.f32.mrb[125].mxu0  ;;  %v1897_v48 = vadd.f32 %v1896_v30, %v11112_v6  ;;  %v1898_v18 = vpop.f32.mrb[125].mxu1  ;;  %v9691_v42 = vld [vmem:[#allocation9 + $0x868] ss:$16 sps:$4 sm:$0xff]  }
 0x273   :  { %5840 = vmatpush1.bf16.msra.mxu0 %v9682_v56  ;;  %6678 = vmatprep.mubr.bf16.mxu1 %v11699_v38  ;;  %v1786_v14 = vadd.f32 %v1785_v55, %v11118_v50  ;;  %v1787_v36 = vpop.f32.mrb[126].mxu0  ;;  %v1899_v57 = vadd.f32 %v1898_v18, %v11126_v7  ;;  %v1900_v1 = vpop.f32.mrb[126].mxu1  ;;  %v9699_v39 = vld [vmem:[#allocation9 + $0x88c] ss:$16 sps:$4 sm:$0xff]  }
 0x274   :  { %6744 = vmatpush1.bf16.msra.mxu1 %v9685_v17  ;;  %5841 = vmatprep.subr.bf16.mxu0 %v9690_v13  ;;  %v1788_v2 = vadd.f32 %v1787_v36, %v11105_v47  ;;  %v1789_v22 = vpop.f32.mrb[127].mxu0  ;;  %v2143_v56 = vmax.f32 %v1897_v48, 0.0  ;;  %v1901_v59 = vadd.f32 %v1900_v1, %v11112_v6  ;;  %v1902_v45 = vpop.f32.mrb[127].mxu1  ;;  %v2141_v38 = vmax.f32 %v1784_v60, 0.0  ;;  %v9694_v36 = vld [vmem:[#allocation9 + $0x880] ss:$16 sps:$4 sm:$0xff]  }
 0x275   :  { %6745 = vmatprep.subr.bf16.mxu1 %v9693_v23  ;;  %v1790_v44 = vadd.f32 %v1789_v22, %v11118_v50  ;;  %v2144_v30 = vmax.f32 %v1899_v57, 0.0  ;;  %v1903_v55 = vadd.f32 %v1902_v45, %v11126_v7  ;;  %v2142_v13 = vmax.f32 %v1786_v14, 0.0  ;;  %v9697_v6 = vld [vmem:[#allocation9 + $0x888] ss:$16 sps:$4 sm:$0xff]   ;;  %v9702_v48 = vld [vmem:[#allocation9 + $0x8a4] ss:$16 sps:$4 sm:$0xff]  }
 0x276   :  { %v2157_v17 = vmax.f32 %v1788_v2, 0.0  ;;  %v2159_v18 = vmax.f32 %v1901_v59, 0.0  ;;  %v11700_v60 = vld [vmem:[#allocation25_spill] sm:$0xff]  ;;  %v9700_v57 = vld [vmem:[#allocation9 + $0x8a0] ss:$16 sps:$4 sm:$0xff]  }
 0x277   :  { %5842 = vmatpush1.bf16.msra.mxu0 %v9688_v54  ;;  %v2158_v47 = vmax.f32 %v1790_v44, 0.0  ;;  %v2160_v23 = vmax.f32 %v1903_v55, 0.0  ;;  %v9705_v7 = vld [vmem:[#allocation9 + $0x8ac] ss:$16 sps:$4 sm:$0xff]   ;;  %v11701_v54 = vld [vmem:[#allocation28_spill] sm:$0xff] }
 0x278   :  { %v11285_v34 = vpack.c.bf16 %v2157_v17, %v2141_v38  ;;  %6746 = vmatpush1.bf16.msra.mxu1 %v9691_v42  ;;  %5843 = vmatprep.subr.bf16.mxu0 %v9696_v43  ;;  %v11287_v50 = vpack.c.bf16 %v2159_v18, %v2143_v56  ;;  %v9703_v42 = vld [vmem:[#allocation9 + $0x8a8] ss:$16 sps:$4 sm:$0xff]   ;;  %v9708_v2 = vld [vmem:[#allocation9 + $0x8c4] ss:$16 sps:$4 sm:$0xff]   ;;  %v9711_v22 = vld [vmem:[#allocation9 + $0x8cc] ss:$16 sps:$4 sm:$0xff]  }
 0x279   :  { %v11289_v1 = vpack.c.bf16 %v2158_v47, %v2142_v13  ;;  %5775 = vmatmul.mubr.bf16.gmra.mrb[136].mxu0 %v11700_v60  ;;  %6747 = vmatprep.subr.bf16.mxu1 %v9699_v39  ;;  %v11292_v14 = vpack.c.bf16 %v2160_v23, %v2144_v30  ;;  %v9706_v43 = vld [vmem:[#allocation9 + $0x8c0] ss:$16 sps:$4 sm:$0xff]   ;;  %v9709_v56 = vld [vmem:[#allocation9 + $0x8c8] ss:$16 sps:$4 sm:$0xff]   ;;  %v9714_v59 = vld [vmem:[#allocation9 + $0x8e4] ss:$16 sps:$4 sm:$0xff]  }
 0x27a   :  { %6679 = vmatmul.mubr.bf16.gmra.mrb[136].mxu1 %v11700_v60  ;;  %5784 = vmatprep.mubr.bf16.mxu0 %v11701_v54  ;;  %v11702_v44 = vld [vmem:[#allocation27_spill] sm:$0xff]  ;;  %v11703_v39 = vld [vmem:[#allocation30_spill] sm:$0xff] }
 0x27b   :  { %5844 = vmatpush1.bf16.msra.mxu0 %v9694_v36  ;;  %6688 = vmatprep.mubr.bf16.mxu1 %v11701_v54  ;;  %v9717_v45 = vld [vmem:[#allocation9 + $0x8ec] ss:$16 sps:$4 sm:$0xff]   ;;  %v9712_v38 = vld [vmem:[#allocation9 + $0x8e0] ss:$16 sps:$4 sm:$0xff]   ;;  %v9715_v30 = vld [vmem:[#allocation9 + $0x8e8] ss:$16 sps:$4 sm:$0xff]  }
 0x27c   :  { %6748 = vmatpush1.bf16.msra.mxu1 %v9697_v6  ;;  %5845 = vmatprep.subr.bf16.mxu0 %v9702_v48  ;;  %v9720_v17 = vld [vmem:[#allocation9 + $0x904] ss:$16 sps:$4 sm:$0xff]   ;;  %v9723_v55 = vld [vmem:[#allocation9 + $0x90c] ss:$16 sps:$4 sm:$0xff]   ;;  %v9718_v13 = vld [vmem:[#allocation9 + $0x900] ss:$16 sps:$4 sm:$0xff]  }
 0x27d   :  { %6749 = vmatprep.subr.bf16.mxu1 %v9705_v7  ;;  %v9721_v18 = vld [vmem:[#allocation9 + $0x908] ss:$16 sps:$4 sm:$0xff]   ;;  %v9726_v47 = vld [vmem:[#allocation9 + $0x924] ss:$16 sps:$4 sm:$0xff]   ;;  %v9729_v23 = vld [vmem:[#allocation9 + $0x92c] ss:$16 sps:$4 sm:$0xff]  }
 0x27e   :  { %v11704_v36 = vld [vmem:[#allocation29_spill] sm:$0xff]  ;;  %v11705_v6 = vld [vmem:[#allocation32_spill] sm:$0xff] }
 0x27f   :  { %5846 = vmatpush1.bf16.msra.mxu0 %v9700_v57  ;;  %v9724_v48 = vld [vmem:[#allocation9 + $0x920] ss:$16 sps:$4 sm:$0xff]   ;;  %v9727_v60 = vld [vmem:[#allocation9 + $0x928] ss:$16 sps:$4 sm:$0xff]   ;;  %v9732_v7 = vld [vmem:[#allocation9 + $0x944] ss:$16 sps:$4 sm:$0xff]  }
 0x280   :  { %6750 = vmatpush1.bf16.msra.mxu1 %v9703_v42  ;;  %5847 = vmatprep.subr.bf16.mxu0 %v9708_v2  ;;  %v9735_v54 = vld [vmem:[#allocation9 + $0x94c] ss:$16 sps:$4 sm:$0xff]   ;;  %v9730_v57 = vld [vmem:[#allocation9 + $0x940] ss:$16 sps:$4 sm:$0xff]   ;;  %v9733_v42 = vld [vmem:[#allocation9 + $0x948] ss:$16 sps:$4 sm:$0xff]  }
 0x281   :  { %5785 = vmatmul.mubr.bf16.gmra.mrb[140].mxu0 %v11702_v44  ;;  %6751 = vmatprep.subr.bf16.mxu1 %v9711_v22  ;;  %v9738_v2 = vld [vmem:[#allocation9 + $0x964] ss:$16 sps:$4 sm:$0xff]   ;;  %v11706_v22 = vld [vmem:[#allocation31_spill] sm:$0xff] }
 0x282   :  { %6689 = vmatmul.mubr.bf16.gmra.mrb[140].mxu1 %v11702_v44  ;;  %5794 = vmatprep.mubr.bf16.mxu0 %v11703_v39  ;;  %v9744_v44 = vld [vmem:[#allocation9 + $0x984] ss:$16 sps:$4 sm:$0xff]  }
 0x283   :  { %5848 = vmatpush1.bf16.msra.mxu0 %v9706_v43  ;;  %6698 = vmatprep.mubr.bf16.mxu1 %v11703_v39  ;;  %v9741_v43 = vld [vmem:[#allocation9 + $0x96c] ss:$16 sps:$4 sm:$0xff]   ;;  %v9742_v39 = vld [vmem:[#allocation9 + $0x980] ss:$16 sps:$4 sm:$0xff]  }
 0x284   :  { %6752 = vmatpush1.bf16.msra.mxu1 %v9709_v56  ;;  %5849 = vmatprep.subr.bf16.mxu0 %v9714_v59  ;;  %v9736_v56 = vld [vmem:[#allocation9 + $0x960] ss:$16 sps:$4 sm:$0xff]   ;;  %v9739_v59 = vld [vmem:[#allocation9 + $0x968] ss:$16 sps:$4 sm:$0xff]  }
 0x285   :  { %6753 = vmatprep.subr.bf16.mxu1 %v9717_v45  ;;  %v9747_v45 = vld [vmem:[#allocation9 + $0x98c] ss:$16 sps:$4 sm:$0xff]  }
 0x287   :  { %5850 = vmatpush1.bf16.msra.mxu0 %v9712_v38  ;;  %v9745_v38 = vld [vmem:[#allocation9 + $0x988] ss:$16 sps:$4 sm:$0xff]  }
 0x288   :  { %6754 = vmatpush1.bf16.msra.mxu1 %v9715_v30  ;;  %5851 = vmatprep.subr.bf16.mxu0 %v9720_v17  ;;  %v9750_v30 = vld [vmem:[#allocation9 + $0x9a4] ss:$16 sps:$4 sm:$0xff]   ;;  %v9753_v17 = vld [vmem:[#allocation9 + $0x9ac] ss:$16 sps:$4 sm:$0xff]  }
 0x289   :  { %5795 = vmatmul.mubr.bf16.gmra.mrb[144].mxu0 %v11704_v36  ;;  %6755 = vmatprep.subr.bf16.mxu1 %v9723_v55  ;;  %v9751_v55 = vld [vmem:[#allocation9 + $0x9a8] ss:$16 sps:$4 sm:$0xff]  }
 0x28a   :  { %6699 = vmatmul.mubr.bf16.gmra.mrb[144].mxu1 %v11704_v36  ;;  %5804 = vmatprep.mubr.bf16.mxu0 %v11705_v6  ;;  %v9757_v36 = vld [vmem:[#allocation9 + $0x9c8] ss:$16 sps:$4 sm:$0xff]  }
 0x28b   :  { %5852 = vmatpush1.bf16.msra.mxu0 %v9718_v13  ;;  %6708 = vmatprep.mubr.bf16.mxu1 %v11705_v6  ;;  %v9756_v13 = vld [vmem:[#allocation9 + $0x9c4] ss:$16 sps:$4 sm:$0xff]   ;;  %v9763_v6 = vld [vmem:[#allocation9 + $0x9e8] ss:$16 sps:$4 sm:$0xff]  }
 0x28c   :  { %6756 = vmatpush1.bf16.msra.mxu1 %v9721_v18  ;;  %5853 = vmatprep.subr.bf16.mxu0 %v9726_v47  ;;  %v9759_v18 = vld [vmem:[#allocation9 + $0x9cc] ss:$16 sps:$4 sm:$0xff]   ;;  %v9754_v47 = vld [vmem:[#allocation9 + $0x9c0] ss:$16 sps:$4 sm:$0xff]  }
 0x28d   :  { %6757 = vmatprep.subr.bf16.mxu1 %v9729_v23  ;;  %v9762_v23 = vld [vmem:[#allocation9 + $0x9e4] ss:$16 sps:$4 sm:$0xff]  }
 0x28f   :  { %5854 = vmatpush1.bf16.msra.mxu0 %v9724_v48  ;;  %v9768_v48 = vld [vmem:[#allocation9 + $0xa04] ss:$16 sps:$4 sm:$0xff]  }
 0x290   :  { %6758 = vmatpush1.bf16.msra.mxu1 %v9727_v60  ;;  %5855 = vmatprep.subr.bf16.mxu0 %v9732_v7  ;;  %v9771_v60 = vld [vmem:[#allocation9 + $0xa0c] ss:$16 sps:$4 sm:$0xff]   ;;  %v9766_v7 = vld [vmem:[#allocation9 + $0xa00] ss:$16 sps:$4 sm:$0xff]  }
 0x291   :  { %5805 = vmatmul.mubr.bf16.gmra.mrb[148].mxu0 %v11706_v22  ;;  %6759 = vmatprep.subr.bf16.mxu1 %v9735_v54  ;;  %v9769_v54 = vld [vmem:[#allocation9 + $0xa08] ss:$16 sps:$4 sm:$0xff]  }
 0x292   :  { %6709 = vmatmul.mubr.bf16.gmra.mrb[148].mxu1 %v11706_v22  ;;  %5814 = vmatprep.mubr.bf16.mxu0 %v10919_v25  ;;  %v9783_v22 = vld [vmem:[#allocation9 + $0xa4c] ss:$16 sps:$4 sm:$0xff]  }
 0x293   :  { %5856 = vmatpush1.bf16.msra.mxu0 %v9730_v57  ;;  %6718 = vmatprep.mubr.bf16.mxu1 %v10919_v25  ;;  %v9748_v25 = vld [vmem:[#allocation9 + $0x9a0] ss:$16 sps:$4 sm:$0xff]   ;;  %v9774_v57 = vld [vmem:[#allocation9 + $0xa24] ss:$16 sps:$4 sm:$0xff]  }
 0x294   :  { %6760 = vmatpush1.bf16.msra.mxu1 %v9733_v42  ;;  %5857 = vmatprep.subr.bf16.mxu0 %v9738_v2  ;;  %v9775_v42 = vld [vmem:[#allocation9 + $0xa28] ss:$16 sps:$4 sm:$0xff]   ;;  %v9780_v2 = vld [vmem:[#allocation9 + $0xa44] ss:$16 sps:$4 sm:$0xff]  }
 0x295   :  { %6761 = vmatprep.subr.bf16.mxu1 %v9741_v43  ;;  %v9778_v43 = vld [vmem:[#allocation9 + $0xa40] ss:$16 sps:$4 sm:$0xff]  }
 0x297   :  { %5858 = vmatpush1.bf16.msra.mxu0 %v9736_v56  ;;  %v9781_v56 = vld [vmem:[#allocation9 + $0xa48] ss:$16 sps:$4 sm:$0xff]  }
 0x298   :  { %6762 = vmatpush1.bf16.msra.mxu1 %v9739_v59  ;;  %5859 = vmatprep.subr.bf16.mxu0 %v9744_v44  ;;  %v9786_v59 = vld [vmem:[#allocation9 + $0xa64] ss:$16 sps:$4 sm:$0xff]   ;;  %v9787_v44 = vld [vmem:[#allocation9 + $0xa68] ss:$16 sps:$4 sm:$0xff]  }
 0x299   :  { %5815 = vmatmul.mubr.bf16.gmra.mrb[152].mxu0 %v10912_v53  ;;  %6763 = vmatprep.subr.bf16.mxu1 %v9747_v45  ;;  %v9792_v45 = vld [vmem:[#allocation9 + $0xa84] ss:$16 sps:$4 sm:$0xff]  }
 0x29a   :  { %6719 = vmatmul.mubr.bf16.gmra.mrb[152].mxu1 %v10912_v53  ;;  %5824 = vmatprep.mubr.bf16.mxu0 %v10955_v5  ;;  %v9765_v53 = vld [vmem:[#allocation9 + $0x9ec] ss:$16 sps:$4 sm:$0xff]  }
 0x29b   :  { %5860 = vmatpush1.bf16.msra.mxu0 %v9742_v39  ;;  %6728 = vmatprep.mubr.bf16.mxu1 %v10955_v5  ;;  %v9760_v5 = vld [vmem:[#allocation9 + $0x9e0] ss:$16 sps:$4 sm:$0xff]   ;;  %v9795_v39 = vld [vmem:[#allocation9 + $0xa8c] ss:$16 sps:$4 sm:$0xff]  }
 0x29c   :  { %6764 = vmatpush1.bf16.msra.mxu1 %v9745_v38  ;;  %5861 = vmatprep.subr.bf16.mxu0 %v9750_v30  ;;  %v9790_v38 = vld [vmem:[#allocation9 + $0xa80] ss:$16 sps:$4 sm:$0xff]   ;;  %v9793_v30 = vld [vmem:[#allocation9 + $0xa88] ss:$16 sps:$4 sm:$0xff]  }
 0x29d   :  { %6765 = vmatprep.subr.bf16.mxu1 %v9753_v17  ;;  %v9798_v17 = vld [vmem:[#allocation9 + $0xaa4] ss:$16 sps:$4 sm:$0xff]  }
 0x29f   :  { %5862 = vmatpush1.bf16.msra.mxu0 %v9748_v25  ;;  %v9799_v25 = vld [vmem:[#allocation9 + $0xaa8] ss:$16 sps:$4 sm:$0xff]  }
 0x2a0   :  { %6766 = vmatpush1.bf16.msra.mxu1 %v9751_v55  ;;  %5863 = vmatprep.subr.bf16.mxu0 %v9756_v13  ;;  %v9804_v55 = vld [vmem:[#allocation9 + $0xac4] ss:$16 sps:$4 sm:$0xff]   ;;  %v9807_v13 = vld [vmem:[#allocation9 + $0xacc] ss:$16 sps:$4 sm:$0xff]  }
 0x2a1   :  { %5825 = vmatmul.mubr.bf16.gmra.mrb[156].mxu0 %v10950_v51  ;;  %6767 = vmatprep.subr.bf16.mxu1 %v9759_v18  ;;  %v9802_v18 = vld [vmem:[#allocation9 + $0xac0] ss:$16 sps:$4 sm:$0xff]  }
 0x2a2   :  { %6729 = vmatmul.mubr.bf16.gmra.mrb[156].mxu1 %v10950_v51  ;;  %5867 = vmatprep.mubr.bf16.mxu0 %v10972_v27  ;;  %v9777_v51 = vld [vmem:[#allocation9 + $0xa2c] ss:$16 sps:$4 sm:$0xff]  }
 0x2a3   :  { %5864 = vmatpush1.bf16.msra.mxu0 %v9754_v47  ;;  %6771 = vmatprep.mubr.bf16.mxu1 %v10972_v27  ;;  %v9772_v27 = vld [vmem:[#allocation9 + $0xa20] ss:$16 sps:$4 sm:$0xff]   ;;  %v9805_v47 = vld [vmem:[#allocation9 + $0xac8] ss:$16 sps:$4 sm:$0xff]  }
 0x2a4   :  { %6768 = vmatpush1.bf16.msra.mxu1 %v9757_v36  ;;  %5865 = vmatprep.subr.bf16.mxu0 %v9762_v23  ;;  %v9810_v36 = vld [vmem:[#allocation9 + $0xae4] ss:$16 sps:$4 sm:$0xff]   ;;  %v9811_v23 = vld [vmem:[#allocation9 + $0xae8] ss:$16 sps:$4 sm:$0xff]  }
 0x2a5   :  { %6769 = vmatprep.subr.bf16.mxu1 %v9765_v53  ;;  %v9816_v53 = vld [vmem:[#allocation9 + $0xb04] ss:$16 sps:$4 sm:$0xff]  }
 0x2a7   :  { %5866 = vmatpush1.bf16.msra.mxu0 %v9760_v5  ;;  %v9819_v5 = vld [vmem:[#allocation9 + $0xb0c] ss:$16 sps:$4 sm:$0xff]  }
 0x2a8   :  { %6770 = vmatpush1.bf16.msra.mxu1 %v9763_v6  ;;  %5948 = vmatprep.subr.bf16.mxu0 %v9768_v48  ;;  %v9814_v6 = vld [vmem:[#allocation9 + $0xb00] ss:$16 sps:$4 sm:$0xff]   ;;  %v9817_v48 = vld [vmem:[#allocation9 + $0xb08] ss:$16 sps:$4 sm:$0xff]  }
 0x2a9   :  { %6852 = vmatprep.subr.bf16.mxu1 %v9771_v60  ;;  %v9822_v60 = vld [vmem:[#allocation9 + $0xb24] ss:$16 sps:$4 sm:$0xff]  }
 0x2aa   :  { %5868 = vmatmul.mubr.bf16.vlgmr.msra.gmra.mrb[128].mxu0 %v10966_v49 }
 0x2ab   :  { %6772 = vmatmul.mubr.bf16.vlgmr.msra.gmra.mrb[128].mxu1 %v10966_v49  ;;  %5877 = vmatprep.mubr.bf16.mxu0 %v10992_v26  ;;  %v9789_v49 = vld [vmem:[#allocation9 + $0xa6c] ss:$16 sps:$4 sm:$0xff]  }
 0x2ac   :  { %5949 = vmatpush1.bf16.msra.mxu0 %v9766_v7  ;;  %6781 = vmatprep.mubr.bf16.mxu1 %v10992_v26  ;;  %v9784_v26 = vld [vmem:[#allocation9 + $0xa60] ss:$16 sps:$4 sm:$0xff]   ;;  %v9823_v7 = vld [vmem:[#allocation9 + $0xb28] ss:$16 sps:$4 sm:$0xff]  }
 0x2ad   :  { %6853 = vmatpush1.bf16.msra.mxu1 %v9769_v54  ;;  %5950 = vmatprep.subr.bf16.mxu0 %v9774_v57  ;;  %v9828_v54 = vld [vmem:[#allocation9 + $0xb44] ss:$16 sps:$4 sm:$0xff]   ;;  %v9831_v57 = vld [vmem:[#allocation9 + $0xb4c] ss:$16 sps:$4 sm:$0xff]  }
 0x2ae   :  { %6854 = vmatprep.subr.bf16.mxu1 %v9777_v51  ;;  %v9826_v51 = vld [vmem:[#allocation9 + $0xb40] ss:$16 sps:$4 sm:$0xff]  }
 0x2b0   :  { %5951 = vmatpush1.bf16.msra.mxu0 %v9772_v27  ;;  %v9829_v27 = vld [vmem:[#allocation9 + $0xb48] ss:$16 sps:$4 sm:$0xff]  }
 0x2b1   :  { %6855 = vmatpush1.bf16.msra.mxu1 %v9775_v42  ;;  %5952 = vmatprep.subr.bf16.mxu0 %v9780_v2  ;;  %v9834_v42 = vld [vmem:[#allocation9 + $0xb64] ss:$16 sps:$4 sm:$0xff]   ;;  %v9835_v2 = vld [vmem:[#allocation9 + $0xb68] ss:$16 sps:$4 sm:$0xff]  }
 0x2b2   :  { %5878 = vmatmul.mubr.bf16.gmra.mrb[132].mxu0 %v10986_v10  ;;  %6856 = vmatprep.subr.bf16.mxu1 %v9783_v22  ;;  %v9840_v22 = vld [vmem:[#allocation9 + $0xb84] ss:$16 sps:$4 sm:$0xff]  }
 0x2b3   :  { %6782 = vmatmul.mubr.bf16.gmra.mrb[132].mxu1 %v10986_v10  ;;  %5887 = vmatprep.mubr.bf16.mxu0 %v11012_v52  ;;  %v9801_v10 = vld [vmem:[#allocation9 + $0xaac] ss:$16 sps:$4 sm:$0xff]  }
 0x2b4   :  { %5953 = vmatpush1.bf16.msra.mxu0 %v9778_v43  ;;  %6791 = vmatprep.mubr.bf16.mxu1 %v11012_v52  ;;  %v9796_v52 = vld [vmem:[#allocation9 + $0xaa0] ss:$16 sps:$4 sm:$0xff]   ;;  %v9843_v43 = vld [vmem:[#allocation9 + $0xb8c] ss:$16 sps:$4 sm:$0xff]  }
 0x2b5   :  { %6857 = vmatpush1.bf16.msra.mxu1 %v9781_v56  ;;  %5954 = vmatprep.subr.bf16.mxu0 %v9786_v59  ;;  %v9838_v56 = vld [vmem:[#allocation9 + $0xb80] ss:$16 sps:$4 sm:$0xff]   ;;  %v9841_v59 = vld [vmem:[#allocation9 + $0xb88] ss:$16 sps:$4 sm:$0xff]  }
 0x2b6   :  { %6858 = vmatprep.subr.bf16.mxu1 %v9789_v49  ;;  %v9846_v49 = vld [vmem:[#allocation9 + $0xba4] ss:$16 sps:$4 sm:$0xff]  }
 0x2b8   :  { %5955 = vmatpush1.bf16.msra.mxu0 %v9784_v26  ;;  %v9847_v26 = vld [vmem:[#allocation9 + $0xba8] ss:$16 sps:$4 sm:$0xff]  }
 0x2b9   :  { %6859 = vmatpush1.bf16.msra.mxu1 %v9787_v44  ;;  %5956 = vmatprep.subr.bf16.mxu0 %v9792_v45  ;;  %v9852_v44 = vld [vmem:[#allocation9 + $0xbc4] ss:$16 sps:$4 sm:$0xff]   ;;  %v9855_v45 = vld [vmem:[#allocation9 + $0xbcc] ss:$16 sps:$4 sm:$0xff]  }
 0x2ba   :  { %5888 = vmatmul.mubr.bf16.gmra.mrb[136].mxu0 %v11006_v37  ;;  %6860 = vmatprep.subr.bf16.mxu1 %v9795_v39  ;;  %v9850_v39 = vld [vmem:[#allocation9 + $0xbc0] ss:$16 sps:$4 sm:$0xff]  }
 0x2bb   :  { %6792 = vmatmul.mubr.bf16.gmra.mrb[136].mxu1 %v11006_v37  ;;  %5897 = vmatprep.mubr.bf16.mxu0 %v11032_v21  ;;  %v9813_v37 = vld [vmem:[#allocation9 + $0xaec] ss:$16 sps:$4 sm:$0xff]  }
 0x2bc   :  { %5957 = vmatpush1.bf16.msra.mxu0 %v9790_v38  ;;  %6801 = vmatprep.mubr.bf16.mxu1 %v11032_v21  ;;  %v9808_v21 = vld [vmem:[#allocation9 + $0xae0] ss:$16 sps:$4 sm:$0xff]   ;;  %v9853_v38 = vld [vmem:[#allocation9 + $0xbc8] ss:$16 sps:$4 sm:$0xff]  }
 0x2bd   :  { %6861 = vmatpush1.bf16.msra.mxu1 %v9793_v30  ;;  %5958 = vmatprep.subr.bf16.mxu0 %v9798_v17  ;;  %v9858_v30 = vld [vmem:[#allocation9 + $0xbe4] ss:$16 sps:$4 sm:$0xff]   ;;  %v9856_v17 = vld [vmem:[#allocation9 + $0xbe0] ss:$16 sps:$4 sm:$0xff]  }
 0x2be   :  { %6862 = vmatprep.subr.bf16.mxu1 %v9801_v10  ;;  %v9859_v10 = vld [vmem:[#allocation9 + $0xbe8] ss:$16 sps:$4 sm:$0xff]  }
 0x2c0   :  { %5959 = vmatpush1.bf16.msra.mxu0 %v9796_v52  ;;  %v9864_v52 = vld [vmem:[#allocation9 + $0xc04] ss:$16 sps:$4 sm:$0xff]  }
 0x2c1   :  { %6863 = vmatpush1.bf16.msra.mxu1 %v9799_v25  ;;  %5960 = vmatprep.subr.bf16.mxu0 %v9804_v55  ;;  %v9867_v25 = vld [vmem:[#allocation9 + $0xc0c] ss:$16 sps:$4 sm:$0xff]   ;;  %v9862_v55 = vld [vmem:[#allocation9 + $0xc00] ss:$16 sps:$4 sm:$0xff]  }
 0x2c2   :  { %5898 = vmatmul.mubr.bf16.gmra.mrb[140].mxu0 %v11026_v33  ;;  %6864 = vmatprep.subr.bf16.mxu1 %v9807_v13  ;;  %v9865_v13 = vld [vmem:[#allocation9 + $0xc08] ss:$16 sps:$4 sm:$0xff]  }
 0x2c3   :  { %6802 = vmatmul.mubr.bf16.gmra.mrb[140].mxu1 %v11026_v33  ;;  %5907 = vmatprep.mubr.bf16.mxu0 %v11052_v31  ;;  %v9825_v33 = vld [vmem:[#allocation9 + $0xb2c] ss:$16 sps:$4 sm:$0xff]  }
 0x2c4   :  { %5961 = vmatpush1.bf16.msra.mxu0 %v9802_v18  ;;  %6811 = vmatprep.mubr.bf16.mxu1 %v11052_v31  ;;  %v9820_v31 = vld [vmem:[#allocation9 + $0xb20] ss:$16 sps:$4 sm:$0xff]   ;;  %v9870_v18 = vld [vmem:[#allocation9 + $0xc24] ss:$16 sps:$4 sm:$0xff]  }
 0x2c5   :  { %6865 = vmatpush1.bf16.msra.mxu1 %v9805_v47  ;;  %5962 = vmatprep.subr.bf16.mxu0 %v9810_v36  ;;  %v9873_v47 = vld [vmem:[#allocation9 + $0xc2c] ss:$16 sps:$4 sm:$0xff]   ;;  %v11709_v36 = vld [vmem:[#allocation36_spill] sm:$0xff] }
 0x2c6   :  { %6866 = vmatprep.subr.bf16.mxu1 %v9813_v37  ;;  %v9868_v37 = vld [vmem:[#allocation9 + $0xc20] ss:$16 sps:$4 sm:$0xff]  }
 0x2c8   :  { %5963 = vmatpush1.bf16.msra.mxu0 %v9808_v21  ;;  %v9871_v21 = vld [vmem:[#allocation9 + $0xc28] ss:$16 sps:$4 sm:$0xff]  }
 0x2c9   :  { %6867 = vmatpush1.bf16.msra.mxu1 %v9811_v23  ;;  %5964 = vmatprep.subr.bf16.mxu0 %v9816_v53  ;;  %v9876_v23 = vld [vmem:[#allocation9 + $0xc44] ss:$16 sps:$4 sm:$0xff]   ;;  %v9879_v53 = vld [vmem:[#allocation9 + $0xc4c] ss:$16 sps:$4 sm:$0xff]  }
 0x2ca   :  { %5908 = vmatmul.mubr.bf16.gmra.mrb[144].mxu0 %v11046_v29  ;;  %6868 = vmatprep.subr.bf16.mxu1 %v9819_v5  ;;  %v9874_v5 = vld [vmem:[#allocation9 + $0xc40] ss:$16 sps:$4 sm:$0xff]  }
 0x2cb   :  { %6812 = vmatmul.mubr.bf16.gmra.mrb[144].mxu1 %v11046_v29  ;;  %5917 = vmatprep.mubr.bf16.mxu0 %v11070_v24  ;;  %v9837_v29 = vld [vmem:[#allocation9 + $0xb6c] ss:$16 sps:$4 sm:$0xff]  }
 0x2cc   :  { %5965 = vmatpush1.bf16.msra.mxu0 %v9814_v6  ;;  %6821 = vmatprep.mubr.bf16.mxu1 %v11070_v24  ;;  %v9832_v24 = vld [vmem:[#allocation9 + $0xb60] ss:$16 sps:$4 sm:$0xff]   ;;  %v9877_v6 = vld [vmem:[#allocation9 + $0xc48] ss:$16 sps:$4 sm:$0xff]  }
 0x2cd   :  { %6869 = vmatpush1.bf16.msra.mxu1 %v9817_v48  ;;  %5966 = vmatprep.subr.bf16.mxu0 %v9822_v60  ;;  %v9882_v48 = vld [vmem:[#allocation9 + $0xc64] ss:$16 sps:$4 sm:$0xff]   ;;  %v11710_v60 = vld [vmem:[#allocation35_spill] sm:$0xff] }
 0x2ce   :  { %6870 = vmatprep.subr.bf16.mxu1 %v9825_v33  ;;  %v9885_v33 = vld [vmem:[#allocation9 + $0xc6c] ss:$16 sps:$4 sm:$0xff]  }
 0x2d0   :  { %5967 = vmatpush1.bf16.msra.mxu0 %v9820_v31  ;;  %v11711_v31 = vld [vmem:[#allocation38_spill] sm:$0xff] }
 0x2d1   :  { %6871 = vmatpush1.bf16.msra.mxu1 %v9823_v7  ;;  %5968 = vmatprep.subr.bf16.mxu0 %v9828_v54  ;;  %v9880_v7 = vld [vmem:[#allocation9 + $0xc60] ss:$16 sps:$4 sm:$0xff]   ;;  %v9883_v54 = vld [vmem:[#allocation9 + $0xc68] ss:$16 sps:$4 sm:$0xff]  }
 0x2d2   :  { %5918 = vmatmul.mubr.bf16.gmra.mrb[148].mxu0 %v11065_v19  ;;  %6872 = vmatprep.subr.bf16.mxu1 %v9831_v57  ;;  %v9888_v57 = vld [vmem:[#allocation9 + $0xc84] ss:$16 sps:$4 sm:$0xff]  }
 0x2d3   :  { %6822 = vmatmul.mubr.bf16.gmra.mrb[148].mxu1 %v11065_v19  ;;  %5927 = vmatprep.mubr.bf16.mxu0 %v11090_v8  ;;  %v9849_v19 = vld [vmem:[#allocation9 + $0xbac] ss:$16 sps:$4 sm:$0xff]  }
 0x2d4   :  { %5969 = vmatpush1.bf16.msra.mxu0 %v9826_v51  ;;  %6831 = vmatprep.mubr.bf16.mxu1 %v11090_v8  ;;  %v9844_v8 = vld [vmem:[#allocation9 + $0xba0] ss:$16 sps:$4 sm:$0xff]   ;;  %v9891_v51 = vld [vmem:[#allocation9 + $0xc8c] ss:$16 sps:$4 sm:$0xff]  }
 0x2d5   :  { %6873 = vmatpush1.bf16.msra.mxu1 %v9829_v27  ;;  %5970 = vmatprep.subr.bf16.mxu0 %v9834_v42  ;;  %v9886_v27 = vld [vmem:[#allocation9 + $0xc80] ss:$16 sps:$4 sm:$0xff]   ;;  %v9889_v42 = vld [vmem:[#allocation9 + $0xc88] ss:$16 sps:$4 sm:$0xff]  }
 0x2d6   :  { %6874 = vmatprep.subr.bf16.mxu1 %v9837_v29  ;;  %v9894_v29 = vld [vmem:[#allocation9 + $0xca4] ss:$16 sps:$4 sm:$0xff]  }
 0x2d8   :  { %5971 = vmatpush1.bf16.msra.mxu0 %v9832_v24  ;;  %v11712_v24 = vld [vmem:[#allocation37_spill] sm:$0xff] }
 0x2d9   :  { %6875 = vmatpush1.bf16.msra.mxu1 %v9835_v2  ;;  %5972 = vmatprep.subr.bf16.mxu0 %v9840_v22  ;;  %v9897_v2 = vld [vmem:[#allocation9 + $0xcac] ss:$16 sps:$4 sm:$0xff]   ;;  %v11713_v22 = vld [vmem:[#allocation40_spill] sm:$0xff] }
 0x2da   :  { %5928 = vmatmul.mubr.bf16.gmra.mrb[152].mxu0 %v11085_v16  ;;  %6876 = vmatprep.subr.bf16.mxu1 %v9843_v43  ;;  %v9892_v43 = vld [vmem:[#allocation9 + $0xca0] ss:$16 sps:$4 sm:$0xff]  }
 0x2db   :  { %6832 = vmatmul.mubr.bf16.gmra.mrb[152].mxu1 %v11085_v16  ;;  %5937 = vmatprep.mubr.bf16.mxu0 %v11130_v9  ;;  %v9861_v16 = vld [vmem:[#allocation9 + $0xbec] ss:$16 sps:$4 sm:$0xff]  }
 0x2dc   :  { %5973 = vmatpush1.bf16.msra.mxu0 %v9838_v56  ;;  %6841 = vmatprep.mubr.bf16.mxu1 %v11130_v9  ;;  %v11707_v9 = vld [vmem:[#allocation34_spill] sm:$0xff]  ;;  %v9895_v56 = vld [vmem:[#allocation9 + $0xca8] ss:$16 sps:$4 sm:$0xff]  }
 0x2dd   :  { %6877 = vmatpush1.bf16.msra.mxu1 %v9841_v59  ;;  %5974 = vmatprep.subr.bf16.mxu0 %v9846_v49  ;;  %v9900_v59 = vld [vmem:[#allocation9 + $0xcc4] ss:$16 sps:$4 sm:$0xff]   ;;  %v9903_v49 = vld [vmem:[#allocation9 + $0xccc] ss:$16 sps:$4 sm:$0xff]  }
 0x2de   :  { %6878 = vmatprep.subr.bf16.mxu1 %v9849_v19  ;;  %v9898_v19 = vld [vmem:[#allocation9 + $0xcc0] ss:$16 sps:$4 sm:$0xff]  }
 0x2e0   :  { %5975 = vmatpush1.bf16.msra.mxu0 %v9844_v8  ;;  %v9901_v8 = vld [vmem:[#allocation9 + $0xcc8] ss:$16 sps:$4 sm:$0xff]  }
 0x2e1   :  { %6879 = vmatpush1.bf16.msra.mxu1 %v9847_v26  ;;  %5976 = vmatprep.subr.bf16.mxu0 %v9852_v44  ;;  %v9906_v26 = vld [vmem:[#allocation9 + $0xce4] ss:$16 sps:$4 sm:$0xff]   ;;  %v11714_v44 = vld [vmem:[#allocation39_spill] sm:$0xff] }
 0x2e2   :  { %5938 = vmatmul.mubr.bf16.gmra.mrb[156].mxu0 %v11120_v20  ;;  %6880 = vmatprep.subr.bf16.mxu1 %v9855_v45  ;;  %v9909_v45 = vld [vmem:[#allocation9 + $0xcec] ss:$16 sps:$4 sm:$0xff]  }
 0x2e3   :  { %6842 = vmatmul.mubr.bf16.gmra.mrb[156].mxu1 %v11120_v20  ;;  %5980 = vmatprep.mubr.bf16.mxu0 %v11707_v9  ;;  %v11708_v20 = vld [vmem:[#allocation33_spill] sm:$0xff] }
 0x2e4   :  { %5977 = vmatpush1.bf16.msra.mxu0 %v9850_v39  ;;  %6884 = vmatprep.mubr.bf16.mxu1 %v11707_v9  ;;  %v11715_v39 = vld [vmem:[#allocation42_spill] sm:$0xff]  ;;  %v9915_v9 = vld [vmem:[#allocation9 + $0xd0c] ss:$16 sps:$4 sm:$0xff]  }
 0x2e5   :  { %6881 = vmatpush1.bf16.msra.mxu1 %v9853_v38  ;;  %5978 = vmatprep.subr.bf16.mxu0 %v9858_v30  ;;  %v9904_v38 = vld [vmem:[#allocation9 + $0xce0] ss:$16 sps:$4 sm:$0xff]   ;;  %v9907_v30 = vld [vmem:[#allocation9 + $0xce8] ss:$16 sps:$4 sm:$0xff]  }
 0x2e6   :  { %6882 = vmatprep.subr.bf16.mxu1 %v9861_v16  ;;  %v9912_v16 = vld [vmem:[#allocation9 + $0xd04] ss:$16 sps:$4 sm:$0xff]  }
 0x2e8   :  { %5979 = vmatpush1.bf16.msra.mxu0 %v9856_v17  ;;  %v9910_v17 = vld [vmem:[#allocation9 + $0xd00] ss:$16 sps:$4 sm:$0xff]  }
 0x2e9   :  { %6883 = vmatpush1.bf16.msra.mxu1 %v9859_v10  ;;  %6061 = vmatprep.subr.bf16.mxu0 %v9864_v52  ;;  %v9913_v10 = vld [vmem:[#allocation9 + $0xd08] ss:$16 sps:$4 sm:$0xff]   ;;  %v9918_v52 = vld [vmem:[#allocation9 + $0xd24] ss:$16 sps:$4 sm:$0xff]  }
 0x2ea   :  { %6965 = vmatprep.subr.bf16.mxu1 %v9867_v25  ;;  %v11716_v25 = vld [vmem:[#allocation41_spill] sm:$0xff] }
 0x2eb   :  { %5981 = vmatmul.mubr.bf16.vlgmr.msra.gmra.mrb[128].mxu0 %v11708_v20 }
 0x2ec   :  { %6885 = vmatmul.mubr.bf16.vlgmr.msra.gmra.mrb[128].mxu1 %v11708_v20  ;;  %5990 = vmatprep.mubr.bf16.mxu0 %v11709_v36  ;;  %v9919_v20 = vld [vmem:[#allocation9 + $0xd28] ss:$16 sps:$4 sm:$0xff]  }
 0x2ed   :  { %6062 = vmatpush1.bf16.msra.mxu0 %v9862_v55  ;;  %6894 = vmatprep.mubr.bf16.mxu1 %v11709_v36  ;;  %v9921_v55 = vld [vmem:[#allocation9 + $0xd2c] ss:$16 sps:$4 sm:$0xff]  }
 0x2ee   :  { %6966 = vmatpush1.bf16.msra.mxu1 %v9865_v13  ;;  %6063 = vmatprep.subr.bf16.mxu0 %v9870_v18  ;;  %v11717_v13 = vld [vmem:[#allocation44_spill] sm:$0xff]  ;;  %v9927_v36 = vld [vmem:[#allocation9 + $0xd4c] ss:$16 sps:$4 sm:$0xff]  }
 0x2ef   :  { %6967 = vmatprep.subr.bf16.mxu1 %v9873_v47  ;;  %v9916_v18 = vld [vmem:[#allocation9 + $0xd20] ss:$16 sps:$4 sm:$0xff]   ;;  %v9924_v47 = vld [vmem:[#allocation9 + $0xd44] ss:$16 sps:$4 sm:$0xff]  }
 0x2f1   :  { %6064 = vmatpush1.bf16.msra.mxu0 %v9868_v37  ;;  %v9922_v37 = vld [vmem:[#allocation9 + $0xd40] ss:$16 sps:$4 sm:$0xff]  }
 0x2f2   :  { %6968 = vmatpush1.bf16.msra.mxu1 %v9871_v21  ;;  %6065 = vmatprep.subr.bf16.mxu0 %v9876_v23  ;;  %v9925_v21 = vld [vmem:[#allocation9 + $0xd48] ss:$16 sps:$4 sm:$0xff]   ;;  %v9930_v23 = vld [vmem:[#allocation9 + $0xd64] ss:$16 sps:$4 sm:$0xff]  }
 0x2f3   :  { %5991 = vmatmul.mubr.bf16.gmra.mrb[132].mxu0 %v11710_v60  ;;  %6969 = vmatprep.subr.bf16.mxu1 %v9879_v53  ;;  %v11718_v53 = vld [vmem:[#allocation43_spill] sm:$0xff] }
 0x2f4   :  { %6895 = vmatmul.mubr.bf16.gmra.mrb[132].mxu1 %v11710_v60  ;;  %6000 = vmatprep.mubr.bf16.mxu0 %v11711_v31  ;;  %v9936_v60 = vld [vmem:[#allocation9 + $0xd84] ss:$16 sps:$4 sm:$0xff]  }
 0x2f5   :  { %6066 = vmatpush1.bf16.msra.mxu0 %v9874_v5  ;;  %6904 = vmatprep.mubr.bf16.mxu1 %v11711_v31  ;;  %v9933_v5 = vld [vmem:[#allocation9 + $0xd6c] ss:$16 sps:$4 sm:$0xff]   ;;  %v9934_v31 = vld [vmem:[#allocation9 + $0xd80] ss:$16 sps:$4 sm:$0xff]  }
 0x2f6   :  { %6970 = vmatpush1.bf16.msra.mxu1 %v9877_v6  ;;  %6067 = vmatprep.subr.bf16.mxu0 %v9882_v48  ;;  %v9928_v6 = vld [vmem:[#allocation9 + $0xd60] ss:$16 sps:$4 sm:$0xff]   ;;  %v9931_v48 = vld [vmem:[#allocation9 + $0xd68] ss:$16 sps:$4 sm:$0xff]  }
 0x2f7   :  { %6971 = vmatprep.subr.bf16.mxu1 %v9885_v33  ;;  %v9939_v33 = vld [vmem:[#allocation9 + $0xd8c] ss:$16 sps:$4 sm:$0xff]  }
 0x2f9   :  { %6068 = vmatpush1.bf16.msra.mxu0 %v9880_v7  ;;  %v9937_v7 = vld [vmem:[#allocation9 + $0xd88] ss:$16 sps:$4 sm:$0xff]  }
 0x2fa   :  { %6972 = vmatpush1.bf16.msra.mxu1 %v9883_v54  ;;  %6069 = vmatprep.subr.bf16.mxu0 %v9888_v57  ;;  %v9942_v54 = vld [vmem:[#allocation9 + $0xda4] ss:$16 sps:$4 sm:$0xff]   ;;  %v11719_v57 = vld [vmem:[#allocation45_spill] sm:$0xff] }
 0x2fb   :  { %6001 = vmatmul.mubr.bf16.gmra.mrb[136].mxu0 %v11712_v24  ;;  %6973 = vmatprep.subr.bf16.mxu1 %v9891_v51  ;;  %v9945_v51 = vld [vmem:[#allocation9 + $0xdac] ss:$16 sps:$4 sm:$0xff]  }
 0x2fc   :  { %6905 = vmatmul.mubr.bf16.gmra.mrb[136].mxu1 %v11712_v24  ;;  %6010 = vmatprep.mubr.bf16.mxu0 %v11713_v22  ;;  %v9946_v24 = vld [vmem:[#allocation9 + $0xdc0] ss:$16 sps:$4 sm:$0xff]  }
 0x2fd   :  { %6070 = vmatpush1.bf16.msra.mxu0 %v9886_v27  ;;  %6914 = vmatprep.mubr.bf16.mxu1 %v11713_v22  ;;  %v9943_v27 = vld [vmem:[#allocation9 + $0xda8] ss:$16 sps:$4 sm:$0xff]   ;;  %v9954_v22 = vld [vmem:[#allocation9 + $0xde4] ss:$16 sps:$4 sm:$0xff]  }
 0x2fe   :  { %6974 = vmatpush1.bf16.msra.mxu1 %v9889_v42  ;;  %6071 = vmatprep.subr.bf16.mxu0 %v9894_v29  ;;  %v9948_v42 = vld [vmem:[#allocation9 + $0xdc4] ss:$16 sps:$4 sm:$0xff]   ;;  %v9951_v29 = vld [vmem:[#allocation9 + $0xdcc] ss:$16 sps:$4 sm:$0xff]  }
 0x2ff   :  { %6975 = vmatprep.subr.bf16.mxu1 %v9897_v2  ;;  %v9949_v2 = vld [vmem:[#allocation9 + $0xdc8] ss:$16 sps:$4 sm:$0xff]  }
 0x301   :  { %6072 = vmatpush1.bf16.msra.mxu0 %v9892_v43  ;;  %v11720_v43 = vld [vmem:[#allocation46_spill] sm:$0xff] }
 0x302   :  { %6976 = vmatpush1.bf16.msra.mxu1 %v9895_v56  ;;  %6073 = vmatprep.subr.bf16.mxu0 %v9900_v59  ;;  %v9957_v56 = vld [vmem:[#allocation9 + $0xdec] ss:$16 sps:$4 sm:$0xff]   ;;  %v9955_v59 = vld [vmem:[#allocation9 + $0xde8] ss:$16 sps:$4 sm:$0xff]  }
 0x303   :  { %6011 = vmatmul.mubr.bf16.gmra.mrb[140].mxu0 %v11714_v44  ;;  %6977 = vmatprep.subr.bf16.mxu1 %v9903_v49  ;;  %v9960_v49 = vld [vmem:[#allocation9 + $0xe04] ss:$16 sps:$4 sm:$0xff]  }
 0x304   :  { %6915 = vmatmul.mubr.bf16.gmra.mrb[140].mxu1 %v11714_v44  ;;  %6020 = vmatprep.mubr.bf16.mxu0 %v11715_v39  ;;  %v9966_v44 = vld [vmem:[#allocation9 + $0xe24] ss:$16 sps:$4 sm:$0xff]  }
 0x305   :  { %6074 = vmatpush1.bf16.msra.mxu0 %v9898_v19  ;;  %6924 = vmatprep.mubr.bf16.mxu1 %v11715_v39  ;;  %v9963_v19 = vld [vmem:[#allocation9 + $0xe0c] ss:$16 sps:$4 sm:$0xff]   ;;  %v9967_v39 = vld [vmem:[#allocation9 + $0xe28] ss:$16 sps:$4 sm:$0xff]  }
 0x306   :  { %6978 = vmatpush1.bf16.msra.mxu1 %v9901_v8  ;;  %6075 = vmatprep.subr.bf16.mxu0 %v9906_v26  ;;  %v9958_v8 = vld [vmem:[#allocation9 + $0xe00] ss:$16 sps:$4 sm:$0xff]   ;;  %v9961_v26 = vld [vmem:[#allocation9 + $0xe08] ss:$16 sps:$4 sm:$0xff]  }
 0x307   :  { %6979 = vmatprep.subr.bf16.mxu1 %v9909_v45  ;;  %v9969_v45 = vld [vmem:[#allocation9 + $0xe2c] ss:$16 sps:$4 sm:$0xff]  }
 0x309   :  { %6076 = vmatpush1.bf16.msra.mxu0 %v9904_v38  ;;  %v9972_v38 = vld [vmem:[#allocation9 + $0xe44] ss:$16 sps:$4 sm:$0xff]  }
 0x30a   :  { %6980 = vmatpush1.bf16.msra.mxu1 %v9907_v30  ;;  %6077 = vmatprep.subr.bf16.mxu0 %v9912_v16  ;;  %v9975_v30 = vld [vmem:[#allocation9 + $0xe4c] ss:$16 sps:$4 sm:$0xff]   ;;  %v9970_v16 = vld [vmem:[#allocation9 + $0xe40] ss:$16 sps:$4 sm:$0xff]  }
 0x30b   :  { %6021 = vmatmul.mubr.bf16.gmra.mrb[144].mxu0 %v11716_v25  ;;  %6981 = vmatprep.subr.bf16.mxu1 %v9915_v9  ;;  %v9973_v9 = vld [vmem:[#allocation9 + $0xe48] ss:$16 sps:$4 sm:$0xff]  }
 0x30c   :  { %6925 = vmatmul.mubr.bf16.gmra.mrb[144].mxu1 %v11716_v25  ;;  %6030 = vmatprep.mubr.bf16.mxu0 %v11717_v13  ;;  %v9987_v25 = vld [vmem:[#allocation9 + $0xe8c] ss:$16 sps:$4 sm:$0xff]  }
 0x30d   :  { %6078 = vmatpush1.bf16.msra.mxu0 %v9910_v17  ;;  %6934 = vmatprep.mubr.bf16.mxu1 %v11717_v13  ;;  %v9978_v17 = vld [vmem:[#allocation9 + $0xe64] ss:$16 sps:$4 sm:$0xff]   ;;  %v9985_v13 = vld [vmem:[#allocation9 + $0xe88] ss:$16 sps:$4 sm:$0xff]  }
 0x30e   :  { %6982 = vmatpush1.bf16.msra.mxu1 %v9913_v10  ;;  %6079 = vmatprep.subr.bf16.mxu0 %v9918_v52  ;;  %v9979_v10 = vld [vmem:[#allocation9 + $0xe68] ss:$16 sps:$4 sm:$0xff]   ;;  %v9984_v52 = vld [vmem:[#allocation9 + $0xe84] ss:$16 sps:$4 sm:$0xff]  }
 0x30f   :  { %6983 = vmatprep.subr.bf16.mxu1 %v9921_v55  ;;  %v9982_v55 = vld [vmem:[#allocation9 + $0xe80] ss:$16 sps:$4 sm:$0xff]  }
 0x311   :  { %6080 = vmatpush1.bf16.msra.mxu0 %v9916_v18  ;;  %v9990_v18 = vld [vmem:[#allocation9 + $0xea4] ss:$16 sps:$4 sm:$0xff]  }
 0x312   :  { %6984 = vmatpush1.bf16.msra.mxu1 %v9919_v20  ;;  %6081 = vmatprep.subr.bf16.mxu0 %v9924_v47  ;;  %v9991_v20 = vld [vmem:[#allocation9 + $0xea8] ss:$16 sps:$4 sm:$0xff]   ;;  %v9996_v47 = vld [vmem:[#allocation9 + $0xec4] ss:$16 sps:$4 sm:$0xff]  }
 0x313   :  { %6031 = vmatmul.mubr.bf16.gmra.mrb[148].mxu0 %v11718_v53  ;;  %6985 = vmatprep.subr.bf16.mxu1 %v9927_v36  ;;  %v9999_v36 = vld [vmem:[#allocation9 + $0xecc] ss:$16 sps:$4 sm:$0xff]  }
 0x314   :  { %6935 = vmatmul.mubr.bf16.gmra.mrb[148].mxu1 %v11718_v53  ;;  %6040 = vmatprep.mubr.bf16.mxu0 %v11094_v28  ;;  %v10003_v53 = vld [vmem:[#allocation9 + $0xee8] ss:$16 sps:$4 sm:$0xff]  }
 0x315   :  { %6082 = vmatpush1.bf16.msra.mxu0 %v9922_v37  ;;  %6944 = vmatprep.mubr.bf16.mxu1 %v11094_v28  ;;  %v9940_v28 = vld [vmem:[#allocation9 + $0xda0] ss:$16 sps:$4 sm:$0xff]  }
 0x316   :  { %6986 = vmatpush1.bf16.msra.mxu1 %v9925_v21  ;;  %6083 = vmatprep.subr.bf16.mxu0 %v9930_v23  ;;  %v9994_v37 = vld [vmem:[#allocation9 + $0xec0] ss:$16 sps:$4 sm:$0xff]   ;;  %v9997_v21 = vld [vmem:[#allocation9 + $0xec8] ss:$16 sps:$4 sm:$0xff]   ;;  %v10002_v23 = vld [vmem:[#allocation9 + $0xee4] ss:$16 sps:$4 sm:$0xff]  }
 0x317   :  { %6987 = vmatprep.subr.bf16.mxu1 %v9933_v5  ;;  %v10008_v5 = vld [vmem:[#allocation9 + $0xf04] ss:$16 sps:$4 sm:$0xff]  }
 0x319   :  { %6084 = vmatpush1.bf16.msra.mxu0 %v9928_v6  ;;  %v10011_v6 = vld [vmem:[#allocation9 + $0xf0c] ss:$16 sps:$4 sm:$0xff]  }
 0x31a   :  { %6988 = vmatpush1.bf16.msra.mxu1 %v9931_v48  ;;  %6085 = vmatprep.subr.bf16.mxu0 %v9936_v60  ;;  %v10006_v48 = vld [vmem:[#allocation9 + $0xf00] ss:$16 sps:$4 sm:$0xff]   ;;  %v10009_v60 = vld [vmem:[#allocation9 + $0xf08] ss:$16 sps:$4 sm:$0xff]  }
 0x31b   :  { %6041 = vmatmul.mubr.bf16.gmra.mrb[152].mxu0 %v11719_v57  ;;  %6989 = vmatprep.subr.bf16.mxu1 %v9939_v33  ;;  %v10014_v33 = vld [vmem:[#allocation9 + $0xf24] ss:$16 sps:$4 sm:$0xff]  }
 0x31c   :  { %6945 = vmatmul.mubr.bf16.gmra.mrb[152].mxu1 %v11719_v57  ;;  %6050 = vmatprep.mubr.bf16.mxu0 %v11134_v62  ;;  %v10018_v57 = vld [vmem:[#allocation9 + $0xf40] ss:$16 sps:$4 sm:$0xff]  }
 0x31d   :  { %6086 = vmatpush1.bf16.msra.mxu0 %v9934_v31  ;;  %6954 = vmatprep.mubr.bf16.mxu1 %v11134_v62  ;;  %v9952_v62 = vld [vmem:[#allocation9 + $0xde0] ss:$16 sps:$4 sm:$0xff]   ;;  %v10015_v31 = vld [vmem:[#allocation9 + $0xf28] ss:$16 sps:$4 sm:$0xff]  }
 0x31e   :  { %6990 = vmatpush1.bf16.msra.mxu1 %v9937_v7  ;;  %6087 = vmatprep.subr.bf16.mxu0 %v9942_v54  ;;  %v10020_v7 = vld [vmem:[#allocation9 + $0xf44] ss:$16 sps:$4 sm:$0xff]   ;;  %v10023_v54 = vld [vmem:[#allocation9 + $0xf4c] ss:$16 sps:$4 sm:$0xff]  }
 0x31f   :  { %6991 = vmatprep.subr.bf16.mxu1 %v9945_v51  ;;  %v10021_v51 = vld [vmem:[#allocation9 + $0xf48] ss:$16 sps:$4 sm:$0xff]  }
 0x321   :  { %6088 = vmatpush1.bf16.msra.mxu0 %v9940_v28  ;;  %v10026_v28 = vld [vmem:[#allocation9 + $0xf64] ss:$16 sps:$4 sm:$0xff]  }
 0x322   :  { %6992 = vmatpush1.bf16.msra.mxu1 %v9943_v27  ;;  %6089 = vmatprep.subr.bf16.mxu0 %v9948_v42  ;;  %v11721_v27 = vld [vmem:[#allocation57_spill] sm:$0xff] }
 0x323   :  { %6051 = vmatmul.mubr.bf16.gmra.mrb[156].mxu0 %v11720_v43  ;;  %6993 = vmatprep.subr.bf16.mxu1 %v9951_v29  ;;  %v10027_v42 = vld [vmem:[#allocation9 + $0xf68] ss:$16 sps:$4 sm:$0xff]   ;;  %v10032_v29 = vld [vmem:[#allocation9 + $0xf84] ss:$16 sps:$4 sm:$0xff]  }
 0x324   :  { %6955 = vmatmul.mubr.bf16.gmra.mrb[156].mxu1 %v11720_v43  ;;  %6093 = vmatprep.mubr.bf16.mxu0 %v11150_v0  ;;  %v10038_v43 = vld [vmem:[#allocation9 + $0xfa4] ss:$16 sps:$4 sm:$0xff]  }
 0x325   :  { %6090 = vmatpush1.bf16.msra.mxu0 %v9946_v24  ;;  %6997 = vmatprep.mubr.bf16.mxu1 %v11150_v0  ;;  %v9964_v0 = vld [vmem:[#allocation9 + $0xe20] ss:$16 sps:$4 sm:$0xff]   ;;  %v10035_v24 = vld [vmem:[#allocation9 + $0xf8c] ss:$16 sps:$4 sm:$0xff]  }
 0x326   :  { %6994 = vmatpush1.bf16.msra.mxu1 %v9949_v2  ;;  %6091 = vmatprep.subr.bf16.mxu0 %v9954_v22  ;;  %v10030_v2 = vld [vmem:[#allocation9 + $0xf80] ss:$16 sps:$4 sm:$0xff]   ;;  %v10033_v22 = vld [vmem:[#allocation9 + $0xf88] ss:$16 sps:$4 sm:$0xff]  }
 0x327   :  { %6995 = vmatprep.subr.bf16.mxu1 %v9957_v56  ;;  %v10041_v56 = vld [vmem:[#allocation9 + $0xfac] ss:$16 sps:$4 sm:$0xff]  }
 0x329   :  { %6092 = vmatpush1.bf16.msra.mxu0 %v9952_v62  ;;  %v10039_v62 = vld [vmem:[#allocation9 + $0xfa8] ss:$16 sps:$4 sm:$0xff]  }
 0x32a   :  { %6996 = vmatpush1.bf16.msra.mxu1 %v9955_v59  ;;  %6174 = vmatprep.subr.bf16.mxu0 %v9960_v49  ;;  %v10044_v59 = vld [vmem:[#allocation9 + $0xfc4] ss:$16 sps:$4 sm:$0xff]   ;;  %v10047_v49 = vld [vmem:[#allocation9 + $0xfcc] ss:$16 sps:$4 sm:$0xff]  }
 0x32b   :  { %7078 = vmatprep.subr.bf16.mxu1 %v9963_v19  ;;  %v10042_v19 = vld [vmem:[#allocation9 + $0xfc0] ss:$16 sps:$4 sm:$0xff]  }
 0x32c   :  { %6094 = vmatmul.mubr.bf16.vlgmr.msra.gmra.mrb[128].mxu0 %v11145_v35 }
 0x32d   :  { %6998 = vmatmul.mubr.bf16.vlgmr.msra.gmra.mrb[128].mxu1 %v11145_v35  ;;  %6103 = vmatprep.mubr.bf16.mxu0 %v11170_v32  ;;  %v9981_v35 = vld [vmem:[#allocation9 + $0xe6c] ss:$16 sps:$4 sm:$0xff]  }
 0x32e   :  { %6175 = vmatpush1.bf16.msra.mxu0 %v9958_v8  ;;  %7007 = vmatprep.mubr.bf16.mxu1 %v11170_v32  ;;  %v9976_v32 = vld [vmem:[#allocation9 + $0xe60] ss:$16 sps:$4 sm:$0xff]   ;;  %v10045_v8 = vld [vmem:[#allocation9 + $0xfc8] ss:$16 sps:$4 sm:$0xff]  }
 0x32f   :  { %7079 = vmatpush1.bf16.msra.mxu1 %v9961_v26  ;;  %6176 = vmatprep.subr.bf16.mxu0 %v9966_v44  ;;  %v10050_v26 = vld [vmem:[#allocation9 + $0xfe4] ss:$16 sps:$4 sm:$0xff]   ;;  %v10048_v44 = vld [vmem:[#allocation9 + $0xfe0] ss:$16 sps:$4 sm:$0xff]  }
 0x330   :  { %7080 = vmatprep.subr.bf16.mxu1 %v9969_v45  ;;  %v10051_v45 = vld [vmem:[#allocation9 + $0xfe8] ss:$16 sps:$4 sm:$0xff]  }
 0x332   :  { %6177 = vmatpush1.bf16.msra.mxu0 %v9964_v0  ;;  %v10054_v0 = vld [vmem:[#allocation12 + $0x40] sm:$0xff]  }
 0x333   :  { %7081 = vmatpush1.bf16.msra.mxu1 %v9967_v39  ;;  %6178 = vmatprep.subr.bf16.mxu0 %v9972_v38  ;;  %v10056_v39 = vld [vmem:[#allocation12 + $0xc0] sm:$0xff]  }
 0x334   :  { %6104 = vmatmul.mubr.bf16.gmra.mrb[132].mxu0 %v11165_v40  ;;  %7082 = vmatprep.subr.bf16.mxu1 %v9975_v30  ;;  %v10055_v38 = vld [vmem:[#allocation12] sm:$0xff]  }
 0x335   :  { %7008 = vmatmul.mubr.bf16.gmra.mrb[132].mxu1 %v11165_v40  ;;  %6113 = vmatprep.mubr.bf16.mxu0 %v11190_v41  ;;  %v9993_v40 = vld [vmem:[#allocation9 + $0xeac] ss:$16 sps:$4 sm:$0xff]   ;;  %v10057_v30 = vld [vmem:[#allocation12 + $0x80] sm:$0xff]  }
 0x336   :  { %6179 = vmatpush1.bf16.msra.mxu0 %v9970_v16  ;;  %7017 = vmatprep.mubr.bf16.mxu1 %v11190_v41  ;;  %v9988_v41 = vld [vmem:[#allocation9 + $0xea0] ss:$16 sps:$4 sm:$0xff]  }
 0x337   :  { %7083 = vmatpush1.bf16.msra.mxu1 %v9973_v9  ;;  %6180 = vmatprep.subr.bf16.mxu0 %v9978_v17  ;;  %v10058_v16 = vld [vmem:[#allocation12 + $0x48] sm:$0xff]  }
 0x338   :  { %7084 = vmatprep.subr.bf16.mxu1 %v9981_v35  ;;  %v10060_v9 = vld [vmem:[#allocation12 + $0xc8] sm:$0xff]  }
 0x339   :  { %v11724_v17 = vld [vmem:[#allocation50_spill] sm:$0xff] }
 0x33a   :  { %6181 = vmatpush1.bf16.msra.mxu0 %v9976_v32  ;;  %v10059_v35 = vld [vmem:[#allocation12 + $0x8] sm:$0xff]  }
 0x33b   :  { %7085 = vmatpush1.bf16.msra.mxu1 %v9979_v10  ;;  %6182 = vmatprep.subr.bf16.mxu0 %v9984_v52  ;;  %v10061_v32 = vld [vmem:[#allocation12 + $0x88] sm:$0xff]   ;;  %v10062_v10 = vld [vmem:[#allocation12 + $0x50] sm:$0xff]  }
 0x33c   :  { %6114 = vmatmul.mubr.bf16.gmra.mrb[136].mxu0 %v11185_v11  ;;  %7086 = vmatprep.subr.bf16.mxu1 %v9987_v25  ;;  %v10064_v52 = vld [vmem:[#allocation12 + $0xd0] sm:$0xff]  }
 0x33d   :  { %7018 = vmatmul.mubr.bf16.gmra.mrb[136].mxu1 %v11185_v11  ;;  %6123 = vmatprep.mubr.bf16.mxu0 %v11210_v61  ;;  %v10005_v11 = vld [vmem:[#allocation9 + $0xeec] ss:$16 sps:$4 sm:$0xff]   ;;  %v10063_v25 = vld [vmem:[#allocation12 + $0x10] sm:$0xff]  }
 0x33e   :  { %6183 = vmatpush1.bf16.msra.mxu0 %v9982_v55  ;;  %7027 = vmatprep.mubr.bf16.mxu1 %v11210_v61  ;;  %v10000_v61 = vld [vmem:[#allocation9 + $0xee0] ss:$16 sps:$4 sm:$0xff]   ;;  %v10065_v55 = vld [vmem:[#allocation12 + $0x90] sm:$0xff]  }
 0x33f   :  { %7087 = vmatpush1.bf16.msra.mxu1 %v9985_v13  ;;  %6184 = vmatprep.subr.bf16.mxu0 %v9990_v18  ;;  %v10066_v13 = vld [vmem:[#allocation12 + $0x58] sm:$0xff]   ;;  %v11725_v18 = vld [vmem:[#allocation49_spill] sm:$0xff] }
 0x340   :  { %7088 = vmatprep.subr.bf16.mxu1 %v9993_v40  ;;  %v10068_v40 = vld [vmem:[#allocation12 + $0xd8] sm:$0xff]  }
 0x342   :  { %6185 = vmatpush1.bf16.msra.mxu0 %v9988_v41  ;;  %v11726_v41 = vld [vmem:[#allocation52_spill] sm:$0xff] }
 0x343   :  { %7089 = vmatpush1.bf16.msra.mxu1 %v9991_v20  ;;  %6186 = vmatprep.subr.bf16.mxu0 %v9996_v47  ;;  %v10067_v20 = vld [vmem:[#allocation12 + $0x18] sm:$0xff]  }
 0x344   :  { %6124 = vmatmul.mubr.bf16.gmra.mrb[140].mxu0 %v11205_v15  ;;  %7090 = vmatprep.subr.bf16.mxu1 %v9999_v36  ;;  %v10069_v47 = vld [vmem:[#allocation12 + $0x98] sm:$0xff]   ;;  %v10070_v36 = vld [vmem:[#allocation12 + $0x60] sm:$0xff]  }
 0x345   :  { %7028 = vmatmul.mubr.bf16.gmra.mrb[140].mxu1 %v11205_v15  ;;  %6133 = vmatprep.mubr.bf16.mxu0 %v11230_v63  ;;  %v10017_v15 = vld [vmem:[#allocation9 + $0xf2c] ss:$16 sps:$4 sm:$0xff]  }
 0x346   :  { %6187 = vmatpush1.bf16.msra.mxu0 %v9994_v37  ;;  %7037 = vmatprep.mubr.bf16.mxu1 %v11230_v63  ;;  %v10012_v63 = vld [vmem:[#allocation9 + $0xf20] ss:$16 sps:$4 sm:$0xff]   ;;  %v10072_v37 = vld [vmem:[#allocation12 + $0xe0] sm:$0xff]  }
 0x347   :  { %7091 = vmatpush1.bf16.msra.mxu1 %v9997_v21  ;;  %6188 = vmatprep.subr.bf16.mxu0 %v10002_v23  ;;  %v10071_v21 = vld [vmem:[#allocation12 + $0x20] sm:$0xff]  }
 0x348   :  { %7092 = vmatprep.subr.bf16.mxu1 %v10005_v11  ;;  %v10073_v23 = vld [vmem:[#allocation12 + $0xa0] sm:$0xff]   ;;  %v10074_v11 = vld [vmem:[#allocation12 + $0x68] sm:$0xff]  }
 0x34a   :  { %6189 = vmatpush1.bf16.msra.mxu0 %v10000_v61  ;;  %v11727_v61 = vld [vmem:[#allocation51_spill] sm:$0xff] }
 0x34b   :  { %7093 = vmatpush1.bf16.msra.mxu1 %v10003_v53  ;;  %6190 = vmatprep.subr.bf16.mxu0 %v10008_v5  ;;  %v10076_v53 = vld [vmem:[#allocation12 + $0xe8] sm:$0xff]  }
 0x34c   :  { %6134 = vmatmul.mubr.bf16.gmra.mrb[144].mxu0 %v11225_v46  ;;  %7094 = vmatprep.subr.bf16.mxu1 %v10011_v6  ;;  %v11728_v5 = vld [vmem:[#allocation54_spill] sm:$0xff] }
 0x34d   :  { %7038 = vmatmul.mubr.bf16.gmra.mrb[144].mxu1 %v11225_v46  ;;  %6143 = vmatprep.mubr.bf16.mxu0 %v11249_v58  ;;  %v10029_v46 = vld [vmem:[#allocation9 + $0xf6c] ss:$16 sps:$4 sm:$0xff]  }
 0x34e   :  { %6191 = vmatpush1.bf16.msra.mxu0 %v10006_v48  ;;  %7047 = vmatprep.mubr.bf16.mxu1 %v11249_v58  ;;  %v10024_v58 = vld [vmem:[#allocation9 + $0xf60] ss:$16 sps:$4 sm:$0xff]  }
 0x34f   :  { %7095 = vmatpush1.bf16.msra.mxu1 %v10009_v60  ;;  %6192 = vmatprep.subr.bf16.mxu0 %v10014_v33  ;;  %v10075_v6 = vld [vmem:[#allocation12 + $0x28] sm:$0xff]   ;;  %v10078_v60 = vld [vmem:[#allocation12 + $0x70] sm:$0xff]  }
 0x350   :  { %7096 = vmatprep.subr.bf16.mxu1 %v10017_v15  ;;  %v10077_v48 = vld [vmem:[#allocation12 + $0xa8] sm:$0xff]   ;;  %v10080_v33 = vld [vmem:[#allocation12 + $0xf0] sm:$0xff]  }
 0x351   :  { %v10079_v15 = vld [vmem:[#allocation12 + $0x30] sm:$0xff]  }
 0x352   :  { %6193 = vmatpush1.bf16.msra.mxu0 %v10012_v63  ;;  %v10081_v63 = vld [vmem:[#allocation12 + $0xb0] sm:$0xff]  }
 0x353   :  { %7097 = vmatpush1.bf16.msra.mxu1 %v10015_v31  ;;  %6194 = vmatprep.subr.bf16.mxu0 %v10020_v7  ;;  %v11729_v31 = vld [vmem:[#allocation53_spill] sm:$0xff]  ;;  %v11730_v7 = vld [vmem:[#allocation56_spill] sm:$0xff] }
 0x354   :  { %6144 = vmatmul.mubr.bf16.gmra.mrb[148].mxu0 %v11721_v27  ;;  %7098 = vmatprep.subr.bf16.mxu1 %v10023_v54  ;;  %v11731_v54 = vld [vmem:[#allocation55_spill] sm:$0xff] }
 0x355   :  { %7048 = vmatmul.mubr.bf16.gmra.mrb[148].mxu1 %v11721_v27  ;;  %6153 = vmatprep.mubr.bf16.mxu0 %v11269_v3  ;;  %v10082_v27 = vld [vmem:[#allocation12 + $0x78] sm:$0xff]  }
 0x356   :  { %6195 = vmatpush1.bf16.msra.mxu0 %v10018_v57  ;;  %7057 = vmatprep.mubr.bf16.mxu1 %v11269_v3  ;;  %v10036_v3 = vld [vmem:[#allocation9 + $0xfa0] ss:$16 sps:$4 sm:$0xff]   ;;  %v11732_v57 = vld [vmem:[#allocation59_spill] sm:$0xff] }
 0x357   :  { %7099 = vmatpush1.bf16.msra.mxu1 %v10021_v51  ;;  %6196 = vmatprep.subr.bf16.mxu0 %v10026_v28  ;;  %v11733_v51 = vld [vmem:[#allocation58_spill] sm:$0xff]  ;;  %v11734_v28 = vld [vmem:[#allocation60_spill] sm:$0xff] }
 0x358   :  { %7100 = vmatprep.subr.bf16.mxu1 %v10029_v46  ;;  %v10084_v46 = vld [vmem:[#allocation12 + $0xf8] sm:$0xff]  }
 0x35a   :  { %6197 = vmatpush1.bf16.msra.mxu0 %v10024_v58  ;;  %v10083_v58 = vld [vmem:[#allocation12 + $0x38] sm:$0xff]  }
 0x35b   :  { %7101 = vmatpush1.bf16.msra.mxu1 %v10027_v42  ;;  %6198 = vmatprep.subr.bf16.mxu0 %v10032_v29  ;;  %v10085_v42 = vld [vmem:[#allocation12 + $0xb8] sm:$0xff]   ;;  %v7795_v29 = vld [vmem:[%s11606_s7 + $0x18] sm:$0xff] }
 0x35c   :  { %6154 = vmatmul.mubr.bf16.gmra.mrb[152].mxu0 %v11265_v4  ;;  %7102 = vmatprep.subr.bf16.mxu1 %v10035_v24  ;;  %v7796_v24 = vld [vmem:[%s11606_s7 + $0x20] sm:$0xff] }
 0x35d   :  { %7058 = vmatmul.mubr.bf16.gmra.mrb[152].mxu1 %v11265_v4  ;;  %6163 = vmatprep.mubr.bf16.mxu0 %v11289_v1  ;;  %v10053_v4 = vld [vmem:[#allocation9 + $0xfec] ss:$16 sps:$4 sm:$0xff]  }
 0x35e   :  { %6199 = vmatpush1.bf16.msra.mxu0 %v10030_v2  ;;  %7067 = vmatprep.mubr.bf16.mxu1 %v11289_v1  ;;  %v11722_v1 = vld [vmem:[#allocation48_spill] sm:$0xff]  ;;  %v7797_v2 = vld [vmem:[%s11606_s7 + $0x28] sm:$0xff] }
 0x35f   :  { %7103 = vmatpush1.bf16.msra.mxu1 %v10033_v22  ;;  %6200 = vmatprep.subr.bf16.mxu0 %v10038_v43  ;;  %v2801_v22 = vld [vmem:[#allocation11] sm:$0xf]  ;;  %v11735_v43 = vld [vmem:[#allocation21_spill] sm:$0xff] }
 0x360   :  { %7104 = vmatprep.subr.bf16.mxu1 %v10041_v56  ;;  %v11462_v56 = vrot.slane %v2801_v22, %v11735_v43 }
 0x362   :  { %6201 = vmatpush1.bf16.msra.mxu0 %v10036_v3  ;;  %v11736_v3 = vld [vmem:[#allocation22_spill] sm:$0xff] }
 0x363   :  { %7105 = vmatpush1.bf16.msra.mxu1 %v10039_v62  ;;  %6202 = vmatprep.subr.bf16.mxu0 %v10044_v59  ;;  %v11465_v62 = vrot.slane %v2801_v22, %v11736_v3  ;;  %v11737_v59 = vld [vmem:[#allocation23_spill] sm:$0xff] }
 0x364   :  { %6164 = vmatmul.mubr.bf16.gmra.mrb[156].mxu0 %v11285_v34  ;;  %7106 = vmatprep.subr.bf16.mxu1 %v10047_v49  ;;  %v11468_v49 = vrot.slane %v2801_v22, %v11737_v59 }
 0x365   :  { %7068 = vmatmul.mubr.bf16.gmra.mrb[156].mxu1 %v11285_v34  ;;  %6206 = vmatprep.mubr.bf16.mxu0 %v11722_v1  ;;  %v11723_v34 = vld [vmem:[#allocation47_spill] sm:$0xff] }
 0x366   :  { %6203 = vmatpush1.bf16.msra.mxu0 %v10042_v19  ;;  %7110 = vmatprep.mubr.bf16.mxu1 %v11722_v1  ;;  %v11738_v19 = vld [vmem:[#allocation24_spill] sm:$0xff] }
 0x367   :  { %7107 = vmatpush1.bf16.msra.mxu1 %v10045_v8  ;;  %6204 = vmatprep.subr.bf16.mxu0 %v10050_v26  ;;  %v11471_v8 = vrot.slane %v2801_v22, %v11738_v19 }
 0x368   :  { %7108 = vmatprep.subr.bf16.mxu1 %v10053_v4 }
 0x36a   :  { %6205 = vmatpush1.bf16.msra.mxu0 %v10048_v44 }
 0x36b   :  { %7109 = vmatpush1.bf16.msra.mxu1 %v10051_v45  ;;  %8628 = vmatprep.subr.bf16.mxu0 %v10054_v0 }
 0x36c   :  { %8692 = vmatprep.subr.bf16.mxu1 %v10056_v39 }
 0x36d   :  { %6207 = vmatmul.mubr.bf16.vlgmr.msra.gmra.mrb[128].mxu0 %v11723_v34 }
 0x36e   :  { %7111 = vmatmul.mubr.bf16.vlgmr.msra.gmra.mrb[128].mxu1 %v11723_v34  ;;  %6216 = vmatprep.mubr.bf16.mxu0 %v11724_v17 }
 0x36f   :  { %7120 = vmatprep.mubr.bf16.mxu1 %v11724_v17  ;;  %8629 = vmatpush3.bf16.msra.mxu0 %v10055_v38 }
 0x370   :  { %8693 = vmatpush3.bf16.msra.mxu1 %v10057_v30  ;;  %8630 = vmatprep.subr.bf16.mxu0 %v10058_v16 }
 0x371   :  { %8694 = vmatprep.subr.bf16.mxu1 %v10060_v9 }
 0x373   :  { %8631 = vmatpush3.bf16.msra.mxu0 %v10059_v35 }
 0x374   :  { %8695 = vmatpush3.bf16.msra.mxu1 %v10061_v32  ;;  %8632 = vmatprep.subr.bf16.mxu0 %v10062_v10 }
 0x375   :  { %6217 = vmatmul.mubr.bf16.gmra.mrb[132].mxu0 %v11725_v18  ;;  %8696 = vmatprep.subr.bf16.mxu1 %v10064_v52 }
 0x376   :  { %7121 = vmatmul.mubr.bf16.gmra.mrb[132].mxu1 %v11725_v18  ;;  %6226 = vmatprep.mubr.bf16.mxu0 %v11726_v41 }
 0x377   :  { %7130 = vmatprep.mubr.bf16.mxu1 %v11726_v41  ;;  %8633 = vmatpush3.bf16.msra.mxu0 %v10063_v25 }
 0x378   :  { %8697 = vmatpush3.bf16.msra.mxu1 %v10065_v55  ;;  %8634 = vmatprep.subr.bf16.mxu0 %v10066_v13 }
 0x379   :  { %8698 = vmatprep.subr.bf16.mxu1 %v10068_v40 }
 0x37b   :  { %8635 = vmatpush3.bf16.msra.mxu0 %v10067_v20 }
 0x37c   :  { %8699 = vmatpush3.bf16.msra.mxu1 %v10069_v47  ;;  %8636 = vmatprep.subr.bf16.mxu0 %v10070_v36 }
 0x37d   :  { %6227 = vmatmul.mubr.bf16.gmra.mrb[136].mxu0 %v11727_v61  ;;  %8700 = vmatprep.subr.bf16.mxu1 %v10072_v37 }
 0x37e   :  { %7131 = vmatmul.mubr.bf16.gmra.mrb[136].mxu1 %v11727_v61  ;;  %6236 = vmatprep.mubr.bf16.mxu0 %v11728_v5 }
 0x37f   :  { %7140 = vmatprep.mubr.bf16.mxu1 %v11728_v5  ;;  %8637 = vmatpush3.bf16.msra.mxu0 %v10071_v21 }
 0x380   :  { %8701 = vmatpush3.bf16.msra.mxu1 %v10073_v23  ;;  %8638 = vmatprep.subr.bf16.mxu0 %v10074_v11 }
 0x381   :  { %8702 = vmatprep.subr.bf16.mxu1 %v10076_v53 }
 0x383   :  { %8639 = vmatpush3.bf16.msra.mxu0 %v10075_v6 }
 0x384   :  { %8703 = vmatpush3.bf16.msra.mxu1 %v10077_v48  ;;  %8640 = vmatprep.subr.bf16.mxu0 %v10078_v60 }
 0x385   :  { %6237 = vmatmul.mubr.bf16.gmra.mrb[140].mxu0 %v11729_v31  ;;  %8704 = vmatprep.subr.bf16.mxu1 %v10080_v33 }
 0x386   :  { %7141 = vmatmul.mubr.bf16.gmra.mrb[140].mxu1 %v11729_v31  ;;  %6246 = vmatprep.mubr.bf16.mxu0 %v11730_v7 }
 0x387   :  { %7150 = vmatprep.mubr.bf16.mxu1 %v11730_v7  ;;  %8641 = vmatpush3.bf16.msra.mxu0 %v10079_v15 }
 0x388   :  { %8705 = vmatpush3.bf16.msra.mxu1 %v10081_v63  ;;  %8642 = vmatprep.subr.bf16.mxu0 %v10082_v27 }
 0x389   :  { %8706 = vmatprep.subr.bf16.mxu1 %v10084_v46 }
 0x38b   :  { %8643 = vmatpush3.bf16.msra.mxu0 %v10083_v58 }
 0x38c   :  { %8707 = vmatpush3.bf16.msra.mxu1 %v10085_v42 }
 0x38d   :  { %6247 = vmatmul.mubr.bf16.gmra.mrb[144].mxu0 %v11731_v54 }
 0x38e   :  { %7151 = vmatmul.mubr.bf16.gmra.mrb[144].mxu1 %v11731_v54  ;;  %6256 = vmatprep.mubr.bf16.mxu0 %v11732_v57 }
 0x38f   :  { %7160 = vmatprep.mubr.bf16.mxu1 %v11732_v57 }
 0x395   :  { %6257 = vmatmul.mubr.bf16.gmra.mrb[148].mxu0 %v11733_v51 }
 0x396   :  { %7161 = vmatmul.mubr.bf16.gmra.mrb[148].mxu1 %v11733_v51  ;;  %6266 = vmatprep.mubr.bf16.mxu0 %v11272_v12 }
 0x397   :  { %7170 = vmatprep.mubr.bf16.mxu1 %v11272_v12  ;;  %v7792_v12 = vld [vmem:[%s11606_s7] sm:$0xff] }
 0x398   :  { %7810 = vperm.xlu1 %9284, %v7792_v12  }
 0x39d   :  { %6267 = vmatmul.mubr.bf16.gmra.mrb[152].mxu0 %v11734_v28 }
 0x39e   :  { %7171 = vmatmul.mubr.bf16.gmra.mrb[152].mxu1 %v11734_v28  ;;  %6276 = vmatprep.mubr.bf16.mxu0 %v11292_v14 }
 0x39f   :  { %7180 = vmatprep.mubr.bf16.mxu1 %v11292_v14  ;;  %v7793_v14 = vld [vmem:[%s11606_s7 + $0x8] sm:$0xff] }
 0x3a0   :  { %7815 = vperm.xlu1 %9284, %v7793_v14  }
 0x3a5   :  { %6277 = vmatmul.mubr.bf16.gmra.mrb[156].mxu0 %v11287_v50 }
 0x3a6   :  { %7181 = vmatmul.mubr.bf16.gmra.mrb[156].mxu1 %v11287_v50  ;;  %v7794_v50 = vld [vmem:[%s11606_s7 + $0x10] sm:$0xff] }
 0x3a7   :  { %7820 = vperm.xlu1 %9284, %v7794_v50  }
 0x3ab   :  { %7825 = vperm.xlu1 %9284, %v7795_v29  }
 0x3af   :  { %7830 = vperm.xlu1 %9284, %v7796_v24  }
 0x3b3   :  { %7835 = vperm.xlu1 %9284, %v7797_v2  }
 0x440   :  { %v6208_v26 = vpop.f32.mrb[128].mxu0 }
 0x441   :  { %v8756_v4 = vadd.f32 %v6208_v26, %v11462_v56  ;;  %v7112_v1 = vpop.f32.mrb[128].mxu1  ;;  %v6210_v44 = vpop.f32.mrb[129].mxu0 }
 0x442   :  { %v8788_v45 = vadd.f32 %v7112_v1, %v11465_v62  ;;  %v8757_v0 = vadd.f32 %v6210_v44, %v11468_v49  ;;  %v7114_v39 = vpop.f32.mrb[129].mxu1  ;;  %v6212_v38 = vpop.f32.mrb[130].mxu0 }
 0x443   :  { %v8789_v30 = vadd.f32 %v7114_v39, %v11471_v8  ;;  %v8758_v16 = vadd.f32 %v6212_v38, %v11462_v56  ;;  %v7116_v34 = vpop.f32.mrb[130].mxu1  ;;  %v6214_v9 = vpop.f32.mrb[131].mxu0  ;;  %v7191_v10 = vmax.f32 %v8756_v4, 0.0 }
 0x444   :  { %v8790_v17 = vadd.f32 %v7116_v34, %v11465_v62  ;;  %v8759_v35 = vadd.f32 %v6214_v9, %v11468_v49  ;;  %v7118_v32 = vpop.f32.mrb[131].mxu1  ;;  %v7193_v55 = vmax.f32 %v8788_v45, 0.0  ;;  %v7192_v13 = vmax.f32 %v8757_v0, 0.0 }
 0x445   :  { %v7195_v52 = vmax.f32 %v8758_v16, 0.0  ;;  %v8791_v25 = vadd.f32 %v7118_v32, %v11471_v8  ;;  %v7194_v41 = vmax.f32 %v8789_v30, 0.0 }
 0x446   :  { %v7197_v18 = vmax.f32 %v8790_v17, 0.0  ;;  %v7196_v40 = vmax.f32 %v8759_v35, 0.0 }
 0x447   :  { %v7255_v20 = vpack.c.bf16 %v7195_v52, %v7191_v10  ;;  %v7198_v47 = vmax.f32 %v8791_v25, 0.0 }
 0x448   :  { %v7257_v36 = vpack.c.bf16 %v7197_v18, %v7193_v55  ;;  %v7256_v37 = vpack.c.bf16 %v7196_v40, %v7192_v13  ;;  %v6218_v21 = vpop.f32.mrb[132].mxu0 }
 0x449   :  { %v7258_v23 = vpack.c.bf16 %v7198_v47, %v7194_v41  ;;  %v8760_v11 = vadd.f32 %v6218_v21, %v11462_v56  ;;  %v7122_v61 = vpop.f32.mrb[132].mxu1  ;;  %v6220_v53 = vpop.f32.mrb[133].mxu0 }
 0x44a   :  { %v8792_v5 = vadd.f32 %v7122_v61, %v11465_v62  ;;  %v8761_v6 = vadd.f32 %v6220_v53, %v11468_v49  ;;  %v7124_v48 = vpop.f32.mrb[133].mxu1  ;;  %v6222_v60 = vpop.f32.mrb[134].mxu0  ;;  %7582 = vmatprep.mubr.bf16.mxu0 %v7256_v37 }
 0x44b   :  { %v8793_v33 = vadd.f32 %v7124_v48, %v11471_v8  ;;  %v8762_v15 = vadd.f32 %v6222_v60, %v11462_v56  ;;  %v7126_v63 = vpop.f32.mrb[134].mxu1  ;;  %7679 = vmatprep.mubr.bf16.mxu1 %v7258_v23  ;;  %v6224_v31 = vpop.f32.mrb[135].mxu0  ;;  %7583 = vmatmul.mubr.bf16.vlgmr.msra.gmra.mrb[160].mxu0 %v7255_v20  ;;  %v7199_v51 = vmax.f32 %v8760_v11, 0.0 }
 0x44c   :  { %v8794_v7 = vadd.f32 %v7126_v63, %v11465_v62  ;;  %v8763_v54 = vadd.f32 %v6224_v31, %v11468_v49  ;;  %v7128_v57 = vpop.f32.mrb[135].mxu1  ;;  %7680 = vmatmul.mubr.bf16.vlgmr.msra.gmra.mrb[160].mxu1 %v7257_v36  ;;  %v7201_v46 = vmax.f32 %v8792_v5, 0.0  ;;  %v7200_v58 = vmax.f32 %v8761_v6, 0.0 }
 0x44d   :  { %v7203_v28 = vmax.f32 %v8762_v15, 0.0  ;;  %v8795_v27 = vadd.f32 %v7128_v57, %v11471_v8  ;;  %v7202_v14 = vmax.f32 %v8793_v33, 0.0 }
 0x44e   :  { %v7205_v42 = vmax.f32 %v8794_v7, 0.0  ;;  %v7204_v12 = vmax.f32 %v8763_v54, 0.0 }
 0x44f   :  { %v7259_v50 = vpack.c.bf16 %v7203_v28, %v7199_v51  ;;  %v7206_v29 = vmax.f32 %v8795_v27, 0.0 }
 0x450   :  { %v7261_v24 = vpack.c.bf16 %v7205_v42, %v7201_v46  ;;  %v7260_v2 = vpack.c.bf16 %v7204_v12, %v7200_v58  ;;  %v6228_v22 = vpop.f32.mrb[136].mxu0 }
 0x451   :  { %v7262_v3 = vpack.c.bf16 %v7206_v29, %v7202_v14  ;;  %v8764_v59 = vadd.f32 %v6228_v22, %v11462_v56  ;;  %v7132_v19 = vpop.f32.mrb[136].mxu1  ;;  %v6230_v26 = vpop.f32.mrb[137].mxu0 }
 0x452   :  { %v8796_v4 = vadd.f32 %v7132_v19, %v11465_v62  ;;  %v8765_v1 = vadd.f32 %v6230_v26, %v11468_v49  ;;  %v7134_v44 = vpop.f32.mrb[137].mxu1  ;;  %v6232_v45 = vpop.f32.mrb[138].mxu0  ;;  %7590 = vmatprep.mubr.bf16.mxu0 %v7260_v2 }
 0x453   :  { %v8797_v0 = vadd.f32 %v7134_v44, %v11471_v8  ;;  %v8766_v39 = vadd.f32 %v6232_v45, %v11462_v56  ;;  %v7136_v38 = vpop.f32.mrb[138].mxu1  ;;  %7687 = vmatprep.mubr.bf16.mxu1 %v7262_v3  ;;  %v6234_v30 = vpop.f32.mrb[139].mxu0  ;;  %7591 = vmatmul.mubr.bf16.gmra.mrb[164].mxu0 %v7259_v50  ;;  %v7207_v17 = vmax.f32 %v8764_v59, 0.0 }
 0x454   :  { %v8798_v16 = vadd.f32 %v7136_v38, %v11465_v62  ;;  %v8767_v34 = vadd.f32 %v6234_v30, %v11468_v49  ;;  %v7138_v9 = vpop.f32.mrb[139].mxu1  ;;  %7688 = vmatmul.mubr.bf16.gmra.mrb[164].mxu1 %v7261_v24  ;;  %v7209_v10 = vmax.f32 %v8796_v4, 0.0  ;;  %v7208_v52 = vmax.f32 %v8765_v1, 0.0 }
 0x455   :  { %v7211_v35 = vmax.f32 %v8766_v39, 0.0  ;;  %v8799_v32 = vadd.f32 %v7138_v9, %v11471_v8  ;;  %v7210_v13 = vmax.f32 %v8797_v0, 0.0 }
 0x456   :  { %v7213_v25 = vmax.f32 %v8798_v16, 0.0  ;;  %v7212_v55 = vmax.f32 %v8767_v34, 0.0 }
 0x457   :  { %v7263_v18 = vpack.c.bf16 %v7211_v35, %v7207_v17  ;;  %v7214_v40 = vmax.f32 %v8799_v32, 0.0 }
 0x458   :  { %v7265_v41 = vpack.c.bf16 %v7213_v25, %v7209_v10  ;;  %v7264_v20 = vpack.c.bf16 %v7212_v55, %v7208_v52  ;;  %v6238_v47 = vpop.f32.mrb[140].mxu0 }
 0x459   :  { %v7266_v36 = vpack.c.bf16 %v7214_v40, %v7210_v13  ;;  %v8768_v37 = vadd.f32 %v6238_v47, %v11462_v56  ;;  %v7142_v21 = vpop.f32.mrb[140].mxu1  ;;  %v6240_v23 = vpop.f32.mrb[141].mxu0 }
 0x45a   :  { %v8800_v11 = vadd.f32 %v7142_v21, %v11465_v62  ;;  %v8769_v61 = vadd.f32 %v6240_v23, %v11468_v49  ;;  %v7144_v53 = vpop.f32.mrb[141].mxu1  ;;  %v6242_v5 = vpop.f32.mrb[142].mxu0  ;;  %7598 = vmatprep.mubr.bf16.mxu0 %v7264_v20 }
 0x45b   :  { %v8801_v6 = vadd.f32 %v7144_v53, %v11471_v8  ;;  %v8770_v48 = vadd.f32 %v6242_v5, %v11462_v56  ;;  %v7146_v60 = vpop.f32.mrb[142].mxu1  ;;  %7695 = vmatprep.mubr.bf16.mxu1 %v7266_v36  ;;  %v6244_v33 = vpop.f32.mrb[143].mxu0  ;;  %7599 = vmatmul.mubr.bf16.gmra.mrb[168].mxu0 %v7263_v18  ;;  %v7215_v7 = vmax.f32 %v8768_v37, 0.0 }
 0x45c   :  { %v8802_v15 = vadd.f32 %v7146_v60, %v11465_v62  ;;  %v8771_v63 = vadd.f32 %v6244_v33, %v11468_v49  ;;  %v7148_v31 = vpop.f32.mrb[143].mxu1  ;;  %7696 = vmatmul.mubr.bf16.gmra.mrb[168].mxu1 %v7265_v41  ;;  %v7217_v51 = vmax.f32 %v8800_v11, 0.0  ;;  %v7216_v28 = vmax.f32 %v8769_v61, 0.0 }
 0x45d   :  { %v7219_v54 = vmax.f32 %v8770_v48, 0.0  ;;  %v8803_v57 = vadd.f32 %v7148_v31, %v11471_v8  ;;  %v7218_v58 = vmax.f32 %v8801_v6, 0.0 }
 0x45e   :  { %v7221_v27 = vmax.f32 %v8802_v15, 0.0  ;;  %v7220_v46 = vmax.f32 %v8771_v63, 0.0 }
 0x45f   :  { %v7267_v42 = vpack.c.bf16 %v7219_v54, %v7215_v7  ;;  %v7222_v12 = vmax.f32 %v8803_v57, 0.0 }
 0x460   :  { %v7269_v14 = vpack.c.bf16 %v7221_v27, %v7217_v51  ;;  %v7268_v50 = vpack.c.bf16 %v7220_v46, %v7216_v28  ;;  %v6248_v29 = vpop.f32.mrb[144].mxu0 }
 0x461   :  { %v7270_v24 = vpack.c.bf16 %v7222_v12, %v7218_v58  ;;  %v8772_v2 = vadd.f32 %v6248_v29, %v11462_v56  ;;  %v7152_v22 = vpop.f32.mrb[144].mxu1  ;;  %v6250_v3 = vpop.f32.mrb[145].mxu0 }
 0x462   :  { %v8804_v59 = vadd.f32 %v7152_v22, %v11465_v62  ;;  %v8773_v19 = vadd.f32 %v6250_v3, %v11468_v49  ;;  %v7154_v26 = vpop.f32.mrb[145].mxu1  ;;  %v6252_v4 = vpop.f32.mrb[146].mxu0  ;;  %7606 = vmatprep.mubr.bf16.mxu0 %v7268_v50 }
 0x463   :  { %v8805_v1 = vadd.f32 %v7154_v26, %v11471_v8  ;;  %v8774_v44 = vadd.f32 %v6252_v4, %v11462_v56  ;;  %v7156_v45 = vpop.f32.mrb[146].mxu1  ;;  %7703 = vmatprep.mubr.bf16.mxu1 %v7270_v24  ;;  %v6254_v0 = vpop.f32.mrb[147].mxu0  ;;  %7607 = vmatmul.mubr.bf16.gmra.mrb[172].mxu0 %v7267_v42  ;;  %v7223_v16 = vmax.f32 %v8772_v2, 0.0 }
 0x464   :  { %v8806_v39 = vadd.f32 %v7156_v45, %v11465_v62  ;;  %v8775_v38 = vadd.f32 %v6254_v0, %v11468_v49  ;;  %v7158_v30 = vpop.f32.mrb[147].mxu1  ;;  %7704 = vmatmul.mubr.bf16.gmra.mrb[172].mxu1 %v7269_v14  ;;  %v7225_v17 = vmax.f32 %v8804_v59, 0.0  ;;  %v7224_v35 = vmax.f32 %v8773_v19, 0.0 }
 0x465   :  { %v7227_v34 = vmax.f32 %v8774_v44, 0.0  ;;  %v8807_v9 = vadd.f32 %v7158_v30, %v11471_v8  ;;  %v7226_v52 = vmax.f32 %v8805_v1, 0.0 }
 0x466   :  { %v7229_v32 = vmax.f32 %v8806_v39, 0.0  ;;  %v7228_v10 = vmax.f32 %v8775_v38, 0.0 }
 0x467   :  { %v7271_v25 = vpack.c.bf16 %v7227_v34, %v7223_v16  ;;  %v7230_v55 = vmax.f32 %v8807_v9, 0.0 }
 0x468   :  { %v7273_v13 = vpack.c.bf16 %v7229_v32, %v7225_v17  ;;  %v7272_v18 = vpack.c.bf16 %v7228_v10, %v7224_v35  ;;  %v6258_v40 = vpop.f32.mrb[148].mxu0 }
 0x469   :  { %v7274_v41 = vpack.c.bf16 %v7230_v55, %v7226_v52  ;;  %v8776_v20 = vadd.f32 %v6258_v40, %v11462_v56  ;;  %v7162_v47 = vpop.f32.mrb[148].mxu1  ;;  %v6260_v36 = vpop.f32.mrb[149].mxu0 }
 0x46a   :  { %v8808_v37 = vadd.f32 %v7162_v47, %v11465_v62  ;;  %v8777_v21 = vadd.f32 %v6260_v36, %v11468_v49  ;;  %v7164_v23 = vpop.f32.mrb[149].mxu1  ;;  %v6262_v11 = vpop.f32.mrb[150].mxu0  ;;  %7614 = vmatprep.mubr.bf16.mxu0 %v7272_v18 }
 0x46b   :  { %v8809_v61 = vadd.f32 %v7164_v23, %v11471_v8  ;;  %v8778_v53 = vadd.f32 %v6262_v11, %v11462_v56  ;;  %v7166_v5 = vpop.f32.mrb[150].mxu1  ;;  %7711 = vmatprep.mubr.bf16.mxu1 %v7274_v41  ;;  %v6264_v6 = vpop.f32.mrb[151].mxu0  ;;  %7615 = vmatmul.mubr.bf16.gmra.mrb[176].mxu0 %v7271_v25  ;;  %v7231_v15 = vmax.f32 %v8776_v20, 0.0 }
 0x46c   :  { %v8810_v48 = vadd.f32 %v7166_v5, %v11465_v62  ;;  %v8779_v60 = vadd.f32 %v6264_v6, %v11468_v49  ;;  %v7168_v33 = vpop.f32.mrb[151].mxu1  ;;  %7712 = vmatmul.mubr.bf16.gmra.mrb[176].mxu1 %v7273_v13  ;;  %v7233_v7 = vmax.f32 %v8808_v37, 0.0  ;;  %v7232_v54 = vmax.f32 %v8777_v21, 0.0 }
 0x46d   :  { %v7235_v63 = vmax.f32 %v8778_v53, 0.0  ;;  %v8811_v31 = vadd.f32 %v7168_v33, %v11471_v8  ;;  %v7234_v28 = vmax.f32 %v8809_v61, 0.0 }
 0x46e   :  { %v7237_v57 = vmax.f32 %v8810_v48, 0.0  ;;  %v7236_v51 = vmax.f32 %v8779_v60, 0.0 }
 0x46f   :  { %v7275_v27 = vpack.c.bf16 %v7235_v63, %v7231_v15  ;;  %v7238_v46 = vmax.f32 %v8811_v31, 0.0 }
 0x470   :  { %v7277_v58 = vpack.c.bf16 %v7237_v57, %v7233_v7  ;;  %v7276_v42 = vpack.c.bf16 %v7236_v51, %v7232_v54  ;;  %v6268_v12 = vpop.f32.mrb[152].mxu0 }
 0x471   :  { %v7278_v14 = vpack.c.bf16 %v7238_v46, %v7234_v28  ;;  %v8780_v50 = vadd.f32 %v6268_v12, %v11462_v56  ;;  %v7172_v29 = vpop.f32.mrb[152].mxu1  ;;  %v6270_v24 = vpop.f32.mrb[153].mxu0  ;;  %v7801_v46 = vld [vmem:[%s11606_s7 + $0x48] sm:$0xff]  ;;  %v7804_v12 = vld [vmem:[%s11606_s7 + $0x60] sm:$0xff] }
 0x472   :  { %v8812_v2 = vadd.f32 %v7172_v29, %v11465_v62  ;;  %v8781_v22 = vadd.f32 %v6270_v24, %v11468_v49  ;;  %v7174_v3 = vpop.f32.mrb[153].mxu1  ;;  %v6272_v59 = vpop.f32.mrb[154].mxu0  ;;  %7622 = vmatprep.mubr.bf16.mxu0 %v7276_v42  ;;  %v7803_v42 = vld [vmem:[%s11606_s7 + $0x58] sm:$0xff] }
 0x473   :  { %v8813_v19 = vadd.f32 %v7174_v3, %v11471_v8  ;;  %v8782_v26 = vadd.f32 %v6272_v59, %v11462_v56  ;;  %v7176_v4 = vpop.f32.mrb[154].mxu1  ;;  %7719 = vmatprep.mubr.bf16.mxu1 %v7278_v14  ;;  %v6274_v1 = vpop.f32.mrb[155].mxu0  ;;  %7623 = vmatmul.mubr.bf16.gmra.mrb[180].mxu0 %v7275_v27  ;;  %v7239_v39 = vmax.f32 %v8780_v50, 0.0  ;;  %v7805_v14 = vld [vmem:[%s11606_s7 + $0x68] sm:$0xff]  ;;  %v7806_v50 = vld [vmem:[%s11606_s7 + $0x70] sm:$0xff]  ;;  %v7807_v29 = vld [vmem:[%s11606_s7 + $0x78] sm:$0xff] }
 0x474   :  { %v8814_v44 = vadd.f32 %v7176_v4, %v11465_v62  ;;  %v8783_v45 = vadd.f32 %v6274_v1, %v11468_v49  ;;  %v7178_v0 = vpop.f32.mrb[155].mxu1  ;;  %7720 = vmatmul.mubr.bf16.gmra.mrb[180].mxu1 %v7277_v58  ;;  %v7241_v16 = vmax.f32 %v8812_v2, 0.0  ;;  %v7240_v34 = vmax.f32 %v8781_v22, 0.0  ;;  %v7802_v58 = vld [vmem:[%s11606_s7 + $0x50] sm:$0xff] }
 0x475   :  { %v7243_v38 = vmax.f32 %v8782_v26, 0.0  ;;  %v8815_v30 = vadd.f32 %v7178_v0, %v11471_v8  ;;  %v7242_v35 = vmax.f32 %v8813_v19, 0.0  ;;  %v11567_v3 = vld [vmem:[#allocation14] ss:$0 sm:$0xff] }
 0x476   :  { %v7245_v9 = vmax.f32 %v8814_v44, 0.0  ;;  %v7244_v17 = vmax.f32 %v8783_v45, 0.0 }
 0x477   :  { %v7279_v32 = vpack.c.bf16 %v7243_v38, %v7239_v39  ;;  %v7246_v10 = vmax.f32 %v8815_v30, 0.0 }
 0x478   :  { %v7281_v52 = vpack.c.bf16 %v7245_v9, %v7241_v16  ;;  %v7280_v25 = vpack.c.bf16 %v7244_v17, %v7240_v34  ;;  %v6278_v55 = vpop.f32.mrb[156].mxu0 }
 0x479   :  { %v7282_v13 = vpack.c.bf16 %v7246_v10, %v7242_v35  ;;  %v8784_v18 = vadd.f32 %v6278_v55, %v11462_v56  ;;  %v7182_v40 = vpop.f32.mrb[156].mxu1  ;;  %v6280_v41 = vpop.f32.mrb[157].mxu0 }
 0x47a   :  { %v8816_v20 = vadd.f32 %v7182_v40, %v11465_v62  ;;  %v8785_v47 = vadd.f32 %v6280_v41, %v11468_v49  ;;  %v7184_v36 = vpop.f32.mrb[157].mxu1  ;;  %v6282_v37 = vpop.f32.mrb[158].mxu0  ;;  %7630 = vmatprep.mubr.bf16.mxu0 %v7280_v25 }
 0x47b   :  { %v8817_v21 = vadd.f32 %v7184_v36, %v11471_v8  ;;  %v8786_v23 = vadd.f32 %v6282_v37, %v11462_v56  ;;  %v7186_v11 = vpop.f32.mrb[158].mxu1  ;;  %7727 = vmatprep.mubr.bf16.mxu1 %v7282_v13  ;;  %v6284_v61 = vpop.f32.mrb[159].mxu0  ;;  %7631 = vmatmul.mubr.bf16.gmra.mrb[184].mxu0 %v7279_v32  ;;  %v7247_v48 = vmax.f32 %v8784_v18, 0.0 }
 0x47c   :  { %v8818_v53 = vadd.f32 %v7186_v11, %v11465_v62  ;;  %v8787_v5 = vadd.f32 %v6284_v61, %v11468_v49  ;;  %v7188_v6 = vpop.f32.mrb[159].mxu1  ;;  %7728 = vmatmul.mubr.bf16.gmra.mrb[184].mxu1 %v7281_v52  ;;  %v7249_v15 = vmax.f32 %v8816_v20, 0.0  ;;  %v7248_v63 = vmax.f32 %v8785_v47, 0.0  ;;  %v7798_v62 = vld [vmem:[%s11606_s7 + $0x30] sm:$0xff]  ;;  %v7799_v49 = vld [vmem:[%s11606_s7 + $0x38] sm:$0xff] }
 0x47d   :  { %v7251_v60 = vmax.f32 %v8786_v23, 0.0  ;;  %v8819_v33 = vadd.f32 %v7188_v6, %v11471_v8  ;;  %v7250_v54 = vmax.f32 %v8817_v21, 0.0  ;;  %7840 = vperm.xlu1 %9284, %v7798_v62   ;;  %v7800_v8 = vld [vmem:[%s11606_s7 + $0x40] sm:$0xff]  ;;  %s10287_s7 = smov [#allocation15]  }
 0x47e   :  { %v7253_v31 = vmax.f32 %v8818_v53, 0.0  ;;  %v7252_v7 = vmax.f32 %v8787_v5, 0.0  ;;  %s7943_s0 = sshll.u32 %s10287_s7, 4  ;;  %s7944_s0 = int_to_ptr.vmem [resolvable:$true] %s7943_s0 }
 0x47f   :  { %v7283_v56 = vpack.c.bf16 %v7251_v60, %v7247_v48  ;;  %v7254_v57 = vmax.f32 %v8819_v33, 0.0  ;;  %s10240_s19 = scalar_lea.vmem %s7944_s0, 16  ;;  %s10244_s29 = scalar_lea.vmem %s7944_s0, 32 }
 0x480   :  { %v7285_v51 = vpack.c.bf16 %v7253_v31, %v7249_v15  ;;  %v7284_v28 = vpack.c.bf16 %v7252_v7, %v7248_v63  ;;  %p10241_p0 = scmp.ne.s32.totalorder %s7944_s0, %s10240_s19  ;;  %p10245_p1 = scmp.lt.s32.totalorder %s7944_s0, %s7944_s0 }
 0x481   :  { %v7286_v27 = vpack.c.bf16 %v7254_v57, %v7250_v54  ;;  %7845 = vperm.xlu1 %9284, %v7799_v49   ;;  %p10246_p2 = scmp.lt.s32.totalorder %s10244_s29, %s10240_s19 }
 0x482   :  { %7638 = vmatprep.mubr.bf16.mxu0 %v7284_v28 }
 0x483   :  { %7735 = vmatprep.mubr.bf16.mxu1 %v7286_v27  ;;  %7639 = vmatmul.mubr.bf16.gmra.mrb[188].mxu0 %v7283_v56  ;;  %p10247_p3 = por %p10246_p2, %p10245_p1 }
 0x484   :  { %7736 = vmatmul.mubr.bf16.gmra.mrb[188].mxu1 %v7285_v51 }
 0x485   :  { %7850 = vperm.xlu1 %9284, %v7800_v8   ;;  %p10248_p4 = pnand %p10247_p3, %p10241_p0 }
 0x489   :  { %7855 = vperm.xlu1 %9284, %v7801_v46  }
 0x48d   :  { %7860 = vperm.xlu1 %9284, %v7802_v58  }
 0x491   :  { %7865 = vperm.xlu1 %9284, %v7803_v42  }
 0x495   :  { %7870 = vperm.xlu1 %9284, %v7804_v12  }
 0x499   :  { %7875 = vperm.xlu1 %9284, %v7805_v14  }
 0x49d   :  { %7880 = vperm.xlu1 %9284, %v7806_v50  }
 0x4a1   :  { %7885 = vperm.xlu1 %9284, %v7807_v29  }
 0x51e   :  { %v8644_v24 = vpop.f32.mrb[160].mxu0 }
 0x51f   :  { %v8708_v2 = vpop.f32.mrb[160].mxu1  ;;  %v8645_v22 = vpop.f32.mrb[161].mxu0 }
 0x520   :  { %v8646_v59 = vadd.f32 %v8645_v22, %v8644_v24  ;;  %v8709_v19 = vpop.f32.mrb[161].mxu1  ;;  %v8647_v26 = vpop.f32.mrb[162].mxu0 }
 0x521   :  { %v8710_v4 = vadd.f32 %v8709_v19, %v8708_v2  ;;  %v8711_v1 = vpop.f32.mrb[162].mxu1  ;;  %v8648_v44 = vpop.f32.mrb[163].mxu0 }
 0x522   :  { %v8649_v45 = vadd.f32 %v8648_v44, %v8647_v26  ;;  %v8712_v0 = vpop.f32.mrb[163].mxu1  ;;  %v7585_v39 = vadd.f32 %v8646_v59, %v11567_v3 }
 0x523   :  { %v8713_v38 = vadd.f32 %v8712_v0, %v8711_v1 }
 0x524   :  { %v7588_v30 = vadd.f32 %v8649_v45, %v11567_v3  ;;  %v7682_v16 = vadd.f32 %v8710_v4, %v7585_v39 }
 0x526   :  { %v8650_v34 = vpop.f32.mrb[164].mxu0  ;;  %v7744_v9 = vmax.f32 %v7682_v16, 0.0  ;;  %v7685_v17 = vadd.f32 %v8713_v38, %v7588_v30 }
 0x527   :  { %v8714_v35 = vpop.f32.mrb[164].mxu1  ;;  %v8651_v32 = vpop.f32.mrb[165].mxu0 }
 0x528   :  { %v8652_v10 = vadd.f32 %v8651_v32, %v8650_v34  ;;  %v8715_v52 = vpop.f32.mrb[165].mxu1  ;;  %v8653_v25 = vpop.f32.mrb[166].mxu0  ;;  %7760 = vxpose.xlu0.b32.start [1/16] %v7744_v9, 128  ;;  %v7745_v47 = vmax.f32 %v7685_v17, 0.0 }
 0x529   :  { %v8716_v55 = vadd.f32 %v8715_v52, %v8714_v35  ;;  %v8717_v13 = vpop.f32.mrb[166].mxu1  ;;  %v8654_v18 = vpop.f32.mrb[167].mxu0 }
 0x52a   :  { %v7593_v40 = vadd.f32 %v8652_v10, %v11567_v3  ;;  %v8655_v41 = vadd.f32 %v8654_v18, %v8653_v25  ;;  %v8718_v20 = vpop.f32.mrb[167].mxu1 }
 0x52b   :  { %v8719_v36 = vadd.f32 %v8718_v20, %v8717_v13 }
 0x52c   :  { %v7596_v37 = vadd.f32 %v8655_v41, %v11567_v3  ;;  %7761 = vxpose.xlu0.b32.cont [2/16] %v7745_v47, 128  ;;  %v7690_v21 = vadd.f32 %v8716_v55, %v7593_v40 }
 0x52e   :  { %v8656_v23 = vpop.f32.mrb[168].mxu0  ;;  %v7746_v11 = vmax.f32 %v7690_v21, 0.0  ;;  %v7693_v61 = vadd.f32 %v8719_v36, %v7596_v37 }
 0x52f   :  { %v8720_v53 = vpop.f32.mrb[168].mxu1  ;;  %v8657_v5 = vpop.f32.mrb[169].mxu0 }
 0x530   :  { %v8658_v6 = vadd.f32 %v8657_v5, %v8656_v23  ;;  %v8721_v48 = vpop.f32.mrb[169].mxu1  ;;  %v8659_v60 = vpop.f32.mrb[170].mxu0  ;;  %7762 = vxpose.xlu0.b32.cont [3/16] %v7746_v11, 128  ;;  %v7747_v56 = vmax.f32 %v7693_v61, 0.0 }
 0x531   :  { %v8722_v33 = vadd.f32 %v8721_v48, %v8720_v53  ;;  %v8723_v15 = vpop.f32.mrb[170].mxu1  ;;  %v8660_v63 = vpop.f32.mrb[171].mxu0 }
 0x532   :  { %v7601_v31 = vadd.f32 %v8658_v6, %v11567_v3  ;;  %v8661_v7 = vadd.f32 %v8660_v63, %v8659_v60  ;;  %v8724_v54 = vpop.f32.mrb[171].mxu1 }
 0x533   :  { %v8725_v57 = vadd.f32 %v8724_v54, %v8723_v15 }
 0x534   :  { %v7604_v51 = vadd.f32 %v8661_v7, %v11567_v3  ;;  %7763 = vxpose.xlu0.b32.cont [4/16] %v7747_v56, 128  ;;  %v7698_v28 = vadd.f32 %v8722_v33, %v7601_v31 }
 0x536   :  { %v8662_v27 = vpop.f32.mrb[172].mxu0  ;;  %v7748_v62 = vmax.f32 %v7698_v28, 0.0  ;;  %v7701_v49 = vadd.f32 %v8725_v57, %v7604_v51 }
 0x537   :  { %v8726_v8 = vpop.f32.mrb[172].mxu1  ;;  %v8663_v46 = vpop.f32.mrb[173].mxu0 }
 0x538   :  { %v8664_v58 = vadd.f32 %v8663_v46, %v8662_v27  ;;  %v8727_v42 = vpop.f32.mrb[173].mxu1  ;;  %v8665_v12 = vpop.f32.mrb[174].mxu0  ;;  %7764 = vxpose.xlu0.b32.cont [5/16] %v7748_v62, 128  ;;  %v7749_v59 = vmax.f32 %v7701_v49, 0.0 }
 0x539   :  { %v8728_v14 = vadd.f32 %v8727_v42, %v8726_v8  ;;  %v8729_v50 = vpop.f32.mrb[174].mxu1  ;;  %v8666_v29 = vpop.f32.mrb[175].mxu0 }
 0x53a   :  { %v7609_v24 = vadd.f32 %v8664_v58, %v11567_v3  ;;  %v8667_v2 = vadd.f32 %v8666_v29, %v8665_v12  ;;  %v8730_v22 = vpop.f32.mrb[175].mxu1 }
 0x53b   :  { %v8731_v19 = vadd.f32 %v8730_v22, %v8729_v50 }
 0x53c   :  { %v7612_v26 = vadd.f32 %v8667_v2, %v11567_v3  ;;  %7765 = vxpose.xlu0.b32.cont [6/16] %v7749_v59, 128  ;;  %v7706_v4 = vadd.f32 %v8728_v14, %v7609_v24 }
 0x53e   :  { %v8668_v1 = vpop.f32.mrb[176].mxu0  ;;  %v7750_v44 = vmax.f32 %v7706_v4, 0.0  ;;  %v7709_v45 = vadd.f32 %v8731_v19, %v7612_v26 }
 0x53f   :  { %v8732_v0 = vpop.f32.mrb[176].mxu1  ;;  %v8669_v39 = vpop.f32.mrb[177].mxu0 }
 0x540   :  { %v8670_v38 = vadd.f32 %v8669_v39, %v8668_v1  ;;  %v8733_v30 = vpop.f32.mrb[177].mxu1  ;;  %v8671_v16 = vpop.f32.mrb[178].mxu0  ;;  %7766 = vxpose.xlu0.b32.cont [7/16] %v7750_v44, 128  ;;  %v7751_v52 = vmax.f32 %v7709_v45, 0.0 }
 0x541   :  { %v8734_v34 = vadd.f32 %v8733_v30, %v8732_v0  ;;  %v8735_v9 = vpop.f32.mrb[178].mxu1  ;;  %v8672_v17 = vpop.f32.mrb[179].mxu0 }
 0x542   :  { %v7617_v35 = vadd.f32 %v8670_v38, %v11567_v3  ;;  %v8673_v32 = vadd.f32 %v8672_v17, %v8671_v16  ;;  %v8736_v10 = vpop.f32.mrb[179].mxu1 }
 0x543   :  { %v8737_v25 = vadd.f32 %v8736_v10, %v8735_v9  ;;  %v7925_v10 = vld [vmem:[#allocation2] sm:$0x1] }
 0x544   :  { %v7620_v55 = vadd.f32 %v8673_v32, %v11567_v3  ;;  %7767 = vxpose.xlu0.b32.cont [8/16] %v7751_v52, 128  ;;  %v7714_v13 = vadd.f32 %v8734_v34, %v7617_v35  ;;  %v11739_v52 = vmov 0  }
 0x546   :  { %v8674_v18 = vpop.f32.mrb[180].mxu0  ;;  %v7752_v40 = vmax.f32 %v7714_v13, 0.0  ;;  %v7717_v41 = vadd.f32 %v8737_v25, %v7620_v55  ;;  %v7811_v25 = vpop.permute.xlu1 %7810 }
 0x547   :  { %v8738_v20 = vpop.f32.mrb[180].mxu1  ;;  %v8675_v47 = vpop.f32.mrb[181].mxu0 }
 0x548   :  { %v8676_v36 = vadd.f32 %v8675_v47, %v8674_v18  ;;  %v8739_v37 = vpop.f32.mrb[181].mxu1  ;;  %v8677_v21 = vpop.f32.mrb[182].mxu0  ;;  %7768 = vxpose.xlu0.b32.cont [9/16] %v7752_v40, 128  ;;  %v7753_v48 = vmax.f32 %v7717_v41, 0.0 }
 0x549   :  { %v8740_v23 = vadd.f32 %v8739_v37, %v8738_v20  ;;  %v8741_v11 = vpop.f32.mrb[182].mxu1  ;;  %v8678_v61 = vpop.f32.mrb[183].mxu0 }
 0x54a   :  { %v7625_v53 = vadd.f32 %v8676_v36, %v11567_v3  ;;  %v8679_v5 = vadd.f32 %v8678_v61, %v8677_v21  ;;  %v8742_v6 = vpop.f32.mrb[183].mxu1  ;;  %v7816_v55 = vpop.permute.xlu1 %7815 }
 0x54b   :  { %v8743_v60 = vadd.f32 %v8742_v6, %v8741_v11 }
 0x54c   :  { %v7628_v33 = vadd.f32 %v8679_v5, %v11567_v3  ;;  %7769 = vxpose.xlu0.b32.cont [10/16] %v7753_v48, 128  ;;  %v7722_v15 = vadd.f32 %v8740_v23, %v7625_v53 }
 0x54e   :  { %v8680_v63 = vpop.f32.mrb[184].mxu0  ;;  %v7754_v31 = vmax.f32 %v7722_v15, 0.0  ;;  %v7725_v7 = vadd.f32 %v8743_v60, %v7628_v33  ;;  %v7821_v13 = vpop.permute.xlu1 %7820 }
 0x54f   :  { %v8744_v54 = vpop.f32.mrb[184].mxu1  ;;  %v8681_v56 = vpop.f32.mrb[185].mxu0 }
 0x550   :  { %v8682_v57 = vadd.f32 %v8681_v56, %v8680_v63  ;;  %v8745_v51 = vpop.f32.mrb[185].mxu1  ;;  %v8683_v28 = vpop.f32.mrb[186].mxu0  ;;  %7770 = vxpose.xlu0.b32.cont [11/16] %v7754_v31, 128  ;;  %v7755_v42 = vmax.f32 %v7725_v7, 0.0 }
 0x551   :  { %v8746_v27 = vadd.f32 %v8745_v51, %v8744_v54  ;;  %v8747_v62 = vpop.f32.mrb[186].mxu1  ;;  %v8684_v49 = vpop.f32.mrb[187].mxu0 }
 0x552   :  { %v7633_v8 = vadd.f32 %v8682_v57, %v11567_v3  ;;  %v8685_v46 = vadd.f32 %v8684_v49, %v8683_v28  ;;  %v8748_v58 = vpop.f32.mrb[187].mxu1  ;;  %v7826_v40 = vpop.permute.xlu1 %7825 }
 0x553   :  { %v8749_v12 = vadd.f32 %v8748_v58, %v8747_v62 }
 0x554   :  { %v7636_v14 = vadd.f32 %v8685_v46, %v11567_v3  ;;  %7771 = vxpose.xlu0.b32.cont [12/16] %v7755_v42, 128  ;;  %v7730_v50 = vadd.f32 %v8746_v27, %v7633_v8 }
 0x556   :  { %v8686_v29 = vpop.f32.mrb[188].mxu0  ;;  %v7756_v24 = vmax.f32 %v7730_v50, 0.0  ;;  %v7733_v2 = vadd.f32 %v8749_v12, %v7636_v14  ;;  %v7831_v20 = vpop.permute.xlu1 %7830 }
 0x557   :  { %v8750_v22 = vpop.f32.mrb[188].mxu1  ;;  %v8687_v59 = vpop.f32.mrb[189].mxu0 }
 0x558   :  { %v8688_v19 = vadd.f32 %v8687_v59, %v8686_v29  ;;  %v8751_v26 = vpop.f32.mrb[189].mxu1  ;;  %v8689_v4 = vpop.f32.mrb[190].mxu0  ;;  %7772 = vxpose.xlu0.b32.cont [13/16] %v7756_v24, 128  ;;  %v7757_v30 = vmax.f32 %v7733_v2, 0.0 }
 0x559   :  { %v8752_v1 = vadd.f32 %v8751_v26, %v8750_v22  ;;  %v8753_v44 = vpop.f32.mrb[190].mxu1  ;;  %v8690_v45 = vpop.f32.mrb[191].mxu0 }
 0x55a   :  { %v7641_v0 = vadd.f32 %v8688_v19, %v11567_v3  ;;  %v8691_v39 = vadd.f32 %v8690_v45, %v8689_v4  ;;  %v8754_v38 = vpop.f32.mrb[191].mxu1  ;;  %v7836_v36 = vpop.permute.xlu1 %7835 }
 0x55b   :  { %v8755_v16 = vadd.f32 %v8754_v38, %v8753_v44 }
 0x55c   :  { %v7644_v34 = vadd.f32 %v8691_v39, %v11567_v3  ;;  %7773 = vxpose.xlu0.b32.cont [14/16] %v7757_v30, 128  ;;  %v7738_v9 = vadd.f32 %v8752_v1, %v7641_v0 }
 0x55e   :  { %v7758_v17 = vmax.f32 %v7738_v9, 0.0  ;;  %v7741_v35 = vadd.f32 %v8755_v16, %v7644_v34  ;;  %v7841_v21 = vpop.permute.xlu1 %7840 }
 0x560   :  { %7774 = vxpose.xlu0.b32.cont [15/16] %v7758_v17, 128  ;;  %v7759_v32 = vmax.f32 %v7741_v35, 0.0 }
 0x562   :  { %v7846_v61 = vpop.permute.xlu1 %7845 }
 0x564   :  { %7775 = vxpose.xlu0.b32.end [16/16] %v7759_v32, 128 }
 0x566   :  { %v7851_v5 = vpop.permute.xlu1 %7850 }
 0x56a   :  { %v7856_v15 = vpop.permute.xlu1 %7855 }
 0x56e   :  { %v7861_v57 = vpop.permute.xlu1 %7860 }
 0x572   :  { %v7866_v62 = vpop.permute.xlu1 %7865 }
 0x576   :  { %v7871_v12 = vpop.permute.xlu1 %7870 }
 0x57a   :  { %v7876_v2 = vpop.permute.xlu1 %7875 }
 0x57e   :  { %v7881_v45 = vpop.permute.xlu1 %7880 }
 0x582   :  { %v7886_v17 = vpop.permute.xlu1 %7885 }
 0x58d   :  { %9285 = vset.pattern.permute.xlu0 %v11739_v52 }
 0x58e   :  { %7928 = vperm.xlu0 %9285, %v7925_v10  }
 0x5a8   :  { %v7776_v18 = vpop.trf.xlu0 }
 0x5a9   :  { %v7888_v48 = vmul.f32 %v7811_v25, %v7776_v18 }
 0x5ac   :  { %v7777_v41 = vpop.trf.xlu0 }
 0x5ad   :  { %v7889_v60 = vmul.f32 %v7816_v55, %v7777_v41 }
 0x5af   :  { %v7904_v63 = vadd.f32 %v7889_v60, %v7888_v48 }
 0x5b0   :  { %v7778_v47 = vpop.trf.xlu0 }
 0x5b1   :  { %v7890_v31 = vmul.f32 %v7821_v13, %v7778_v47 }
 0x5b3   :  { %v7905_v54 = vadd.f32 %v7904_v63, %v7890_v31 }
 0x5b4   :  { %v7779_v3 = vpop.trf.xlu0 }
 0x5b5   :  { %v7891_v56 = vmul.f32 %v7826_v40, %v7779_v3 }
 0x5b7   :  { %v7906_v51 = vadd.f32 %v7905_v54, %v7891_v56 }
 0x5b8   :  { %v7780_v37 = vpop.trf.xlu0 }
 0x5b9   :  { %v7892_v28 = vmul.f32 %v7831_v20, %v7780_v37 }
 0x5bb   :  { %v7907_v49 = vadd.f32 %v7906_v51, %v7892_v28 }
 0x5bc   :  { %v7781_v23 = vpop.trf.xlu0 }
 0x5bd   :  { %v7893_v8 = vmul.f32 %v7836_v36, %v7781_v23 }
 0x5bf   :  { %v7908_v58 = vadd.f32 %v7907_v49, %v7893_v8 }
 0x5c0   :  { %v7782_v11 = vpop.trf.xlu0 }
 0x5c1   :  { %v7894_v42 = vmul.f32 %v7841_v21, %v7782_v11 }
 0x5c3   :  { %v7909_v14 = vadd.f32 %v7908_v58, %v7894_v42 }
 0x5c4   :  { %v7783_v53 = vpop.trf.xlu0 }
 0x5c5   :  { %v7895_v50 = vmul.f32 %v7846_v61, %v7783_v53 }
 0x5c7   :  { %v7910_v22 = vadd.f32 %v7909_v14, %v7895_v50 }
 0x5c8   :  { %v7784_v6 = vpop.trf.xlu0 }
 0x5c9   :  { %v7896_v24 = vmul.f32 %v7851_v5, %v7784_v6 }
 0x5cb   :  { %v7911_v19 = vadd.f32 %v7910_v22, %v7896_v24 }
 0x5cc   :  { %v7785_v33 = vpop.trf.xlu0 }
 0x5cd   :  { %v7897_v59 = vmul.f32 %v7856_v15, %v7785_v33 }
 0x5cf   :  { %v7912_v1 = vadd.f32 %v7911_v19, %v7897_v59 }
 0x5d0   :  { %v7786_v7 = vpop.trf.xlu0 }
 0x5d1   :  { %v7898_v26 = vmul.f32 %v7861_v57, %v7786_v7 }
 0x5d3   :  { %v7913_v0 = vadd.f32 %v7912_v1, %v7898_v26 }
 0x5d4   :  { %v7787_v27 = vpop.trf.xlu0 }
 0x5d5   :  { %v7899_v44 = vmul.f32 %v7866_v62, %v7787_v27 }
 0x5d7   :  { %v7914_v38 = vadd.f32 %v7913_v0, %v7899_v44 }
 0x5d8   :  { %v7788_v46 = vpop.trf.xlu0 }
 0x5d9   :  { %v7900_v39 = vmul.f32 %v7871_v12, %v7788_v46 }
 0x5db   :  { %v7915_v34 = vadd.f32 %v7914_v38, %v7900_v39 }
 0x5dc   :  { %v7789_v29 = vpop.trf.xlu0 }
 0x5dd   :  { %v7901_v30 = vmul.f32 %v7876_v2, %v7789_v29 }
 0x5df   :  { %v7916_v35 = vadd.f32 %v7915_v34, %v7901_v30 }
 0x5e0   :  { %v7790_v4 = vpop.trf.xlu0 }
 0x5e1   :  { %v7902_v9 = vmul.f32 %v7881_v45, %v7790_v4 }
 0x5e3   :  { %v7917_v10 = vadd.f32 %v7916_v35, %v7902_v9 }
 0x5e4   :  { %v7791_v16 = vpop.trf.xlu0 }
 0x5e5   :  { %v7903_v32 = vmul.f32 %v7886_v17, %v7791_v16 }
 0x5e7   :  { %v7918_v52 = vadd.f32 %v7917_v10, %v7903_v32 }
 0x5e9   :  { %v7919_v25 = vrot.slane %v7918_v52, 4 }
 0x5eb   :  { %v7920_v55 = vadd.f32 %v7919_v25, %v7918_v52 }
 0x5ed   :  { %v7921_v13 = vrot.slane %v7920_v55, 2 }
 0x5ef   :  { %v7922_v18 = vadd.f32 %v7921_v13, %v7920_v55 }
 0x5f1   :  { %v7923_v40 = vrot.slane %v7922_v18, 1 }
 0x5f3   :  { %v7924_v20 = vadd.f32 %v7923_v40, %v7922_v18 }
 0x60d   :  { %v7929_v41 = vpop.permute.xlu0 %7928 }
 0x60e   :  { %v7934_v47 = vrot.slane %v7929_v41, %v11735_v43 }
 0x610   :  { %v7935_v3 = vadd.f32 %v7934_v47, %v7924_v20 }
 0x612   :  { %7936 = vst [vmem:[#allocation15] sm:$0x1] %v7935_v3 }
 0x613   :  { %10251 = shalt.err (!%p10248_p4)
}
 0x614   :  { %s10252_s11 = scalar_lea.hbm %s11608_s9, 16 }
 0x615   :  { %p10253_p5 = scmp.ne.s32.totalorder %s11608_s9, %s10252_s11  ;;  %p10256_p6 = scmp.lt.u32.totalorder %s10252_s11, %s11608_s9 }
 0x617   :  { %p10258_p7 = pnand %p10256_p6, %p10253_p5 }
 0x619   :  { %10261 = shalt.err (!%p10258_p7)
}
 0x61a   :  { %7946 = dma.vmem_to_hbm [thread:$0]  %s7944_s0, 16, %s11608_s9, [#allocation5]  }
 0x61b   :  { %10270 = dma.done.wait [#allocation5], 16  }
 0x61c   :  { %10271 = vsyncadd [#allocation5], 4294967280 }
 0x61d   :  { %7950 = vsyncpa [#allocation4], 1 }
 0x61e   :  { %7951 = vsyncpa [#allocation7], 1 }
 0x61f   :  { %7952 = vsyncpa [#allocation10], 1 }
 0x620   :  { %7953 = vsyncpa [#allocation13], 1 }
 0x621   :  { %7954 = vsyncpa [#allocation5], 1 }

</bundles_post_ra>
